<compile_context>
chip_gen: v5e
topology: v5e:2x2
jax: 0.10.0
libtpu: 0.0.40
codegen_flags: <defaults>
</compile_context>

<pallas_src>
import functools

import numpy as np
import jax
import jax.numpy as jnp
from jax import lax
from jax.experimental import pallas as pl
from jax.experimental.pallas import tpu as pltpu


# ------------------------------- fused kernel -------------------------------

def _fused_kernel(x_ref, p1_ref, m1_ref, b1_ref, p2_ref, m2_ref, b2_ref,
                  p3_ref, m3_ref, b3_ref, w1_ref, fb1_ref, w2_ref, fb2_ref,
                  o_ref, *, b_img, hp1, hp2, hp3):
    """Whole CnnModel forward for one block of `b_img` images, in VMEM."""
    f32 = jnp.float32

    def conv_stage(act, p_ref_, m_ref_, bias_ref_, rows, h_stride):
        # 3x3 conv + ReLU + 2x2/2 max-pool as matmuls:
        #   xh     = P @ act                      (H taps + H pad + pool rows)
        #   acc_dh = sum_kh xh[phase] @ M[kh]     (W taps/stride/pad/pool cols)
        #   out    = relu(max_{dh,dw} acc_dh[:, dw-half] + bias)
        # TODO(synk): the H-phase selection is a tiny 0/1 MXU matmul; strided
        # sublane reads (pl.ds(..., stride=...)) would free those MXU cycles
        # but lower less reliably, so the robust matmul form is kept.
        xh = jnp.dot(p_ref_[...], act, preferred_element_type=f32)
        half = m_ref_.shape[-1] // 2
        pooled = None
        for dh in range(2):
            acc = None
            for kh in range(3):
                s = h_stride * dh + kh
                t = jnp.dot(xh[s * rows:(s + 1) * rows, :], m_ref_[kh],
                            preferred_element_type=f32)
                acc = t if acc is None else acc + t
            for dw in range(2):
                y = acc[:, dw * half:(dw + 1) * half]
                pooled = y if pooled is None else jnp.maximum(pooled, y)
        return jnp.maximum(pooled + bias_ref_[...], 0.0)

    # conv1/conv2 rows ordered (img, h); conv3 rows ordered (h, img).
    z1 = conv_stage(x_ref[...], p1_ref, m1_ref, b1_ref, hp1 * b_img, 2)
    z2 = conv_stage(z1, p2_ref, m2_ref, b2_ref, hp2 * b_img, 1)
    z3 = conv_stage(z2, p3_ref, m3_ref, b3_ref, hp3 * b_img, 1)

    # flatten (torch (C,H,W) order pre-folded into w1_ref) + fc1/ReLU/fc2/sigmoid
    feat = jnp.concatenate(
        [z3[h * b_img:(h + 1) * b_img, :] for h in range(hp3)], axis=1)
    hid = jnp.maximum(
        jnp.dot(feat, w1_ref[...], preferred_element_type=f32) + fb1_ref[...],
        0.0)
    logits = jnp.dot(hid, w2_ref[...], preferred_element_type=f32) + fb2_ref[...]
    o_ref[...] = jax.nn.sigmoid(logits)


# ----------------------------- pallas_call wrapper ---------------------------

def _const_spec(a):
    if a.ndim == 2:
        return pl.BlockSpec(a.shape, lambda i: (0, 0))
    return pl.BlockSpec(a.shape, lambda i: (0, 0, 0))


def _fused_call(x_rows, consts, *, n_imgs, b_img, hin, win_cin, hp1, hp2, hp3):
    (p1, m1, b1, p2, m2, b2, p3, m3, b3, w1p, fb1, w2, fb2) = consts
    n_blocks = n_imgs // b_img

    def mm(a, b, c):
        return 2 * a * b * c
    per_block = (
        mm(p1.shape[0], p1.shape[1], win_cin)
        + 6 * mm(hp1 * b_img, m1.shape[1], m1.shape[2])
        + mm(p2.shape[0], p2.shape[1], m1.shape[2] // 2)
        + 6 * mm(hp2 * b_img, m2.shape[1], m2.shape[2])
        + mm(p3.shape[0], p3.shape[1], m2.shape[2] // 2)
        + 6 * mm(hp3 * b_img, m3.shape[1], m3.shape[2])
        + mm(b_img, w1p.shape[0], w1p.shape[1])
        + mm(b_img, w2.shape[0], w2.shape[1]))
    bytes_acc = int(x_rows.size * 4 + sum(int(c.size) * 4 for c in consts)
                    + n_imgs * 3 * 4)

    kernel = functools.partial(_fused_kernel, b_img=b_img,
                               hp1=hp1, hp2=hp2, hp3=hp3)
    out = pl.pallas_call(
        kernel,
        grid=(n_blocks,),
        in_specs=[pl.BlockSpec((b_img * hin, win_cin), lambda i: (i, 0))]
                 + [_const_spec(c) for c in consts],
        out_specs=pl.BlockSpec((None, b_img, 3), lambda i: (i, 0, 0)),
        out_shape=jax.ShapeDtypeStruct((n_blocks, b_img, 3), jnp.float32),
        compiler_params=pltpu.CompilerParams(dimension_semantics=("parallel",)),
        cost_estimate=pl.CostEstimate(flops=int(per_block * n_blocks),
                                      transcendentals=3 * n_imgs,
                                      bytes_accessed=bytes_acc),
    )(x_rows, *consts)
    return out.reshape(n_imgs, 3)


# --------------------------- constant-folding helpers ------------------------

def _h_select(hin, hp, conv_stride, b_img, hb_order=False):
    """0/1 selection folding conv H taps, H zero padding, 2x2-pool row phase
    and the image block into one matrix.

    Output row (s, b, i) [or (s, i, b) if hb_order] selects input row
    b*hin + 2*conv_stride*i + s - 1, with s = conv_stride*dh + kh;
    out-of-range rows (conv zero padding) select nothing.
    """
    n_phases = conv_stride + 3
    shape = ((n_phases, hp, b_img, b_img * hin) if hb_order
             else (n_phases, b_img, hp, b_img * hin))
    sel = np.zeros(shape, np.float32)
    for s in range(n_phases):
        for b in range(b_img):
            for i in range(hp):
                h = 2 * conv_stride * i + s - 1
                if 0 <= h < hin:
                    if hb_order:
                        sel[s, i, b, b * hin + h] = 1.0
                    else:
                        sel[s, b, i, b * hin + h] = 1.0
    return jnp.asarray(sel.reshape(n_phases * hp * b_img, b_img * hin))


def _fold_conv_w(w_conv, win, wp):
    """Fold W taps, W stride 2, W zero padding and pool column phase into the
    conv weight: (Cout, Cin, 3, 3) -> (3, Win*Cin, 2*Wp*Cout), indexed
    [kh, w*Cin + ci, dw*(Wp*Cout) + p*Cout + co]."""
    cout, cin = int(w_conv.shape[0]), int(w_conv.shape[1])
    sel = np.zeros((3, 2, win, wp), np.float32)
    for kw in range(3):
        for dw in range(2):
            for p in range(wp):
                w_in = 2 * (2 * p + dw) + kw - 1
                if 0 <= w_in < win:
                    sel[kw, dw, w_in, p] = 1.0
    m = jnp.einsum('adwp,oiha->hwidpo', jnp.asarray(sel),
                   w_conv.astype(jnp.float32),
                   precision=jax.lax.Precision.HIGHEST)
    return m.reshape(3, win * cin, 2 * wp * cout)


# --------------------------------- model glue --------------------------------

def init_params(key, input_channels=2, context_measures=0,
                conv1_channels=15, conv2_channels=15, conv3_channels=10,
                hidden=15):
    total_measures = 1 + context_measures * 2
    ks = jax.random.split(key, 10)
    f32 = jnp.float32
    return {
        "conv1_w": 0.1 * jax.random.normal(ks[0], (conv1_channels, input_channels, 3, 3), f32),
        "conv1_b": 0.01 * jax.random.normal(ks[1], (conv1_channels,), f32),
        "conv2_w": 0.1 * jax.random.normal(ks[2], (conv2_channels, conv1_channels, 3, 3), f32),
        "conv2_b": 0.01 * jax.random.normal(ks[3], (conv2_channels,), f32),
        "conv3_w": 0.1 * jax.random.normal(ks[4], (conv3_channels, conv2_channels, 3, 3), f32),
        "conv3_b": 0.01 * jax.random.normal(ks[5], (conv3_channels,), f32),
        "fc1_w": 0.1 * jax.random.normal(ks[6], (12 * conv3_channels * total_measures, hidden), f32),
        "fc1_b": 0.01 * jax.random.normal(ks[7], (hidden,), f32),
        "fc2_w": 0.1 * jax.random.normal(ks[8], (hidden, 3), f32),
        "fc2_b": 0.01 * jax.random.normal(ks[9], (3,), f32),
    }


def cnn_forward(params, x_nchw, block_images=None):
    """Forward pass of CnnModel.  x_nchw: (N, Cin, 96*total_measures, 128)."""
    n, cin, hin, win = (int(d) for d in x_nchw.shape)
    c1 = int(params["conv1_w"].shape[0])
    c2 = int(params["conv2_w"].shape[0])
    c3 = int(params["conv3_w"].shape[0])
    hp1, wp1 = hin // 4, win // 4          # conv1+pool output (24*T, 32)
    hp2, wp2 = hp1 // 2, wp1 // 4          # conv2+pool output (12*T, 8)
    hp3, wp3 = hp2 // 2, wp2 // 4          # conv3+pool output (6*T, 2)

    if block_images is None:
        # Block spare images per grid step (raises MXU row fill) while keeping
        # grid >= 2 so both v7x TensorCores get work; the block-diagonal
        # selection matmuls cap useful block size at a handful of images.
        block_images = 1
        for b in (4, 3, 2):
            if n % b == 0 and n // b >= 2:
                block_images = b
                break
    assert n % block_images == 0
    b_img = block_images

    # NCHW -> per-image (H, W*Cin) row slabs stacked over images.
    x_rows = (jnp.transpose(x_nchw, (0, 2, 3, 1))
              .reshape(n * hin, win * cin).astype(jnp.float32))

    f32 = jnp.float32
    consts = (
        _h_select(hin, hp1, 2, b_img),                                  # p1
        _fold_conv_w(params["conv1_w"], win, wp1),                      # m1
        jnp.tile(params["conv1_b"].astype(f32), wp1).reshape(1, wp1 * c1),
        _h_select(hp1, hp2, 1, b_img),                                  # p2
        _fold_conv_w(params["conv2_w"], wp1, wp2),                      # m2
        jnp.tile(params["conv2_b"].astype(f32), wp2).reshape(1, wp2 * c2),
        _h_select(hp2, hp3, 1, b_img, hb_order=True),                   # p3
        _fold_conv_w(params["conv3_w"], wp2, wp3),                      # m3
        jnp.tile(params["conv3_b"].astype(f32), wp3).reshape(1, wp3 * c3),
        # fold torch.flatten's (C, H, W) ordering into fc1's weight
        params["fc1_w"].astype(f32).reshape(c3, hp3, wp3, -1)
            .transpose(1, 2, 0, 3).reshape(hp3 * wp3 * c3, -1),
        params["fc1_b"].astype(f32).reshape(1, -1),
        params["fc2_w"].astype(f32),
        params["fc2_b"].astype(f32).reshape(1, -1),
    )
    return _fused_call(x_rows, consts, n_imgs=n, b_img=b_img, hin=hin,
                       win_cin=win * cin, hp1=hp1, hp2=hp2, hp3=hp3)


# --------------------------- pure-JAX reference ------------------------------

def _reference_forward(params, x):
    def block(x, w, b, stride):
        y = lax.conv_general_dilated(
            x, w, window_strides=stride, padding=((1, 1), (1, 1)),
            dimension_numbers=("NCHW", "OIHW", "NCHW"))
        y = jnp.maximum(y + b[None, :, None, None], 0.0)
        return lax.reduce_window(y, -jnp.inf, lax.max,
                                 (1, 1, 2, 2), (1, 1, 2, 2), "VALID")
    y = block(x, params["conv1_w"], params["conv1_b"], (2, 2))
    y = block(y, params["conv2_w"], params["conv2_b"], (1, 2))
    y = block(y, params["conv3_w"], params["conv3_b"], (1, 2))
    y = y.reshape(y.shape[0], -1)
    h = jnp.maximum(y @ params["fc1_w"] + params["fc1_b"], 0.0)
    return jax.nn.sigmoid(h @ params["fc2_w"] + params["fc2_b"])


# ------------------------------------ main -----------------------------------

if __name__ == "__main__":
    key = jax.random.PRNGKey(0)
    pkey, xkey = jax.random.split(key)
    params = init_params(pkey)

    # CnnModel's flatten dim (12*conv3_channels*total_measures = 120) pins the
    # spatial size to (96*total_measures, 128); keep the batch small.
    batch, in_ch, H, W = 2, 2, 96, 128
    x = jax.random.normal(xkey, (batch, in_ch, H, W), jnp.float32)

    out = jax.block_until_ready(jax.jit(cnn_forward)(params, x))
    assert out.shape == (batch, 3), out.shape
    assert bool(jnp.all((out >= 0.0) & (out <= 1.0)))   # sigmoid range sanity

    ref = jax.block_until_ready(jax.jit(_reference_forward)(params, x))
    err = float(jnp.max(jnp.abs(out - ref)))
    assert err < 2e-2, f"max |pallas - reference| = {err}"

    print("KERNEL_OK")
</pallas_src>

<mosaic_0001>
module attributes {stable_mosaic.version = 11 : i64} {
  func.func @_fused_kernel(%arg0: i32, %arg1: memref<96x256xf32, #tpu.memory_space<vmem>>, %arg2: memref<120x96xf32, #tpu.memory_space<vmem>>, %arg3: memref<3x256x960xf32, #tpu.memory_space<vmem>>, %arg4: memref<1x480xf32, #tpu.memory_space<vmem>>, %arg5: memref<48x24xf32, #tpu.memory_space<vmem>>, %arg6: memref<3x480x240xf32, #tpu.memory_space<vmem>>, %arg7: memref<1x120xf32, #tpu.memory_space<vmem>>, %arg8: memref<24x12xf32, #tpu.memory_space<vmem>>, %arg9: memref<3x120x40xf32, #tpu.memory_space<vmem>>, %arg10: memref<1x20xf32, #tpu.memory_space<vmem>>, %arg11: memref<120x15xf32, #tpu.memory_space<vmem>>, %arg12: memref<1x15xf32, #tpu.memory_space<vmem>>, %arg13: memref<15x3xf32, #tpu.memory_space<vmem>>, %arg14: memref<1x3xf32, #tpu.memory_space<vmem>>, %arg15: memref<1x1x3xf32, #tpu.memory_space<vmem>>) attributes {dimension_semantics = [#tpu.dimension_semantics<parallel>], iteration_bounds = array<i64: 2>, scalar_prefetch = 0 : i64, scratch_operands = 0 : i64, tpu.core_type = #tpu.core_type<tc>, window_params = [{transform_indices = @transform_0, window_bounds = array<i64: 96, 256>}, {pipeline_mode = #tpu.pipeline_mode<synchronous>, transform_indices = @transform_1, window_bounds = array<i64: 120, 96>}, {pipeline_mode = #tpu.pipeline_mode<synchronous>, transform_indices = @transform_2, window_bounds = array<i64: 3, 256, 960>}, {pipeline_mode = #tpu.pipeline_mode<synchronous>, transform_indices = @transform_3, window_bounds = array<i64: 1, 480>}, {pipeline_mode = #tpu.pipeline_mode<synchronous>, transform_indices = @transform_4, window_bounds = array<i64: 48, 24>}, {pipeline_mode = #tpu.pipeline_mode<synchronous>, transform_indices = @transform_5, window_bounds = array<i64: 3, 480, 240>}, {pipeline_mode = #tpu.pipeline_mode<synchronous>, transform_indices = @transform_6, window_bounds = array<i64: 1, 120>}, {pipeline_mode = #tpu.pipeline_mode<synchronous>, transform_indices = @transform_7, window_bounds = array<i64: 24, 12>}, {pipeline_mode = #tpu.pipeline_mode<synchronous>, transform_indices = @transform_8, window_bounds = array<i64: 3, 120, 40>}, {pipeline_mode = #tpu.pipeline_mode<synchronous>, transform_indices = @transform_9, window_bounds = array<i64: 1, 20>}, {pipeline_mode = #tpu.pipeline_mode<synchronous>, transform_indices = @transform_10, window_bounds = array<i64: 120, 15>}, {pipeline_mode = #tpu.pipeline_mode<synchronous>, transform_indices = @transform_11, window_bounds = array<i64: 1, 15>}, {pipeline_mode = #tpu.pipeline_mode<synchronous>, transform_indices = @transform_12, window_bounds = array<i64: 15, 3>}, {pipeline_mode = #tpu.pipeline_mode<synchronous>, transform_indices = @transform_13, window_bounds = array<i64: 1, 3>}, {transform_indices = @transform_14, window_bounds = array<i64: 1, 1, 3>}]} {
    %c0 = arith.constant 0 : index
    %c0_0 = arith.constant 0 : index
    %0 = vector.load %arg1[%c0, %c0_0] : memref<96x256xf32, #tpu.memory_space<vmem>>, vector<96x256xf32>
    %c0_1 = arith.constant 0 : index
    %c0_2 = arith.constant 0 : index
    %1 = vector.load %arg2[%c0_1, %c0_2] : memref<120x96xf32, #tpu.memory_space<vmem>>, vector<120x96xf32>
    %cst = arith.constant dense<0.000000e+00> : vector<120x256xf32>
    %2 = tpu.matmul %1, %0, %cst {dimension_numbers = #tpu.dot_dimension_numbers<[1], [0], [0], [1], [0, 0, 1, 1], [], []>} : vector<120x96xf32>, vector<96x256xf32>, vector<120x256xf32> -> vector<120x256xf32>
    %3 = vector.extract_strided_slice %2 {offsets = [0, 0], sizes = [24, 256], strides = [1, 1]} : vector<120x256xf32> to vector<24x256xf32>
    %c0_3 = arith.constant 0 : index
    %c0_4 = arith.constant 0 : index
    %c0_5 = arith.constant 0 : index
    %4 = vector.load %arg3[%c0_3, %c0_4, %c0_5] : memref<3x256x960xf32, #tpu.memory_space<vmem>>, vector<1x256x960xf32>
    %5 = vector.shape_cast %4 : vector<1x256x960xf32> to vector<256x960xf32>
    %cst_6 = arith.constant dense<0.000000e+00> : vector<24x960xf32>
    %6 = tpu.matmul %3, %5, %cst_6 {dimension_numbers = #tpu.dot_dimension_numbers<[1], [0], [0], [1], [0, 0, 1, 1], [], []>} : vector<24x256xf32>, vector<256x960xf32>, vector<24x960xf32> -> vector<24x960xf32>
    %7 = vector.extract_strided_slice %2 {offsets = [24, 0], sizes = [24, 256], strides = [1, 1]} : vector<120x256xf32> to vector<24x256xf32>
    %c1 = arith.constant 1 : index
    %c0_7 = arith.constant 0 : index
    %c0_8 = arith.constant 0 : index
    %8 = vector.load %arg3[%c1, %c0_7, %c0_8] : memref<3x256x960xf32, #tpu.memory_space<vmem>>, vector<1x256x960xf32>
    %9 = vector.shape_cast %8 : vector<1x256x960xf32> to vector<256x960xf32>
    %cst_9 = arith.constant dense<0.000000e+00> : vector<24x960xf32>
    %10 = tpu.matmul %7, %9, %cst_9 {dimension_numbers = #tpu.dot_dimension_numbers<[1], [0], [0], [1], [0, 0, 1, 1], [], []>} : vector<24x256xf32>, vector<256x960xf32>, vector<24x960xf32> -> vector<24x960xf32>
    %11 = arith.addf %6, %10 : vector<24x960xf32>
    %12 = vector.extract_strided_slice %2 {offsets = [48, 0], sizes = [24, 256], strides = [1, 1]} : vector<120x256xf32> to vector<24x256xf32>
    %c2 = arith.constant 2 : index
    %c0_10 = arith.constant 0 : index
    %c0_11 = arith.constant 0 : index
    %13 = vector.load %arg3[%c2, %c0_10, %c0_11] : memref<3x256x960xf32, #tpu.memory_space<vmem>>, vector<1x256x960xf32>
    %14 = vector.shape_cast %13 : vector<1x256x960xf32> to vector<256x960xf32>
    %cst_12 = arith.constant dense<0.000000e+00> : vector<24x960xf32>
    %15 = tpu.matmul %12, %14, %cst_12 {dimension_numbers = #tpu.dot_dimension_numbers<[1], [0], [0], [1], [0, 0, 1, 1], [], []>} : vector<24x256xf32>, vector<256x960xf32>, vector<24x960xf32> -> vector<24x960xf32>
    %16 = arith.addf %11, %15 : vector<24x960xf32>
    %17 = vector.extract_strided_slice %16 {offsets = [0, 0], sizes = [24, 480], strides = [1, 1]} : vector<24x960xf32> to vector<24x480xf32>
    %18 = vector.extract_strided_slice %16 {offsets = [0, 480], sizes = [24, 480], strides = [1, 1]} : vector<24x960xf32> to vector<24x480xf32>
    %19 = arith.maximumf %17, %18 : vector<24x480xf32>
    %20 = vector.extract_strided_slice %2 {offsets = [48, 0], sizes = [24, 256], strides = [1, 1]} : vector<120x256xf32> to vector<24x256xf32>
    %c0_13 = arith.constant 0 : index
    %c0_14 = arith.constant 0 : index
    %c0_15 = arith.constant 0 : index
    %21 = vector.load %arg3[%c0_13, %c0_14, %c0_15] : memref<3x256x960xf32, #tpu.memory_space<vmem>>, vector<1x256x960xf32>
    %22 = vector.shape_cast %21 : vector<1x256x960xf32> to vector<256x960xf32>
    %cst_16 = arith.constant dense<0.000000e+00> : vector<24x960xf32>
    %23 = tpu.matmul %20, %22, %cst_16 {dimension_numbers = #tpu.dot_dimension_numbers<[1], [0], [0], [1], [0, 0, 1, 1], [], []>} : vector<24x256xf32>, vector<256x960xf32>, vector<24x960xf32> -> vector<24x960xf32>
    %24 = vector.extract_strided_slice %2 {offsets = [72, 0], sizes = [24, 256], strides = [1, 1]} : vector<120x256xf32> to vector<24x256xf32>
    %c1_17 = arith.constant 1 : index
    %c0_18 = arith.constant 0 : index
    %c0_19 = arith.constant 0 : index
    %25 = vector.load %arg3[%c1_17, %c0_18, %c0_19] : memref<3x256x960xf32, #tpu.memory_space<vmem>>, vector<1x256x960xf32>
    %26 = vector.shape_cast %25 : vector<1x256x960xf32> to vector<256x960xf32>
    %cst_20 = arith.constant dense<0.000000e+00> : vector<24x960xf32>
    %27 = tpu.matmul %24, %26, %cst_20 {dimension_numbers = #tpu.dot_dimension_numbers<[1], [0], [0], [1], [0, 0, 1, 1], [], []>} : vector<24x256xf32>, vector<256x960xf32>, vector<24x960xf32> -> vector<24x960xf32>
    %28 = arith.addf %23, %27 : vector<24x960xf32>
    %29 = vector.extract_strided_slice %2 {offsets = [96, 0], sizes = [24, 256], strides = [1, 1]} : vector<120x256xf32> to vector<24x256xf32>
    %c2_21 = arith.constant 2 : index
    %c0_22 = arith.constant 0 : index
    %c0_23 = arith.constant 0 : index
    %30 = vector.load %arg3[%c2_21, %c0_22, %c0_23] : memref<3x256x960xf32, #tpu.memory_space<vmem>>, vector<1x256x960xf32>
    %31 = vector.shape_cast %30 : vector<1x256x960xf32> to vector<256x960xf32>
    %cst_24 = arith.constant dense<0.000000e+00> : vector<24x960xf32>
    %32 = tpu.matmul %29, %31, %cst_24 {dimension_numbers = #tpu.dot_dimension_numbers<[1], [0], [0], [1], [0, 0, 1, 1], [], []>} : vector<24x256xf32>, vector<256x960xf32>, vector<24x960xf32> -> vector<24x960xf32>
    %33 = arith.addf %28, %32 : vector<24x960xf32>
    %34 = vector.extract_strided_slice %33 {offsets = [0, 0], sizes = [24, 480], strides = [1, 1]} : vector<24x960xf32> to vector<24x480xf32>
    %35 = arith.maximumf %19, %34 : vector<24x480xf32>
    %36 = vector.extract_strided_slice %33 {offsets = [0, 480], sizes = [24, 480], strides = [1, 1]} : vector<24x960xf32> to vector<24x480xf32>
    %37 = arith.maximumf %35, %36 : vector<24x480xf32>
    %c0_25 = arith.constant 0 : index
    %c0_26 = arith.constant 0 : index
    %38 = vector.load %arg4[%c0_25, %c0_26] : memref<1x480xf32, #tpu.memory_space<vmem>>, vector<1x480xf32>
    %39 = vector.broadcast %38 : vector<1x480xf32> to vector<24x480xf32>
    %40 = arith.addf %37, %39 : vector<24x480xf32>
    %cst_27 = arith.constant 0.000000e+00 : f32
    %41 = vector.broadcast %cst_27 : f32 to vector<24x480xf32>
    %42 = arith.maximumf %40, %41 : vector<24x480xf32>
    %c0_28 = arith.constant 0 : index
    %c0_29 = arith.constant 0 : index
    %43 = vector.load %arg5[%c0_28, %c0_29] : memref<48x24xf32, #tpu.memory_space<vmem>>, vector<48x24xf32>
    %cst_30 = arith.constant dense<0.000000e+00> : vector<48x480xf32>
    %44 = tpu.matmul %43, %42, %cst_30 {dimension_numbers = #tpu.dot_dimension_numbers<[1], [0], [0], [1], [0, 0, 1, 1], [], []>} : vector<48x24xf32>, vector<24x480xf32>, vector<48x480xf32> -> vector<48x480xf32>
    %45 = vector.extract_strided_slice %44 {offsets = [0, 0], sizes = [12, 480], strides = [1, 1]} : vector<48x480xf32> to vector<12x480xf32>
    %c0_31 = arith.constant 0 : index
    %c0_32 = arith.constant 0 : index
    %c0_33 = arith.constant 0 : index
    %46 = vector.load %arg6[%c0_31, %c0_32, %c0_33] : memref<3x480x240xf32, #tpu.memory_space<vmem>>, vector<1x480x240xf32>
    %47 = vector.shape_cast %46 : vector<1x480x240xf32> to vector<480x240xf32>
    %cst_34 = arith.constant dense<0.000000e+00> : vector<12x240xf32>
    %48 = tpu.matmul %45, %47, %cst_34 {dimension_numbers = #tpu.dot_dimension_numbers<[1], [0], [0], [1], [0, 0, 1, 1], [], []>} : vector<12x480xf32>, vector<480x240xf32>, vector<12x240xf32> -> vector<12x240xf32>
    %49 = vector.extract_strided_slice %44 {offsets = [12, 0], sizes = [12, 480], strides = [1, 1]} : vector<48x480xf32> to vector<12x480xf32>
    %c1_35 = arith.constant 1 : index
    %c0_36 = arith.constant 0 : index
    %c0_37 = arith.constant 0 : index
    %50 = vector.load %arg6[%c1_35, %c0_36, %c0_37] : memref<3x480x240xf32, #tpu.memory_space<vmem>>, vector<1x480x240xf32>
    %51 = vector.shape_cast %50 : vector<1x480x240xf32> to vector<480x240xf32>
    %cst_38 = arith.constant dense<0.000000e+00> : vector<12x240xf32>
    %52 = tpu.matmul %49, %51, %cst_38 {dimension_numbers = #tpu.dot_dimension_numbers<[1], [0], [0], [1], [0, 0, 1, 1], [], []>} : vector<12x480xf32>, vector<480x240xf32>, vector<12x240xf32> -> vector<12x240xf32>
    %53 = arith.addf %48, %52 : vector<12x240xf32>
    %54 = vector.extract_strided_slice %44 {offsets = [24, 0], sizes = [12, 480], strides = [1, 1]} : vector<48x480xf32> to vector<12x480xf32>
    %c2_39 = arith.constant 2 : index
    %c0_40 = arith.constant 0 : index
    %c0_41 = arith.constant 0 : index
    %55 = vector.load %arg6[%c2_39, %c0_40, %c0_41] : memref<3x480x240xf32, #tpu.memory_space<vmem>>, vector<1x480x240xf32>
    %56 = vector.shape_cast %55 : vector<1x480x240xf32> to vector<480x240xf32>
    %cst_42 = arith.constant dense<0.000000e+00> : vector<12x240xf32>
    %57 = tpu.matmul %54, %56, %cst_42 {dimension_numbers = #tpu.dot_dimension_numbers<[1], [0], [0], [1], [0, 0, 1, 1], [], []>} : vector<12x480xf32>, vector<480x240xf32>, vector<12x240xf32> -> vector<12x240xf32>
    %58 = arith.addf %53, %57 : vector<12x240xf32>
    %59 = vector.extract_strided_slice %58 {offsets = [0, 0], sizes = [12, 120], strides = [1, 1]} : vector<12x240xf32> to vector<12x120xf32>
    %60 = vector.extract_strided_slice %58 {offsets = [0, 120], sizes = [12, 120], strides = [1, 1]} : vector<12x240xf32> to vector<12x120xf32>
    %61 = arith.maximumf %59, %60 : vector<12x120xf32>
    %62 = vector.extract_strided_slice %44 {offsets = [12, 0], sizes = [12, 480], strides = [1, 1]} : vector<48x480xf32> to vector<12x480xf32>
    %c0_43 = arith.constant 0 : index
    %c0_44 = arith.constant 0 : index
    %c0_45 = arith.constant 0 : index
    %63 = vector.load %arg6[%c0_43, %c0_44, %c0_45] : memref<3x480x240xf32, #tpu.memory_space<vmem>>, vector<1x480x240xf32>
    %64 = vector.shape_cast %63 : vector<1x480x240xf32> to vector<480x240xf32>
    %cst_46 = arith.constant dense<0.000000e+00> : vector<12x240xf32>
    %65 = tpu.matmul %62, %64, %cst_46 {dimension_numbers = #tpu.dot_dimension_numbers<[1], [0], [0], [1], [0, 0, 1, 1], [], []>} : vector<12x480xf32>, vector<480x240xf32>, vector<12x240xf32> -> vector<12x240xf32>
    %66 = vector.extract_strided_slice %44 {offsets = [24, 0], sizes = [12, 480], strides = [1, 1]} : vector<48x480xf32> to vector<12x480xf32>
    %c1_47 = arith.constant 1 : index
    %c0_48 = arith.constant 0 : index
    %c0_49 = arith.constant 0 : index
    %67 = vector.load %arg6[%c1_47, %c0_48, %c0_49] : memref<3x480x240xf32, #tpu.memory_space<vmem>>, vector<1x480x240xf32>
    %68 = vector.shape_cast %67 : vector<1x480x240xf32> to vector<480x240xf32>
    %cst_50 = arith.constant dense<0.000000e+00> : vector<12x240xf32>
    %69 = tpu.matmul %66, %68, %cst_50 {dimension_numbers = #tpu.dot_dimension_numbers<[1], [0], [0], [1], [0, 0, 1, 1], [], []>} : vector<12x480xf32>, vector<480x240xf32>, vector<12x240xf32> -> vector<12x240xf32>
    %70 = arith.addf %65, %69 : vector<12x240xf32>
    %71 = vector.extract_strided_slice %44 {offsets = [36, 0], sizes = [12, 480], strides = [1, 1]} : vector<48x480xf32> to vector<12x480xf32>
    %c2_51 = arith.constant 2 : index
    %c0_52 = arith.constant 0 : index
    %c0_53 = arith.constant 0 : index
    %72 = vector.load %arg6[%c2_51, %c0_52, %c0_53] : memref<3x480x240xf32, #tpu.memory_space<vmem>>, vector<1x480x240xf32>
    %73 = vector.shape_cast %72 : vector<1x480x240xf32> to vector<480x240xf32>
    %cst_54 = arith.constant dense<0.000000e+00> : vector<12x240xf32>
    %74 = tpu.matmul %71, %73, %cst_54 {dimension_numbers = #tpu.dot_dimension_numbers<[1], [0], [0], [1], [0, 0, 1, 1], [], []>} : vector<12x480xf32>, vector<480x240xf32>, vector<12x240xf32> -> vector<12x240xf32>
    %75 = arith.addf %70, %74 : vector<12x240xf32>
    %76 = vector.extract_strided_slice %75 {offsets = [0, 0], sizes = [12, 120], strides = [1, 1]} : vector<12x240xf32> to vector<12x120xf32>
    %77 = arith.maximumf %61, %76 : vector<12x120xf32>
    %78 = vector.extract_strided_slice %75 {offsets = [0, 120], sizes = [12, 120], strides = [1, 1]} : vector<12x240xf32> to vector<12x120xf32>
    %79 = arith.maximumf %77, %78 : vector<12x120xf32>
    %c0_55 = arith.constant 0 : index
    %c0_56 = arith.constant 0 : index
    %80 = vector.load %arg7[%c0_55, %c0_56] : memref<1x120xf32, #tpu.memory_space<vmem>>, vector<1x120xf32>
    %81 = vector.broadcast %80 : vector<1x120xf32> to vector<12x120xf32>
    %82 = arith.addf %79, %81 : vector<12x120xf32>
    %cst_57 = arith.constant 0.000000e+00 : f32
    %83 = vector.broadcast %cst_57 : f32 to vector<12x120xf32>
    %84 = arith.maximumf %82, %83 : vector<12x120xf32>
    %c0_58 = arith.constant 0 : index
    %c0_59 = arith.constant 0 : index
    %85 = vector.load %arg8[%c0_58, %c0_59] : memref<24x12xf32, #tpu.memory_space<vmem>>, vector<24x12xf32>
    %cst_60 = arith.constant dense<0.000000e+00> : vector<24x120xf32>
    %86 = tpu.matmul %85, %84, %cst_60 {dimension_numbers = #tpu.dot_dimension_numbers<[1], [0], [0], [1], [0, 0, 1, 1], [], []>} : vector<24x12xf32>, vector<12x120xf32>, vector<24x120xf32> -> vector<24x120xf32>
    %87 = vector.extract_strided_slice %86 {offsets = [0, 0], sizes = [6, 120], strides = [1, 1]} : vector<24x120xf32> to vector<6x120xf32>
    %c0_61 = arith.constant 0 : index
    %c0_62 = arith.constant 0 : index
    %c0_63 = arith.constant 0 : index
    %88 = vector.load %arg9[%c0_61, %c0_62, %c0_63] : memref<3x120x40xf32, #tpu.memory_space<vmem>>, vector<1x120x40xf32>
    %89 = vector.shape_cast %88 : vector<1x120x40xf32> to vector<120x40xf32>
    %cst_64 = arith.constant dense<0.000000e+00> : vector<6x40xf32>
    %90 = tpu.matmul %87, %89, %cst_64 {dimension_numbers = #tpu.dot_dimension_numbers<[1], [0], [0], [1], [0, 0, 1, 1], [], []>} : vector<6x120xf32>, vector<120x40xf32>, vector<6x40xf32> -> vector<6x40xf32>
    %91 = vector.extract_strided_slice %86 {offsets = [6, 0], sizes = [6, 120], strides = [1, 1]} : vector<24x120xf32> to vector<6x120xf32>
    %c1_65 = arith.constant 1 : index
    %c0_66 = arith.constant 0 : index
    %c0_67 = arith.constant 0 : index
    %92 = vector.load %arg9[%c1_65, %c0_66, %c0_67] : memref<3x120x40xf32, #tpu.memory_space<vmem>>, vector<1x120x40xf32>
    %93 = vector.shape_cast %92 : vector<1x120x40xf32> to vector<120x40xf32>
    %cst_68 = arith.constant dense<0.000000e+00> : vector<6x40xf32>
    %94 = tpu.matmul %91, %93, %cst_68 {dimension_numbers = #tpu.dot_dimension_numbers<[1], [0], [0], [1], [0, 0, 1, 1], [], []>} : vector<6x120xf32>, vector<120x40xf32>, vector<6x40xf32> -> vector<6x40xf32>
    %95 = arith.addf %90, %94 : vector<6x40xf32>
    %96 = vector.extract_strided_slice %86 {offsets = [12, 0], sizes = [6, 120], strides = [1, 1]} : vector<24x120xf32> to vector<6x120xf32>
    %c2_69 = arith.constant 2 : index
    %c0_70 = arith.constant 0 : index
    %c0_71 = arith.constant 0 : index
    %97 = vector.load %arg9[%c2_69, %c0_70, %c0_71] : memref<3x120x40xf32, #tpu.memory_space<vmem>>, vector<1x120x40xf32>
    %98 = vector.shape_cast %97 : vector<1x120x40xf32> to vector<120x40xf32>
    %cst_72 = arith.constant dense<0.000000e+00> : vector<6x40xf32>
    %99 = tpu.matmul %96, %98, %cst_72 {dimension_numbers = #tpu.dot_dimension_numbers<[1], [0], [0], [1], [0, 0, 1, 1], [], []>} : vector<6x120xf32>, vector<120x40xf32>, vector<6x40xf32> -> vector<6x40xf32>
    %100 = arith.addf %95, %99 : vector<6x40xf32>
    %101 = vector.extract_strided_slice %100 {offsets = [0, 0], sizes = [6, 20], strides = [1, 1]} : vector<6x40xf32> to vector<6x20xf32>
    %102 = vector.extract_strided_slice %100 {offsets = [0, 20], sizes = [6, 20], strides = [1, 1]} : vector<6x40xf32> to vector<6x20xf32>
    %103 = arith.maximumf %101, %102 : vector<6x20xf32>
    %104 = vector.extract_strided_slice %86 {offsets = [6, 0], sizes = [6, 120], strides = [1, 1]} : vector<24x120xf32> to vector<6x120xf32>
    %c0_73 = arith.constant 0 : index
    %c0_74 = arith.constant 0 : index
    %c0_75 = arith.constant 0 : index
    %105 = vector.load %arg9[%c0_73, %c0_74, %c0_75] : memref<3x120x40xf32, #tpu.memory_space<vmem>>, vector<1x120x40xf32>
    %106 = vector.shape_cast %105 : vector<1x120x40xf32> to vector<120x40xf32>
    %cst_76 = arith.constant dense<0.000000e+00> : vector<6x40xf32>
    %107 = tpu.matmul %104, %106, %cst_76 {dimension_numbers = #tpu.dot_dimension_numbers<[1], [0], [0], [1], [0, 0, 1, 1], [], []>} : vector<6x120xf32>, vector<120x40xf32>, vector<6x40xf32> -> vector<6x40xf32>
    %108 = vector.extract_strided_slice %86 {offsets = [12, 0], sizes = [6, 120], strides = [1, 1]} : vector<24x120xf32> to vector<6x120xf32>
    %c1_77 = arith.constant 1 : index
    %c0_78 = arith.constant 0 : index
    %c0_79 = arith.constant 0 : index
    %109 = vector.load %arg9[%c1_77, %c0_78, %c0_79] : memref<3x120x40xf32, #tpu.memory_space<vmem>>, vector<1x120x40xf32>
    %110 = vector.shape_cast %109 : vector<1x120x40xf32> to vector<120x40xf32>
    %cst_80 = arith.constant dense<0.000000e+00> : vector<6x40xf32>
    %111 = tpu.matmul %108, %110, %cst_80 {dimension_numbers = #tpu.dot_dimension_numbers<[1], [0], [0], [1], [0, 0, 1, 1], [], []>} : vector<6x120xf32>, vector<120x40xf32>, vector<6x40xf32> -> vector<6x40xf32>
    %112 = arith.addf %107, %111 : vector<6x40xf32>
    %113 = vector.extract_strided_slice %86 {offsets = [18, 0], sizes = [6, 120], strides = [1, 1]} : vector<24x120xf32> to vector<6x120xf32>
    %c2_81 = arith.constant 2 : index
    %c0_82 = arith.constant 0 : index
    %c0_83 = arith.constant 0 : index
    %114 = vector.load %arg9[%c2_81, %c0_82, %c0_83] : memref<3x120x40xf32, #tpu.memory_space<vmem>>, vector<1x120x40xf32>
    %115 = vector.shape_cast %114 : vector<1x120x40xf32> to vector<120x40xf32>
    %cst_84 = arith.constant dense<0.000000e+00> : vector<6x40xf32>
    %116 = tpu.matmul %113, %115, %cst_84 {dimension_numbers = #tpu.dot_dimension_numbers<[1], [0], [0], [1], [0, 0, 1, 1], [], []>} : vector<6x120xf32>, vector<120x40xf32>, vector<6x40xf32> -> vector<6x40xf32>
    %117 = arith.addf %112, %116 : vector<6x40xf32>
    %118 = vector.extract_strided_slice %117 {offsets = [0, 0], sizes = [6, 20], strides = [1, 1]} : vector<6x40xf32> to vector<6x20xf32>
    %119 = arith.maximumf %103, %118 : vector<6x20xf32>
    %120 = vector.extract_strided_slice %117 {offsets = [0, 20], sizes = [6, 20], strides = [1, 1]} : vector<6x40xf32> to vector<6x20xf32>
    %121 = arith.maximumf %119, %120 : vector<6x20xf32>
    %c0_85 = arith.constant 0 : index
    %c0_86 = arith.constant 0 : index
    %122 = vector.load %arg10[%c0_85, %c0_86] : memref<1x20xf32, #tpu.memory_space<vmem>>, vector<1x20xf32>
    %123 = vector.broadcast %122 : vector<1x20xf32> to vector<6x20xf32>
    %124 = arith.addf %121, %123 : vector<6x20xf32>
    %cst_87 = arith.constant 0.000000e+00 : f32
    %125 = vector.broadcast %cst_87 : f32 to vector<6x20xf32>
    %126 = arith.maximumf %124, %125 : vector<6x20xf32>
    %127 = vector.extract_strided_slice %126 {offsets = [0, 0], sizes = [1, 20], strides = [1, 1]} : vector<6x20xf32> to vector<1x20xf32>
    %128 = vector.extract_strided_slice %126 {offsets = [1, 0], sizes = [1, 20], strides = [1, 1]} : vector<6x20xf32> to vector<1x20xf32>
    %129 = vector.extract_strided_slice %126 {offsets = [2, 0], sizes = [1, 20], strides = [1, 1]} : vector<6x20xf32> to vector<1x20xf32>
    %130 = vector.extract_strided_slice %126 {offsets = [3, 0], sizes = [1, 20], strides = [1, 1]} : vector<6x20xf32> to vector<1x20xf32>
    %131 = vector.extract_strided_slice %126 {offsets = [4, 0], sizes = [1, 20], strides = [1, 1]} : vector<6x20xf32> to vector<1x20xf32>
    %132 = vector.extract_strided_slice %126 {offsets = [5, 0], sizes = [1, 20], strides = [1, 1]} : vector<6x20xf32> to vector<1x20xf32>
    %133 = tpu.concatenate %127, %128, %129, %130, %131, %132 in 1 : vector<1x20xf32>, vector<1x20xf32>, vector<1x20xf32>, vector<1x20xf32>, vector<1x20xf32>, vector<1x20xf32> -> vector<1x120xf32>
    %c0_88 = arith.constant 0 : index
    %c0_89 = arith.constant 0 : index
    %134 = vector.load %arg11[%c0_88, %c0_89] : memref<120x15xf32, #tpu.memory_space<vmem>>, vector<120x15xf32>
    %cst_90 = arith.constant dense<0.000000e+00> : vector<1x15xf32>
    %135 = tpu.matmul %133, %134, %cst_90 {dimension_numbers = #tpu.dot_dimension_numbers<[1], [0], [0], [1], [0, 0, 1, 1], [], []>} : vector<1x120xf32>, vector<120x15xf32>, vector<1x15xf32> -> vector<1x15xf32>
    %c0_91 = arith.constant 0 : index
    %c0_92 = arith.constant 0 : index
    %136 = vector.load %arg12[%c0_91, %c0_92] : memref<1x15xf32, #tpu.memory_space<vmem>>, vector<1x15xf32>
    %137 = arith.addf %135, %136 : vector<1x15xf32>
    %cst_93 = arith.constant 0.000000e+00 : f32
    %138 = vector.broadcast %cst_93 : f32 to vector<1x15xf32>
    %139 = arith.maximumf %137, %138 : vector<1x15xf32>
    %c0_94 = arith.constant 0 : index
    %c0_95 = arith.constant 0 : index
    %140 = vector.load %arg13[%c0_94, %c0_95] : memref<15x3xf32, #tpu.memory_space<vmem>>, vector<15x3xf32>
    %cst_96 = arith.constant dense<0.000000e+00> : vector<1x3xf32>
    %141 = tpu.matmul %139, %140, %cst_96 {dimension_numbers = #tpu.dot_dimension_numbers<[1], [0], [0], [1], [0, 0, 1, 1], [], []>} : vector<1x15xf32>, vector<15x3xf32>, vector<1x3xf32> -> vector<1x3xf32>
    %c0_97 = arith.constant 0 : index
    %c0_98 = arith.constant 0 : index
    %142 = vector.load %arg14[%c0_97, %c0_98] : memref<1x3xf32, #tpu.memory_space<vmem>>, vector<1x3xf32>
    %143 = arith.addf %141, %142 : vector<1x3xf32>
    %144 = arith.negf %143 : vector<1x3xf32>
    %145 = math.exp %144 : vector<1x3xf32>
    %cst_99 = arith.constant 1.000000e+00 : f32
    %146 = vector.broadcast %cst_99 : f32 to vector<1x3xf32>
    %147 = arith.addf %146, %145 : vector<1x3xf32>
    %148 = arith.divf %146, %147 : vector<1x3xf32>
    %c0_100 = arith.constant 0 : index
    %c0_101 = arith.constant 0 : index
    %c0_102 = arith.constant 0 : index
    %149 = vector.load %arg15[%c0_100, %c0_101, %c0_102] : memref<1x1x3xf32, #tpu.memory_space<vmem>>, vector<1x1x3xf32>
    %150 = vector.shape_cast %149 : vector<1x1x3xf32> to vector<1x3xf32>
    %151 = vector.shape_cast %148 : vector<1x3xf32> to vector<1x1x3xf32>
    tpu.vector_store %arg15[%c0_100, %c0_101, %c0_102], %151 {strides = array<i32>} : memref<1x1x3xf32, #tpu.memory_space<vmem>>, vector<1x1x3xf32>,
    return
  }
  func.func @transform_0(%arg0: i32) -> (i32, i32) {
    %c0_i32 = arith.constant 0 : i32
    %c0_i32_0 = arith.constant 0 : i32
    return %arg0, %c0_i32 : i32, i32
  }
  func.func @transform_1(%arg0: i32) -> (i32, i32) {
    %c0_i32 = arith.constant 0 : i32
    %c0_i32_0 = arith.constant 0 : i32
    %c0_i32_1 = arith.constant 0 : i32
    return %c0_i32, %c0_i32_0 : i32, i32
  }
  func.func @transform_2(%arg0: i32) -> (i32, i32, i32) {
    %c0_i32 = arith.constant 0 : i32
    %c0_i32_0 = arith.constant 0 : i32
    %c0_i32_1 = arith.constant 0 : i32
    %c0_i32_2 = arith.constant 0 : i32
    return %c0_i32, %c0_i32_0, %c0_i32_1 : i32, i32, i32
  }
  func.func @transform_3(%arg0: i32) -> (i32, i32) {
    %c0_i32 = arith.constant 0 : i32
    %c0_i32_0 = arith.constant 0 : i32
    %c0_i32_1 = arith.constant 0 : i32
    return %c0_i32, %c0_i32_0 : i32, i32
  }
  func.func @transform_4(%arg0: i32) -> (i32, i32) {
    %c0_i32 = arith.constant 0 : i32
    %c0_i32_0 = arith.constant 0 : i32
    %c0_i32_1 = arith.constant 0 : i32
    return %c0_i32, %c0_i32_0 : i32, i32
  }
  func.func @transform_5(%arg0: i32) -> (i32, i32, i32) {
    %c0_i32 = arith.constant 0 : i32
    %c0_i32_0 = arith.constant 0 : i32
    %c0_i32_1 = arith.constant 0 : i32
    %c0_i32_2 = arith.constant 0 : i32
    return %c0_i32, %c0_i32_0, %c0_i32_1 : i32, i32, i32
  }
  func.func @transform_6(%arg0: i32) -> (i32, i32) {
    %c0_i32 = arith.constant 0 : i32
    %c0_i32_0 = arith.constant 0 : i32
    %c0_i32_1 = arith.constant 0 : i32
    return %c0_i32, %c0_i32_0 : i32, i32
  }
  func.func @transform_7(%arg0: i32) -> (i32, i32) {
    %c0_i32 = arith.constant 0 : i32
    %c0_i32_0 = arith.constant 0 : i32
    %c0_i32_1 = arith.constant 0 : i32
    return %c0_i32, %c0_i32_0 : i32, i32
  }
  func.func @transform_8(%arg0: i32) -> (i32, i32, i32) {
    %c0_i32 = arith.constant 0 : i32
    %c0_i32_0 = arith.constant 0 : i32
    %c0_i32_1 = arith.constant 0 : i32
    %c0_i32_2 = arith.constant 0 : i32
    return %c0_i32, %c0_i32_0, %c0_i32_1 : i32, i32, i32
  }
  func.func @transform_9(%arg0: i32) -> (i32, i32) {
    %c0_i32 = arith.constant 0 : i32
    %c0_i32_0 = arith.constant 0 : i32
    %c0_i32_1 = arith.constant 0 : i32
    return %c0_i32, %c0_i32_0 : i32, i32
  }
  func.func @transform_10(%arg0: i32) -> (i32, i32) {
    %c0_i32 = arith.constant 0 : i32
    %c0_i32_0 = arith.constant 0 : i32
    %c0_i32_1 = arith.constant 0 : i32
    return %c0_i32, %c0_i32_0 : i32, i32
  }
  func.func @transform_11(%arg0: i32) -> (i32, i32) {
    %c0_i32 = arith.constant 0 : i32
    %c0_i32_0 = arith.constant 0 : i32
    %c0_i32_1 = arith.constant 0 : i32
    return %c0_i32, %c0_i32_0 : i32, i32
  }
  func.func @transform_12(%arg0: i32) -> (i32, i32) {
    %c0_i32 = arith.constant 0 : i32
    %c0_i32_0 = arith.constant 0 : i32
    %c0_i32_1 = arith.constant 0 : i32
    return %c0_i32, %c0_i32_0 : i32, i32
  }
  func.func @transform_13(%arg0: i32) -> (i32, i32) {
    %c0_i32 = arith.constant 0 : i32
    %c0_i32_0 = arith.constant 0 : i32
    %c0_i32_1 = arith.constant 0 : i32
    return %c0_i32, %c0_i32_0 : i32, i32
  }
  func.func @transform_14(%arg0: i32) -> (i32, i32, i32) {
    %c0_i32 = arith.constant 0 : i32
    %c0_i32_0 = arith.constant 0 : i32
    %c0_i32_1 = arith.constant 0 : i32
    return %arg0, %c0_i32, %c0_i32_0 : i32, i32, i32
  }
}

</mosaic_0001>

<bundles_post_ra>
// kernel: tile.18
= control target key start
LH: loop header
LB: loop body
LE: loop exit
PB: predicated region body
PF: predicated region fallthrough
CT: control target
= control target key end

     0   :  { %s40_s0 = inlined_call_operand.vmem [shape: f32[15], index: 0, kind: input, shape index: {}]   ;;  %s41_s1 = inlined_call_operand.vmem [shape: f32[32,15], index: 1, kind: output, shape index: {}]  }
   0x1   :  { %v4_v0 = vld [vmem:[%s40_s0] ss:$0 sm:$0xff] }
   0x2   :  { %5 = vst [vmem:[%s41_s1] sm:$0xff] %v4_v0 }
   0x3   :  { %12 = vst [vmem:[%s41_s1 + $0x8] sm:$0xff] %v4_v0 }
   0x4   :  { %13 = vst [vmem:[%s41_s1 + $0x10] sm:$0xff] %v4_v0 }
   0x5   :  { %14 = vst [vmem:[%s41_s1 + $0x18] sm:$0xff] %v4_v0 }

// kernel: tile.19
= control target key start
LH: loop header
LB: loop body
LE: loop exit
PB: predicated region body
PF: predicated region fallthrough
CT: control target
= control target key end

     0   :  { %vm9_vm0 = vcmask 7168   ;;  %vm36_vm1 = vcmask 72704   ;;  %s327_s14 = smov 127   ;;  %s328_s15 = smov 119   ;;  %vm23_vm2 = vcmask 64512   ;;  %vm3_vm3 = vcmask 121856   ;;  %s485_s0 = inlined_call_operand.vmem [shape: f32[32,15], index: 0, kind: input, shape index: {}]   ;;  %s486_s1 = inlined_call_operand.vmem [shape: f32[1,480], index: 1, kind: output, shape index: {}]  }
   0x1   :  { %v259_v0 = vld [vmem:[%s485_s0 + $0x11] sm:$0x1]   ;;  %v263_v3 = vld [vmem:[%s485_s0 + $0x19] sm:$0x1]   ;;  %v261_v6 = vld [vmem:[%s485_s0 + $0x8] sm:$0x1]  }
   0x2   :  { %v260_v1 = vld [vmem:[%s485_s0 + $0x11] sm:$0x1]   ;;  %v264_v4 = vld [vmem:[%s485_s0 + $0x19] sm:$0x1]   ;;  %v262_v7 = vld [vmem:[%s485_s0 + $0x8] sm:$0x1]  }
   0x3   :  { %v10_v2 = vsel %vm9_vm0, %v260_v1, %v259_v0  ;;  %v37_v5 = vsel %vm36_vm1, %v264_v4, %v263_v3  ;;  %v266_v8 = vld [vmem:[%s485_s0 + $0x7] sm:$0x1]   ;;  %s329_s22 = smov 105   ;;  %v24_v9 = vsel %vm23_vm2, %v262_v7, %v261_v6  ;;  %v265_v10 = vld [vmem:[%s485_s0 + $0x10] sm:$0x1]   ;;  %s330_s25 = smov 120  }
   0x4   :  { %11 = vrot.lane.b32.xlu0 %v10_v2, %s327_s14  ;;  %38 = vrot.lane.b32.xlu1 %v37_v5, %s328_s15  ;;  %s331_s26 = smov 112   ;;  %v267_v11 = vld [vmem:[%s485_s0 + $0x18] sm:$0x1]   ;;  %s332_s29 = smov 104   ;;  %v268_v12 = vld [vmem:[%s485_s0 + $0xf] sm:$0x1]  }
   0x5   :  { %55 = vrot.lane.b32.xlu2 %v266_v8, %s329_s22  ;;  %v269_v13 = vld [vmem:[%s485_s0 + $0x6] sm:$0x1]   ;;  %s333_s5 = smov 97   ;;  %s334_s6 = smov 90   ;;  %v270_v14 = vld [vmem:[%s485_s0 + $0x17] sm:$0x1]  }
   0x6   :  { %s335_s9 = smov 89   ;;  %v271_v15 = vld [vmem:[%s485_s0 + $0xe] sm:$0x1]   ;;  %v272_v16 = vld [vmem:[%s485_s0 + $0x1f] sm:$0x1]   ;;  %s336_s14 = smov 82  }
   0x7   :  { %s337_s15 = smov 81   ;;  %v273_v17 = vld [vmem:[%s485_s0 + $0x5] sm:$0x1]   ;;  %s338_s18 = smov 75   ;;  %v274_v18 = vld [vmem:[%s485_s0 + $0x16] sm:$0x1]  }
   0x8   :  { %v275_v19 = vld [vmem:[%s485_s0 + $0xd] sm:$0x1]   ;;  %s339_s23 = smov 74   ;;  %s340_s24 = smov 67   ;;  %v276_v20 = vld [vmem:[%s485_s0 + $0x1e] sm:$0x1]  }
   0x9   :  { %s341_s27 = smov 66   ;;  %v277_v21 = vld [vmem:[%s485_s0 + $0x4] sm:$0x1]   ;;  %v278_v22 = vld [vmem:[%s485_s0 + $0x15] sm:$0x1]   ;;  %s342_s3 = smov 60  }
   0xa   :  { %s343_s4 = smov 59   ;;  %v279_v23 = vld [vmem:[%s485_s0 + $0xc] sm:$0x1]   ;;  %s344_s7 = smov 52   ;;  %v280_v24 = vld [vmem:[%s485_s0 + $0x1d] sm:$0x1]  }
   0xb   :  { %v281_v25 = vld [vmem:[%s485_s0 + $0x3] sm:$0x1]   ;;  %s345_s12 = smov 51   ;;  %s346_s13 = smov 45   ;;  %v282_v26 = vld [vmem:[%s485_s0 + $0x14] sm:$0x1]  }
   0xc   :  { %25 = vrot.lane.b32.xlu0 %v24_v9, %s330_s25  ;;  %48 = vrot.lane.b32.xlu1 %v265_v10, %s331_s26  ;;  %s347_s16 = smov 44   ;;  %v283_v27 = vld [vmem:[%s485_s0 + $0xb] sm:$0x1]   ;;  %v284_v28 = vld [vmem:[%s485_s0 + $0x1c] sm:$0x1]   ;;  %s348_s21 = smov 37  }
   0xd   :  { %61 = vrot.lane.b32.xlu2 %v267_v11, %s332_s29  ;;  %s349_s22 = smov 36   ;;  %v285_v29 = vld [vmem:[%s485_s0 + $0x2] sm:$0x1]   ;;  %s350_s25 = smov 30   ;;  %v286_v30 = vld [vmem:[%s485_s0 + $0x13] sm:$0x1]  }
   0xe   :  { %v287_v31 = vld [vmem:[%s485_s0 + $0xa] sm:$0x1]   ;;  %s351_s30 = smov 29   ;;  %s352_s2 = smov 22   ;;  %v288_v32 = vld [vmem:[%s485_s0 + $0x1b] sm:$0x1]  }
   0xf   :  { %v289_v33 = vld [vmem:[%s485_s0 + $0x1] sm:$0x1]   ;;  %v290_v34 = vld [vmem:[%s485_s0 + $0x12] sm:$0x1]   ;;  %s354_s10 = smov 15   ;;  %s355_s11 = smov 14  }
  0x10   :  { %v291_v35 = vld [vmem:[%s485_s0 + $0x9] sm:$0x1]   ;;  %v292_v36 = vld [vmem:[%s485_s0 + $0x1a] sm:$0x1]   ;;  %s357_s17 = smov 6   ;;  %vm13_vm4 = vcmask 113664  }
  0x11   :  { %v2_v37 = vld [vmem:[%s485_s0] sm:$0x1]   ;;  %vm16_vm5 = vcmask 1048568   ;;  %vm40_vm6 = vcmask 48128   ;;  %vm43_vm7 = vcmask 1048504   ;;  %vm63_vm8 = vcmask 974656  }
  0x12   :  { %4 = vst.msk [vmem:[#allocation0] sm:$0x1] %vm3_vm3, %v2_v37   ;;  %vm83_vm9 = vcmask 851656   ;;  %vm27_vm10 = vcmask 56320   ;;  %vm30_vm11 = vcmask 1048512   ;;  %vm57_vm12 = vcmask 982856  }
  0x13   :  { %vm50_vm13 = vcmask 1040256   ;;  %vm70_vm14 = vcmask 917256   ;;  %vm77_vm15 = vcmask 859856   ;;  %vm104_vm0 = vcmask 736856  }
  0x14   :  { %68 = vrot.lane.b32.xlu0 %v268_v12, %s333_s5  ;;  %75 = vrot.lane.b32.xlu1 %v269_v13, %s334_s6  ;;  %s353_s5 = smov 21   ;;  %vm90_vm1 = vcmask 794256   ;;  %vm97_vm2 = vcmask 786056   ;;  %vm124_vm3 = vcmask 663056  }
  0x15   :  { %81 = vrot.lane.b32.xlu2 %v270_v14, %s335_s9 }
  0x1c   :  { %88 = vrot.lane.b32.xlu0 %v271_v15, %s336_s14  ;;  %95 = vrot.lane.b32.xlu1 %v272_v16, %s337_s15  ;;  %s356_s14 = smov 7  }
  0x1d   :  { %102 = vrot.lane.b32.xlu2 %v273_v17, %s338_s18 }
  0x24   :  { %108 = vrot.lane.b32.xlu0 %v274_v18, %s339_s23  ;;  %115 = vrot.lane.b32.xlu1 %v275_v19, %s340_s24 }
  0x25   :  { %122 = vrot.lane.b32.xlu2 %v276_v20, %s341_s27 }
  0x2c   :  { %129 = vrot.lane.b32.xlu0 %v277_v21, %s342_s3  ;;  %135 = vrot.lane.b32.xlu1 %v278_v22, %s343_s4 }
  0x2d   :  { %142 = vrot.lane.b32.xlu2 %v279_v23, %s344_s7 }
  0x34   :  { %149 = vrot.lane.b32.xlu0 %v280_v24, %s345_s12  ;;  %156 = vrot.lane.b32.xlu1 %v281_v25, %s346_s13 }
  0x35   :  { %162 = vrot.lane.b32.xlu2 %v282_v26, %s347_s16 }
  0x3c   :  { %169 = vrot.lane.b32.xlu0 %v283_v27, %s348_s21  ;;  %176 = vrot.lane.b32.xlu1 %v284_v28, %s349_s22 }
  0x3d   :  { %183 = vrot.lane.b32.xlu2 %v285_v29, %s350_s25 }
  0x44   :  { %189 = vrot.lane.b32.xlu0 %v286_v30, %s351_s30  ;;  %196 = vrot.lane.b32.xlu1 %v287_v31, %s352_s2 }
  0x45   :  { %203 = vrot.lane.b32.xlu2 %v288_v32, %s353_s5 }
  0x4c   :  { %210 = vrot.lane.b32.xlu0 %v289_v33, %s354_s10  ;;  %216 = vrot.lane.b32.xlu1 %v290_v34, %s355_s11 }
  0x4d   :  { %223 = vrot.lane.b32.xlu2 %v291_v35, %s356_s14 }
  0x54   :  { %230 = vrot.lane.b32.xlu0 %v292_v36, %s357_s17 }
  0x5f   :  { %v56_v38 = vpop.permute.xlu2 %55  }
  0x67   :  { %v62_v39 = vpop.permute.xlu2 %61  }
  0x6f   :  { %v82_v40 = vpop.permute.xlu2 %81  }
  0x76   :  { %v12_v41 = vpop.permute.xlu0 %11   ;;  %v39_v42 = vpop.permute.xlu1 %38  }
  0x77   :  { %15 = vst.msk [vmem:[#allocation0 + $0x10] sm:$0x1] %vm13_vm4, %v12_v41   ;;  %v103_v43 = vpop.permute.xlu2 %102   ;;  %vm110_vm4 = vcmask 728656  }
  0x78   :  { %18 = vst.msk [vmem:[#allocation0 + $0x8] sm:$0x1] %vm16_vm5, %v12_v41   ;;  %vm117_vm5 = vcmask 671256  }
  0x79   :  { %42 = vst.msk [vmem:[#allocation0 + $0x18] sm:$0x1] %vm40_vm6, %v39_v42   ;;  %vm144_vm6 = vcmask 548256  }
  0x7a   :  { %45 = vst.msk [vmem:[#allocation0 + $0x10] sm:$0x1] %vm43_vm7, %v39_v42   ;;  %vm131_vm7 = vcmask 613856  }
  0x7b   :  { %65 = vst.msk [vmem:[#allocation0 + $0x10] sm:$0x1] %vm63_vm8, %v62_v39   ;;  %vm137_vm8 = vcmask 605656  }
  0x7c   :  { %85 = vst.msk [vmem:[#allocation0 + $0x10] sm:$0x1] %vm83_vm9, %v82_v40   ;;  %vm164_vm9 = vcmask 482656  }
  0x7e   :  { %v26_v44 = vpop.permute.xlu0 %25   ;;  %v49_v45 = vpop.permute.xlu1 %48  }
  0x7f   :  { %29 = vst.msk [vmem:[#allocation0 + $0x8] sm:$0x1] %vm27_vm10, %v26_v44   ;;  %v123_v46 = vpop.permute.xlu2 %122   ;;  %vm151_vm10 = vcmask 540056  }
  0x80   :  { %31 = vst.msk [vmem:[#allocation0] sm:$0x1] %vm30_vm11, %v26_v44   ;;  %vm158_vm11 = vcmask 490856  }
  0x81   :  { %58 = vst.msk [vmem:[#allocation0] sm:$0x1] %vm57_vm12, %v56_v38   ;;  %vm185_vm12 = vcmask 367856  }
  0x82   :  { %52 = vst.msk [vmem:[#allocation0 + $0x8] sm:$0x1] %vm50_vm13, %v49_v45   ;;  %vm171_vm13 = vcmask 425256  }
  0x86   :  { %v69_v47 = vpop.permute.xlu0 %68   ;;  %v76_v48 = vpop.permute.xlu1 %75  }
  0x87   :  { %72 = vst.msk [vmem:[#allocation0 + $0x8] sm:$0x1] %vm70_vm14, %v69_v47   ;;  %v143_v49 = vpop.permute.xlu2 %142   ;;  %vm178_vm14 = vcmask 417056  }
  0x88   :  { %78 = vst.msk [vmem:[#allocation0] sm:$0x1] %vm77_vm15, %v76_v48   ;;  %vm205_vm15 = vcmask 294056  }
  0x89   :  { %105 = vst.msk [vmem:[#allocation0] sm:$0x1] %vm104_vm0, %v103_v43   ;;  %vm191_vm0 = vcmask 359656  }
  0x8e   :  { %v89_v50 = vpop.permute.xlu0 %88   ;;  %v96_v51 = vpop.permute.xlu1 %95  }
  0x8f   :  { %92 = vst.msk [vmem:[#allocation0 + $0x8] sm:$0x1] %vm90_vm1, %v89_v50   ;;  %v163_v52 = vpop.permute.xlu2 %162   ;;  %vm198_vm1 = vcmask 302256  }
  0x90   :  { %99 = vst.msk [vmem:[#allocation0 + $0x18] sm:$0x1] %vm97_vm2, %v96_v51   ;;  %vm225_vm2 = vcmask 179256  }
  0x91   :  { %126 = vst.msk [vmem:[#allocation0 + $0x18] sm:$0x1] %vm124_vm3, %v123_v46   ;;  %vm212_vm3 = vcmask 244856  }
  0x96   :  { %v109_v53 = vpop.permute.xlu0 %108   ;;  %v116_v54 = vpop.permute.xlu1 %115  }
  0x97   :  { %112 = vst.msk [vmem:[#allocation0 + $0x10] sm:$0x1] %vm110_vm4, %v109_v53   ;;  %v184_v55 = vpop.permute.xlu2 %183   ;;  %vm218_vm4 = vcmask 236656  }
  0x98   :  { %119 = vst.msk [vmem:[#allocation0 + $0x8] sm:$0x1] %vm117_vm5, %v116_v54   ;;  %vm232_vm5 = vcmask 171056  }
  0x99   :  { %146 = vst.msk [vmem:[#allocation0 + $0x8] sm:$0x1] %vm144_vm6, %v143_v49  }
  0x9e   :  { %v130_v56 = vpop.permute.xlu0 %129   ;;  %v136_v57 = vpop.permute.xlu1 %135  }
  0x9f   :  { %132 = vst.msk [vmem:[#allocation0] sm:$0x1] %vm131_vm7, %v130_v56   ;;  %v204_v58 = vpop.permute.xlu2 %203  }
  0xa0   :  { %139 = vst.msk [vmem:[#allocation0 + $0x10] sm:$0x1] %vm137_vm8, %v136_v57  }
  0xa1   :  { %166 = vst.msk [vmem:[#allocation0 + $0x10] sm:$0x1] %vm164_vm9, %v163_v52  }
  0xa6   :  { %v150_v59 = vpop.permute.xlu0 %149   ;;  %v157_v60 = vpop.permute.xlu1 %156  }
  0xa7   :  { %153 = vst.msk [vmem:[#allocation0 + $0x18] sm:$0x1] %vm151_vm10, %v150_v59   ;;  %v224_v61 = vpop.permute.xlu2 %223  }
  0xa8   :  { %159 = vst.msk [vmem:[#allocation0] sm:$0x1] %vm158_vm11, %v157_v60  }
  0xa9   :  { %186 = vst.msk [vmem:[#allocation0] sm:$0x1] %vm185_vm12, %v184_v55  }
  0xae   :  { %v170_v62 = vpop.permute.xlu0 %169   ;;  %v177_v63 = vpop.permute.xlu1 %176  }
  0xaf   :  { %173 = vst.msk [vmem:[#allocation0 + $0x8] sm:$0x1] %vm171_vm13, %v170_v62  }
  0xb0   :  { %180 = vst.msk [vmem:[#allocation0 + $0x18] sm:$0x1] %vm178_vm14, %v177_v63  }
  0xb1   :  { %207 = vst.msk [vmem:[#allocation0 + $0x18] sm:$0x1] %vm205_vm15, %v204_v58  }
  0xb6   :  { %v190_v0 = vpop.permute.xlu0 %189   ;;  %v197_v1 = vpop.permute.xlu1 %196  }
  0xb7   :  { %193 = vst.msk [vmem:[#allocation0 + $0x10] sm:$0x1] %vm191_vm0, %v190_v0  }
  0xb8   :  { %200 = vst.msk [vmem:[#allocation0 + $0x8] sm:$0x1] %vm198_vm1, %v197_v1  }
  0xb9   :  { %227 = vst.msk [vmem:[#allocation0 + $0x8] sm:$0x1] %vm225_vm2, %v224_v61  }
  0xbe   :  { %v211_v2 = vpop.permute.xlu0 %210   ;;  %v217_v3 = vpop.permute.xlu1 %216  }
  0xbf   :  { %213 = vst.msk [vmem:[#allocation0] sm:$0x1] %vm212_vm3, %v211_v2  }
  0xc0   :  { %v242_v4 = vld [vmem:[#allocation0 + $0x8] sm:$0x1]  ;;  %220 = vst.msk [vmem:[#allocation0 + $0x10] sm:$0x1] %vm218_vm4, %v217_v3  }
  0xc1   :  { %293 = vst [vmem:[%s486_s1 + $0x1] sm:$0x1] %v242_v4 }
  0xc6   :  { %v237_v5 = vld [vmem:[#allocation0] sm:$0x1]  ;;  %v231_v6 = vpop.permute.xlu0 %230  }
  0xc7   :  { %240 = vst [vmem:[%s486_s1] sm:$0x1] %v237_v5  ;;  %v248_v7 = vld [vmem:[#allocation0 + $0x10] sm:$0x1] }
  0xc8   :  { %294 = vst [vmem:[%s486_s1 + $0x2] sm:$0x1] %v248_v7 }
  0xc9   :  { %234 = vst.msk [vmem:[#allocation0 + $0x18] sm:$0x1] %vm232_vm5, %v231_v6  }
  0xd0   :  { %v254_v8 = vld [vmem:[#allocation0 + $0x18] sm:$0x1] }
  0xd1   :  { %295 = vst [vmem:[%s486_s1 + $0x3] sm:$0x1] %v254_v8 }

// kernel: tile.23
= control target key start
LH: loop header
LB: loop body
LE: loop exit
PB: predicated region body
PF: predicated region fallthrough
CT: control target
= control target key end

     0   :  { %s22_s0 = inlined_call_operand.vmem [shape: f32[15], index: 0, kind: input, shape index: {}]   ;;  %s23_s1 = inlined_call_operand.vmem [shape: f32[8,15], index: 1, kind: output, shape index: {}]  }
   0x1   :  { %v4_v0 = vld [vmem:[%s22_s0] ss:$0 sm:$0xff] }
   0x2   :  { %5 = vst [vmem:[%s23_s1] sm:$0xff] %v4_v0 }

// kernel: tile.24
= control target key start
LH: loop header
LB: loop body
LE: loop exit
PB: predicated region body
PF: predicated region fallthrough
CT: control target
= control target key end

     0   :  { %s67_s10 = smov 105   ;;  %s68_s11 = smov 75   ;;  %vm3_vm0 = vcmask 121856   ;;  %vm9_vm1 = vcmask 982856   ;;  %vm15_vm2 = vcmask 859856   ;;  %vm21_vm3 = vcmask 736856   ;;  %s111_s0 = inlined_call_operand.vmem [shape: f32[8,15], index: 0, kind: input, shape index: {}]   ;;  %s112_s1 = inlined_call_operand.vmem [shape: f32[1,120], index: 1, kind: output, shape index: {}]  }
   0x1   :  { %v53_v0 = vld [vmem:[%s111_s0 + $0x7] sm:$0x1]   ;;  %v55_v1 = vld [vmem:[%s111_s0 + $0x5] sm:$0x1]   ;;  %v57_v2 = vld [vmem:[%s111_s0 + $0x3] sm:$0x1]  }
   0x2   :  { %7 = vrot.lane.b32.xlu0 %v53_v0, %s67_s10  ;;  %19 = vrot.lane.b32.xlu1 %v55_v1, %s68_s11  ;;  %s69_s14 = smov 45   ;;  %v54_v3 = vld [vmem:[%s111_s0 + $0x6] sm:$0x1]   ;;  %v56_v4 = vld [vmem:[%s111_s0 + $0x4] sm:$0x1]   ;;  %s70_s21 = smov 90  }
   0x3   :  { %31 = vrot.lane.b32.xlu2 %v57_v2, %s69_s14  ;;  %v58_v5 = vld [vmem:[%s111_s0 + $0x2] sm:$0x1]   ;;  %s71_s22 = smov 60   ;;  %s72_s23 = smov 30   ;;  %v59_v6 = vld [vmem:[%s111_s0 + $0x1] sm:$0x1]  }
   0x4   :  { %s73_s26 = smov 15   ;;  %v2_v7 = vld [vmem:[%s111_s0] sm:$0x1]   ;;  %vm27_vm4 = vcmask 613856   ;;  %vm33_vm5 = vcmask 490856   ;;  %vm39_vm6 = vcmask 367856  }
   0x5   :  { %4 = vst.msk [vmem:[#allocation0] sm:$0x1] %vm3_vm0, %v2_v7   ;;  %vm45_vm7 = vcmask 244856  }
   0xa   :  { %13 = vrot.lane.b32.xlu0 %v54_v3, %s70_s21  ;;  %25 = vrot.lane.b32.xlu1 %v56_v4, %s71_s22 }
   0xb   :  { %37 = vrot.lane.b32.xlu2 %v58_v5, %s72_s23 }
  0x12   :  { %43 = vrot.lane.b32.xlu0 %v59_v6, %s73_s26 }
  0x5d   :  { %v32_v8 = vpop.permute.xlu2 %31  }
  0x65   :  { %v38_v9 = vpop.permute.xlu2 %37  }
  0x74   :  { %v8_v10 = vpop.permute.xlu0 %7   ;;  %v20_v11 = vpop.permute.xlu1 %19  }
  0x75   :  { %10 = vst.msk [vmem:[#allocation0] sm:$0x1] %vm9_vm1, %v8_v10  }
  0x7c   :  { %v14_v12 = vpop.permute.xlu0 %13   ;;  %v26_v13 = vpop.permute.xlu1 %25  }
  0x7d   :  { %16 = vst.msk [vmem:[#allocation0] sm:$0x1] %vm15_vm2, %v14_v12  }
  0x7e   :  { %22 = vst.msk [vmem:[#allocation0] sm:$0x1] %vm21_vm3, %v20_v11  }
  0x7f   :  { %28 = vst.msk [vmem:[#allocation0] sm:$0x1] %vm27_vm4, %v26_v13  }
  0x80   :  { %34 = vst.msk [vmem:[#allocation0] sm:$0x1] %vm33_vm5, %v32_v8  }
  0x81   :  { %40 = vst.msk [vmem:[#allocation0] sm:$0x1] %vm39_vm6, %v38_v9  }
  0x84   :  { %v44_v14 = vpop.permute.xlu0 %43  }
  0x85   :  { %46 = vst.msk [vmem:[#allocation0] sm:$0x1] %vm45_vm7, %v44_v14  }
  0x8c   :  { %v49_v15 = vld [vmem:[#allocation0] sm:$0x1] }
  0x8d   :  { %52 = vst [vmem:[%s112_s1] sm:$0x1] %v49_v15 }

// kernel: tile.28
= control target key start
LH: loop header
LB: loop body
LE: loop exit
PB: predicated region body
PF: predicated region fallthrough
CT: control target
= control target key end

     0   :  { %s22_s0 = inlined_call_operand.vmem [shape: f32[10], index: 0, kind: input, shape index: {}]   ;;  %s23_s1 = inlined_call_operand.vmem [shape: f32[2,10], index: 1, kind: output, shape index: {}]  }
   0x1   :  { %v4_v0 = vld [vmem:[%s22_s0] ss:$0 sm:$0xff] }
   0x2   :  { %5 = vst [vmem:[%s23_s1] sm:$0x3] %v4_v0 }

// kernel: tile.29
= control target key start
LH: loop header
LB: loop body
LE: loop exit
PB: predicated region body
PF: predicated region fallthrough
CT: control target
= control target key end

     0   :  { %vm7_vm0 = vcmask 80896   ;;  %vm13_vm1 = vcmask 162896   ;;  %s39_s0 = inlined_call_operand.vmem [shape: f32[2,10], index: 0, kind: input, shape index: {}]   ;;  %s40_s1 = inlined_call_operand.vmem [shape: f32[1,20], index: 1, kind: output, shape index: {}]  }
   0x1   :  { %v4_v0 = vld [vmem:[%s39_s0] sm:$0x3]  ;;  %s22_s0 = smov 10  }
   0x2   :  { %5 = vst [vmem:[#allocation1] sm:$0x3] %v4_v0 }
   0x9   :  { %v10_v1 = vld [vmem:[#allocation1 + $0x1] sm:$0x1]   ;;  %v6_v2 = vld [vmem:[#allocation1] sm:$0x1]  }
   0xa   :  { %11 = vrot.lane.b32.xlu0 %v10_v1, %s22_s0  ;;  %8 = vst.msk [vmem:[#allocation0] sm:$0x1] %vm7_vm0, %v6_v2  }
  0x7c   :  { %v12_v3 = vpop.permute.xlu0 %11  }
  0x7d   :  { %14 = vst.msk [vmem:[#allocation0] sm:$0x1] %vm13_vm1, %v12_v3  }
  0x84   :  { %v17_v4 = vld [vmem:[#allocation0] sm:$0x1] }
  0x85   :  { %20 = vst [vmem:[%s40_s1] sm:$0x1] %v17_v4 }

// kernel: cnn_forward.1
= control target key start
LH: loop header
LB: loop body
LE: loop exit
PB: predicated region body
PF: predicated region fallthrough
CT: control target
= control target key end

     0   :  { %s17494_s0 = inlined_call_operand.vmem [shape: f32[192,256], index: 0, kind: input, shape index: {}]   ;;  %s17495_s1 = inlined_call_operand.vmem [shape: f32[120,96], index: 1, kind: input, shape index: {}]   ;;  %s17496_s2 = inlined_call_operand.vmem [shape: f32[3,256,960], index: 2, kind: input, shape index: {}]   ;;  %s17497_s3 = inlined_call_operand.vmem [shape: f32[1,480], index: 3, kind: input, shape index: {}]   ;;  %s17498_s4 = inlined_call_operand.vmem [shape: f32[48,24], index: 4, kind: input, shape index: {}]   ;;  %s17499_s5 = inlined_call_operand.vmem [shape: f32[3,480,240], index: 5, kind: input, shape index: {}]   ;;  %s17500_s6 = inlined_call_operand.vmem [shape: f32[1,120], index: 6, kind: input, shape index: {}]   ;;  %s17501_s7 = inlined_call_operand.vmem [shape: f32[24,12], index: 7, kind: input, shape index: {}]   ;;  %s17502_s8 = inlined_call_operand.vmem [shape: f32[3,120,40], index: 8, kind: input, shape index: {}]   ;;  %s17503_s9 = inlined_call_operand.vmem [shape: f32[1,20], index: 9, kind: input, shape index: {}]   ;;  %s17504_s10 = inlined_call_operand.vmem [shape: f32[120,15], index: 10, kind: input, shape index: {}]   ;;  %s17505_s11 = inlined_call_operand.vmem [shape: f32[1,15], index: 11, kind: input, shape index: {}]   ;;  %s17506_s12 = inlined_call_operand.vmem [shape: f32[15,3], index: 12, kind: input, shape index: {}]   ;;  %s17507_s13 = inlined_call_operand.vmem [shape: f32[1,3], index: 13, kind: input, shape index: {}]   ;;  %s17508_s14 = inlined_call_operand.hbm [shape: f32[2,1,3], index: 14, kind: output, shape index: {}]  }
   0x1   :  { %17532 = sst [smem:[#allocation121_spill]] %s17494_s0 }
   0x2   :  { %17533 = sst [smem:[#allocation122_spill]] %s17495_s1 }
   0x3   :  { %19 = vsyncpa [#allocation3], 0 }
   0x4   :  { %21 = vsyncpa [#allocation3 + $0x1], 0  ;;  %s8580_s29 = smov 0   ;;  %s8582_s30 = smov 0  }
   0x5   :  { %s8584_s15 = smov 0   ;;  %s8586_s16 = smov 0  }
   0x6 LB: > { %17534 = sst [smem:[#allocation5_spill]] %s8491_s15  ;;  %s8601_s17 = sadd.s32 4294967295, %s8495_s16   ;;  %s8495_s16 = sphi %s8586_s16, %s17813_s16   ;;  %s8491_s15 = sphi %s8584_s15, %s17810_s15   ;;  %s8487_s30 = sphi %s8582_s30, %s17812_s30   ;;  %s8483_s29 = sphi %s8580_s29, %s17811_s29  }
   0x7   : > { %s6398_s18 = sadd.s32 4294967294, %s8495_s16   ;;  %s8605_s19 = sadd.s32 1, %s8495_s16  }
   0x8   : > { %s333_s20 = sadd.s32 1, %s8491_s15  ;;  %s330_s21 = ssub.s32 %s8495_s16, %s8605_s19 }
   0x9   : > { %p343_p0 = scmp.ne.s32.totalorder %s8491_s15, %s8487_s30  ;;  %p331_p1 = scmp.eq.s32.totalorder %s330_s21, 0 }
   0xa   : > { %p344_p2 = scmp.eq.s32.totalorder %s8601_s17, 1  ;;  %p349_p3 = scmp.ne.s32.totalorder %s8487_s30, %s8483_s29 }
   0xb   : > { %p350_p4 = scmp.eq.s32.totalorder %s6398_s18, 1  ;;  %p6401_p7 = scmp.ge.s32.totalorder %s8495_s16, 1 }
   0xc   : > { %s8616_s22 = scalar_select %p331_p1, %s8491_s15, %s333_s20  }
   0xd   : > { %p8618_p5 = por %p344_p2, %p343_p0  ;;  %p8622_p6 = por %p350_p4, %p349_p3 }
   0xe   : > { %17535 = sst [smem:[#allocation6_spill]] %s8616_s22  ;;  %p417_p8 = scmp.lt.s32.totalorder %s8495_s16, 3 }
  0x10   : > { %p418_p9 = pnand %p6401_p7, %p417_p8 }
  0x12   : > { %421 = sbr.rel (%p418_p9) target bundleno = 2946 (0xb82), region = 76 }
  0x17   : > { %s463_s25 = smul.u32 12, %s8601_s17  ;;  %s17538_s0 = sld [smem:[#allocation121_spill]]  ;;  %vm509_vm0 = vcmask 785408   ;;  %v6554_v28 = vld [vmem:[%s17496_s2 + $0xbc0] sm:$0xff]  ;;  %vm2766_vm1 = vcmask 261120   ;;  %vm4208_vm2 = vcmask 195584  }
  0x18   : > { %s17539_s1 = sld [smem:[#allocation122_spill]]  ;;  %v6682_v29 = vld [vmem:[%s17496_s2 + $0xfc0] sm:$0xff]  ;;  %1192 = vmatpush.msra.mxu2 %v6554_v28  ;;  %vm4616_vm3 = vcmask 1043456   ;;  %vm5339_vm4 = vcmask 64512   ;;  %vm5962_vm5 = vcmask 97280   ;;  %vm6038_vm6 = vcmask 982016  }
  0x19   : > { %p464_p10 = scmp.lt.s32.totalorder %s463_s25, 23  ;;  %v6558_v30 = vld [vmem:[%s17496_s2 + $0xbe0] sm:$0xff]  ;;  %1218 = vmatpush.msra.mxu3 %v6682_v29  ;;  %vm6034_vm7 = vcmask 1041408   ;;  %s8502_s21 = smov 20   ;;  %vm6228_vm8 = vcmask 162816   ;;  %vm6230_vm9 = vcmask 326656  }
  0x1a   : > { %v6686_v31 = vld [vmem:[%s17496_s2 + $0xfe0] sm:$0xff]  ;;  %vm6232_vm10 = vcmask 490496   ;;  %vm6234_vm11 = vcmask 654336   ;;  %vm6236_vm12 = vcmask 818176   ;;  %vm6285_vm13 = vcmask 1046528   ;;  %s461_s22 = sand.u32 1, %s8487_s30  }
  0x1b   : > { %s17815_s25 = smov (!%p464_p10, %s463_s25), 23  ;;  %v6546_v32 = vld [vmem:[%s17496_s2 + $0xb80] sm:$0xff]  ;;  %vm6281_vm14 = vcmask 121856  }
  0x1c   : > { %s7280_s26 = sshll.u32 %s17815_s25, 4  ;;  %v6674_v33 = vld [vmem:[%s17496_s2 + $0xf80] sm:$0xff]  ;;  %1193 = vmatpush.msra.mxu2 %v6546_v32  ;;  %v6555_v32 = vld [vmem:[%s17496_s2 + $0xbc8] sm:$0xff]  ;;  %s8503_s25 = smov 100  }
  0x1d   : > { %s8632_s18 = scalar_lea.vmem %s17538_s0, %s7280_s26  ;;  %v6550_v34 = vld [vmem:[%s17496_s2 + $0xba0] sm:$0xff]  ;;  %1219 = vmatpush.msra.mxu3 %v6674_v33  ;;  %v6683_v33 = vld [vmem:[%s17496_s2 + $0xfc8] sm:$0xff]  ;;  %s17516_s0 = smov 32  }
  0x1e   : > { %v492_v0 = vld [vmem:[%s8632_s18 + $0xb0] sm:$0xff]  ;;  %v493_v1 = vld [vmem:[%s8632_s18 + $0xb8] sm:$0xff]  ;;  %v490_v2 = vld [vmem:[%s8632_s18 + $0xa0] sm:$0xff]  ;;  %s8498_s26 = smov 8  }
  0x1f   : > { %559 = vmatpush.msra.mxu0 %v492_v0  ;;  %621 = vmatpush.msra.mxu1 %v493_v1  ;;  %v491_v3 = vld [vmem:[%s8632_s18 + $0xa8] sm:$0xff]  ;;  %v488_v4 = vld [vmem:[%s8632_s18 + $0x90] sm:$0xff]  ;;  %v489_v5 = vld [vmem:[%s8632_s18 + $0x98] sm:$0xff] }
  0x20   : > { %v486_v6 = vld [vmem:[%s8632_s18 + $0x80] sm:$0xff]  ;;  %v487_v7 = vld [vmem:[%s8632_s18 + $0x88] sm:$0xff]  ;;  %v484_v8 = vld [vmem:[%s8632_s18 + $0x70] sm:$0xff] }
  0x21   : > { %560 = vmatpush.msra.mxu0 %v490_v2  ;;  %622 = vmatpush.msra.mxu1 %v491_v3  ;;  %v485_v9 = vld [vmem:[%s8632_s18 + $0x78] sm:$0xff]  ;;  %v482_v10 = vld [vmem:[%s8632_s18 + $0x60] sm:$0xff]  ;;  %v483_v11 = vld [vmem:[%s8632_s18 + $0x68] sm:$0xff] }
  0x22   : > { %v480_v12 = vld [vmem:[%s8632_s18 + $0x50] sm:$0xff]  ;;  %v481_v13 = vld [vmem:[%s8632_s18 + $0x58] sm:$0xff]  ;;  %v478_v14 = vld [vmem:[%s8632_s18 + $0x40] sm:$0xff] }
  0x23   : > { %561 = vmatpush.msra.mxu0 %v488_v4  ;;  %623 = vmatpush.msra.mxu1 %v489_v5  ;;  %v479_v15 = vld [vmem:[%s8632_s18 + $0x48] sm:$0xff]  ;;  %v476_v16 = vld [vmem:[%s8632_s18 + $0x30] sm:$0xff]  ;;  %v477_v17 = vld [vmem:[%s8632_s18 + $0x38] sm:$0xff] }
  0x24   : > { %v474_v18 = vld [vmem:[%s8632_s18 + $0x20] sm:$0xff]  ;;  %v475_v19 = vld [vmem:[%s8632_s18 + $0x28] sm:$0xff]  ;;  %v472_v20 = vld [vmem:[%s8632_s18 + $0x10] sm:$0xff] }
  0x25   : > { %562 = vmatpush.msra.mxu0 %v486_v6  ;;  %624 = vmatpush.msra.mxu1 %v487_v7  ;;  %v473_v21 = vld [vmem:[%s8632_s18 + $0x18] sm:$0xff]  ;;  %v470_v22 = vld [vmem:[%s8632_s18] sm:$0xff]  ;;  %v471_v23 = vld [vmem:[%s8632_s18 + $0x8] sm:$0xff]  ;;  %s17594_s18 = smov 32  }
  0x26   : > { %v494_v24 = vld [vmem:[%s17539_s1] sm:$0xff]  ;;  %v495_v25 = vld [vmem:[%s17539_s1 + $0x8] sm:$0xff]  ;;  %v496_v26 = vld [vmem:[%s17539_s1 + $0x10] sm:$0xff] }
  0x27   : > { %563 = vmatpush.msra.mxu0 %v484_v8  ;;  %625 = vmatpush.msra.mxu1 %v485_v9  ;;  %v497_v27 = vld [vmem:[%s17539_s1 + $0x18] sm:$0xff]  ;;  %v6678_v35 = vld [vmem:[%s17496_s2 + $0xfa0] sm:$0xff]  ;;  %v499_v55 = vld [vmem:[%s17539_s1 + $0x28] sm:$0xff] }
  0x28   : > { %v6538_v36 = vld [vmem:[%s17496_s2 + $0xb40] sm:$0xff]  ;;  %v500_v6 = vld [vmem:[%s17539_s1 + $0x30] sm:$0xff] }
  0x29   : > { %564 = vmatpush.msra.mxu0 %v482_v10  ;;  %626 = vmatpush.msra.mxu1 %v483_v11  ;;  %v6666_v37 = vld [vmem:[%s17496_s2 + $0xf40] sm:$0xff] }
  0x2a   : > { %v6542_v38 = vld [vmem:[%s17496_s2 + $0xb60] sm:$0xff]  ;;  %1194 = vmatpush.msra.mxu2 %v6538_v36  ;;  %1220 = vmatpush.msra.mxu3 %v6666_v37  ;;  %v6547_v37 = vld [vmem:[%s17496_s2 + $0xb88] sm:$0xff] }
  0x2b   : > { %565 = vmatpush.msra.mxu0 %v480_v12  ;;  %627 = vmatpush.msra.mxu1 %v481_v13  ;;  %v6670_v39 = vld [vmem:[%s17496_s2 + $0xf60] sm:$0xff] }
  0x2c   : > { %v498_v40 = vld [vmem:[%s17539_s1 + $0x20] sm:$0xff] }
  0x2d   : > { %566 = vmatpush.msra.mxu0 %v478_v14  ;;  %628 = vmatpush.msra.mxu1 %v479_v15  ;;  %v6530_v41 = vld [vmem:[%s17496_s2 + $0xb00] sm:$0xff] }
  0x2e   : > { %v6658_v42 = vld [vmem:[%s17496_s2 + $0xf00] sm:$0xff]  ;;  %1195 = vmatpush.msra.mxu2 %v6530_v41  ;;  %v6539_v41 = vld [vmem:[%s17496_s2 + $0xb48] sm:$0xff] }
  0x2f   : > { %567 = vmatpush.msra.mxu0 %v476_v16  ;;  %629 = vmatpush.msra.mxu1 %v477_v17  ;;  %v6534_v43 = vld [vmem:[%s17496_s2 + $0xb20] sm:$0xff] }
  0x30   : > { %1221 = vmatpush.msra.mxu3 %v6658_v42  ;;  %v6662_v44 = vld [vmem:[%s17496_s2 + $0xf20] sm:$0xff]  ;;  %v6667_v42 = vld [vmem:[%s17496_s2 + $0xf48] sm:$0xff] }
  0x31   : > { %568 = vmatpush.msra.mxu0 %v474_v18  ;;  %630 = vmatpush.msra.mxu1 %v475_v19  ;;  %v6522_v45 = vld [vmem:[%s17496_s2 + $0xac0] sm:$0xff] }
  0x32   : > { %v6650_v46 = vld [vmem:[%s17496_s2 + $0xec0] sm:$0xff]  ;;  %1196 = vmatpush.msra.mxu2 %v6522_v45  ;;  %v503_v45 = vld [vmem:[%s17539_s1 + $0x48] sm:$0xff] }
  0x33   : > { %569 = vmatpush.msra.mxu0 %v472_v20  ;;  %631 = vmatpush.msra.mxu1 %v473_v21  ;;  %v6526_v47 = vld [vmem:[%s17496_s2 + $0xae0] sm:$0xff]  ;;  %v501_v21 = vld [vmem:[%s17539_s1 + $0x38] sm:$0xff] }
  0x34   : > { %v6654_v48 = vld [vmem:[%s17496_s2 + $0xee0] sm:$0xff]  ;;  %1222 = vmatpush.msra.mxu3 %v6650_v46  ;;  %v504_v46 = vld [vmem:[%s17539_s1 + $0x50] sm:$0xff] }
  0x35   : > { %570 = vmatpush.msra.mxu0 %v470_v22  ;;  %632 = vmatpush.msra.mxu1 %v471_v23  ;;  %v6514_v49 = vld [vmem:[%s17496_s2 + $0xa80] sm:$0xff] }
  0x36   : > { %6404 = vmatmul.msk.f32.vlgmr.msra.gmra.mxu0 %vm509_vm0, %v494_v24  ;;  %6419 = vmatmul.msk.f32.vlgmr.msra.gmra.mxu1 %vm509_vm0, %v494_v24  ;;  %v6642_v50 = vld [vmem:[%s17496_s2 + $0xe80] sm:$0xff] }
  0x37   : > { %1400 = vmatpush.msrb.mxu0 %v6558_v30  ;;  %1426 = vmatpush.msrb.mxu1 %v6686_v31  ;;  %v6518_v51 = vld [vmem:[%s17496_s2 + $0xaa0] sm:$0xff] }
  0x38   : > { %v6646_v52 = vld [vmem:[%s17496_s2 + $0xea0] sm:$0xff]  ;;  %1197 = vmatpush.msra.mxu2 %v6514_v49  ;;  %1223 = vmatpush.msra.mxu3 %v6642_v50  ;;  %v6659_v49 = vld [vmem:[%s17496_s2 + $0xf08] sm:$0xff]  ;;  %v6536_v50 = vld [vmem:[%s17496_s2 + $0xb30] sm:$0xff] }
  0x39   : > { %1401 = vmatpush.msrb.mxu0 %v6550_v34  ;;  %1427 = vmatpush.msrb.mxu1 %v6678_v35  ;;  %v6506_v53 = vld [vmem:[%s17496_s2 + $0xa40] sm:$0xff]  ;;  %v6560_v34 = vld [vmem:[%s17496_s2 + $0xbf0] sm:$0xff] }
  0x3a   : > { %v6634_v54 = vld [vmem:[%s17496_s2 + $0xe40] sm:$0xff]  ;;  %1198 = vmatpush.msra.mxu2 %v6506_v53  ;;  %v6688_v35 = vld [vmem:[%s17496_s2 + $0xff0] sm:$0xff]  ;;  %v6523_v53 = vld [vmem:[%s17496_s2 + $0xac8] sm:$0xff] }
  0x3b   : > { %1402 = vmatpush.msrb.mxu0 %v6542_v38  ;;  %1428 = vmatpush.msrb.mxu1 %v6670_v39  ;;  %v6510_v56 = vld [vmem:[%s17496_s2 + $0xa60] sm:$0xff]  ;;  %v6675_v38 = vld [vmem:[%s17496_s2 + $0xf88] sm:$0xff]  ;;  %v6552_v39 = vld [vmem:[%s17496_s2 + $0xbb0] sm:$0xff] }
  0x3c   : > { %v6638_v57 = vld [vmem:[%s17496_s2 + $0xe60] sm:$0xff]  ;;  %1224 = vmatpush.msra.mxu3 %v6634_v54  ;;  %v6651_v54 = vld [vmem:[%s17496_s2 + $0xec8] sm:$0xff] }
  0x3d   : > { %1403 = vmatpush.msrb.mxu0 %v6534_v43  ;;  %1429 = vmatpush.msrb.mxu1 %v6662_v44  ;;  %v6498_v58 = vld [vmem:[%s17496_s2 + $0xa00] sm:$0xff]  ;;  %v6544_v43 = vld [vmem:[%s17496_s2 + $0xb70] sm:$0xff] }
  0x3e   : > { %6405 = vmatmul.msk.f32.gmra.mxu0 %vm509_vm0, %v495_v25  ;;  %6420 = vmatmul.msk.f32.gmra.mxu1 %vm509_vm0, %v495_v25  ;;  %v6626_v59 = vld [vmem:[%s17496_s2 + $0xe00] sm:$0xff]  ;;  %v6672_v44 = vld [vmem:[%s17496_s2 + $0xf70] sm:$0xff] }
  0x3f   : > { %1404 = vmatpush.msrb.mxu0 %v6526_v47  ;;  %1430 = vmatpush.msrb.mxu1 %v6654_v48  ;;  %v6502_v60 = vld [vmem:[%s17496_s2 + $0xa20] sm:$0xff]  ;;  %v505_v47 = vld [vmem:[%s17539_s1 + $0x58] sm:$0xff]  ;;  %v6531_v48 = vld [vmem:[%s17496_s2 + $0xb08] sm:$0xff] }
  0x40   : > { %v6630_v61 = vld [vmem:[%s17496_s2 + $0xe20] sm:$0xff]  ;;  %1199 = vmatpush.msra.mxu2 %v6498_v58  ;;  %1225 = vmatpush.msra.mxu3 %v6626_v59  ;;  %v6643_v58 = vld [vmem:[%s17496_s2 + $0xe88] sm:$0xff]  ;;  %v6520_v59 = vld [vmem:[%s17496_s2 + $0xab0] sm:$0xff] }
  0x41   : > { %1405 = vmatpush.msrb.mxu0 %v6518_v51  ;;  %1431 = vmatpush.msrb.mxu1 %v6646_v52  ;;  %v6490_v62 = vld [vmem:[%s17496_s2 + $0x9c0] sm:$0xff]  ;;  %v6664_v51 = vld [vmem:[%s17496_s2 + $0xf30] sm:$0xff] }
  0x42   : > { %v6618_v63 = vld [vmem:[%s17496_s2 + $0xdc0] sm:$0xff]  ;;  %1200 = vmatpush.msra.mxu2 %v6490_v62  ;;  %v6635_v62 = vld [vmem:[%s17496_s2 + $0xe48] sm:$0xff] }
  0x43   : > { %1406 = vmatpush.msrb.mxu0 %v6510_v56  ;;  %1432 = vmatpush.msrb.mxu1 %v6638_v57  ;;  %v6494_v0 = vld [vmem:[%s17496_s2 + $0x9e0] sm:$0xff]  ;;  %v6656_v56 = vld [vmem:[%s17496_s2 + $0xef0] sm:$0xff]  ;;  %v6515_v57 = vld [vmem:[%s17496_s2 + $0xa88] sm:$0xff] }
  0x44   : > { %v6622_v1 = vld [vmem:[%s17496_s2 + $0xde0] sm:$0xff]  ;;  %1226 = vmatpush.msra.mxu3 %v6618_v63  ;;  %v6512_v63 = vld [vmem:[%s17496_s2 + $0xa70] sm:$0xff] }
  0x45   : > { %1407 = vmatpush.msrb.mxu0 %v6502_v60  ;;  %1433 = vmatpush.msrb.mxu1 %v6630_v61  ;;  %v6482_v2 = vld [vmem:[%s17496_s2 + $0x980] sm:$0xff]  ;;  %v6648_v60 = vld [vmem:[%s17496_s2 + $0xeb0] sm:$0xff]  ;;  %v6507_v61 = vld [vmem:[%s17496_s2 + $0xa48] sm:$0xff] }
  0x46   : > { %6406 = vmatmul.msk.f32.gmra.mxu0 %vm509_vm0, %v496_v26  ;;  %6421 = vmatmul.msk.f32.gmra.mxu1 %vm509_vm0, %v496_v26  ;;  %v6610_v3 = vld [vmem:[%s17496_s2 + $0xd80] sm:$0xff] }
  0x47   : > { %v6486_v4 = vld [vmem:[%s17496_s2 + $0x9a0] sm:$0xff]  ;;  %1408 = vmatpush.msrb.mxu0 %v6494_v0  ;;  %1434 = vmatpush.msrb.mxu1 %v6622_v1  ;;  %v6640_v0 = vld [vmem:[%s17496_s2 + $0xe70] sm:$0xff]  ;;  %v6499_v1 = vld [vmem:[%s17496_s2 + $0xa08] sm:$0xff] }
  0x48   : > { %v6614_v5 = vld [vmem:[%s17496_s2 + $0xda0] sm:$0xff]  ;;  %1201 = vmatpush.msra.mxu2 %v6482_v2  ;;  %1227 = vmatpush.msra.mxu3 %v6610_v3  ;;  %v6627_v2 = vld [vmem:[%s17496_s2 + $0xe08] sm:$0xff]  ;;  %v6504_v3 = vld [vmem:[%s17496_s2 + $0xa30] sm:$0xff] }
  0x49   : > { %v6474_v7 = vld [vmem:[%s17496_s2 + $0x940] sm:$0xff]  ;;  %1409 = vmatpush.msrb.mxu0 %v6486_v4  ;;  %1435 = vmatpush.msrb.mxu1 %v6614_v5  ;;  %v6632_v4 = vld [vmem:[%s17496_s2 + $0xe30] sm:$0xff]  ;;  %v507_v5 = vld [vmem:[%s17539_s1 + $0x68] sm:$0xff] }
  0x4a   : > { %v6602_v8 = vld [vmem:[%s17496_s2 + $0xd40] sm:$0xff]  ;;  %1202 = vmatpush.msra.mxu2 %v6474_v7  ;;  %v6619_v7 = vld [vmem:[%s17496_s2 + $0xdc8] sm:$0xff] }
  0x4b   : > { %v6478_v9 = vld [vmem:[%s17496_s2 + $0x960] sm:$0xff]  ;;  %1228 = vmatpush.msra.mxu3 %v6602_v8  ;;  %v6496_v8 = vld [vmem:[%s17496_s2 + $0x9f0] sm:$0xff] }
  0x4c   : > { %v6606_v10 = vld [vmem:[%s17496_s2 + $0xd60] sm:$0xff]  ;;  %1410 = vmatpush.msrb.mxu0 %v6478_v9  ;;  %v6624_v9 = vld [vmem:[%s17496_s2 + $0xdf0] sm:$0xff] }
  0x4d   : > { %v6466_v11 = vld [vmem:[%s17496_s2 + $0x900] sm:$0xff]  ;;  %1436 = vmatpush.msrb.mxu1 %v6606_v10  ;;  %v6483_v10 = vld [vmem:[%s17496_s2 + $0x988] sm:$0xff] }
  0x4e   : > { %6407 = vmatmul.msk.f32.gmra.mxu0 %vm509_vm0, %v497_v27  ;;  %6422 = vmatmul.msk.f32.gmra.mxu1 %vm509_vm0, %v497_v27  ;;  %v6594_v12 = vld [vmem:[%s17496_s2 + $0xd00] sm:$0xff] }
  0x4f   : > { %v6470_v13 = vld [vmem:[%s17496_s2 + $0x920] sm:$0xff]  ;;  %1203 = vmatpush.msra.mxu2 %v6466_v11  ;;  %1229 = vmatpush.msra.mxu3 %v6594_v12  ;;  %v6611_v11 = vld [vmem:[%s17496_s2 + $0xd88] sm:$0xff]  ;;  %v6488_v12 = vld [vmem:[%s17496_s2 + $0x9b0] sm:$0xff] }
  0x50   : > { %v6598_v14 = vld [vmem:[%s17496_s2 + $0xd20] sm:$0xff]  ;;  %1411 = vmatpush.msrb.mxu0 %v6470_v13  ;;  %v6616_v13 = vld [vmem:[%s17496_s2 + $0xdb0] sm:$0xff] }
  0x51   : > { %v6458_v15 = vld [vmem:[%s17496_s2 + $0x8c0] sm:$0xff]  ;;  %1437 = vmatpush.msrb.mxu1 %v6598_v14  ;;  %v6475_v14 = vld [vmem:[%s17496_s2 + $0x948] sm:$0xff] }
  0x52   : > { %v6586_v16 = vld [vmem:[%s17496_s2 + $0xcc0] sm:$0xff]  ;;  %1204 = vmatpush.msra.mxu2 %v6458_v15  ;;  %v6603_v15 = vld [vmem:[%s17496_s2 + $0xd48] sm:$0xff] }
  0x53   : > { %v6462_v17 = vld [vmem:[%s17496_s2 + $0x8e0] sm:$0xff]  ;;  %1230 = vmatpush.msra.mxu3 %v6586_v16  ;;  %v6480_v16 = vld [vmem:[%s17496_s2 + $0x970] sm:$0xff] }
  0x54   : > { %v6590_v18 = vld [vmem:[%s17496_s2 + $0xce0] sm:$0xff]  ;;  %1412 = vmatpush.msrb.mxu0 %v6462_v17  ;;  %v6608_v17 = vld [vmem:[%s17496_s2 + $0xd70] sm:$0xff] }
  0x55   : > { %v6450_v19 = vld [vmem:[%s17496_s2 + $0x880] sm:$0xff]  ;;  %1438 = vmatpush.msrb.mxu1 %v6590_v18  ;;  %v6467_v18 = vld [vmem:[%s17496_s2 + $0x908] sm:$0xff] }
  0x56   : > { %6408 = vmatmul.msk.f32.gmra.mxu0 %vm509_vm0, %v498_v40  ;;  %6423 = vmatmul.msk.f32.gmra.mxu1 %vm509_vm0, %v498_v40  ;;  %v6578_v20 = vld [vmem:[%s17496_s2 + $0xc80] sm:$0xff]  ;;  %v6680_v40 = vld [vmem:[%s17496_s2 + $0xfb0] sm:$0xff] }
  0x57   : > { %v6454_v22 = vld [vmem:[%s17496_s2 + $0x8a0] sm:$0xff]  ;;  %1205 = vmatpush.msra.mxu2 %v6450_v19  ;;  %1231 = vmatpush.msra.mxu3 %v6578_v20  ;;  %v6595_v19 = vld [vmem:[%s17496_s2 + $0xd08] sm:$0xff]  ;;  %v6472_v20 = vld [vmem:[%s17496_s2 + $0x930] sm:$0xff] }
  0x58   : > { %v6582_v23 = vld [vmem:[%s17496_s2 + $0xca0] sm:$0xff]  ;;  %1413 = vmatpush.msrb.mxu0 %v6454_v22  ;;  %v508_v22 = vld [vmem:[%s17539_s1 + $0x70] sm:$0xff] }
  0x59   : > { %v6442_v24 = vld [vmem:[%s17496_s2 + $0x840] sm:$0xff]  ;;  %1439 = vmatpush.msrb.mxu1 %v6582_v23  ;;  %v6459_v23 = vld [vmem:[%s17496_s2 + $0x8c8] sm:$0xff] }
  0x5a   : > { %v6570_v25 = vld [vmem:[%s17496_s2 + $0xc40] sm:$0xff]  ;;  %1206 = vmatpush.msra.mxu2 %v6442_v24  ;;  %v6587_v24 = vld [vmem:[%s17496_s2 + $0xcc8] sm:$0xff] }
  0x5b   : > { %v6446_v26 = vld [vmem:[%s17496_s2 + $0x860] sm:$0xff]  ;;  %1232 = vmatpush.msra.mxu3 %v6570_v25  ;;  %v6464_v25 = vld [vmem:[%s17496_s2 + $0x8f0] sm:$0xff] }
  0x5c   : > { %v6574_v27 = vld [vmem:[%s17496_s2 + $0xc60] sm:$0xff]  ;;  %1414 = vmatpush.msrb.mxu0 %v6446_v26  ;;  %v6592_v26 = vld [vmem:[%s17496_s2 + $0xcf0] sm:$0xff] }
  0x5d   : > { %v6434_v28 = vld [vmem:[%s17496_s2 + $0x800] sm:$0xff]  ;;  %1440 = vmatpush.msrb.mxu1 %v6574_v27  ;;  %v6451_v27 = vld [vmem:[%s17496_s2 + $0x888] sm:$0xff] }
  0x5e   : > { %6409 = vmatmul.msk.f32.gmra.mxu0 %vm509_vm0, %v499_v55  ;;  %6424 = vmatmul.msk.f32.gmra.mxu1 %vm509_vm0, %v499_v55  ;;  %v6562_v29 = vld [vmem:[%s17496_s2 + $0xc00] sm:$0xff]  ;;  %v6528_v55 = vld [vmem:[%s17496_s2 + $0xaf0] sm:$0xff] }
  0x5f   : > { %v6438_v30 = vld [vmem:[%s17496_s2 + $0x820] sm:$0xff]  ;;  %1207 = vmatpush.msra.mxu2 %v6434_v28  ;;  %1233 = vmatpush.msra.mxu3 %v6562_v29  ;;  %v6579_v28 = vld [vmem:[%s17496_s2 + $0xc88] sm:$0xff]  ;;  %v6456_v29 = vld [vmem:[%s17496_s2 + $0x8b0] sm:$0xff] }
  0x60   : > { %v6566_v31 = vld [vmem:[%s17496_s2 + $0xc20] sm:$0xff]  ;;  %1415 = vmatpush.msrb.mxu0 %v6438_v30  ;;  %v6584_v30 = vld [vmem:[%s17496_s2 + $0xcb0] sm:$0xff] }
  0x61   : > { %v502_v36 = vld [vmem:[%s17539_s1 + $0x40] sm:$0xff]  ;;  %1441 = vmatpush.msrb.mxu1 %v6566_v31  ;;  %1244 = vmatpush.msrb.mxu2 %v6555_v32  ;;  %v6443_v31 = vld [vmem:[%s17496_s2 + $0x848] sm:$0xff] }
  0x62   : > { %1270 = vmatpush.msrb.mxu3 %v6683_v33  ;;  %1504 = vmatpush.msra.mxu0 %v6560_v34  ;;  %v506_v52 = vld [vmem:[%s17539_s1 + $0x60] sm:$0xff]  ;;  %v6571_v32 = vld [vmem:[%s17496_s2 + $0xc48] sm:$0xff]  ;;  %v6448_v33 = vld [vmem:[%s17496_s2 + $0x870] sm:$0xff]  ;;  %s8504_s1 = smov 80  }
  0x63   : > { %1530 = vmatpush.msra.mxu1 %v6688_v35  ;;  %1245 = vmatpush.msrb.mxu2 %v6547_v37  ;;  %v6576_v34 = vld [vmem:[%s17496_s2 + $0xc70] sm:$0xff]  ;;  %v6435_v35 = vld [vmem:[%s17496_s2 + $0x808] sm:$0xff] }
  0x64   : > { %1271 = vmatpush.msrb.mxu3 %v6675_v38  ;;  %1505 = vmatpush.msra.mxu0 %v6552_v39  ;;  %v6440_v37 = vld [vmem:[%s17496_s2 + $0x830] sm:$0xff] }
  0x65   : > { %1531 = vmatpush.msra.mxu1 %v6680_v40  ;;  %1246 = vmatpush.msrb.mxu2 %v6539_v41  ;;  %v6568_v38 = vld [vmem:[%s17496_s2 + $0xc30] sm:$0xff] }
  0x66   : > { %6410 = vmatmul.msk.f32.gmra.mxu0 %vm509_vm0, %v500_v6  ;;  %6425 = vmatmul.msk.f32.gmra.mxu1 %vm509_vm0, %v500_v6  ;;  %v6491_v6 = vld [vmem:[%s17496_s2 + $0x9c8] sm:$0xff] }
  0x67   : > { %1272 = vmatpush.msrb.mxu3 %v6667_v42  ;;  %1506 = vmatpush.msra.mxu0 %v6544_v43 }
  0x68   : > { %1532 = vmatpush.msra.mxu1 %v6672_v44  ;;  %1247 = vmatpush.msrb.mxu2 %v6531_v48 }
  0x69   : > { %1273 = vmatpush.msrb.mxu3 %v6659_v49  ;;  %1507 = vmatpush.msra.mxu0 %v6536_v50  ;;  %v799_v49 = vld [vmem:[%s17496_s2 + $0x3c0] sm:$0xff] }
  0x6a   : > { %1533 = vmatpush.msra.mxu1 %v6664_v51  ;;  %1248 = vmatpush.msrb.mxu2 %v6523_v53  ;;  %v927_v50 = vld [vmem:[%s17496_s2 + $0x7c0] sm:$0xff]  ;;  %v6548_v51 = vld [vmem:[%s17496_s2 + $0xb90] sm:$0xff] }
  0x6b   : > { %1274 = vmatpush.msrb.mxu3 %v6651_v54  ;;  %1508 = vmatpush.msra.mxu0 %v6528_v55  ;;  %v791_v53 = vld [vmem:[%s17496_s2 + $0x380] sm:$0xff]  ;;  %v6540_v55 = vld [vmem:[%s17496_s2 + $0xb50] sm:$0xff] }
  0x6c   : > { %1534 = vmatpush.msra.mxu1 %v6656_v56  ;;  %1249 = vmatpush.msrb.mxu2 %v6515_v57  ;;  %v919_v54 = vld [vmem:[%s17496_s2 + $0x780] sm:$0xff]  ;;  %v6668_v56 = vld [vmem:[%s17496_s2 + $0xf50] sm:$0xff] }
  0x6d   : > { %1275 = vmatpush.msrb.mxu3 %v6643_v58  ;;  %1509 = vmatpush.msra.mxu0 %v6520_v59  ;;  %v783_v57 = vld [vmem:[%s17496_s2 + $0x340] sm:$0xff]  ;;  %v6532_v59 = vld [vmem:[%s17496_s2 + $0xb10] sm:$0xff] }
  0x6e   : > { %6411 = vmatmul.msk.f32.gmra.mxu0 %vm509_vm0, %v501_v21  ;;  %6426 = vmatmul.msk.f32.gmra.mxu1 %vm509_vm0, %v501_v21  ;;  %v6600_v21 = vld [vmem:[%s17496_s2 + $0xd30] sm:$0xff]  ;;  %v911_v58 = vld [vmem:[%s17496_s2 + $0x740] sm:$0xff] }
  0x6f   : > { %1535 = vmatpush.msra.mxu1 %v6648_v60  ;;  %1250 = vmatpush.msrb.mxu2 %v6507_v61  ;;  %v6660_v60 = vld [vmem:[%s17496_s2 + $0xf10] sm:$0xff]  ;;  %v775_v61 = vld [vmem:[%s17496_s2 + $0x300] sm:$0xff] }
  0x70   : > { %1276 = vmatpush.msrb.mxu3 %v6635_v62  ;;  %1510 = vmatpush.msra.mxu0 %v6512_v63  ;;  %v903_v62 = vld [vmem:[%s17496_s2 + $0x700] sm:$0xff] }
  0x71   : > { %1536 = vmatpush.msra.mxu1 %v6640_v0  ;;  %1251 = vmatpush.msrb.mxu2 %v6499_v1  ;;  %v6524_v1 = vld [vmem:[%s17496_s2 + $0xad0] sm:$0xff] }
  0x72   : > { %1277 = vmatpush.msrb.mxu3 %v6627_v2  ;;  %1511 = vmatpush.msra.mxu0 %v6504_v3  ;;  %v6652_v2 = vld [vmem:[%s17496_s2 + $0xed0] sm:$0xff]  ;;  %v767_v3 = vld [vmem:[%s17496_s2 + $0x2c0] sm:$0xff] }
  0x73   : > { %1537 = vmatpush.msra.mxu1 %v6632_v4  ;;  %1252 = vmatpush.msrb.mxu2 %v6491_v6  ;;  %v895_v4 = vld [vmem:[%s17496_s2 + $0x6c0] sm:$0xff]  ;;  %v6644_v6 = vld [vmem:[%s17496_s2 + $0xe90] sm:$0xff] }
  0x74   : > { %1278 = vmatpush.msrb.mxu3 %v6619_v7  ;;  %1512 = vmatpush.msra.mxu0 %v6496_v8  ;;  %v759_v7 = vld [vmem:[%s17496_s2 + $0x280] sm:$0xff] }
  0x75   : > { %1538 = vmatpush.msra.mxu1 %v6624_v9  ;;  %1253 = vmatpush.msrb.mxu2 %v6483_v10  ;;  %v887_v8 = vld [vmem:[%s17496_s2 + $0x680] sm:$0xff]  ;;  %v6508_v9 = vld [vmem:[%s17496_s2 + $0xa50] sm:$0xff] }
  0x76   : > { %6412 = vmatmul.msk.f32.gmra.mxu0 %vm509_vm0, %v502_v36  ;;  %6427 = vmatmul.msk.f32.gmra.mxu1 %vm509_vm0, %v502_v36  ;;  %v6563_v36 = vld [vmem:[%s17496_s2 + $0xc08] sm:$0xff]  ;;  %v6636_v10 = vld [vmem:[%s17496_s2 + $0xe50] sm:$0xff] }
  0x77   : > { %1279 = vmatpush.msrb.mxu3 %v6611_v11  ;;  %1513 = vmatpush.msra.mxu0 %v6488_v12  ;;  %v751_v11 = vld [vmem:[%s17496_s2 + $0x240] sm:$0xff] }
  0x78   : > { %1539 = vmatpush.msra.mxu1 %v6616_v13  ;;  %1254 = vmatpush.msrb.mxu2 %v6475_v14  ;;  %v879_v12 = vld [vmem:[%s17496_s2 + $0x640] sm:$0xff]  ;;  %v6500_v13 = vld [vmem:[%s17496_s2 + $0xa10] sm:$0xff] }
  0x79   : > { %1280 = vmatpush.msrb.mxu3 %v6603_v15  ;;  %1514 = vmatpush.msra.mxu0 %v6480_v16  ;;  %v6628_v14 = vld [vmem:[%s17496_s2 + $0xe10] sm:$0xff]  ;;  %v743_v15 = vld [vmem:[%s17496_s2 + $0x200] sm:$0xff] }
  0x7a   : > { %1540 = vmatpush.msra.mxu1 %v6608_v17  ;;  %1255 = vmatpush.msrb.mxu2 %v6467_v18  ;;  %v871_v16 = vld [vmem:[%s17496_s2 + $0x600] sm:$0xff] }
  0x7b   : > { %1281 = vmatpush.msrb.mxu3 %v6595_v19  ;;  %1515 = vmatpush.msra.mxu0 %v6472_v20  ;;  %v6492_v19 = vld [vmem:[%s17496_s2 + $0x9d0] sm:$0xff] }
  0x7c   : > { %1541 = vmatpush.msra.mxu1 %v6600_v21  ;;  %1256 = vmatpush.msrb.mxu2 %v6459_v23  ;;  %v6620_v20 = vld [vmem:[%s17496_s2 + $0xdd0] sm:$0xff]  ;;  %v735_v21 = vld [vmem:[%s17496_s2 + $0x1c0] sm:$0xff] }
  0x7d   : > { %1282 = vmatpush.msrb.mxu3 %v6587_v24  ;;  %1516 = vmatpush.msra.mxu0 %v6464_v25  ;;  %v6484_v23 = vld [vmem:[%s17496_s2 + $0x990] sm:$0xff]  ;;  %v727_v25 = vld [vmem:[%s17496_s2 + $0x180] sm:$0xff] }
  0x7e   : > { %6413 = vmatmul.msk.f32.gmra.mxu0 %vm509_vm0, %v503_v45  ;;  %6428 = vmatmul.msk.f32.gmra.mxu1 %vm509_vm0, %v503_v45  ;;  %v6556_v45 = vld [vmem:[%s17496_s2 + $0xbd0] sm:$0xff] }
  0x7f   : > { %1542 = vmatpush.msra.mxu1 %v6592_v26  ;;  %1257 = vmatpush.msrb.mxu2 %v6451_v27  ;;  %v6612_v24 = vld [vmem:[%s17496_s2 + $0xd90] sm:$0xff]  ;;  %v855_v26 = vld [vmem:[%s17496_s2 + $0x580] sm:$0xff] }
  0x80   : > { %1283 = vmatpush.msrb.mxu3 %v6579_v28  ;;  %1517 = vmatpush.msra.mxu0 %v6456_v29  ;;  %v6476_v27 = vld [vmem:[%s17496_s2 + $0x950] sm:$0xff]  ;;  %v719_v29 = vld [vmem:[%s17496_s2 + $0x140] sm:$0xff] }
  0x81   : > { %1543 = vmatpush.msra.mxu1 %v6584_v30  ;;  %1258 = vmatpush.msrb.mxu2 %v6443_v31  ;;  %v6604_v28 = vld [vmem:[%s17496_s2 + $0xd50] sm:$0xff]  ;;  %v847_v30 = vld [vmem:[%s17496_s2 + $0x540] sm:$0xff] }
  0x82   : > { %1284 = vmatpush.msrb.mxu3 %v6571_v32  ;;  %1518 = vmatpush.msra.mxu0 %v6448_v33  ;;  %v6468_v31 = vld [vmem:[%s17496_s2 + $0x910] sm:$0xff]  ;;  %v711_v33 = vld [vmem:[%s17496_s2 + $0x100] sm:$0xff] }
  0x83   : > { %1544 = vmatpush.msra.mxu1 %v6576_v34  ;;  %1259 = vmatpush.msrb.mxu2 %v6435_v35  ;;  %v6596_v32 = vld [vmem:[%s17496_s2 + $0xd10] sm:$0xff]  ;;  %v839_v34 = vld [vmem:[%s17496_s2 + $0x500] sm:$0xff] }
  0x84   : > { %1285 = vmatpush.msrb.mxu3 %v6563_v36  ;;  %1519 = vmatpush.msra.mxu0 %v6440_v37  ;;  %v6460_v35 = vld [vmem:[%s17496_s2 + $0x8d0] sm:$0xff]  ;;  %v703_v37 = vld [vmem:[%s17496_s2 + $0xc0] sm:$0xff] }
  0x85   : > { %1545 = vmatpush.msra.mxu1 %v6568_v38  ;;  %v6588_v36 = vld [vmem:[%s17496_s2 + $0xcd0] sm:$0xff]  ;;  %v831_v38 = vld [vmem:[%s17496_s2 + $0x4c0] sm:$0xff] }
  0x86   : > { %6414 = vmatmul.msk.f32.gmra.mxu0 %vm509_vm0, %v504_v46  ;;  %6429 = vmatmul.msk.f32.gmra.mxu1 %vm509_vm0, %v504_v46  ;;  %v6684_v46 = vld [vmem:[%s17496_s2 + $0xfd0] sm:$0xff] }
  0x8e   : > { %6415 = vmatmul.msk.f32.gmra.mxu0 %vm509_vm0, %v505_v47  ;;  %6430 = vmatmul.msk.f32.gmra.mxu1 %vm509_vm0, %v505_v47 }
  0x96   : > { %6416 = vmatmul.msk.f32.gmra.mxu0 %vm509_vm0, %v506_v52  ;;  %6431 = vmatmul.msk.f32.gmra.mxu1 %vm509_vm0, %v506_v52  ;;  %v6676_v52 = vld [vmem:[%s17496_s2 + $0xf90] sm:$0xff] }
  0x9e   : > { %6417 = vmatmul.msk.f32.gmra.mxu0 %vm509_vm0, %v507_v5  ;;  %6432 = vmatmul.msk.f32.gmra.mxu1 %vm509_vm0, %v507_v5  ;;  %v6516_v5 = vld [vmem:[%s17496_s2 + $0xa90] sm:$0xff] }
  0xa6   : > { %6418 = vmatmul.msk.f32.gmra.mxu0 %vm509_vm0, %v508_v22  ;;  %6433 = vmatmul.msk.f32.gmra.mxu1 %vm509_vm0, %v508_v22  ;;  %v863_v22 = vld [vmem:[%s17496_s2 + $0x5c0] sm:$0xff] }
  0xb3   : > { %v9117_v39 = vpop.f32.mrf.mxu0  ;;  %v9119_v40 = vpop.f32.mrf.mxu1 }
  0xbb   : > { %v9121_v41 = vpop.f32.mrf.mxu0  ;;  %v9123_v42 = vpop.f32.mrf.mxu1 }
  0xc3   : > { %v9125_v43 = vpop.f32.mrf.mxu0  ;;  %v9127_v44 = vpop.f32.mrf.mxu1 }
  0xcb   : > { %v9135_v47 = vpop.f32.mrf.mxu0  ;;  %v9137_v48 = vpop.f32.mrf.mxu1 }
  0xcc   : > { %1208 = vmatmul.f32.vlgmr.msra.gmra.mxu2 %v9135_v47  ;;  %1234 = vmatmul.f32.vlgmr.msra.gmra.mxu3 %v9137_v48 }
  0xcd   : > { %1296 = vmatpush.msra.mxu2 %v6556_v45  ;;  %1322 = vmatpush.msra.mxu3 %v6684_v46  ;;  %v6452_v45 = vld [vmem:[%s17496_s2 + $0x890] sm:$0xff] }
  0xce   : > { %1416 = vmatmul.f32.vlgmr.msrb.gmra.mxu0 %v9135_v47  ;;  %1442 = vmatmul.f32.vlgmr.msrb.gmra.mxu1 %v9137_v48  ;;  %v6580_v46 = vld [vmem:[%s17496_s2 + $0xc90] sm:$0xff] }
  0xcf   : > { %1608 = vmatpush.msrb.mxu0 %v799_v49  ;;  %1634 = vmatpush.msrb.mxu1 %v927_v50  ;;  %v695_v49 = vld [vmem:[%s17496_s2 + $0x80] sm:$0xff] }
  0xd0   : > { %1297 = vmatpush.msra.mxu2 %v6548_v51  ;;  %1323 = vmatpush.msra.mxu3 %v6676_v52  ;;  %v823_v50 = vld [vmem:[%s17496_s2 + $0x480] sm:$0xff]  ;;  %v6444_v51 = vld [vmem:[%s17496_s2 + $0x850] sm:$0xff] }
  0xd1   : > { %1609 = vmatpush.msrb.mxu0 %v791_v53  ;;  %1635 = vmatpush.msrb.mxu1 %v919_v54  ;;  %v6572_v52 = vld [vmem:[%s17496_s2 + $0xc50] sm:$0xff]  ;;  %v687_v53 = vld [vmem:[%s17496_s2 + $0x40] sm:$0xff] }
  0xd2   : > { %1298 = vmatpush.msra.mxu2 %v6540_v55  ;;  %1324 = vmatpush.msra.mxu3 %v6668_v56  ;;  %v815_v54 = vld [vmem:[%s17496_s2 + $0x440] sm:$0xff]  ;;  %v6436_v55 = vld [vmem:[%s17496_s2 + $0x810] sm:$0xff] }
  0xd3   : > { %1610 = vmatpush.msrb.mxu0 %v783_v57  ;;  %1636 = vmatpush.msrb.mxu1 %v911_v58  ;;  %v9185_v63 = vpop.f32.mrf.mxu0  ;;  %v9187_v0 = vpop.f32.mrf.mxu1  ;;  %v6564_v56 = vld [vmem:[%s17496_s2 + $0xc10] sm:$0xff]  ;;  %v679_v57 = vld [vmem:[%s17496_s2] sm:$0xff] }
  0xd4   : > { %1299 = vmatpush.msra.mxu2 %v6532_v59  ;;  %1325 = vmatpush.msra.mxu3 %v6660_v60  ;;  %v807_v58 = vld [vmem:[%s17496_s2 + $0x400] sm:$0xff]  ;;  %v6557_v59 = vld [vmem:[%s17496_s2 + $0xbd8] sm:$0xff] }
  0xd5   : > { %1611 = vmatpush.msrb.mxu0 %v775_v61  ;;  %1637 = vmatpush.msrb.mxu1 %v903_v62  ;;  %v6685_v60 = vld [vmem:[%s17496_s2 + $0xfd8] sm:$0xff]  ;;  %v801_v61 = vld [vmem:[%s17496_s2 + $0x3d0] sm:$0xff] }
  0xd6   : > { %1211 = vmatmul.f32.gmra.mxu2 %v9185_v63  ;;  %1237 = vmatmul.f32.gmra.mxu3 %v9187_v0  ;;  %v929_v62 = vld [vmem:[%s17496_s2 + $0x7d0] sm:$0xff] }
  0xd7   : > { %1300 = vmatpush.msra.mxu2 %v6524_v1  ;;  %1326 = vmatpush.msra.mxu3 %v6652_v2  ;;  %v6549_v1 = vld [vmem:[%s17496_s2 + $0xb98] sm:$0xff] }
  0xd8   : > { %1419 = vmatmul.f32.gmra.mxu0 %v9185_v63  ;;  %1445 = vmatmul.f32.gmra.mxu1 %v9187_v0  ;;  %v6677_v2 = vld [vmem:[%s17496_s2 + $0xf98] sm:$0xff] }
  0xd9   : > { %1612 = vmatpush.msrb.mxu0 %v767_v3  ;;  %1638 = vmatpush.msrb.mxu1 %v895_v4  ;;  %v793_v3 = vld [vmem:[%s17496_s2 + $0x390] sm:$0xff] }
  0xda   : > { %1301 = vmatpush.msra.mxu2 %v6516_v5  ;;  %1327 = vmatpush.msra.mxu3 %v6644_v6  ;;  %v921_v4 = vld [vmem:[%s17496_s2 + $0x790] sm:$0xff]  ;;  %v6541_v5 = vld [vmem:[%s17496_s2 + $0xb58] sm:$0xff] }
  0xdb   : > { %1613 = vmatpush.msrb.mxu0 %v759_v7  ;;  %1639 = vmatpush.msrb.mxu1 %v887_v8  ;;  %v9241_v17 = vpop.f32.mrf.mxu0  ;;  %v9243_v18 = vpop.f32.mrf.mxu1  ;;  %v6669_v6 = vld [vmem:[%s17496_s2 + $0xf58] sm:$0xff]  ;;  %v785_v7 = vld [vmem:[%s17496_s2 + $0x350] sm:$0xff] }
  0xdc   : > { %1302 = vmatpush.msra.mxu2 %v6508_v9  ;;  %1328 = vmatpush.msra.mxu3 %v6636_v10  ;;  %v913_v8 = vld [vmem:[%s17496_s2 + $0x750] sm:$0xff]  ;;  %v6533_v9 = vld [vmem:[%s17496_s2 + $0xb18] sm:$0xff] }
  0xdd   : > { %1614 = vmatpush.msrb.mxu0 %v751_v11  ;;  %1640 = vmatpush.msrb.mxu1 %v879_v12  ;;  %v6661_v10 = vld [vmem:[%s17496_s2 + $0xf18] sm:$0xff]  ;;  %v777_v11 = vld [vmem:[%s17496_s2 + $0x310] sm:$0xff] }
  0xde   : > { %1303 = vmatpush.msra.mxu2 %v6500_v13  ;;  %1329 = vmatpush.msra.mxu3 %v6628_v14  ;;  %v905_v12 = vld [vmem:[%s17496_s2 + $0x710] sm:$0xff]  ;;  %v6525_v13 = vld [vmem:[%s17496_s2 + $0xad8] sm:$0xff] }
  0xdf   : > { %1615 = vmatpush.msrb.mxu0 %v743_v15  ;;  %1641 = vmatpush.msrb.mxu1 %v871_v16  ;;  %v6653_v14 = vld [vmem:[%s17496_s2 + $0xed8] sm:$0xff]  ;;  %v769_v15 = vld [vmem:[%s17496_s2 + $0x2d0] sm:$0xff] }
  0xe0   : > { %1214 = vmatmul.f32.gmra.mxu2 %v9241_v17  ;;  %1240 = vmatmul.f32.gmra.mxu3 %v9243_v18  ;;  %v897_v16 = vld [vmem:[%s17496_s2 + $0x6d0] sm:$0xff] }
  0xe1   : > { %1304 = vmatpush.msra.mxu2 %v6492_v19  ;;  %1330 = vmatpush.msra.mxu3 %v6620_v20  ;;  %v6517_v19 = vld [vmem:[%s17496_s2 + $0xa98] sm:$0xff] }
  0xe2   : > { %1422 = vmatmul.f32.gmra.mxu0 %v9241_v17  ;;  %1448 = vmatmul.f32.gmra.mxu1 %v9243_v18  ;;  %v6645_v20 = vld [vmem:[%s17496_s2 + $0xe98] sm:$0xff] }
  0xe3   : > { %1616 = vmatpush.msrb.mxu0 %v735_v21  ;;  %1642 = vmatpush.msrb.mxu1 %v863_v22  ;;  %v761_v21 = vld [vmem:[%s17496_s2 + $0x290] sm:$0xff] }
  0xe4   : > { %1305 = vmatpush.msra.mxu2 %v6484_v23  ;;  %1331 = vmatpush.msra.mxu3 %v6612_v24  ;;  %v889_v22 = vld [vmem:[%s17496_s2 + $0x690] sm:$0xff]  ;;  %v6509_v23 = vld [vmem:[%s17496_s2 + $0xa58] sm:$0xff] }
  0xe5   : > { %1617 = vmatpush.msrb.mxu0 %v727_v25  ;;  %1643 = vmatpush.msrb.mxu1 %v855_v26  ;;  %v6637_v24 = vld [vmem:[%s17496_s2 + $0xe58] sm:$0xff]  ;;  %v753_v25 = vld [vmem:[%s17496_s2 + $0x250] sm:$0xff] }
  0xe6   : > { %1306 = vmatpush.msra.mxu2 %v6476_v27  ;;  %1332 = vmatpush.msra.mxu3 %v6604_v28  ;;  %v881_v26 = vld [vmem:[%s17496_s2 + $0x650] sm:$0xff]  ;;  %v6501_v27 = vld [vmem:[%s17496_s2 + $0xa18] sm:$0xff] }
  0xe7   : > { %1618 = vmatpush.msrb.mxu0 %v719_v29  ;;  %1644 = vmatpush.msrb.mxu1 %v847_v30  ;;  %v6629_v28 = vld [vmem:[%s17496_s2 + $0xe18] sm:$0xff]  ;;  %v745_v29 = vld [vmem:[%s17496_s2 + $0x210] sm:$0xff] }
  0xe8   : > { %1307 = vmatpush.msra.mxu2 %v6468_v31  ;;  %1333 = vmatpush.msra.mxu3 %v6596_v32  ;;  %v873_v30 = vld [vmem:[%s17496_s2 + $0x610] sm:$0xff]  ;;  %v6493_v31 = vld [vmem:[%s17496_s2 + $0x9d8] sm:$0xff] }
  0xe9   : > { %1619 = vmatpush.msrb.mxu0 %v711_v33  ;;  %1645 = vmatpush.msrb.mxu1 %v839_v34  ;;  %v6621_v32 = vld [vmem:[%s17496_s2 + $0xdd8] sm:$0xff]  ;;  %v737_v33 = vld [vmem:[%s17496_s2 + $0x1d0] sm:$0xff] }
  0xea   : > { %1260 = vmatmul.f32.vlgmr.msrb.gmra.mxu2 %v9135_v47  ;;  %1286 = vmatmul.f32.vlgmr.msrb.gmra.mxu3 %v9137_v48  ;;  %v865_v34 = vld [vmem:[%s17496_s2 + $0x5d0] sm:$0xff] }
  0xeb   : > { %1308 = vmatpush.msra.mxu2 %v6460_v35  ;;  %1334 = vmatpush.msra.mxu3 %v6588_v36  ;;  %v6485_v35 = vld [vmem:[%s17496_s2 + $0x998] sm:$0xff] }
  0xec   : > { %1520 = vmatmul.f32.vlgmr.msra.gmra.mxu0 %v9135_v47  ;;  %1546 = vmatmul.f32.vlgmr.msra.gmra.mxu1 %v9137_v48  ;;  %v6613_v36 = vld [vmem:[%s17496_s2 + $0xd98] sm:$0xff] }
  0xed   : > { %1620 = vmatpush.msrb.mxu0 %v703_v37  ;;  %1646 = vmatpush.msrb.mxu1 %v831_v38  ;;  %v729_v37 = vld [vmem:[%s17496_s2 + $0x190] sm:$0xff] }
  0xee   : > { %1309 = vmatpush.msra.mxu2 %v6452_v45  ;;  %1335 = vmatpush.msra.mxu3 %v6580_v46  ;;  %v857_v38 = vld [vmem:[%s17496_s2 + $0x590] sm:$0xff]  ;;  %v6477_v45 = vld [vmem:[%s17496_s2 + $0x958] sm:$0xff] }
  0xef   : > { %1621 = vmatpush.msrb.mxu0 %v695_v49  ;;  %1647 = vmatpush.msrb.mxu1 %v823_v50  ;;  %v6605_v46 = vld [vmem:[%s17496_s2 + $0xd58] sm:$0xff]  ;;  %v721_v49 = vld [vmem:[%s17496_s2 + $0x150] sm:$0xff] }
  0xf0   : > { %1310 = vmatpush.msra.mxu2 %v6444_v51  ;;  %1336 = vmatpush.msra.mxu3 %v6572_v52  ;;  %v849_v50 = vld [vmem:[%s17496_s2 + $0x550] sm:$0xff]  ;;  %v6469_v51 = vld [vmem:[%s17496_s2 + $0x918] sm:$0xff] }
  0xf1   : > { %1622 = vmatpush.msrb.mxu0 %v687_v53  ;;  %1648 = vmatpush.msrb.mxu1 %v815_v54  ;;  %v6597_v52 = vld [vmem:[%s17496_s2 + $0xd18] sm:$0xff]  ;;  %v713_v53 = vld [vmem:[%s17496_s2 + $0x110] sm:$0xff] }
  0xf2   : > { %1311 = vmatpush.msra.mxu2 %v6436_v55  ;;  %1337 = vmatpush.msra.mxu3 %v6564_v56  ;;  %v841_v54 = vld [vmem:[%s17496_s2 + $0x510] sm:$0xff]  ;;  %v6461_v55 = vld [vmem:[%s17496_s2 + $0x8d8] sm:$0xff] }
  0xf3   : > { %1623 = vmatpush.msrb.mxu0 %v679_v57  ;;  %1649 = vmatpush.msrb.mxu1 %v807_v58  ;;  %v6589_v56 = vld [vmem:[%s17496_s2 + $0xcd8] sm:$0xff]  ;;  %v705_v57 = vld [vmem:[%s17496_s2 + $0xd0] sm:$0xff] }
  0xf4   : > { %1348 = vmatpush.msrb.mxu2 %v6557_v59  ;;  %1374 = vmatpush.msrb.mxu3 %v6685_v60  ;;  %v833_v58 = vld [vmem:[%s17496_s2 + $0x4d0] sm:$0xff]  ;;  %v6453_v59 = vld [vmem:[%s17496_s2 + $0x898] sm:$0xff] }
  0xf5   : > { %1712 = vmatpush.msra.mxu0 %v801_v61  ;;  %1738 = vmatpush.msra.mxu1 %v929_v62  ;;  %v6581_v60 = vld [vmem:[%s17496_s2 + $0xc98] sm:$0xff]  ;;  %v697_v61 = vld [vmem:[%s17496_s2 + $0x90] sm:$0xff] }
  0xf6   : > { %1263 = vmatmul.f32.gmra.mxu2 %v9185_v63  ;;  %1289 = vmatmul.f32.gmra.mxu3 %v9187_v0  ;;  %v825_v62 = vld [vmem:[%s17496_s2 + $0x490] sm:$0xff] }
  0xf7   : > { %1523 = vmatmul.f32.gmra.mxu0 %v9185_v63  ;;  %1549 = vmatmul.f32.gmra.mxu1 %v9187_v0 }
  0xf8   : > { %1349 = vmatpush.msrb.mxu2 %v6549_v1  ;;  %1375 = vmatpush.msrb.mxu3 %v6677_v2  ;;  %v6445_v1 = vld [vmem:[%s17496_s2 + $0x858] sm:$0xff] }
  0xf9   : > { %1713 = vmatpush.msra.mxu0 %v793_v3  ;;  %1739 = vmatpush.msra.mxu1 %v921_v4  ;;  %v6573_v2 = vld [vmem:[%s17496_s2 + $0xc58] sm:$0xff]  ;;  %v689_v3 = vld [vmem:[%s17496_s2 + $0x50] sm:$0xff] }
  0xfa   : > { %1350 = vmatpush.msrb.mxu2 %v6541_v5  ;;  %1376 = vmatpush.msrb.mxu3 %v6669_v6  ;;  %v817_v4 = vld [vmem:[%s17496_s2 + $0x450] sm:$0xff]  ;;  %v6437_v5 = vld [vmem:[%s17496_s2 + $0x818] sm:$0xff] }
  0xfb   : > { %1714 = vmatpush.msra.mxu0 %v785_v7  ;;  %1740 = vmatpush.msra.mxu1 %v913_v8  ;;  %v6565_v6 = vld [vmem:[%s17496_s2 + $0xc18] sm:$0xff]  ;;  %v681_v7 = vld [vmem:[%s17496_s2 + $0x10] sm:$0xff] }
  0xfc   : > { %1351 = vmatpush.msrb.mxu2 %v6533_v9  ;;  %1377 = vmatpush.msrb.mxu3 %v6661_v10  ;;  %v809_v8 = vld [vmem:[%s17496_s2 + $0x410] sm:$0xff]  ;;  %v6559_v9 = vld [vmem:[%s17496_s2 + $0xbe8] sm:$0xff] }
  0xfd   : > { %1715 = vmatpush.msra.mxu0 %v777_v11  ;;  %1741 = vmatpush.msra.mxu1 %v905_v12  ;;  %v6687_v10 = vld [vmem:[%s17496_s2 + $0xfe8] sm:$0xff]  ;;  %v803_v11 = vld [vmem:[%s17496_s2 + $0x3e0] sm:$0xff] }
  0xfe   : > { %1352 = vmatpush.msrb.mxu2 %v6525_v13  ;;  %1378 = vmatpush.msrb.mxu3 %v6653_v14  ;;  %v931_v12 = vld [vmem:[%s17496_s2 + $0x7e0] sm:$0xff]  ;;  %v6551_v13 = vld [vmem:[%s17496_s2 + $0xba8] sm:$0xff] }
  0xff   : > { %1716 = vmatpush.msra.mxu0 %v769_v15  ;;  %1742 = vmatpush.msra.mxu1 %v897_v16  ;;  %v6679_v14 = vld [vmem:[%s17496_s2 + $0xfa8] sm:$0xff]  ;;  %v795_v15 = vld [vmem:[%s17496_s2 + $0x3a0] sm:$0xff] }
 0x100   : > { %1266 = vmatmul.f32.gmra.mxu2 %v9241_v17  ;;  %1292 = vmatmul.f32.gmra.mxu3 %v9243_v18  ;;  %v923_v16 = vld [vmem:[%s17496_s2 + $0x7a0] sm:$0xff] }
 0x101   : > { %1526 = vmatmul.f32.gmra.mxu0 %v9241_v17  ;;  %1552 = vmatmul.f32.gmra.mxu1 %v9243_v18 }
 0x102   : > { %1353 = vmatpush.msrb.mxu2 %v6517_v19  ;;  %1379 = vmatpush.msrb.mxu3 %v6645_v20  ;;  %v6543_v19 = vld [vmem:[%s17496_s2 + $0xb68] sm:$0xff] }
 0x103   : > { %1717 = vmatpush.msra.mxu0 %v761_v21  ;;  %1743 = vmatpush.msra.mxu1 %v889_v22  ;;  %v6671_v20 = vld [vmem:[%s17496_s2 + $0xf68] sm:$0xff]  ;;  %v787_v21 = vld [vmem:[%s17496_s2 + $0x360] sm:$0xff] }
 0x104   : > { %1354 = vmatpush.msrb.mxu2 %v6509_v23  ;;  %1380 = vmatpush.msrb.mxu3 %v6637_v24  ;;  %v915_v22 = vld [vmem:[%s17496_s2 + $0x760] sm:$0xff]  ;;  %v6535_v23 = vld [vmem:[%s17496_s2 + $0xb28] sm:$0xff] }
 0x105   : > { %1718 = vmatpush.msra.mxu0 %v753_v25  ;;  %1744 = vmatpush.msra.mxu1 %v881_v26  ;;  %v6663_v24 = vld [vmem:[%s17496_s2 + $0xf28] sm:$0xff]  ;;  %v779_v25 = vld [vmem:[%s17496_s2 + $0x320] sm:$0xff] }
 0x106   : > { %1355 = vmatpush.msrb.mxu2 %v6501_v27  ;;  %1381 = vmatpush.msrb.mxu3 %v6629_v28  ;;  %v907_v26 = vld [vmem:[%s17496_s2 + $0x720] sm:$0xff]  ;;  %v6527_v27 = vld [vmem:[%s17496_s2 + $0xae8] sm:$0xff] }
 0x107   : > { %1719 = vmatpush.msra.mxu0 %v745_v29  ;;  %1745 = vmatpush.msra.mxu1 %v873_v30  ;;  %v6655_v28 = vld [vmem:[%s17496_s2 + $0xee8] sm:$0xff]  ;;  %v771_v29 = vld [vmem:[%s17496_s2 + $0x2e0] sm:$0xff] }
 0x108   : > { %1356 = vmatpush.msrb.mxu2 %v6493_v31  ;;  %1382 = vmatpush.msrb.mxu3 %v6621_v32  ;;  %v899_v30 = vld [vmem:[%s17496_s2 + $0x6e0] sm:$0xff]  ;;  %v6519_v31 = vld [vmem:[%s17496_s2 + $0xaa8] sm:$0xff] }
 0x109   : > { %1720 = vmatpush.msra.mxu0 %v737_v33  ;;  %1746 = vmatpush.msra.mxu1 %v865_v34  ;;  %v6647_v32 = vld [vmem:[%s17496_s2 + $0xea8] sm:$0xff]  ;;  %v763_v33 = vld [vmem:[%s17496_s2 + $0x2a0] sm:$0xff] }
 0x10a   : > { %1312 = vmatmul.f32.vlgmr.msra.gmra.mxu2 %v9135_v47  ;;  %1338 = vmatmul.f32.vlgmr.msra.gmra.mxu3 %v9137_v48  ;;  %v891_v34 = vld [vmem:[%s17496_s2 + $0x6a0] sm:$0xff] }
 0x10b   : > { %1624 = vmatmul.f32.vlgmr.msrb.gmra.mxu0 %v9117_v39  ;;  %1650 = vmatmul.f32.vlgmr.msrb.gmra.mxu1 %v9119_v40 }
 0x10c   : > { %1357 = vmatpush.msrb.mxu2 %v6485_v35  ;;  %1383 = vmatpush.msrb.mxu3 %v6613_v36  ;;  %v6511_v35 = vld [vmem:[%s17496_s2 + $0xa68] sm:$0xff] }
 0x10d   : > { %1721 = vmatpush.msra.mxu0 %v729_v37  ;;  %1747 = vmatpush.msra.mxu1 %v857_v38  ;;  %v6639_v36 = vld [vmem:[%s17496_s2 + $0xe68] sm:$0xff]  ;;  %v755_v37 = vld [vmem:[%s17496_s2 + $0x260] sm:$0xff] }
 0x10e   : > { %1358 = vmatpush.msrb.mxu2 %v6477_v45  ;;  %1384 = vmatpush.msrb.mxu3 %v6605_v46  ;;  %v883_v38 = vld [vmem:[%s17496_s2 + $0x660] sm:$0xff]  ;;  %v6503_v45 = vld [vmem:[%s17496_s2 + $0xa28] sm:$0xff] }
 0x10f   : > { %1722 = vmatpush.msra.mxu0 %v721_v49  ;;  %1748 = vmatpush.msra.mxu1 %v849_v50  ;;  %v6631_v46 = vld [vmem:[%s17496_s2 + $0xe28] sm:$0xff]  ;;  %v747_v49 = vld [vmem:[%s17496_s2 + $0x220] sm:$0xff] }
 0x110   : > { %1359 = vmatpush.msrb.mxu2 %v6469_v51  ;;  %1385 = vmatpush.msrb.mxu3 %v6597_v52  ;;  %v875_v50 = vld [vmem:[%s17496_s2 + $0x620] sm:$0xff]  ;;  %v6495_v51 = vld [vmem:[%s17496_s2 + $0x9e8] sm:$0xff] }
 0x111   : > { %1723 = vmatpush.msra.mxu0 %v713_v53  ;;  %1749 = vmatpush.msra.mxu1 %v841_v54  ;;  %v6623_v52 = vld [vmem:[%s17496_s2 + $0xde8] sm:$0xff]  ;;  %v739_v53 = vld [vmem:[%s17496_s2 + $0x1e0] sm:$0xff] }
 0x112   : > { %1360 = vmatpush.msrb.mxu2 %v6461_v55  ;;  %1386 = vmatpush.msrb.mxu3 %v6589_v56  ;;  %v867_v54 = vld [vmem:[%s17496_s2 + $0x5e0] sm:$0xff]  ;;  %v6487_v55 = vld [vmem:[%s17496_s2 + $0x9a8] sm:$0xff] }
 0x113   : > { %1724 = vmatpush.msra.mxu0 %v705_v57  ;;  %1750 = vmatpush.msra.mxu1 %v833_v58  ;;  %v6615_v56 = vld [vmem:[%s17496_s2 + $0xda8] sm:$0xff]  ;;  %v9679_v57 = vpop.f32.mrf.mxu0  ;;  %v9681_v58 = vpop.f32.mrf.mxu1 }
 0x114   : > { %1315 = vmatmul.f32.gmra.mxu2 %v9185_v63  ;;  %1341 = vmatmul.f32.gmra.mxu3 %v9187_v0 }
 0x115   : > { %1627 = vmatmul.f32.gmra.mxu0 %v9121_v41  ;;  %1653 = vmatmul.f32.gmra.mxu1 %v9123_v42 }
 0x116   : > { %1361 = vmatpush.msrb.mxu2 %v6453_v59  ;;  %1387 = vmatpush.msrb.mxu3 %v6581_v60  ;;  %v731_v59 = vld [vmem:[%s17496_s2 + $0x1a0] sm:$0xff] }
 0x117   : > { %1725 = vmatpush.msra.mxu0 %v697_v61  ;;  %1751 = vmatpush.msra.mxu1 %v825_v62  ;;  %v859_v60 = vld [vmem:[%s17496_s2 + $0x5a0] sm:$0xff]  ;;  %v6479_v61 = vld [vmem:[%s17496_s2 + $0x968] sm:$0xff] }
 0x118   : > { %1362 = vmatpush.msrb.mxu2 %v6445_v1  ;;  %1388 = vmatpush.msrb.mxu3 %v6573_v2  ;;  %v6607_v62 = vld [vmem:[%s17496_s2 + $0xd68] sm:$0xff]  ;;  %v723_v1 = vld [vmem:[%s17496_s2 + $0x160] sm:$0xff] }
 0x119   : > { %1726 = vmatpush.msra.mxu0 %v689_v3  ;;  %1752 = vmatpush.msra.mxu1 %v817_v4  ;;  %v851_v2 = vld [vmem:[%s17496_s2 + $0x560] sm:$0xff]  ;;  %v6471_v3 = vld [vmem:[%s17496_s2 + $0x928] sm:$0xff] }
 0x11a   : > { %1363 = vmatpush.msrb.mxu2 %v6437_v5  ;;  %1389 = vmatpush.msrb.mxu3 %v6565_v6  ;;  %v6599_v4 = vld [vmem:[%s17496_s2 + $0xd28] sm:$0xff]  ;;  %v715_v5 = vld [vmem:[%s17496_s2 + $0x120] sm:$0xff] }
 0x11b   : > { %1727 = vmatpush.msra.mxu0 %v681_v7  ;;  %1753 = vmatpush.msra.mxu1 %v809_v8  ;;  %v843_v6 = vld [vmem:[%s17496_s2 + $0x520] sm:$0xff]  ;;  %v6463_v7 = vld [vmem:[%s17496_s2 + $0x8e8] sm:$0xff] }
 0x11c   : > { %1452 = vmatpush.msra.mxu2 %v6559_v9  ;;  %1478 = vmatpush.msra.mxu3 %v6687_v10  ;;  %v6591_v8 = vld [vmem:[%s17496_s2 + $0xce8] sm:$0xff]  ;;  %v707_v9 = vld [vmem:[%s17496_s2 + $0xe0] sm:$0xff] }
 0x11d   : > { %1816 = vmatpush.msrb.mxu0 %v803_v11  ;;  %1842 = vmatpush.msrb.mxu1 %v931_v12  ;;  %v835_v10 = vld [vmem:[%s17496_s2 + $0x4e0] sm:$0xff]  ;;  %v6455_v11 = vld [vmem:[%s17496_s2 + $0x8a8] sm:$0xff] }
 0x11e   : > { %1318 = vmatmul.f32.gmra.mxu2 %v9241_v17  ;;  %1344 = vmatmul.f32.gmra.mxu3 %v9243_v18  ;;  %v6583_v12 = vld [vmem:[%s17496_s2 + $0xca8] sm:$0xff] }
 0x11f   : > { %1453 = vmatpush.msra.mxu2 %v6551_v13  ;;  %1479 = vmatpush.msra.mxu3 %v6679_v14  ;;  %v9735_v13 = vpop.f32.mrf.mxu0  ;;  %v9737_v14 = vpop.f32.mrf.mxu1 }
 0x120   : > { %1630 = vmatmul.f32.gmra.mxu0 %v9125_v43  ;;  %1656 = vmatmul.f32.gmra.mxu1 %v9127_v44 }
 0x121   : > { %1817 = vmatpush.msrb.mxu0 %v795_v15  ;;  %1843 = vmatpush.msrb.mxu1 %v923_v16  ;;  %v699_v15 = vld [vmem:[%s17496_s2 + $0xa0] sm:$0xff] }
 0x122   : > { %1454 = vmatpush.msra.mxu2 %v6543_v19  ;;  %1480 = vmatpush.msra.mxu3 %v6671_v20  ;;  %v827_v16 = vld [vmem:[%s17496_s2 + $0x4a0] sm:$0xff]  ;;  %v6447_v19 = vld [vmem:[%s17496_s2 + $0x868] sm:$0xff] }
 0x123   : > { %1818 = vmatpush.msrb.mxu0 %v787_v21  ;;  %1844 = vmatpush.msrb.mxu1 %v915_v22  ;;  %v6575_v20 = vld [vmem:[%s17496_s2 + $0xc68] sm:$0xff]  ;;  %v691_v21 = vld [vmem:[%s17496_s2 + $0x60] sm:$0xff] }
 0x124   : > { %1455 = vmatpush.msra.mxu2 %v6535_v23  ;;  %1481 = vmatpush.msra.mxu3 %v6663_v24  ;;  %v819_v22 = vld [vmem:[%s17496_s2 + $0x460] sm:$0xff]  ;;  %v6439_v23 = vld [vmem:[%s17496_s2 + $0x828] sm:$0xff] }
 0x125   : > { %1819 = vmatpush.msrb.mxu0 %v779_v25  ;;  %1845 = vmatpush.msrb.mxu1 %v907_v26  ;;  %v6567_v24 = vld [vmem:[%s17496_s2 + $0xc28] sm:$0xff]  ;;  %v683_v25 = vld [vmem:[%s17496_s2 + $0x20] sm:$0xff] }
 0x126   : > { %1456 = vmatpush.msra.mxu2 %v6527_v27  ;;  %1482 = vmatpush.msra.mxu3 %v6655_v28  ;;  %v811_v26 = vld [vmem:[%s17496_s2 + $0x420] sm:$0xff]  ;;  %v6561_v27 = vld [vmem:[%s17496_s2 + $0xbf8] sm:$0xff] }
 0x127   : > { %1820 = vmatpush.msrb.mxu0 %v771_v29  ;;  %1846 = vmatpush.msrb.mxu1 %v899_v30  ;;  %v6689_v28 = vld [vmem:[%s17496_s2 + $0xff8] sm:$0xff]  ;;  %v805_v29 = vld [vmem:[%s17496_s2 + $0x3f0] sm:$0xff] }
 0x128   : > { %1364 = vmatmul.f32.vlgmr.msrb.gmra.mxu2 %v9135_v47  ;;  %1390 = vmatmul.f32.vlgmr.msrb.gmra.mxu3 %v9137_v48  ;;  %v933_v30 = vld [vmem:[%s17496_s2 + $0x7f0] sm:$0xff] }
 0x129   : > { %1457 = vmatpush.msra.mxu2 %v6519_v31  ;;  %1483 = vmatpush.msra.mxu3 %v6647_v32  ;;  %v6553_v31 = vld [vmem:[%s17496_s2 + $0xbb8] sm:$0xff] }
 0x12a   : > { %1728 = vmatmul.f32.vlgmr.msra.gmra.mxu0 %v9117_v39  ;;  %1754 = vmatmul.f32.vlgmr.msra.gmra.mxu1 %v9119_v40  ;;  %v6681_v32 = vld [vmem:[%s17496_s2 + $0xfb8] sm:$0xff] }
 0x12b   : > { %1821 = vmatpush.msrb.mxu0 %v763_v33  ;;  %1847 = vmatpush.msrb.mxu1 %v891_v34  ;;  %v797_v33 = vld [vmem:[%s17496_s2 + $0x3b0] sm:$0xff] }
 0x12c   : > { %1458 = vmatpush.msra.mxu2 %v6511_v35  ;;  %1484 = vmatpush.msra.mxu3 %v6639_v36  ;;  %v925_v34 = vld [vmem:[%s17496_s2 + $0x7b0] sm:$0xff]  ;;  %v9797_v35 = vpop.f32.mrf.mxu0  ;;  %v9799_v36 = vpop.f32.mrf.mxu1 }
 0x12d   : > { %1822 = vmatpush.msrb.mxu0 %v755_v37  ;;  %1848 = vmatpush.msrb.mxu1 %v883_v38  ;;  %v6545_v37 = vld [vmem:[%s17496_s2 + $0xb78] sm:$0xff] }
 0x12e   : > { %1459 = vmatpush.msra.mxu2 %v6503_v45  ;;  %1485 = vmatpush.msra.mxu3 %v6631_v46  ;;  %v6673_v38 = vld [vmem:[%s17496_s2 + $0xf78] sm:$0xff]  ;;  %v789_v45 = vld [vmem:[%s17496_s2 + $0x370] sm:$0xff] }
 0x12f   : > { %1823 = vmatpush.msrb.mxu0 %v747_v49  ;;  %1849 = vmatpush.msrb.mxu1 %v875_v50  ;;  %v917_v46 = vld [vmem:[%s17496_s2 + $0x770] sm:$0xff]  ;;  %v6537_v49 = vld [vmem:[%s17496_s2 + $0xb38] sm:$0xff] }
 0x130   : > { %1460 = vmatpush.msra.mxu2 %v6495_v51  ;;  %1486 = vmatpush.msra.mxu3 %v6623_v52  ;;  %v6665_v50 = vld [vmem:[%s17496_s2 + $0xf38] sm:$0xff]  ;;  %v781_v51 = vld [vmem:[%s17496_s2 + $0x330] sm:$0xff] }
 0x131   : > { %1824 = vmatpush.msrb.mxu0 %v739_v53  ;;  %1850 = vmatpush.msrb.mxu1 %v867_v54  ;;  %v909_v52 = vld [vmem:[%s17496_s2 + $0x730] sm:$0xff]  ;;  %v6529_v53 = vld [vmem:[%s17496_s2 + $0xaf8] sm:$0xff] }
 0x132   : > { %1367 = vmatmul.f32.gmra.mxu2 %v9185_v63  ;;  %1393 = vmatmul.f32.gmra.mxu3 %v9187_v0  ;;  %v6657_v54 = vld [vmem:[%s17496_s2 + $0xef8] sm:$0xff] }
 0x133   : > { %1461 = vmatpush.msra.mxu2 %v6487_v55  ;;  %1487 = vmatpush.msra.mxu3 %v6615_v56  ;;  %v773_v55 = vld [vmem:[%s17496_s2 + $0x2f0] sm:$0xff] }
 0x134   : > { %1731 = vmatmul.f32.gmra.mxu0 %v9121_v41  ;;  %1757 = vmatmul.f32.gmra.mxu1 %v9123_v42  ;;  %v901_v56 = vld [vmem:[%s17496_s2 + $0x6f0] sm:$0xff] }
 0x135   : > { %1825 = vmatpush.msrb.mxu0 %v731_v59  ;;  %1851 = vmatpush.msrb.mxu1 %v859_v60  ;;  %v6521_v59 = vld [vmem:[%s17496_s2 + $0xab8] sm:$0xff] }
 0x136   : > { %1462 = vmatpush.msra.mxu2 %v6479_v61  ;;  %1488 = vmatpush.msra.mxu3 %v6607_v62  ;;  %v6649_v60 = vld [vmem:[%s17496_s2 + $0xeb8] sm:$0xff]  ;;  %v765_v61 = vld [vmem:[%s17496_s2 + $0x2b0] sm:$0xff] }
 0x137   : > { %1826 = vmatpush.msrb.mxu0 %v723_v1  ;;  %1852 = vmatpush.msrb.mxu1 %v851_v2  ;;  %v893_v62 = vld [vmem:[%s17496_s2 + $0x6b0] sm:$0xff]  ;;  %v9853_v1 = vpop.f32.mrf.mxu0  ;;  %v9855_v2 = vpop.f32.mrf.mxu1 }
 0x138   : > { %1463 = vmatpush.msra.mxu2 %v6471_v3  ;;  %1489 = vmatpush.msra.mxu3 %v6599_v4  ;;  %v6513_v3 = vld [vmem:[%s17496_s2 + $0xa78] sm:$0xff] }
 0x139   : > { %1827 = vmatpush.msrb.mxu0 %v715_v5  ;;  %1853 = vmatpush.msrb.mxu1 %v843_v6  ;;  %v6641_v4 = vld [vmem:[%s17496_s2 + $0xe78] sm:$0xff]  ;;  %v757_v5 = vld [vmem:[%s17496_s2 + $0x270] sm:$0xff] }
 0x13a   : > { %1464 = vmatpush.msra.mxu2 %v6463_v7  ;;  %1490 = vmatpush.msra.mxu3 %v6591_v8  ;;  %v885_v6 = vld [vmem:[%s17496_s2 + $0x670] sm:$0xff]  ;;  %v6505_v7 = vld [vmem:[%s17496_s2 + $0xa38] sm:$0xff] }
 0x13b   : > { %1828 = vmatpush.msrb.mxu0 %v707_v9  ;;  %1854 = vmatpush.msrb.mxu1 %v835_v10  ;;  %v6633_v8 = vld [vmem:[%s17496_s2 + $0xe38] sm:$0xff]  ;;  %v749_v9 = vld [vmem:[%s17496_s2 + $0x230] sm:$0xff] }
 0x13c   : > { %1370 = vmatmul.f32.gmra.mxu2 %v9241_v17  ;;  %1396 = vmatmul.f32.gmra.mxu3 %v9243_v18  ;;  %v877_v10 = vld [vmem:[%s17496_s2 + $0x630] sm:$0xff] }
 0x13d   : > { %1465 = vmatpush.msra.mxu2 %v6455_v11  ;;  %1491 = vmatpush.msra.mxu3 %v6583_v12  ;;  %v6497_v11 = vld [vmem:[%s17496_s2 + $0x9f8] sm:$0xff] }
 0x13e   : > { %1734 = vmatmul.f32.gmra.mxu0 %v9125_v43  ;;  %1760 = vmatmul.f32.gmra.mxu1 %v9127_v44  ;;  %v6625_v12 = vld [vmem:[%s17496_s2 + $0xdf8] sm:$0xff] }
 0x13f   : > { %1829 = vmatpush.msrb.mxu0 %v699_v15  ;;  %1855 = vmatpush.msrb.mxu1 %v827_v16  ;;  %v741_v15 = vld [vmem:[%s17496_s2 + $0x1f0] sm:$0xff] }
 0x140   : > { %1466 = vmatpush.msra.mxu2 %v6447_v19  ;;  %1492 = vmatpush.msra.mxu3 %v6575_v20  ;;  %v869_v16 = vld [vmem:[%s17496_s2 + $0x5f0] sm:$0xff]  ;;  %v6489_v19 = vld [vmem:[%s17496_s2 + $0x9b8] sm:$0xff] }
 0x141   : > { %1830 = vmatpush.msrb.mxu0 %v691_v21  ;;  %1856 = vmatpush.msrb.mxu1 %v819_v22  ;;  %v6617_v20 = vld [vmem:[%s17496_s2 + $0xdb8] sm:$0xff]  ;;  %v733_v21 = vld [vmem:[%s17496_s2 + $0x1b0] sm:$0xff] }
 0x142   : > { %1467 = vmatpush.msra.mxu2 %v6439_v23  ;;  %1493 = vmatpush.msra.mxu3 %v6567_v24  ;;  %v861_v22 = vld [vmem:[%s17496_s2 + $0x5b0] sm:$0xff]  ;;  %v9909_v23 = vpop.f32.mrf.mxu0  ;;  %v9911_v24 = vpop.f32.mrf.mxu1 }
 0x143   : > { %1831 = vmatpush.msrb.mxu0 %v683_v25  ;;  %1857 = vmatpush.msrb.mxu1 %v811_v26  ;;  %v6481_v25 = vld [vmem:[%s17496_s2 + $0x978] sm:$0xff] }
 0x144   : > { %1556 = vmatpush.msrb.mxu2 %v6561_v27  ;;  %1582 = vmatpush.msrb.mxu3 %v6689_v28  ;;  %v6609_v26 = vld [vmem:[%s17496_s2 + $0xd78] sm:$0xff]  ;;  %v725_v27 = vld [vmem:[%s17496_s2 + $0x170] sm:$0xff] }
 0x145   : > { %1920 = vmatpush.msra.mxu0 %v805_v29  ;;  %1946 = vmatpush.msra.mxu1 %v933_v30  ;;  %v853_v28 = vld [vmem:[%s17496_s2 + $0x570] sm:$0xff]  ;;  %v6473_v29 = vld [vmem:[%s17496_s2 + $0x938] sm:$0xff] }
 0x146   : > { %1557 = vmatpush.msrb.mxu2 %v6553_v31  ;;  %1583 = vmatpush.msrb.mxu3 %v6681_v32  ;;  %v6601_v30 = vld [vmem:[%s17496_s2 + $0xd38] sm:$0xff]  ;;  %v717_v31 = vld [vmem:[%s17496_s2 + $0x130] sm:$0xff] }
 0x147   : > { %1921 = vmatpush.msra.mxu0 %v797_v33  ;;  %1947 = vmatpush.msra.mxu1 %v925_v34  ;;  %v845_v32 = vld [vmem:[%s17496_s2 + $0x530] sm:$0xff]  ;;  %v6465_v33 = vld [vmem:[%s17496_s2 + $0x8f8] sm:$0xff] }
 0x148   : > { %1468 = vmatmul.f32.vlgmr.msra.gmra.mxu2 %v9135_v47  ;;  %1494 = vmatmul.f32.vlgmr.msra.gmra.mxu3 %v9137_v48  ;;  %v6593_v34 = vld [vmem:[%s17496_s2 + $0xcf8] sm:$0xff] }
 0x149   : > { %1832 = vmatmul.f32.vlgmr.msrb.gmra.mxu0 %v9117_v39  ;;  %1858 = vmatmul.f32.vlgmr.msrb.gmra.mxu1 %v9119_v40 }
 0x14a   : > { %1558 = vmatpush.msrb.mxu2 %v6545_v37  ;;  %1584 = vmatpush.msrb.mxu3 %v6673_v38  ;;  %v709_v37 = vld [vmem:[%s17496_s2 + $0xf0] sm:$0xff] }
 0x14b   : > { %1922 = vmatpush.msra.mxu0 %v789_v45  ;;  %1948 = vmatpush.msra.mxu1 %v917_v46  ;;  %v837_v38 = vld [vmem:[%s17496_s2 + $0x4f0] sm:$0xff]  ;;  %v6457_v45 = vld [vmem:[%s17496_s2 + $0x8b8] sm:$0xff] }
 0x14c   : > { %1559 = vmatpush.msrb.mxu2 %v6537_v49  ;;  %1585 = vmatpush.msrb.mxu3 %v6665_v50  ;;  %v6585_v46 = vld [vmem:[%s17496_s2 + $0xcb8] sm:$0xff]  ;;  %v701_v49 = vld [vmem:[%s17496_s2 + $0xb0] sm:$0xff] }
 0x14d   : > { %1923 = vmatpush.msra.mxu0 %v781_v51  ;;  %1949 = vmatpush.msra.mxu1 %v909_v52  ;;  %v829_v50 = vld [vmem:[%s17496_s2 + $0x4b0] sm:$0xff]  ;;  %v9965_v51 = vpop.f32.mrf.mxu0  ;;  %v9967_v52 = vpop.f32.mrf.mxu1 }
 0x14e   : > { %1560 = vmatpush.msrb.mxu2 %v6529_v53  ;;  %1586 = vmatpush.msrb.mxu3 %v6657_v54  ;;  %v6449_v53 = vld [vmem:[%s17496_s2 + $0x878] sm:$0xff] }
 0x14f   : > { %1924 = vmatpush.msra.mxu0 %v773_v55  ;;  %1950 = vmatpush.msra.mxu1 %v901_v56  ;;  %v6577_v54 = vld [vmem:[%s17496_s2 + $0xc78] sm:$0xff]  ;;  %v693_v55 = vld [vmem:[%s17496_s2 + $0x70] sm:$0xff] }
 0x150   : > { %1561 = vmatpush.msrb.mxu2 %v6521_v59  ;;  %1587 = vmatpush.msrb.mxu3 %v6649_v60  ;;  %v821_v56 = vld [vmem:[%s17496_s2 + $0x470] sm:$0xff]  ;;  %v6441_v59 = vld [vmem:[%s17496_s2 + $0x838] sm:$0xff] }
 0x151   : > { %1925 = vmatpush.msra.mxu0 %v765_v61  ;;  %1951 = vmatpush.msra.mxu1 %v893_v62  ;;  %v6569_v60 = vld [vmem:[%s17496_s2 + $0xc38] sm:$0xff]  ;;  %v685_v61 = vld [vmem:[%s17496_s2 + $0x30] sm:$0xff] }
 0x152   : > { %1471 = vmatmul.f32.gmra.mxu2 %v9185_v63  ;;  %1497 = vmatmul.f32.gmra.mxu3 %v9187_v0  ;;  %v813_v62 = vld [vmem:[%s17496_s2 + $0x430] sm:$0xff] }
 0x153   : > { %1835 = vmatmul.f32.gmra.mxu0 %v9121_v41  ;;  %1861 = vmatmul.f32.gmra.mxu1 %v9123_v42 }
 0x154   : > { %1562 = vmatpush.msrb.mxu2 %v6513_v3  ;;  %1588 = vmatpush.msrb.mxu3 %v6641_v4  ;;  %v800_v3 = vld [vmem:[%s17496_s2 + $0x3c8] sm:$0xff] }
 0x155   : > { %1926 = vmatpush.msra.mxu0 %v757_v5  ;;  %1952 = vmatpush.msra.mxu1 %v885_v6  ;;  %v928_v4 = vld [vmem:[%s17496_s2 + $0x7c8] sm:$0xff]  ;;  %v6810_v5 = vld [vmem:[%s17496_s2 + $0x13c0] sm:$0xff] }
 0x156   : > { %1563 = vmatpush.msrb.mxu2 %v6505_v7  ;;  %1589 = vmatpush.msrb.mxu3 %v6633_v8  ;;  %v6938_v6 = vld [vmem:[%s17496_s2 + $0x17c0] sm:$0xff]  ;;  %v792_v7 = vld [vmem:[%s17496_s2 + $0x388] sm:$0xff] }
 0x157   : > { %1927 = vmatpush.msra.mxu0 %v749_v9  ;;  %1953 = vmatpush.msra.mxu1 %v877_v10  ;;  %v6930_v8 = vld [vmem:[%s17496_s2 + $0x1780] sm:$0xff]  ;;  %v10021_v9 = vpop.f32.mrf.mxu0  ;;  %v10023_v10 = vpop.f32.mrf.mxu1 }
 0x158   : > { %1564 = vmatpush.msrb.mxu2 %v6497_v11  ;;  %1590 = vmatpush.msrb.mxu3 %v6625_v12  ;;  %17540 = vst [vmem:[#allocation7_spill] sm:$0xff] %v10021_v9  ;;  %v784_v11 = vld [vmem:[%s17496_s2 + $0x348] sm:$0xff]  ;;  %v7424_v9 = vld [vmem:[%s17496_s2 + $0xd20] sm:$0xff] }
 0x159   : > { %1928 = vmatpush.msra.mxu0 %v741_v15  ;;  %1954 = vmatpush.msra.mxu1 %v869_v16  ;;  %17541 = vst [vmem:[#allocation8_spill] sm:$0xff] %v10023_v10  ;;  %v912_v12 = vld [vmem:[%s17496_s2 + $0x748] sm:$0xff]  ;;  %v6794_v15 = vld [vmem:[%s17496_s2 + $0x1340] sm:$0xff] }
 0x15a   : > { %1565 = vmatpush.msrb.mxu2 %v6489_v19  ;;  %1591 = vmatpush.msrb.mxu3 %v6617_v20  ;;  %v6922_v16 = vld [vmem:[%s17496_s2 + $0x1740] sm:$0xff]  ;;  %v776_v19 = vld [vmem:[%s17496_s2 + $0x308] sm:$0xff] }
 0x15b   : > { %1929 = vmatpush.msra.mxu0 %v733_v21  ;;  %1955 = vmatpush.msra.mxu1 %v861_v22  ;;  %v904_v20 = vld [vmem:[%s17496_s2 + $0x708] sm:$0xff]  ;;  %v6786_v21 = vld [vmem:[%s17496_s2 + $0x1300] sm:$0xff] }
 0x15c   : > { %1474 = vmatmul.f32.gmra.mxu2 %v9241_v17  ;;  %1500 = vmatmul.f32.gmra.mxu3 %v9243_v18  ;;  %v6914_v22 = vld [vmem:[%s17496_s2 + $0x1700] sm:$0xff] }
 0x15d   : > { %1838 = vmatmul.f32.gmra.mxu0 %v9125_v43  ;;  %1864 = vmatmul.f32.gmra.mxu1 %v9127_v44 }
 0x15e   : > { %1566 = vmatpush.msrb.mxu2 %v6481_v25  ;;  %1592 = vmatpush.msrb.mxu3 %v6609_v26  ;;  %v768_v25 = vld [vmem:[%s17496_s2 + $0x2c8] sm:$0xff] }
 0x15f   : > { %1930 = vmatpush.msra.mxu0 %v725_v27  ;;  %1956 = vmatpush.msra.mxu1 %v853_v28  ;;  %v896_v26 = vld [vmem:[%s17496_s2 + $0x6c8] sm:$0xff]  ;;  %v6778_v27 = vld [vmem:[%s17496_s2 + $0x12c0] sm:$0xff] }
 0x160   : > { %1567 = vmatpush.msrb.mxu2 %v6473_v29  ;;  %1593 = vmatpush.msrb.mxu3 %v6601_v30  ;;  %v6906_v28 = vld [vmem:[%s17496_s2 + $0x16c0] sm:$0xff]  ;;  %v760_v29 = vld [vmem:[%s17496_s2 + $0x288] sm:$0xff] }
 0x161   : > { %1931 = vmatpush.msra.mxu0 %v717_v31  ;;  %1957 = vmatpush.msra.mxu1 %v845_v32  ;;  %v6898_v30 = vld [vmem:[%s17496_s2 + $0x1680] sm:$0xff]  ;;  %v10077_v31 = vpop.f32.mrf.mxu0  ;;  %v10079_v32 = vpop.f32.mrf.mxu1 }
 0x162   : > { %1568 = vmatpush.msrb.mxu2 %v6465_v33  ;;  %1594 = vmatpush.msrb.mxu3 %v6593_v34  ;;  %17542 = vst [vmem:[#allocation9_spill] sm:$0xff] %v10077_v31  ;;  %v752_v33 = vld [vmem:[%s17496_s2 + $0x248] sm:$0xff] }
 0x163   : > { %1932 = vmatpush.msra.mxu0 %v709_v37  ;;  %1958 = vmatpush.msra.mxu1 %v837_v38  ;;  %17543 = vst [vmem:[#allocation10_spill] sm:$0xff] %v10079_v32  ;;  %v880_v34 = vld [vmem:[%s17496_s2 + $0x648] sm:$0xff]  ;;  %v6762_v37 = vld [vmem:[%s17496_s2 + $0x1240] sm:$0xff] }
 0x164   : > { %1569 = vmatpush.msrb.mxu2 %v6457_v45  ;;  %1595 = vmatpush.msrb.mxu3 %v6585_v46  ;;  %v6890_v38 = vld [vmem:[%s17496_s2 + $0x1640] sm:$0xff]  ;;  %v744_v45 = vld [vmem:[%s17496_s2 + $0x208] sm:$0xff] }
 0x165   : > { %1933 = vmatpush.msra.mxu0 %v701_v49  ;;  %1959 = vmatpush.msra.mxu1 %v829_v50  ;;  %v872_v46 = vld [vmem:[%s17496_s2 + $0x608] sm:$0xff]  ;;  %v6754_v49 = vld [vmem:[%s17496_s2 + $0x1200] sm:$0xff] }
 0x166   : > { %1570 = vmatpush.msrb.mxu2 %v6449_v53  ;;  %1596 = vmatpush.msrb.mxu3 %v6577_v54  ;;  %v6882_v50 = vld [vmem:[%s17496_s2 + $0x1600] sm:$0xff]  ;;  %v736_v53 = vld [vmem:[%s17496_s2 + $0x1c8] sm:$0xff] }
 0x167   : > { %1934 = vmatpush.msra.mxu0 %v693_v55  ;;  %1960 = vmatpush.msra.mxu1 %v821_v56  ;;  %v864_v54 = vld [vmem:[%s17496_s2 + $0x5c8] sm:$0xff]  ;;  %v6746_v55 = vld [vmem:[%s17496_s2 + $0x11c0] sm:$0xff] }
 0x168   : > { %1571 = vmatpush.msrb.mxu2 %v6441_v59  ;;  %1597 = vmatpush.msrb.mxu3 %v6569_v60  ;;  %v6874_v56 = vld [vmem:[%s17496_s2 + $0x15c0] sm:$0xff]  ;;  %v728_v59 = vld [vmem:[%s17496_s2 + $0x188] sm:$0xff] }
 0x169   : > { %1935 = vmatpush.msra.mxu0 %v685_v61  ;;  %1961 = vmatpush.msra.mxu1 %v813_v62  ;;  %v6866_v60 = vld [vmem:[%s17496_s2 + $0x1580] sm:$0xff]  ;;  %v10133_v61 = vpop.f32.mrf.mxu0  ;;  %v10135_v62 = vpop.f32.mrf.mxu1  ;;  %v6887_v31 = vld [vmem:[%s17496_s2 + $0x1628] sm:$0xff] }
 0x16a   : > { %1572 = vmatmul.f32.vlgmr.msrb.gmra.mxu2 %v9135_v47  ;;  %1598 = vmatmul.f32.vlgmr.msrb.gmra.mxu3 %v9137_v48  ;;  %v920_v47 = vld [vmem:[%s17496_s2 + $0x788] sm:$0xff]  ;;  %v6802_v48 = vld [vmem:[%s17496_s2 + $0x1380] sm:$0xff]  ;;  %17544 = vst [vmem:[#allocation11_spill] sm:$0xff] %v10133_v61 }
 0x16b   : > { %1660 = vmatpush.msra.mxu2 %v800_v3  ;;  %1686 = vmatpush.msra.mxu3 %v928_v4  ;;  %17545 = vst [vmem:[#allocation12_spill] sm:$0xff] %v10135_v62  ;;  %v720_v3 = vld [vmem:[%s17496_s2 + $0x148] sm:$0xff]  ;;  %v6709_v62 = vld [vmem:[%s17496_s2 + $0x1098] sm:$0xff]  ;;  %v7411_v32 = vld [vmem:[%s17496_s2 + $0xaa0] sm:$0xff] }
 0x16c   : > { %1936 = vmatmul.f32.vlgmr.msra.gmra.mxu0 %v9117_v39  ;;  %1962 = vmatmul.f32.vlgmr.msra.gmra.mxu1 %v9119_v40  ;;  %v848_v4 = vld [vmem:[%s17496_s2 + $0x548] sm:$0xff] }
 0x16d   : > { %2281 = vmatpush.msrb.mxu0 %v6810_v5  ;;  %2307 = vmatpush.msrb.mxu1 %v6938_v6  ;;  %v6730_v5 = vld [vmem:[%s17496_s2 + $0x1140] sm:$0xff]  ;;  %v6919_v61 = vld [vmem:[%s17496_s2 + $0x1728] sm:$0xff] }
 0x16e   : > { %1661 = vmatpush.msra.mxu2 %v792_v7  ;;  %1687 = vmatpush.msra.mxu3 %v920_v47  ;;  %v6858_v6 = vld [vmem:[%s17496_s2 + $0x1540] sm:$0xff]  ;;  %v712_v7 = vld [vmem:[%s17496_s2 + $0x108] sm:$0xff] }
 0x16f   : > { %2282 = vmatpush.msrb.mxu0 %v6802_v48  ;;  %2308 = vmatpush.msrb.mxu1 %v6930_v8  ;;  %v840_v47 = vld [vmem:[%s17496_s2 + $0x508] sm:$0xff]  ;;  %v6722_v48 = vld [vmem:[%s17496_s2 + $0x1100] sm:$0xff] }
 0x170   : > { %1662 = vmatpush.msra.mxu2 %v784_v11  ;;  %1688 = vmatpush.msra.mxu3 %v912_v12  ;;  %v6850_v8 = vld [vmem:[%s17496_s2 + $0x1500] sm:$0xff]  ;;  %v704_v11 = vld [vmem:[%s17496_s2 + $0xc8] sm:$0xff] }
 0x171   : > { %2283 = vmatpush.msrb.mxu0 %v6794_v15  ;;  %2309 = vmatpush.msrb.mxu1 %v6922_v16  ;;  %v832_v12 = vld [vmem:[%s17496_s2 + $0x4c8] sm:$0xff]  ;;  %v6714_v15 = vld [vmem:[%s17496_s2 + $0x10c0] sm:$0xff] }
 0x172   : > { %1663 = vmatpush.msra.mxu2 %v776_v19  ;;  %1689 = vmatpush.msra.mxu3 %v904_v20  ;;  %v6842_v16 = vld [vmem:[%s17496_s2 + $0x14c0] sm:$0xff]  ;;  %v696_v19 = vld [vmem:[%s17496_s2 + $0x88] sm:$0xff] }
 0x173   : > { %2284 = vmatpush.msrb.mxu0 %v6786_v21  ;;  %2310 = vmatpush.msrb.mxu1 %v6914_v22  ;;  %v824_v20 = vld [vmem:[%s17496_s2 + $0x488] sm:$0xff]  ;;  %v6706_v21 = vld [vmem:[%s17496_s2 + $0x1080] sm:$0xff] }
 0x174   : > { %1575 = vmatmul.f32.gmra.mxu2 %v9185_v63  ;;  %1601 = vmatmul.f32.gmra.mxu3 %v9187_v0  ;;  %v888_v63 = vld [vmem:[%s17496_s2 + $0x688] sm:$0xff]  ;;  %v6770_v0 = vld [vmem:[%s17496_s2 + $0x1280] sm:$0xff] }
 0x175   : > { %1664 = vmatpush.msra.mxu2 %v768_v25  ;;  %1690 = vmatpush.msra.mxu3 %v896_v26  ;;  %v6834_v22 = vld [vmem:[%s17496_s2 + $0x1480] sm:$0xff]  ;;  %v688_v25 = vld [vmem:[%s17496_s2 + $0x48] sm:$0xff] }
 0x176   : > { %1939 = vmatmul.f32.gmra.mxu0 %v9121_v41  ;;  %1965 = vmatmul.f32.gmra.mxu1 %v9123_v42  ;;  %v816_v26 = vld [vmem:[%s17496_s2 + $0x448] sm:$0xff] }
 0x177   : > { %2285 = vmatpush.msrb.mxu0 %v6778_v27  ;;  %2311 = vmatpush.msrb.mxu1 %v6906_v28  ;;  %v6698_v27 = vld [vmem:[%s17496_s2 + $0x1040] sm:$0xff] }
 0x178   : > { %1665 = vmatpush.msra.mxu2 %v760_v29  ;;  %1691 = vmatpush.msra.mxu3 %v888_v63  ;;  %v6826_v28 = vld [vmem:[%s17496_s2 + $0x1440] sm:$0xff]  ;;  %v10197_v29 = vpop.f32.mrf.mxu0  ;;  %v10199_v63 = vpop.f32.mrf.mxu1 }
 0x179   : > { %2286 = vmatpush.msrb.mxu0 %v6770_v0  ;;  %2312 = vmatpush.msrb.mxu1 %v6898_v30  ;;  %v680_v0 = vld [vmem:[%s17496_s2 + $0x8] sm:$0xff] }
 0x17a   : > { %1666 = vmatpush.msra.mxu2 %v752_v33  ;;  %1692 = vmatpush.msra.mxu3 %v880_v34  ;;  %v808_v30 = vld [vmem:[%s17496_s2 + $0x408] sm:$0xff]  ;;  %v6690_v33 = vld [vmem:[%s17496_s2 + $0x1000] sm:$0xff] }
 0x17b   : > { %2287 = vmatpush.msrb.mxu0 %v6762_v37  ;;  %2313 = vmatpush.msrb.mxu1 %v6890_v38  ;;  %v6818_v34 = vld [vmem:[%s17496_s2 + $0x1400] sm:$0xff]  ;;  %v802_v37 = vld [vmem:[%s17496_s2 + $0x3d8] sm:$0xff] }
 0x17c   : > { %1667 = vmatpush.msra.mxu2 %v744_v45  ;;  %1693 = vmatpush.msra.mxu3 %v872_v46  ;;  %v930_v38 = vld [vmem:[%s17496_s2 + $0x7d8] sm:$0xff]  ;;  %v6812_v45 = vld [vmem:[%s17496_s2 + $0x13d0] sm:$0xff] }
 0x17d   : > { %2288 = vmatpush.msrb.mxu0 %v6754_v49  ;;  %2314 = vmatpush.msrb.mxu1 %v6882_v50  ;;  %v6940_v46 = vld [vmem:[%s17496_s2 + $0x17d0] sm:$0xff]  ;;  %v794_v49 = vld [vmem:[%s17496_s2 + $0x398] sm:$0xff] }
 0x17e   : > { %1578 = vmatmul.f32.gmra.mxu2 %v9241_v17  ;;  %1604 = vmatmul.f32.gmra.mxu3 %v9243_v18  ;;  %v856_v17 = vld [vmem:[%s17496_s2 + $0x588] sm:$0xff]  ;;  %v6738_v18 = vld [vmem:[%s17496_s2 + $0x1180] sm:$0xff]  ;;  %v922_v50 = vld [vmem:[%s17496_s2 + $0x798] sm:$0xff] }
 0x17f   : > { %1668 = vmatpush.msra.mxu2 %v736_v53  ;;  %1694 = vmatpush.msra.mxu3 %v864_v54  ;;  %v6804_v53 = vld [vmem:[%s17496_s2 + $0x1390] sm:$0xff] }
 0x180   : > { %1942 = vmatmul.f32.gmra.mxu0 %v9125_v43  ;;  %1968 = vmatmul.f32.gmra.mxu1 %v9127_v44  ;;  %v6932_v54 = vld [vmem:[%s17496_s2 + $0x1790] sm:$0xff] }
 0x181   : > { %2289 = vmatpush.msrb.mxu0 %v6746_v55  ;;  %2315 = vmatpush.msrb.mxu1 %v6874_v56  ;;  %v786_v55 = vld [vmem:[%s17496_s2 + $0x358] sm:$0xff] }
 0x182   : > { %1669 = vmatpush.msra.mxu2 %v728_v59  ;;  %1695 = vmatpush.msra.mxu3 %v856_v17  ;;  %v914_v56 = vld [vmem:[%s17496_s2 + $0x758] sm:$0xff]  ;;  %v6796_v59 = vld [vmem:[%s17496_s2 + $0x1350] sm:$0xff] }
 0x183   : > { %2290 = vmatpush.msrb.mxu0 %v6738_v18  ;;  %2316 = vmatpush.msrb.mxu1 %v6866_v60  ;;  %v6924_v17 = vld [vmem:[%s17496_s2 + $0x1750] sm:$0xff]  ;;  %v10253_v18 = vpop.f32.mrf.mxu0  ;;  %v10255_v60 = vpop.f32.mrf.mxu1 }
 0x184   : > { %1670 = vmatpush.msra.mxu2 %v720_v3  ;;  %1696 = vmatpush.msra.mxu3 %v848_v4  ;;  %v778_v3 = vld [vmem:[%s17496_s2 + $0x318] sm:$0xff] }
 0x185   : > { %2291 = vmatpush.msrb.mxu0 %v6730_v5  ;;  %2317 = vmatpush.msrb.mxu1 %v6858_v6  ;;  %v906_v4 = vld [vmem:[%s17496_s2 + $0x718] sm:$0xff]  ;;  %v6788_v5 = vld [vmem:[%s17496_s2 + $0x1310] sm:$0xff] }
 0x186   : > { %1671 = vmatpush.msra.mxu2 %v712_v7  ;;  %1697 = vmatpush.msra.mxu3 %v840_v47  ;;  %v6916_v6 = vld [vmem:[%s17496_s2 + $0x1710] sm:$0xff]  ;;  %v770_v7 = vld [vmem:[%s17496_s2 + $0x2d8] sm:$0xff] }
 0x187   : > { %2292 = vmatpush.msrb.mxu0 %v6722_v48  ;;  %2318 = vmatpush.msrb.mxu1 %v6850_v8  ;;  %v898_v47 = vld [vmem:[%s17496_s2 + $0x6d8] sm:$0xff]  ;;  %v6780_v48 = vld [vmem:[%s17496_s2 + $0x12d0] sm:$0xff] }
 0x188   : > { %1672 = vmatpush.msra.mxu2 %v704_v11  ;;  %1698 = vmatpush.msra.mxu3 %v832_v12  ;;  %v6908_v8 = vld [vmem:[%s17496_s2 + $0x16d0] sm:$0xff]  ;;  %v762_v11 = vld [vmem:[%s17496_s2 + $0x298] sm:$0xff] }
 0x189   : > { %2293 = vmatpush.msrb.mxu0 %v6714_v15  ;;  %2319 = vmatpush.msrb.mxu1 %v6842_v16  ;;  %v890_v12 = vld [vmem:[%s17496_s2 + $0x698] sm:$0xff]  ;;  %v6772_v15 = vld [vmem:[%s17496_s2 + $0x1290] sm:$0xff] }
 0x18a   : > { %1673 = vmatpush.msra.mxu2 %v696_v19  ;;  %1699 = vmatpush.msra.mxu3 %v824_v20  ;;  %v6900_v16 = vld [vmem:[%s17496_s2 + $0x1690] sm:$0xff]  ;;  %v754_v19 = vld [vmem:[%s17496_s2 + $0x258] sm:$0xff] }
 0x18b   : > { %2294 = vmatpush.msrb.mxu0 %v6706_v21  ;;  %2320 = vmatpush.msrb.mxu1 %v6834_v22  ;;  %v882_v20 = vld [vmem:[%s17496_s2 + $0x658] sm:$0xff]  ;;  %v6764_v21 = vld [vmem:[%s17496_s2 + $0x1250] sm:$0xff] }
 0x18c   : > { %1674 = vmatpush.msra.mxu2 %v688_v25  ;;  %1700 = vmatpush.msra.mxu3 %v816_v26  ;;  %v6892_v22 = vld [vmem:[%s17496_s2 + $0x1650] sm:$0xff]  ;;  %v10309_v25 = vpop.f32.mrf.mxu0  ;;  %v10311_v26 = vpop.f32.mrf.mxu1 }
 0x18d   : > { %2295 = vmatpush.msrb.mxu0 %v6698_v27  ;;  %2321 = vmatpush.msrb.mxu1 %v6826_v28  ;;  %v746_v27 = vld [vmem:[%s17496_s2 + $0x218] sm:$0xff] }
 0x18e   : > { %1675 = vmatpush.msra.mxu2 %v680_v0  ;;  %1701 = vmatpush.msra.mxu3 %v808_v30  ;;  %v874_v28 = vld [vmem:[%s17496_s2 + $0x618] sm:$0xff]  ;;  %v6756_v0 = vld [vmem:[%s17496_s2 + $0x1210] sm:$0xff] }
 0x18f   : > { %2296 = vmatpush.msrb.mxu0 %v6690_v33  ;;  %2322 = vmatpush.msrb.mxu1 %v6818_v34  ;;  %v6884_v30 = vld [vmem:[%s17496_s2 + $0x1610] sm:$0xff]  ;;  %v738_v33 = vld [vmem:[%s17496_s2 + $0x1d8] sm:$0xff] }
 0x190   : > { %1676 = vmatmul.f32.vlgmr.msra.gmra.mxu2 %v9117_v39  ;;  %1702 = vmatmul.f32.vlgmr.msra.gmra.mxu3 %v9119_v40  ;;  %v866_v34 = vld [vmem:[%s17496_s2 + $0x5d8] sm:$0xff] }
 0x191   : > { %1764 = vmatpush.msrb.mxu2 %v802_v37  ;;  %1790 = vmatpush.msrb.mxu3 %v930_v38  ;;  %v6748_v37 = vld [vmem:[%s17496_s2 + $0x11d0] sm:$0xff] }
 0x192   : > { %2297 = vmatmul.f32.vlgmr.msrb.gmra.mxu0 %v9679_v57  ;;  %2323 = vmatmul.f32.vlgmr.msrb.gmra.mxu1 %v9681_v58  ;;  %v6876_v38 = vld [vmem:[%s17496_s2 + $0x15d0] sm:$0xff] }
 0x193   : > { %2385 = vmatpush.msra.mxu0 %v6812_v45  ;;  %2411 = vmatpush.msra.mxu1 %v6940_v46  ;;  %v730_v45 = vld [vmem:[%s17496_s2 + $0x198] sm:$0xff] }
 0x194   : > { %1765 = vmatpush.msrb.mxu2 %v794_v49  ;;  %1791 = vmatpush.msrb.mxu3 %v922_v50  ;;  %v858_v46 = vld [vmem:[%s17496_s2 + $0x598] sm:$0xff]  ;;  %v6740_v49 = vld [vmem:[%s17496_s2 + $0x1190] sm:$0xff] }
 0x195   : > { %2386 = vmatpush.msra.mxu0 %v6804_v53  ;;  %2412 = vmatpush.msra.mxu1 %v6932_v54  ;;  %v6868_v50 = vld [vmem:[%s17496_s2 + $0x1590] sm:$0xff]  ;;  %v722_v53 = vld [vmem:[%s17496_s2 + $0x158] sm:$0xff] }
 0x196   : > { %1766 = vmatpush.msrb.mxu2 %v786_v55  ;;  %1792 = vmatpush.msrb.mxu3 %v914_v56  ;;  %v850_v54 = vld [vmem:[%s17496_s2 + $0x558] sm:$0xff]  ;;  %v6732_v55 = vld [vmem:[%s17496_s2 + $0x1150] sm:$0xff] }
 0x197   : > { %2387 = vmatpush.msra.mxu0 %v6796_v59  ;;  %2413 = vmatpush.msra.mxu1 %v6924_v17  ;;  %v6860_v56 = vld [vmem:[%s17496_s2 + $0x1550] sm:$0xff]  ;;  %v10365_v59 = vpop.f32.mrf.mxu0  ;;  %v10367_v17 = vpop.f32.mrf.mxu1 }
 0x198   : > { %1767 = vmatpush.msrb.mxu2 %v778_v3  ;;  %1793 = vmatpush.msrb.mxu3 %v906_v4  ;;  %v714_v3 = vld [vmem:[%s17496_s2 + $0x118] sm:$0xff] }
 0x199   : > { %2388 = vmatpush.msra.mxu0 %v6788_v5  ;;  %2414 = vmatpush.msra.mxu1 %v6916_v6  ;;  %v842_v4 = vld [vmem:[%s17496_s2 + $0x518] sm:$0xff]  ;;  %v6724_v5 = vld [vmem:[%s17496_s2 + $0x1110] sm:$0xff] }
 0x19a   : > { %1679 = vmatmul.f32.gmra.mxu2 %v9121_v41  ;;  %1705 = vmatmul.f32.gmra.mxu3 %v9123_v42  ;;  %v6852_v6 = vld [vmem:[%s17496_s2 + $0x1510] sm:$0xff] }
 0x19b   : > { %1768 = vmatpush.msrb.mxu2 %v770_v7  ;;  %1794 = vmatpush.msrb.mxu3 %v898_v47  ;;  %v706_v7 = vld [vmem:[%s17496_s2 + $0xd8] sm:$0xff] }
 0x19c   : > { %2300 = vmatmul.f32.gmra.mxu0 %v9735_v13  ;;  %2326 = vmatmul.f32.gmra.mxu1 %v9737_v14  ;;  %v834_v47 = vld [vmem:[%s17496_s2 + $0x4d8] sm:$0xff] }
 0x19d   : > { %2389 = vmatpush.msra.mxu0 %v6780_v48  ;;  %2415 = vmatpush.msra.mxu1 %v6908_v8  ;;  %v6716_v48 = vld [vmem:[%s17496_s2 + $0x10d0] sm:$0xff] }
 0x19e   : > { %1769 = vmatpush.msrb.mxu2 %v762_v11  ;;  %1795 = vmatpush.msrb.mxu3 %v890_v12  ;;  %v6844_v8 = vld [vmem:[%s17496_s2 + $0x14d0] sm:$0xff]  ;;  %v698_v11 = vld [vmem:[%s17496_s2 + $0x98] sm:$0xff] }
 0x19f   : > { %2390 = vmatpush.msra.mxu0 %v6772_v15  ;;  %2416 = vmatpush.msra.mxu1 %v6900_v16  ;;  %v826_v12 = vld [vmem:[%s17496_s2 + $0x498] sm:$0xff]  ;;  %v6708_v15 = vld [vmem:[%s17496_s2 + $0x1090] sm:$0xff] }
 0x1a0   : > { %1770 = vmatpush.msrb.mxu2 %v754_v19  ;;  %1796 = vmatpush.msrb.mxu3 %v882_v20  ;;  %v6836_v16 = vld [vmem:[%s17496_s2 + $0x1490] sm:$0xff]  ;;  %v690_v19 = vld [vmem:[%s17496_s2 + $0x58] sm:$0xff] }
 0x1a1   : > { %2391 = vmatpush.msra.mxu0 %v6764_v21  ;;  %2417 = vmatpush.msra.mxu1 %v6892_v22  ;;  %v818_v20 = vld [vmem:[%s17496_s2 + $0x458] sm:$0xff]  ;;  %v10411_v21 = vpop.f32.mrf.mxu2  ;;  %v10413_v22 = vpop.f32.mrf.mxu3 }
 0x1a2   : > { %1771 = vmatpush.msrb.mxu2 %v746_v27  ;;  %1797 = vmatpush.msrb.mxu3 %v874_v28  ;;  %17546 = vst [vmem:[#allocation13_spill] sm:$0xff] %v10411_v21  ;;  %v6700_v27 = vld [vmem:[%s17496_s2 + $0x1050] sm:$0xff] }
 0x1a3   : > { %2392 = vmatpush.msra.mxu0 %v6756_v0  ;;  %2418 = vmatpush.msra.mxu1 %v6884_v30  ;;  %17547 = vst [vmem:[#allocation14_spill] sm:$0xff] %v10413_v22  ;;  %v6828_v28 = vld [vmem:[%s17496_s2 + $0x1450] sm:$0xff]  ;;  %v682_v0 = vld [vmem:[%s17496_s2 + $0x18] sm:$0xff] }
 0x1a4   : > { %1682 = vmatmul.f32.gmra.mxu2 %v9125_v43  ;;  %1708 = vmatmul.f32.gmra.mxu3 %v9127_v44  ;;  %v810_v30 = vld [vmem:[%s17496_s2 + $0x418] sm:$0xff]  ;;  %v7392_v21 = vld [vmem:[%s17496_s2 + $0xd10] sm:$0xff] }
 0x1a5   : > { %1772 = vmatpush.msrb.mxu2 %v738_v33  ;;  %1798 = vmatpush.msrb.mxu3 %v866_v34  ;;  %v6692_v33 = vld [vmem:[%s17496_s2 + $0x1010] sm:$0xff] }
 0x1a6   : > { %2303 = vmatmul.f32.gmra.mxu0 %v9797_v35  ;;  %2329 = vmatmul.f32.gmra.mxu1 %v9799_v36  ;;  %v6820_v34 = vld [vmem:[%s17496_s2 + $0x1410] sm:$0xff] }
 0x1a7   : > { %2393 = vmatpush.msra.mxu0 %v6748_v37  ;;  %2419 = vmatpush.msra.mxu1 %v6876_v38  ;;  %v10433_v37 = vpop.f32.mrf.mxu0  ;;  %v10435_v38 = vpop.f32.mrf.mxu1 }
 0x1a8   : > { %1773 = vmatpush.msrb.mxu2 %v730_v45  ;;  %1799 = vmatpush.msrb.mxu3 %v858_v46  ;;  %v804_v45 = vld [vmem:[%s17496_s2 + $0x3e8] sm:$0xff] }
 0x1a9   : > { %2394 = vmatpush.msra.mxu0 %v6740_v49  ;;  %2420 = vmatpush.msra.mxu1 %v6868_v50  ;;  %v932_v46 = vld [vmem:[%s17496_s2 + $0x7e8] sm:$0xff]  ;;  %v6814_v49 = vld [vmem:[%s17496_s2 + $0x13e0] sm:$0xff] }
 0x1aa   : > { %1774 = vmatpush.msrb.mxu2 %v722_v53  ;;  %1800 = vmatpush.msrb.mxu3 %v850_v54  ;;  %v6942_v50 = vld [vmem:[%s17496_s2 + $0x17e0] sm:$0xff]  ;;  %v796_v53 = vld [vmem:[%s17496_s2 + $0x3a8] sm:$0xff] }
 0x1ab   : > { %2395 = vmatpush.msra.mxu0 %v6732_v55  ;;  %2421 = vmatpush.msra.mxu1 %v6860_v56  ;;  %v924_v54 = vld [vmem:[%s17496_s2 + $0x7a8] sm:$0xff]  ;;  %v6806_v55 = vld [vmem:[%s17496_s2 + $0x13a0] sm:$0xff] }
 0x1ac   : > { %1775 = vmatpush.msrb.mxu2 %v714_v3  ;;  %1801 = vmatpush.msrb.mxu3 %v842_v4  ;;  %v6934_v56 = vld [vmem:[%s17496_s2 + $0x17a0] sm:$0xff]  ;;  %v788_v3 = vld [vmem:[%s17496_s2 + $0x368] sm:$0xff] }
 0x1ad   : > { %2396 = vmatpush.msra.mxu0 %v6724_v5  ;;  %2422 = vmatpush.msra.mxu1 %v6852_v6  ;;  %v916_v4 = vld [vmem:[%s17496_s2 + $0x768] sm:$0xff]  ;;  %v10471_v5 = vpop.f32.mrf.mxu2  ;;  %v10473_v6 = vpop.f32.mrf.mxu3 }
 0x1ae   : > { %1776 = vmatpush.msrb.mxu2 %v706_v7  ;;  %1802 = vmatpush.msrb.mxu3 %v834_v47  ;;  %17548 = vst [vmem:[#allocation15_spill] sm:$0xff] %v10471_v5  ;;  %v6798_v7 = vld [vmem:[%s17496_s2 + $0x1360] sm:$0xff]  ;;  %v6853_v5 = vld [vmem:[%s17496_s2 + $0x1518] sm:$0xff] }
 0x1af   : > { %2397 = vmatpush.msra.mxu0 %v6716_v48  ;;  %2423 = vmatpush.msra.mxu1 %v6844_v8  ;;  %17549 = vst [vmem:[#allocation16_spill] sm:$0xff] %v10473_v6  ;;  %v6926_v47 = vld [vmem:[%s17496_s2 + $0x1760] sm:$0xff]  ;;  %v780_v48 = vld [vmem:[%s17496_s2 + $0x328] sm:$0xff]  ;;  %v7387_v6 = vld [vmem:[%s17496_s2 + $0x990] sm:$0xff] }
 0x1b0   : > { %1777 = vmatpush.msrb.mxu2 %v698_v11  ;;  %1803 = vmatpush.msrb.mxu3 %v826_v12  ;;  %v908_v8 = vld [vmem:[%s17496_s2 + $0x728] sm:$0xff]  ;;  %v6790_v11 = vld [vmem:[%s17496_s2 + $0x1320] sm:$0xff] }
 0x1b1   : > { %2398 = vmatpush.msra.mxu0 %v6708_v15  ;;  %2424 = vmatpush.msra.mxu1 %v6836_v16  ;;  %v6918_v12 = vld [vmem:[%s17496_s2 + $0x1720] sm:$0xff]  ;;  %v10493_v15 = vpop.f32.mrf.mxu0  ;;  %v10495_v16 = vpop.f32.mrf.mxu1 }
 0x1b2   : > { %1778 = vmatpush.msrb.mxu2 %v690_v19  ;;  %1804 = vmatpush.msrb.mxu3 %v818_v20  ;;  %v772_v19 = vld [vmem:[%s17496_s2 + $0x2e8] sm:$0xff] }
 0x1b3   : > { %2399 = vmatpush.msra.mxu0 %v6700_v27  ;;  %2425 = vmatpush.msra.mxu1 %v6828_v28  ;;  %v900_v20 = vld [vmem:[%s17496_s2 + $0x6e8] sm:$0xff]  ;;  %v6782_v27 = vld [vmem:[%s17496_s2 + $0x12e0] sm:$0xff] }
 0x1b4   : > { %1779 = vmatpush.msrb.mxu2 %v682_v0  ;;  %1805 = vmatpush.msrb.mxu3 %v810_v30  ;;  %v6910_v28 = vld [vmem:[%s17496_s2 + $0x16e0] sm:$0xff]  ;;  %v764_v0 = vld [vmem:[%s17496_s2 + $0x2a8] sm:$0xff] }
 0x1b5   : > { %2400 = vmatpush.msra.mxu0 %v6692_v33  ;;  %2426 = vmatpush.msra.mxu1 %v6820_v34  ;;  %v892_v30 = vld [vmem:[%s17496_s2 + $0x6a8] sm:$0xff]  ;;  %v6774_v33 = vld [vmem:[%s17496_s2 + $0x12a0] sm:$0xff] }
 0x1b6   : > { %1780 = vmatmul.f32.vlgmr.msrb.gmra.mxu2 %v9117_v39  ;;  %1806 = vmatmul.f32.vlgmr.msrb.gmra.mxu3 %v9119_v40  ;;  %v6902_v34 = vld [vmem:[%s17496_s2 + $0x16a0] sm:$0xff] }
 0x1b7   : > { %1868 = vmatpush.msra.mxu2 %v804_v45  ;;  %1894 = vmatpush.msra.mxu3 %v932_v46  ;;  %v756_v45 = vld [vmem:[%s17496_s2 + $0x268] sm:$0xff] }
 0x1b8   : > { %2401 = vmatmul.f32.vlgmr.msra.gmra.mxu0 %v9679_v57  ;;  %2427 = vmatmul.f32.vlgmr.msra.gmra.mxu1 %v9681_v58  ;;  %v884_v46 = vld [vmem:[%s17496_s2 + $0x668] sm:$0xff] }
 0x1b9   : > { %2489 = vmatpush.msrb.mxu0 %v6814_v49  ;;  %2515 = vmatpush.msrb.mxu1 %v6942_v50  ;;  %v10531_v49 = vpop.f32.mrf.mxu2  ;;  %v10533_v50 = vpop.f32.mrf.mxu3 }
 0x1ba   : > { %1869 = vmatpush.msra.mxu2 %v796_v53  ;;  %1895 = vmatpush.msra.mxu3 %v924_v54  ;;  %17550 = vst [vmem:[#allocation17_spill] sm:$0xff] %v10531_v49  ;;  %v6766_v53 = vld [vmem:[%s17496_s2 + $0x1260] sm:$0xff]  ;;  %v6885_v49 = vld [vmem:[%s17496_s2 + $0x1618] sm:$0xff] }
 0x1bb   : > { %2490 = vmatpush.msrb.mxu0 %v6806_v55  ;;  %2516 = vmatpush.msrb.mxu1 %v6934_v56  ;;  %17551 = vst [vmem:[#allocation18_spill] sm:$0xff] %v10533_v50  ;;  %v6894_v54 = vld [vmem:[%s17496_s2 + $0x1660] sm:$0xff]  ;;  %v748_v55 = vld [vmem:[%s17496_s2 + $0x228] sm:$0xff]  ;;  %v7379_v50 = vld [vmem:[%s17496_s2 + $0xa90] sm:$0xff] }
 0x1bc   : > { %1870 = vmatpush.msra.mxu2 %v788_v3  ;;  %1896 = vmatpush.msra.mxu3 %v916_v4  ;;  %v876_v56 = vld [vmem:[%s17496_s2 + $0x628] sm:$0xff]  ;;  %v6758_v3 = vld [vmem:[%s17496_s2 + $0x1220] sm:$0xff] }
 0x1bd   : > { %2491 = vmatpush.msrb.mxu0 %v6798_v7  ;;  %2517 = vmatpush.msrb.mxu1 %v6926_v47  ;;  %v6886_v4 = vld [vmem:[%s17496_s2 + $0x1620] sm:$0xff]  ;;  %v10553_v7 = vpop.f32.mrf.mxu0  ;;  %v10555_v47 = vpop.f32.mrf.mxu1 }
 0x1be   : > { %1871 = vmatpush.msra.mxu2 %v780_v48  ;;  %1897 = vmatpush.msra.mxu3 %v908_v8  ;;  %17552 = vst [vmem:[#allocation19_spill] sm:$0xff] %v10553_v7  ;;  %v740_v48 = vld [vmem:[%s17496_s2 + $0x1e8] sm:$0xff]  ;;  %v6893_v7 = vld [vmem:[%s17496_s2 + $0x1658] sm:$0xff] }
 0x1bf   : > { %2492 = vmatpush.msrb.mxu0 %v6790_v11  ;;  %2518 = vmatpush.msrb.mxu1 %v6918_v12  ;;  %17553 = vst [vmem:[#allocation20_spill] sm:$0xff] %v10555_v47  ;;  %v868_v8 = vld [vmem:[%s17496_s2 + $0x5e8] sm:$0xff]  ;;  %v6750_v11 = vld [vmem:[%s17496_s2 + $0x11e0] sm:$0xff] }
 0x1c0   : > { %1783 = vmatmul.f32.gmra.mxu2 %v9121_v41  ;;  %1809 = vmatmul.f32.gmra.mxu3 %v9123_v42  ;;  %v6878_v12 = vld [vmem:[%s17496_s2 + $0x15e0] sm:$0xff] }
 0x1c1   : > { %1872 = vmatpush.msra.mxu2 %v772_v19  ;;  %1898 = vmatpush.msra.mxu3 %v900_v20  ;;  %v732_v19 = vld [vmem:[%s17496_s2 + $0x1a8] sm:$0xff] }
 0x1c2   : > { %2404 = vmatmul.f32.gmra.mxu0 %v9735_v13  ;;  %2430 = vmatmul.f32.gmra.mxu1 %v9737_v14  ;;  %v860_v20 = vld [vmem:[%s17496_s2 + $0x5a8] sm:$0xff] }
 0x1c3   : > { %2493 = vmatpush.msrb.mxu0 %v6782_v27  ;;  %2519 = vmatpush.msrb.mxu1 %v6910_v28  ;;  %v6742_v27 = vld [vmem:[%s17496_s2 + $0x11a0] sm:$0xff] }
 0x1c4   : > { %1873 = vmatpush.msra.mxu2 %v764_v0  ;;  %1899 = vmatpush.msra.mxu3 %v892_v30  ;;  %v6870_v28 = vld [vmem:[%s17496_s2 + $0x15a0] sm:$0xff]  ;;  %v724_v0 = vld [vmem:[%s17496_s2 + $0x168] sm:$0xff] }
 0x1c5   : > { %2494 = vmatpush.msrb.mxu0 %v6774_v33  ;;  %2520 = vmatpush.msrb.mxu1 %v6902_v34  ;;  %v852_v30 = vld [vmem:[%s17496_s2 + $0x568] sm:$0xff]  ;;  %v10591_v33 = vpop.f32.mrf.mxu2  ;;  %v10593_v34 = vpop.f32.mrf.mxu3 }
 0x1c6   : > { %1874 = vmatpush.msra.mxu2 %v756_v45  ;;  %1900 = vmatpush.msra.mxu3 %v884_v46  ;;  %17554 = vst [vmem:[#allocation21_spill] sm:$0xff] %v10591_v33  ;;  %v6734_v45 = vld [vmem:[%s17496_s2 + $0x1160] sm:$0xff]  ;;  %v6707_v33 = vld [vmem:[%s17496_s2 + $0x1088] sm:$0xff] }
 0x1c7   : > { %2495 = vmatpush.msrb.mxu0 %v6766_v53  ;;  %2521 = vmatpush.msrb.mxu1 %v6894_v54  ;;  %17555 = vst [vmem:[#allocation22_spill] sm:$0xff] %v10593_v34  ;;  %v6862_v46 = vld [vmem:[%s17496_s2 + $0x1560] sm:$0xff]  ;;  %v716_v53 = vld [vmem:[%s17496_s2 + $0x128] sm:$0xff] }
 0x1c8   : > { %1875 = vmatpush.msra.mxu2 %v748_v55  ;;  %1901 = vmatpush.msra.mxu3 %v876_v56  ;;  %v844_v54 = vld [vmem:[%s17496_s2 + $0x528] sm:$0xff]  ;;  %v6726_v55 = vld [vmem:[%s17496_s2 + $0x1120] sm:$0xff] }
 0x1c9   : > { %2496 = vmatpush.msrb.mxu0 %v6758_v3  ;;  %2522 = vmatpush.msrb.mxu1 %v6886_v4  ;;  %v6854_v56 = vld [vmem:[%s17496_s2 + $0x1520] sm:$0xff]  ;;  %v10613_v3 = vpop.f32.mrf.mxu0  ;;  %v10615_v4 = vpop.f32.mrf.mxu1 }
 0x1ca   : > { %1786 = vmatmul.f32.gmra.mxu2 %v9125_v43  ;;  %1812 = vmatmul.f32.gmra.mxu3 %v9127_v44  ;;  %17556 = vst [vmem:[#allocation23_spill] sm:$0xff] %v10613_v3  ;;  %v7360_v34 = vld [vmem:[%s17496_s2 + $0xd00] sm:$0xff] }
 0x1cb   : > { %1876 = vmatpush.msra.mxu2 %v740_v48  ;;  %1902 = vmatpush.msra.mxu3 %v868_v8  ;;  %17557 = vst [vmem:[#allocation24_spill] sm:$0xff] %v10615_v4  ;;  %v708_v48 = vld [vmem:[%s17496_s2 + $0xe8] sm:$0xff]  ;;  %v6760_v4 = vld [vmem:[%s17496_s2 + $0x1230] sm:$0xff] }
 0x1cc   : > { %2407 = vmatmul.f32.gmra.mxu0 %v9797_v35  ;;  %2433 = vmatmul.f32.gmra.mxu1 %v9799_v36  ;;  %v836_v8 = vld [vmem:[%s17496_s2 + $0x4e8] sm:$0xff] }
 0x1cd   : > { %2497 = vmatpush.msrb.mxu0 %v6750_v11  ;;  %2523 = vmatpush.msrb.mxu1 %v6878_v12  ;;  %v6718_v11 = vld [vmem:[%s17496_s2 + $0x10e0] sm:$0xff] }
 0x1ce   : > { %1877 = vmatpush.msra.mxu2 %v732_v19  ;;  %1903 = vmatpush.msra.mxu3 %v860_v20  ;;  %v6846_v12 = vld [vmem:[%s17496_s2 + $0x14e0] sm:$0xff]  ;;  %v700_v19 = vld [vmem:[%s17496_s2 + $0xa8] sm:$0xff] }
 0x1cf   : > { %2498 = vmatpush.msrb.mxu0 %v6742_v27  ;;  %2524 = vmatpush.msrb.mxu1 %v6870_v28  ;;  %v828_v20 = vld [vmem:[%s17496_s2 + $0x4a8] sm:$0xff]  ;;  %v6710_v27 = vld [vmem:[%s17496_s2 + $0x10a0] sm:$0xff] }
 0x1d0   : > { %1878 = vmatpush.msra.mxu2 %v724_v0  ;;  %1904 = vmatpush.msra.mxu3 %v852_v30  ;;  %v6838_v28 = vld [vmem:[%s17496_s2 + $0x14a0] sm:$0xff]  ;;  %v692_v0 = vld [vmem:[%s17496_s2 + $0x68] sm:$0xff] }
 0x1d1   : > { %2499 = vmatpush.msrb.mxu0 %v6734_v45  ;;  %2525 = vmatpush.msrb.mxu1 %v6862_v46  ;;  %v820_v30 = vld [vmem:[%s17496_s2 + $0x468] sm:$0xff]  ;;  %v6702_v45 = vld [vmem:[%s17496_s2 + $0x1060] sm:$0xff] }
 0x1d2   : > { %1879 = vmatpush.msra.mxu2 %v716_v53  ;;  %1905 = vmatpush.msra.mxu3 %v844_v54  ;;  %v6830_v46 = vld [vmem:[%s17496_s2 + $0x1460] sm:$0xff]  ;;  %v684_v53 = vld [vmem:[%s17496_s2 + $0x28] sm:$0xff] }
 0x1d3   : > { %2500 = vmatpush.msrb.mxu0 %v6726_v55  ;;  %2526 = vmatpush.msrb.mxu1 %v6854_v56  ;;  %v812_v54 = vld [vmem:[%s17496_s2 + $0x428] sm:$0xff]  ;;  %v10659_v55 = vpop.f32.mrf.mxu2  ;;  %v10661_v56 = vpop.f32.mrf.mxu3 }
 0x1d4   : > { %1880 = vmatpush.msra.mxu2 %v708_v48  ;;  %1906 = vmatpush.msra.mxu3 %v836_v8  ;;  %17558 = vst [vmem:[#allocation25_spill] sm:$0xff] %v10659_v55  ;;  %v6694_v48 = vld [vmem:[%s17496_s2 + $0x1020] sm:$0xff]  ;;  %v702_v55 = vld [vmem:[%s17496_s2 + $0xb8] sm:$0xff] }
 0x1d5   : > { %2501 = vmatpush.msrb.mxu0 %v6718_v11  ;;  %2527 = vmatpush.msrb.mxu1 %v6846_v12  ;;  %17559 = vst [vmem:[#allocation26_spill] sm:$0xff] %v10661_v56  ;;  %v6822_v8 = vld [vmem:[%s17496_s2 + $0x1420] sm:$0xff]  ;;  %v806_v11 = vld [vmem:[%s17496_s2 + $0x3f8] sm:$0xff] }
 0x1d6   : > { %1881 = vmatpush.msra.mxu2 %v700_v19  ;;  %1907 = vmatpush.msra.mxu3 %v828_v20  ;;  %v934_v12 = vld [vmem:[%s17496_s2 + $0x7f8] sm:$0xff]  ;;  %v10675_v19 = vpop.f32.mrf.mxu0  ;;  %v10677_v20 = vpop.f32.mrf.mxu1 }
 0x1d7   : > { %2502 = vmatpush.msrb.mxu0 %v6710_v27  ;;  %2528 = vmatpush.msrb.mxu1 %v6838_v28  ;;  %17560 = vst [vmem:[#allocation27_spill] sm:$0xff] %v10675_v19  ;;  %v6816_v27 = vld [vmem:[%s17496_s2 + $0x13f0] sm:$0xff]  ;;  %v838_v56 = vld [vmem:[%s17496_s2 + $0x4f8] sm:$0xff]  ;;  %v6851_v19 = vld [vmem:[%s17496_s2 + $0x1508] sm:$0xff] }
 0x1d8   : > { %1882 = vmatpush.msra.mxu2 %v692_v0  ;;  %1908 = vmatpush.msra.mxu3 %v820_v30  ;;  %17561 = vst [vmem:[#allocation28_spill] sm:$0xff] %v10677_v20  ;;  %v6944_v28 = vld [vmem:[%s17496_s2 + $0x17f0] sm:$0xff]  ;;  %v798_v0 = vld [vmem:[%s17496_s2 + $0x3b8] sm:$0xff] }
 0x1d9   : > { %2503 = vmatpush.msrb.mxu0 %v6702_v45  ;;  %2529 = vmatpush.msrb.mxu1 %v6830_v46  ;;  %v926_v30 = vld [vmem:[%s17496_s2 + $0x7b8] sm:$0xff]  ;;  %v6808_v45 = vld [vmem:[%s17496_s2 + $0x13b0] sm:$0xff] }
 0x1da   : > { %1883 = vmatpush.msra.mxu2 %v684_v53  ;;  %1909 = vmatpush.msra.mxu3 %v812_v54  ;;  %v6936_v46 = vld [vmem:[%s17496_s2 + $0x17b0] sm:$0xff]  ;;  %v790_v53 = vld [vmem:[%s17496_s2 + $0x378] sm:$0xff] }
 0x1db   : > { %2504 = vmatpush.msrb.mxu0 %v6694_v48  ;;  %2530 = vmatpush.msrb.mxu1 %v6822_v8  ;;  %v918_v54 = vld [vmem:[%s17496_s2 + $0x778] sm:$0xff]  ;;  %v6800_v48 = vld [vmem:[%s17496_s2 + $0x1370] sm:$0xff] }
 0x1dc   : > { %1884 = vmatmul.f32.vlgmr.msra.gmra.mxu2 %v9117_v39  ;;  %1910 = vmatmul.f32.vlgmr.msra.gmra.mxu3 %v9119_v40  ;;  %v6928_v8 = vld [vmem:[%s17496_s2 + $0x1770] sm:$0xff] }
 0x1dd   : > { %1972 = vmatpush.msrb.mxu2 %v806_v11  ;;  %1998 = vmatpush.msrb.mxu3 %v934_v12  ;;  %v782_v11 = vld [vmem:[%s17496_s2 + $0x338] sm:$0xff]  ;;  %v6896_v20 = vld [vmem:[%s17496_s2 + $0x1670] sm:$0xff] }
 0x1de   : > { %2505 = vmatmul.f32.vlgmr.msrb.gmra.mxu0 %v9679_v57  ;;  %2531 = vmatmul.f32.vlgmr.msrb.gmra.mxu1 %v9681_v58  ;;  %v910_v12 = vld [vmem:[%s17496_s2 + $0x738] sm:$0xff] }
 0x1df   : > { %2593 = vmatpush.msra.mxu0 %v6816_v27  ;;  %2619 = vmatpush.msra.mxu1 %v6944_v28  ;;  %v10719_v27 = vpop.f32.mrf.mxu2  ;;  %v10721_v28 = vpop.f32.mrf.mxu3 }
 0x1e0   : > { %1973 = vmatpush.msrb.mxu2 %v798_v0  ;;  %1999 = vmatpush.msrb.mxu3 %v926_v30  ;;  %17562 = vst [vmem:[#allocation29_spill] sm:$0xff] %v10719_v27  ;;  %v6792_v0 = vld [vmem:[%s17496_s2 + $0x1330] sm:$0xff] }
 0x1e1   : > { %2594 = vmatpush.msra.mxu0 %v6808_v45  ;;  %2620 = vmatpush.msra.mxu1 %v6936_v46  ;;  %17563 = vst [vmem:[#allocation30_spill] sm:$0xff] %v10721_v28  ;;  %v6920_v30 = vld [vmem:[%s17496_s2 + $0x1730] sm:$0xff]  ;;  %v774_v45 = vld [vmem:[%s17496_s2 + $0x2f8] sm:$0xff] }
 0x1e2   : > { %1974 = vmatpush.msrb.mxu2 %v790_v53  ;;  %2000 = vmatpush.msrb.mxu3 %v918_v54  ;;  %v902_v46 = vld [vmem:[%s17496_s2 + $0x6f8] sm:$0xff]  ;;  %v10735_v53 = vpop.f32.mrf.mxu0  ;;  %v10737_v54 = vpop.f32.mrf.mxu1  ;;  %v6864_v28 = vld [vmem:[%s17496_s2 + $0x1570] sm:$0xff] }
 0x1e3   : > { %2595 = vmatpush.msra.mxu0 %v6800_v48  ;;  %2621 = vmatpush.msra.mxu1 %v6928_v8  ;;  %17564 = vst [vmem:[#allocation31_spill] sm:$0xff] %v10735_v53  ;;  %v6784_v48 = vld [vmem:[%s17496_s2 + $0x12f0] sm:$0xff]  ;;  %v6739_v53 = vld [vmem:[%s17496_s2 + $0x1188] sm:$0xff] }
 0x1e4   : > { %1975 = vmatpush.msrb.mxu2 %v782_v11  ;;  %2001 = vmatpush.msrb.mxu3 %v910_v12  ;;  %17565 = vst [vmem:[#allocation32_spill] sm:$0xff] %v10737_v54  ;;  %v6912_v8 = vld [vmem:[%s17496_s2 + $0x16f0] sm:$0xff]  ;;  %v766_v11 = vld [vmem:[%s17496_s2 + $0x2b8] sm:$0xff] }
 0x1e5   : > { %2596 = vmatpush.msra.mxu0 %v6792_v0  ;;  %2622 = vmatpush.msra.mxu1 %v6920_v30  ;;  %v894_v12 = vld [vmem:[%s17496_s2 + $0x6b8] sm:$0xff]  ;;  %v6776_v0 = vld [vmem:[%s17496_s2 + $0x12b0] sm:$0xff] }
 0x1e6   : > { %1887 = vmatmul.f32.gmra.mxu2 %v9121_v41  ;;  %1913 = vmatmul.f32.gmra.mxu3 %v9123_v42  ;;  %v6904_v30 = vld [vmem:[%s17496_s2 + $0x16b0] sm:$0xff] }
 0x1e7   : > { %1976 = vmatpush.msrb.mxu2 %v774_v45  ;;  %2002 = vmatpush.msrb.mxu3 %v902_v46  ;;  %v758_v45 = vld [vmem:[%s17496_s2 + $0x278] sm:$0xff]  ;;  %v6768_v54 = vld [vmem:[%s17496_s2 + $0x1270] sm:$0xff] }
 0x1e8   : > { %2508 = vmatmul.f32.gmra.mxu0 %v9735_v13  ;;  %2534 = vmatmul.f32.gmra.mxu1 %v9737_v14  ;;  %v886_v46 = vld [vmem:[%s17496_s2 + $0x678] sm:$0xff]  ;;  %v6728_v27 = vld [vmem:[%s17496_s2 + $0x1130] sm:$0xff] }
 0x1e9   : > { %2597 = vmatpush.msra.mxu0 %v6784_v48  ;;  %2623 = vmatpush.msra.mxu1 %v6912_v8  ;;  %v750_v48 = vld [vmem:[%s17496_s2 + $0x238] sm:$0xff] }
 0x1ea   : > { %1977 = vmatpush.msrb.mxu2 %v766_v11  ;;  %2003 = vmatpush.msrb.mxu3 %v894_v12  ;;  %v878_v8 = vld [vmem:[%s17496_s2 + $0x638] sm:$0xff]  ;;  %v10779_v11 = vpop.f32.mrf.mxu2  ;;  %v10781_v12 = vpop.f32.mrf.mxu3 }
 0x1eb   : > { %2598 = vmatpush.msra.mxu0 %v6776_v0  ;;  %2624 = vmatpush.msra.mxu1 %v6904_v30  ;;  %17566 = vst [vmem:[#allocation33_spill] sm:$0xff] %v10779_v11  ;;  %v6888_v0 = vld [vmem:[%s17496_s2 + $0x1630] sm:$0xff]  ;;  %v742_v30 = vld [vmem:[%s17496_s2 + $0x1f8] sm:$0xff]  ;;  %v10797_v47 = vpop.f32.mrf.mxu1 }
 0x1ec   : > { %17567 = vst [vmem:[#allocation34_spill] sm:$0xff] %v10781_v12  ;;  %1978 = vmatpush.msrb.mxu2 %v758_v45  ;;  %2004 = vmatpush.msrb.mxu3 %v886_v46  ;;  %v870_v45 = vld [vmem:[%s17496_s2 + $0x5f8] sm:$0xff]  ;;  %v10795_v46 = vpop.f32.mrf.mxu0  ;;  %v7377_v11 = vld [vmem:[%s17496_s2 + $0xad0] sm:$0xff] }
 0x1ed   : > { %2599 = vmatpush.msra.mxu0 %v6768_v54  ;;  %2625 = vmatpush.msra.mxu1 %v6896_v20  ;;  %17568 = vst [vmem:[#allocation35_spill] sm:$0xff] %v10795_v46  ;;  %v6752_v20 = vld [vmem:[%s17496_s2 + $0x11f0] sm:$0xff]  ;;  %v6883_v46 = vld [vmem:[%s17496_s2 + $0x1608] sm:$0xff]  ;;  %v6917_v12 = vld [vmem:[%s17496_s2 + $0x1718] sm:$0xff] }
 0x1ee   : > { %1979 = vmatpush.msrb.mxu2 %v750_v48  ;;  %2005 = vmatpush.msrb.mxu3 %v878_v8  ;;  %17569 = vst [vmem:[#allocation36_spill] sm:$0xff] %v10797_v47  ;;  %v6880_v54 = vld [vmem:[%s17496_s2 + $0x15f0] sm:$0xff]  ;;  %v734_v48 = vld [vmem:[%s17496_s2 + $0x1b8] sm:$0xff] }
 0x1ef   : > { %2600 = vmatpush.msra.mxu0 %v6760_v4  ;;  %2626 = vmatpush.msra.mxu1 %v6888_v0  ;;  %v862_v4 = vld [vmem:[%s17496_s2 + $0x5b8] sm:$0xff]  ;;  %v6744_v8 = vld [vmem:[%s17496_s2 + $0x11b0] sm:$0xff] }
 0x1f0   : > { %1890 = vmatmul.f32.gmra.mxu2 %v9125_v43  ;;  %1916 = vmatmul.f32.gmra.mxu3 %v9127_v44  ;;  %v6872_v0 = vld [vmem:[%s17496_s2 + $0x15b0] sm:$0xff] }
 0x1f1   : > { %1980 = vmatpush.msrb.mxu2 %v742_v30  ;;  %2006 = vmatpush.msrb.mxu3 %v870_v45  ;;  %v726_v30 = vld [vmem:[%s17496_s2 + $0x178] sm:$0xff]  ;;  %v6736_v47 = vld [vmem:[%s17496_s2 + $0x1170] sm:$0xff] }
 0x1f2   : > { %2511 = vmatmul.f32.gmra.mxu0 %v9797_v35  ;;  %2537 = vmatmul.f32.gmra.mxu1 %v9799_v36  ;;  %v854_v45 = vld [vmem:[%s17496_s2 + $0x578] sm:$0xff] }
 0x1f3   : > { %2601 = vmatpush.msra.mxu0 %v6752_v20  ;;  %2627 = vmatpush.msra.mxu1 %v6880_v54  ;;  %v718_v20 = vld [vmem:[%s17496_s2 + $0x138] sm:$0xff] }
 0x1f4   : > { %1981 = vmatpush.msrb.mxu2 %v734_v48  ;;  %2007 = vmatpush.msrb.mxu3 %v862_v4  ;;  %v846_v54 = vld [vmem:[%s17496_s2 + $0x538] sm:$0xff]  ;;  %v10839_v48 = vpop.f32.mrf.mxu2  ;;  %v10841_v4 = vpop.f32.mrf.mxu3 }
 0x1f5   : > { %2602 = vmatpush.msra.mxu0 %v6744_v8  ;;  %2628 = vmatpush.msra.mxu1 %v6872_v0  ;;  %17570 = vst [vmem:[#allocation37_spill] sm:$0xff] %v10839_v48  ;;  %v6856_v8 = vld [vmem:[%s17496_s2 + $0x1530] sm:$0xff]  ;;  %v710_v0 = vld [vmem:[%s17496_s2 + $0xf8] sm:$0xff] }
 0x1f6   : > { %17571 = vst [vmem:[#allocation38_spill] sm:$0xff] %v10841_v4  ;;  %1982 = vmatpush.msrb.mxu2 %v726_v30  ;;  %2008 = vmatpush.msrb.mxu3 %v854_v45  ;;  %v6720_v30 = vld [vmem:[%s17496_s2 + $0x10f0] sm:$0xff]  ;;  %v6925_v4 = vld [vmem:[%s17496_s2 + $0x1758] sm:$0xff] }
 0x1f7   : > { %2603 = vmatpush.msra.mxu0 %v6736_v47  ;;  %2629 = vmatpush.msra.mxu1 %v6864_v28  ;;  %v6848_v45 = vld [vmem:[%s17496_s2 + $0x14f0] sm:$0xff]  ;;  %v10861_v47 = vpop.f32.mrf.mxu0  ;;  %v10863_v28 = vpop.f32.mrf.mxu1 }
 0x1f8   : > { %1983 = vmatpush.msrb.mxu2 %v718_v20  ;;  %2009 = vmatpush.msrb.mxu3 %v846_v54  ;;  %17572 = vst [vmem:[#allocation39_spill] sm:$0xff] %v10861_v47  ;;  %v830_v20 = vld [vmem:[%s17496_s2 + $0x4b8] sm:$0xff]  ;;  %v6712_v54 = vld [vmem:[%s17496_s2 + $0x10b0] sm:$0xff]  ;;  %v6771_v47 = vld [vmem:[%s17496_s2 + $0x1288] sm:$0xff] }
 0x1f9   : > { %17573 = vst [vmem:[#allocation40_spill] sm:$0xff] %v10863_v28  ;;  %2604 = vmatpush.msra.mxu0 %v6728_v27  ;;  %2630 = vmatpush.msra.mxu1 %v6856_v8  ;;  %v6840_v28 = vld [vmem:[%s17496_s2 + $0x14b0] sm:$0xff]  ;;  %v694_v27 = vld [vmem:[%s17496_s2 + $0x78] sm:$0xff] }
 0x1fa   : > { %1984 = vmatpush.msrb.mxu2 %v710_v0  ;;  %2010 = vmatpush.msrb.mxu3 %v838_v56  ;;  %v822_v8 = vld [vmem:[%s17496_s2 + $0x478] sm:$0xff]  ;;  %v6704_v56 = vld [vmem:[%s17496_s2 + $0x1070] sm:$0xff] }
 0x1fb   : > { %2605 = vmatpush.msra.mxu0 %v6720_v30  ;;  %2631 = vmatpush.msra.mxu1 %v6848_v45  ;;  %v6832_v0 = vld [vmem:[%s17496_s2 + $0x1470] sm:$0xff]  ;;  %v686_v30 = vld [vmem:[%s17496_s2 + $0x38] sm:$0xff] }
 0x1fc   : > { %1985 = vmatpush.msrb.mxu2 %v702_v55  ;;  %2011 = vmatpush.msrb.mxu3 %v830_v20  ;;  %v814_v45 = vld [vmem:[%s17496_s2 + $0x438] sm:$0xff]  ;;  %v6696_v55 = vld [vmem:[%s17496_s2 + $0x1030] sm:$0xff] }
 0x1fd   : > { %2606 = vmatpush.msra.mxu0 %v6712_v54  ;;  %2632 = vmatpush.msra.mxu1 %v6840_v28  ;;  %v6824_v20 = vld [vmem:[%s17496_s2 + $0x1430] sm:$0xff]  ;;  %v10901_v28 = vpop.f32.mrf.mxu2  ;;  %v10903_v54 = vpop.f32.mrf.mxu3 }
 0x1fe   : > { %1986 = vmatpush.msrb.mxu2 %v694_v27  ;;  %2012 = vmatpush.msrb.mxu3 %v822_v8  ;;  %17574 = vst [vmem:[#allocation41_spill] sm:$0xff] %v10901_v28  ;;  %v6811_v27 = vld [vmem:[%s17496_s2 + $0x13c8] sm:$0xff]  ;;  %v7369_v28 = vld [vmem:[%s17496_s2 + $0xbd0] sm:$0xff] }
 0x1ff   : > { %2607 = vmatpush.msra.mxu0 %v6704_v56  ;;  %2633 = vmatpush.msra.mxu1 %v6832_v0  ;;  %17575 = vst [vmem:[#allocation42_spill] sm:$0xff] %v10903_v54  ;;  %v6939_v8 = vld [vmem:[%s17496_s2 + $0x17c8] sm:$0xff]  ;;  %v10913_v56 = vpop.f32.mrf.mxu0  ;;  %v10915_v0 = vpop.f32.mrf.mxu1  ;;  %v7371_v48 = vld [vmem:[%s17496_s2 + $0xb90] sm:$0xff] }
 0x200   : > { %1987 = vmatpush.msrb.mxu2 %v686_v30  ;;  %2013 = vmatpush.msrb.mxu3 %v814_v45  ;;  %v6803_v30 = vld [vmem:[%s17496_s2 + $0x1388] sm:$0xff] }
 0x201   : > { %2608 = vmatpush.msra.mxu0 %v6696_v55  ;;  %2634 = vmatpush.msra.mxu1 %v6824_v20  ;;  %v6931_v45 = vld [vmem:[%s17496_s2 + $0x1788] sm:$0xff] }
 0x202   : > { %1988 = vmatmul.f32.vlgmr.msrb.gmra.mxu2 %v9117_v39  ;;  %2014 = vmatmul.f32.vlgmr.msrb.gmra.mxu3 %v9119_v40  ;;  %v7337_v39 = vld [vmem:[%s17496_s2 + $0xbc0] sm:$0xff]  ;;  %v6795_v55 = vld [vmem:[%s17496_s2 + $0x1348] sm:$0xff] }
 0x203   : > { %2333 = vmatpush.msra.mxu2 %v6811_v27  ;;  %2359 = vmatpush.msra.mxu3 %v6939_v8  ;;  %v7338_v40 = vld [vmem:[%s17496_s2 + $0xfc0] sm:$0xff]  ;;  %v6923_v20 = vld [vmem:[%s17496_s2 + $0x1748] sm:$0xff] }
 0x204   : > { %2609 = vmatmul.f32.vlgmr.msra.gmra.mxu0 %v9679_v57  ;;  %2635 = vmatmul.f32.vlgmr.msra.gmra.mxu1 %v9681_v58  ;;  %v7339_v27 = vld [vmem:[%s17496_s2 + $0xb80] sm:$0xff]  ;;  %v6827_v54 = vld [vmem:[%s17496_s2 + $0x1448] sm:$0xff] }
 0x205   : > { %2803 = vmatpush.msrb.mxu0 %v7337_v39  ;;  %2829 = vmatpush.msrb.mxu1 %v7338_v40  ;;  %v7340_v8 = vld [vmem:[%s17496_s2 + $0xf80] sm:$0xff]  ;;  %v6787_v39 = vld [vmem:[%s17496_s2 + $0x1308] sm:$0xff] }
 0x206   : > { %2334 = vmatpush.msra.mxu2 %v6803_v30  ;;  %2360 = vmatpush.msra.mxu3 %v6931_v45  ;;  %v6915_v40 = vld [vmem:[%s17496_s2 + $0x1708] sm:$0xff]  ;;  %v7341_v30 = vld [vmem:[%s17496_s2 + $0xb40] sm:$0xff] }
 0x207   : > { %2804 = vmatpush.msrb.mxu0 %v7339_v27  ;;  %2830 = vmatpush.msrb.mxu1 %v7340_v8  ;;  %v7342_v45 = vld [vmem:[%s17496_s2 + $0xf40] sm:$0xff]  ;;  %v10955_v27 = vpop.f32.mrf.mxu2  ;;  %v10957_v8 = vpop.f32.mrf.mxu3 }
 0x208   : > { %2335 = vmatpush.msra.mxu2 %v6795_v55  ;;  %2361 = vmatpush.msra.mxu3 %v6923_v20  ;;  %v6779_v55 = vld [vmem:[%s17496_s2 + $0x12c8] sm:$0xff] }
 0x209   : > { %2805 = vmatpush.msrb.mxu0 %v7341_v30  ;;  %2831 = vmatpush.msrb.mxu1 %v7342_v45  ;;  %v6907_v20 = vld [vmem:[%s17496_s2 + $0x16c8] sm:$0xff]  ;;  %v7343_v30 = vld [vmem:[%s17496_s2 + $0xb00] sm:$0xff] }
 0x20a   : > { %2336 = vmatpush.msra.mxu2 %v6787_v39  ;;  %2362 = vmatpush.msra.mxu3 %v6915_v40  ;;  %v7344_v45 = vld [vmem:[%s17496_s2 + $0xf00] sm:$0xff]  ;;  %v10973_v39 = vpop.f32.mrf.mxu0  ;;  %v10975_v40 = vpop.f32.mrf.mxu1 }
 0x20b   : > { %2806 = vmatpush.msrb.mxu0 %v7343_v30  ;;  %2832 = vmatpush.msrb.mxu1 %v7344_v45  ;;  %v6899_v30 = vld [vmem:[%s17496_s2 + $0x1688] sm:$0xff]  ;;  %v7347_v45 = vld [vmem:[%s17496_s2 + $0xa80] sm:$0xff] }
 0x20c   : > { %1991 = vmatmul.f32.gmra.mxu2 %v9121_v41  ;;  %2017 = vmatmul.f32.gmra.mxu3 %v9123_v42  ;;  %v7345_v41 = vld [vmem:[%s17496_s2 + $0xac0] sm:$0xff] }
 0x20d   : > { %2337 = vmatpush.msra.mxu2 %v6779_v55  ;;  %2363 = vmatpush.msra.mxu3 %v6907_v20  ;;  %v7346_v42 = vld [vmem:[%s17496_s2 + $0xec0] sm:$0xff]  ;;  %v6763_v55 = vld [vmem:[%s17496_s2 + $0x1248] sm:$0xff] }
 0x20e   : > { %2612 = vmatmul.f32.gmra.mxu0 %v9735_v13  ;;  %2638 = vmatmul.f32.gmra.mxu1 %v9737_v14  ;;  %v6891_v20 = vld [vmem:[%s17496_s2 + $0x1648] sm:$0xff] }
 0x20f   : > { %2807 = vmatpush.msrb.mxu0 %v7345_v41  ;;  %2833 = vmatpush.msrb.mxu1 %v7346_v42  ;;  %v7348_v41 = vld [vmem:[%s17496_s2 + $0xe80] sm:$0xff]  ;;  %v6755_v42 = vld [vmem:[%s17496_s2 + $0x1208] sm:$0xff] }
 0x210   : > { %2338 = vmatpush.msra.mxu2 %v6771_v47  ;;  %2364 = vmatpush.msra.mxu3 %v6899_v30  ;;  %v7349_v47 = vld [vmem:[%s17496_s2 + $0xa40] sm:$0xff] }
 0x211   : > { %2808 = vmatpush.msrb.mxu0 %v7347_v45  ;;  %2834 = vmatpush.msrb.mxu1 %v7348_v41  ;;  %v7350_v30 = vld [vmem:[%s17496_s2 + $0xe40] sm:$0xff]  ;;  %v11015_v45 = vpop.f32.mrf.mxu2  ;;  %v11017_v41 = vpop.f32.mrf.mxu3 }
 0x212   : > { %2339 = vmatpush.msra.mxu2 %v6763_v55  ;;  %2365 = vmatpush.msra.mxu3 %v6891_v20  ;;  %v6747_v55 = vld [vmem:[%s17496_s2 + $0x11c8] sm:$0xff] }
 0x213   : > { %2809 = vmatpush.msrb.mxu0 %v7349_v47  ;;  %2835 = vmatpush.msrb.mxu1 %v7350_v30  ;;  %v6875_v20 = vld [vmem:[%s17496_s2 + $0x15c8] sm:$0xff]  ;;  %v7351_v47 = vld [vmem:[%s17496_s2 + $0xa00] sm:$0xff] }
 0x214   : > { %2340 = vmatpush.msra.mxu2 %v6755_v42  ;;  %2366 = vmatpush.msra.mxu3 %v6883_v46  ;;  %v7352_v30 = vld [vmem:[%s17496_s2 + $0xe00] sm:$0xff]  ;;  %v11033_v46 = vpop.f32.mrf.mxu0  ;;  %v11035_v42 = vpop.f32.mrf.mxu1 }
 0x215   : > { %2810 = vmatpush.msrb.mxu0 %v7351_v47  ;;  %2836 = vmatpush.msrb.mxu1 %v7352_v30  ;;  %v6867_v47 = vld [vmem:[%s17496_s2 + $0x1588] sm:$0xff]  ;;  %v7355_v30 = vld [vmem:[%s17496_s2 + $0x980] sm:$0xff] }
 0x216   : > { %1994 = vmatmul.f32.gmra.mxu2 %v9125_v43  ;;  %2020 = vmatmul.f32.gmra.mxu3 %v9127_v44  ;;  %v7353_v43 = vld [vmem:[%s17496_s2 + $0x9c0] sm:$0xff] }
 0x217   : > { %2341 = vmatpush.msra.mxu2 %v6747_v55  ;;  %2367 = vmatpush.msra.mxu3 %v6875_v20  ;;  %v7354_v44 = vld [vmem:[%s17496_s2 + $0xdc0] sm:$0xff]  ;;  %v6731_v55 = vld [vmem:[%s17496_s2 + $0x1148] sm:$0xff] }
 0x218   : > { %2615 = vmatmul.f32.gmra.mxu0 %v9797_v35  ;;  %2641 = vmatmul.f32.gmra.mxu1 %v9799_v36  ;;  %v6859_v20 = vld [vmem:[%s17496_s2 + $0x1548] sm:$0xff] }
 0x219   : > { %2811 = vmatpush.msrb.mxu0 %v7353_v43  ;;  %2837 = vmatpush.msrb.mxu1 %v7354_v44  ;;  %v7356_v43 = vld [vmem:[%s17496_s2 + $0xd80] sm:$0xff]  ;;  %v6723_v44 = vld [vmem:[%s17496_s2 + $0x1108] sm:$0xff] }
 0x21a   : > { %2342 = vmatpush.msra.mxu2 %v6739_v53  ;;  %2368 = vmatpush.msra.mxu3 %v6867_v47  ;;  %v7357_v53 = vld [vmem:[%s17496_s2 + $0x940] sm:$0xff] }
 0x21b   : > { %2812 = vmatpush.msrb.mxu0 %v7355_v30  ;;  %2838 = vmatpush.msrb.mxu1 %v7356_v43  ;;  %v7358_v47 = vld [vmem:[%s17496_s2 + $0xd40] sm:$0xff]  ;;  %v6715_v30 = vld [vmem:[%s17496_s2 + $0x10c8] sm:$0xff] }
 0x21c   : > { %2343 = vmatpush.msra.mxu2 %v6731_v55  ;;  %2369 = vmatpush.msra.mxu3 %v6859_v20  ;;  %v6843_v43 = vld [vmem:[%s17496_s2 + $0x14c8] sm:$0xff]  ;;  %v11081_v55 = vpop.f32.mrf.mxu2  ;;  %v11083_v20 = vpop.f32.mrf.mxu3 }
 0x21d   : > { %2813 = vmatpush.msrb.mxu0 %v7357_v53  ;;  %2839 = vmatpush.msrb.mxu1 %v7358_v47  ;;  %v11085_v53 = vpop.f32.mrf.mxu0  ;;  %v11087_v3 = vpop.f32.mrf.mxu1  ;;  %v7359_v47 = vld [vmem:[%s17496_s2 + $0x900] sm:$0xff] }
 0x21e   : > { %2344 = vmatpush.msra.mxu2 %v6723_v44  ;;  %2370 = vmatpush.msra.mxu3 %v6851_v19  ;;  %v6835_v19 = vld [vmem:[%s17496_s2 + $0x1488] sm:$0xff]  ;;  %v7361_v44 = vld [vmem:[%s17496_s2 + $0x8c0] sm:$0xff] }
 0x21f   : > { %2814 = vmatpush.msrb.mxu0 %v7359_v47  ;;  %2840 = vmatpush.msrb.mxu1 %v7360_v34  ;;  %v7362_v47 = vld [vmem:[%s17496_s2 + $0xcc0] sm:$0xff]  ;;  %v6699_v34 = vld [vmem:[%s17496_s2 + $0x1048] sm:$0xff] }
 0x220   : > { %2345 = vmatpush.msra.mxu2 %v6715_v30  ;;  %2371 = vmatpush.msra.mxu3 %v6843_v43  ;;  %v7363_v30 = vld [vmem:[%s17496_s2 + $0x880] sm:$0xff] }
 0x221   : > { %2815 = vmatpush.msrb.mxu0 %v7361_v44  ;;  %2841 = vmatpush.msrb.mxu1 %v7362_v47  ;;  %v7364_v43 = vld [vmem:[%s17496_s2 + $0xc80] sm:$0xff]  ;;  %v6691_v44 = vld [vmem:[%s17496_s2 + $0x1008] sm:$0xff] }
 0x222   : > { %2346 = vmatpush.msra.mxu2 %v6707_v33  ;;  %2372 = vmatpush.msra.mxu3 %v6835_v19  ;;  %v6819_v47 = vld [vmem:[%s17496_s2 + $0x1408] sm:$0xff]  ;;  %v7365_v33 = vld [vmem:[%s17496_s2 + $0x840] sm:$0xff] }
 0x223   : > { %2816 = vmatpush.msrb.mxu0 %v7363_v30  ;;  %2842 = vmatpush.msrb.mxu1 %v7364_v43  ;;  %v7366_v19 = vld [vmem:[%s17496_s2 + $0xc40] sm:$0xff]  ;;  %v6813_v30 = vld [vmem:[%s17496_s2 + $0x13d8] sm:$0xff] }
 0x224   : > { %2347 = vmatpush.msra.mxu2 %v6699_v34  ;;  %2373 = vmatpush.msra.mxu3 %v6827_v54  ;;  %v6941_v54 = vld [vmem:[%s17496_s2 + $0x17d8] sm:$0xff]  ;;  %v7367_v34 = vld [vmem:[%s17496_s2 + $0x800] sm:$0xff] }
 0x225   : > { %2817 = vmatpush.msrb.mxu0 %v7365_v33  ;;  %2843 = vmatpush.msrb.mxu1 %v7366_v19  ;;  %v7368_v43 = vld [vmem:[%s17496_s2 + $0xc00] sm:$0xff]  ;;  %v11149_v33 = vpop.f32.mrf.mxu0  ;;  %v11151_v19 = vpop.f32.mrf.mxu1 }
 0x226   : > { %2348 = vmatpush.msra.mxu2 %v6691_v44  ;;  %2374 = vmatpush.msra.mxu3 %v6819_v47  ;;  %v11143_v44 = vpop.f32.mrf.mxu2  ;;  %v11145_v47 = vpop.f32.mrf.mxu3 }
 0x227   : > { %2818 = vmatpush.msrb.mxu0 %v7367_v34  ;;  %2844 = vmatpush.msrb.mxu1 %v7368_v43  ;;  %v6805_v34 = vld [vmem:[%s17496_s2 + $0x1398] sm:$0xff] }
 0x228   : > { %2349 = vmatmul.f32.vlgmr.msra.gmra.mxu2 %v9679_v57  ;;  %2375 = vmatmul.f32.vlgmr.msra.gmra.mxu3 %v9681_v58  ;;  %v6933_v43 = vld [vmem:[%s17496_s2 + $0x1798] sm:$0xff] }
 0x229   : > { %2437 = vmatpush.msrb.mxu2 %v6813_v30  ;;  %2463 = vmatpush.msrb.mxu3 %v6941_v54  ;;  %v7370_v30 = vld [vmem:[%s17496_s2 + $0xfd0] sm:$0xff]  ;;  %v6797_v54 = vld [vmem:[%s17496_s2 + $0x1358] sm:$0xff] }
 0x22a   : > { %2819 = vmatmul.f32.vlgmr.msrb.gmra.mxu0 %v9853_v1  ;;  %2845 = vmatmul.f32.vlgmr.msrb.gmra.mxu1 %v9855_v2 }
 0x22b   : > { %2907 = vmatpush.msra.mxu0 %v7369_v28  ;;  %2933 = vmatpush.msra.mxu1 %v7370_v30  ;;  %v7372_v28 = vld [vmem:[%s17496_s2 + $0xf90] sm:$0xff]  ;;  %v6789_v30 = vld [vmem:[%s17496_s2 + $0x1318] sm:$0xff] }
 0x22c   : > { %2438 = vmatpush.msrb.mxu2 %v6805_v34  ;;  %2464 = vmatpush.msrb.mxu3 %v6933_v43  ;;  %v7373_v34 = vld [vmem:[%s17496_s2 + $0xb50] sm:$0xff]  ;;  %v6781_v43 = vld [vmem:[%s17496_s2 + $0x12d8] sm:$0xff] }
 0x22d   : > { %2908 = vmatpush.msra.mxu0 %v7371_v48  ;;  %2934 = vmatpush.msra.mxu1 %v7372_v28  ;;  %v7374_v48 = vld [vmem:[%s17496_s2 + $0xf50] sm:$0xff] }
 0x22e   : > { %2439 = vmatpush.msrb.mxu2 %v6797_v54  ;;  %2465 = vmatpush.msrb.mxu3 %v6925_v4  ;;  %v6909_v4 = vld [vmem:[%s17496_s2 + $0x16d8] sm:$0xff]  ;;  %v7375_v54 = vld [vmem:[%s17496_s2 + $0xb10] sm:$0xff] }
 0x22f   : > { %2909 = vmatpush.msra.mxu0 %v7373_v34  ;;  %2935 = vmatpush.msra.mxu1 %v7374_v48  ;;  %v7376_v28 = vld [vmem:[%s17496_s2 + $0xf10] sm:$0xff]  ;;  %v11209_v34 = vpop.f32.mrf.mxu0  ;;  %v11211_v48 = vpop.f32.mrf.mxu1 }
 0x230   : > { %2440 = vmatpush.msrb.mxu2 %v6789_v30  ;;  %2466 = vmatpush.msrb.mxu3 %v6917_v12  ;;  %v11203_v30 = vpop.f32.mrf.mxu2  ;;  %v11205_v12 = vpop.f32.mrf.mxu3 }
 0x231   : > { %2910 = vmatpush.msra.mxu0 %v7375_v54  ;;  %2936 = vmatpush.msra.mxu1 %v7376_v28  ;;  %v6773_v54 = vld [vmem:[%s17496_s2 + $0x1298] sm:$0xff] }
 0x232   : > { %2352 = vmatmul.f32.gmra.mxu2 %v9735_v13  ;;  %2378 = vmatmul.f32.gmra.mxu3 %v9737_v14  ;;  %v6901_v28 = vld [vmem:[%s17496_s2 + $0x1698] sm:$0xff] }
 0x233   : > { %2441 = vmatpush.msrb.mxu2 %v6781_v43  ;;  %2467 = vmatpush.msrb.mxu3 %v6909_v4  ;;  %v7378_v43 = vld [vmem:[%s17496_s2 + $0xed0] sm:$0xff]  ;;  %v6765_v4 = vld [vmem:[%s17496_s2 + $0x1258] sm:$0xff] }
 0x234   : > { %2822 = vmatmul.f32.gmra.mxu0 %v9909_v23  ;;  %2848 = vmatmul.f32.gmra.mxu1 %v9911_v24 }
 0x235   : > { %2911 = vmatpush.msra.mxu0 %v7377_v11  ;;  %2937 = vmatpush.msra.mxu1 %v7378_v43  ;;  %v7380_v11 = vld [vmem:[%s17496_s2 + $0xe90] sm:$0xff]  ;;  %v6757_v43 = vld [vmem:[%s17496_s2 + $0x1218] sm:$0xff] }
 0x236   : > { %2442 = vmatpush.msrb.mxu2 %v6773_v54  ;;  %2468 = vmatpush.msrb.mxu3 %v6901_v28  ;;  %v7381_v54 = vld [vmem:[%s17496_s2 + $0xa50] sm:$0xff]  ;;  %v6749_v28 = vld [vmem:[%s17496_s2 + $0x11d8] sm:$0xff] }
 0x237   : > { %2912 = vmatpush.msra.mxu0 %v7379_v50  ;;  %2938 = vmatpush.msra.mxu1 %v7380_v11  ;;  %v7382_v50 = vld [vmem:[%s17496_s2 + $0xe50] sm:$0xff]  ;;  %v11259_v11 = vpop.f32.mrf.mxu1 }
 0x238   : > { %2443 = vmatpush.msrb.mxu2 %v6765_v4  ;;  %2469 = vmatpush.msrb.mxu3 %v6893_v7  ;;  %v6877_v7 = vld [vmem:[%s17496_s2 + $0x15d8] sm:$0xff]  ;;  %v11257_v4 = vpop.f32.mrf.mxu0  ;;  %17577 = vst [vmem:[#allocation44_spill] sm:$0xff] %v11259_v11 }
 0x239   : > { %2913 = vmatpush.msra.mxu0 %v7381_v54  ;;  %2939 = vmatpush.msra.mxu1 %v7382_v50  ;;  %17576 = vst [vmem:[#allocation43_spill] sm:$0xff] %v11257_v4  ;;  %v7383_v54 = vld [vmem:[%s17496_s2 + $0xa10] sm:$0xff]  ;;  %v11269_v50 = vpop.f32.mrf.mxu3  ;;  %v6741_v11 = vld [vmem:[%s17496_s2 + $0x1198] sm:$0xff] }
 0x23a   : > { %2444 = vmatpush.msrb.mxu2 %v6757_v43  ;;  %2470 = vmatpush.msrb.mxu3 %v6885_v49  ;;  %v7384_v49 = vld [vmem:[%s17496_s2 + $0xe10] sm:$0xff]  ;;  %v11267_v43 = vpop.f32.mrf.mxu2  ;;  %v6861_v4 = vld [vmem:[%s17496_s2 + $0x1558] sm:$0xff] }
 0x23b   : > { %2914 = vmatpush.msra.mxu0 %v7383_v54  ;;  %2940 = vmatpush.msra.mxu1 %v7384_v49  ;;  %v6869_v54 = vld [vmem:[%s17496_s2 + $0x1598] sm:$0xff]  ;;  %v7385_v49 = vld [vmem:[%s17496_s2 + $0x9d0] sm:$0xff] }
 0x23c   : > { %2355 = vmatmul.f32.gmra.mxu2 %v9797_v35  ;;  %2381 = vmatmul.f32.gmra.mxu3 %v9799_v36 }
 0x23d   : > { %2445 = vmatpush.msrb.mxu2 %v6749_v28  ;;  %2471 = vmatpush.msrb.mxu3 %v6877_v7  ;;  %v7386_v28 = vld [vmem:[%s17496_s2 + $0xdd0] sm:$0xff]  ;;  %v6733_v7 = vld [vmem:[%s17496_s2 + $0x1158] sm:$0xff] }
 0x23e   : > { %2825 = vmatmul.f32.gmra.mxu0 %v9965_v51  ;;  %2851 = vmatmul.f32.gmra.mxu1 %v9967_v52 }
 0x23f   : > { %2915 = vmatpush.msra.mxu0 %v7385_v49  ;;  %2941 = vmatpush.msra.mxu1 %v7386_v28  ;;  %v7388_v49 = vld [vmem:[%s17496_s2 + $0xd90] sm:$0xff]  ;;  %v6725_v28 = vld [vmem:[%s17496_s2 + $0x1118] sm:$0xff]  ;;  %v11323_v22 = vpop.f32.mrf.mxu1 }
 0x240   : > { %2446 = vmatpush.msrb.mxu2 %v6741_v11  ;;  %2472 = vmatpush.msrb.mxu3 %v6869_v54  ;;  %v7389_v11 = vld [vmem:[%s17496_s2 + $0x950] sm:$0xff]  ;;  %v6717_v54 = vld [vmem:[%s17496_s2 + $0x10d8] sm:$0xff]  ;;  %17579 = vst [vmem:[#allocation46_spill] sm:$0xff] %v11323_v22 }
 0x241   : > { %2916 = vmatpush.msra.mxu0 %v7387_v6  ;;  %2942 = vmatpush.msra.mxu1 %v7388_v49  ;;  %v7390_v6 = vld [vmem:[%s17496_s2 + $0xd50] sm:$0xff]  ;;  %v6845_v49 = vld [vmem:[%s17496_s2 + $0x14d8] sm:$0xff] }
 0x242   : > { %2447 = vmatpush.msrb.mxu2 %v6733_v7  ;;  %2473 = vmatpush.msrb.mxu3 %v6861_v4  ;;  %v11317_v7 = vpop.f32.mrf.mxu2  ;;  %v11319_v4 = vpop.f32.mrf.mxu3  ;;  %v6829_v22 = vld [vmem:[%s17496_s2 + $0x1458] sm:$0xff] }
 0x243   : > { %2917 = vmatpush.msra.mxu0 %v7389_v11  ;;  %2943 = vmatpush.msra.mxu1 %v7390_v6  ;;  %v11321_v11 = vpop.f32.mrf.mxu0  ;;  %v7391_v6 = vld [vmem:[%s17496_s2 + $0x910] sm:$0xff] }
 0x244   : > { %2448 = vmatpush.msrb.mxu2 %v6725_v28  ;;  %2474 = vmatpush.msrb.mxu3 %v6853_v5  ;;  %17578 = vst [vmem:[#allocation45_spill] sm:$0xff] %v11321_v11  ;;  %v6837_v5 = vld [vmem:[%s17496_s2 + $0x1498] sm:$0xff]  ;;  %v7393_v28 = vld [vmem:[%s17496_s2 + $0x8d0] sm:$0xff]  ;;  %v7403_v11 = vld [vmem:[%s17496_s2 + $0xba0] sm:$0xff] }
 0x245   : > { %2918 = vmatpush.msra.mxu0 %v7391_v6  ;;  %2944 = vmatpush.msra.mxu1 %v7392_v21  ;;  %v7394_v6 = vld [vmem:[%s17496_s2 + $0xcd0] sm:$0xff]  ;;  %v6701_v21 = vld [vmem:[%s17496_s2 + $0x1058] sm:$0xff] }
 0x246   : > { %2449 = vmatpush.msrb.mxu2 %v6717_v54  ;;  %2475 = vmatpush.msrb.mxu3 %v6845_v49  ;;  %v7395_v54 = vld [vmem:[%s17496_s2 + $0x890] sm:$0xff] }
 0x247   : > { %2919 = vmatpush.msra.mxu0 %v7393_v28  ;;  %2945 = vmatpush.msra.mxu1 %v7394_v6  ;;  %v7396_v49 = vld [vmem:[%s17496_s2 + $0xc90] sm:$0xff]  ;;  %v6693_v28 = vld [vmem:[%s17496_s2 + $0x1018] sm:$0xff] }
 0x248   : > { %2450 = vmatpush.msrb.mxu2 %v6709_v62  ;;  %2476 = vmatpush.msrb.mxu3 %v6837_v5  ;;  %v6821_v6 = vld [vmem:[%s17496_s2 + $0x1418] sm:$0xff]  ;;  %v7397_v62 = vld [vmem:[%s17496_s2 + $0x850] sm:$0xff] }
 0x249   : > { %2920 = vmatpush.msra.mxu0 %v7395_v54  ;;  %2946 = vmatpush.msra.mxu1 %v7396_v49  ;;  %v7398_v5 = vld [vmem:[%s17496_s2 + $0xc50] sm:$0xff]  ;;  %v6815_v54 = vld [vmem:[%s17496_s2 + $0x13e8] sm:$0xff] }
 0x24a   : > { %2451 = vmatpush.msrb.mxu2 %v6701_v21  ;;  %2477 = vmatpush.msrb.mxu3 %v6829_v22  ;;  %v6943_v22 = vld [vmem:[%s17496_s2 + $0x17e8] sm:$0xff]  ;;  %v7399_v21 = vld [vmem:[%s17496_s2 + $0x810] sm:$0xff] }
 0x24b   : > { %2921 = vmatpush.msra.mxu0 %v7397_v62  ;;  %2947 = vmatpush.msra.mxu1 %v7398_v5  ;;  %v7400_v49 = vld [vmem:[%s17496_s2 + $0xc10] sm:$0xff]  ;;  %v11385_v62 = vpop.f32.mrf.mxu0  ;;  %v11387_v5 = vpop.f32.mrf.mxu1 }
 0x24c   : > { %2452 = vmatpush.msrb.mxu2 %v6693_v28  ;;  %2478 = vmatpush.msrb.mxu3 %v6821_v6  ;;  %v11379_v28 = vpop.f32.mrf.mxu2  ;;  %v11381_v6 = vpop.f32.mrf.mxu3  ;;  %17580 = vst [vmem:[#allocation47_spill] sm:$0xff] %v11385_v62  ;;  %v7401_v62 = vld [vmem:[%s17496_s2 + $0xbe0] sm:$0xff] }
 0x24d   : > { %2922 = vmatpush.msra.mxu0 %v7399_v21  ;;  %2948 = vmatpush.msra.mxu1 %v7400_v49  ;;  %17581 = vst [vmem:[#allocation48_spill] sm:$0xff] %v11387_v5  ;;  %v6807_v21 = vld [vmem:[%s17496_s2 + $0x13a8] sm:$0xff] }
 0x24e   : > { %2453 = vmatmul.f32.vlgmr.msrb.gmra.mxu2 %v9679_v57  ;;  %2479 = vmatmul.f32.vlgmr.msrb.gmra.mxu3 %v9681_v58  ;;  %v6935_v49 = vld [vmem:[%s17496_s2 + $0x17a8] sm:$0xff] }
 0x24f   : > { %2541 = vmatpush.msra.mxu2 %v6815_v54  ;;  %2567 = vmatpush.msra.mxu3 %v6943_v22  ;;  %v7402_v54 = vld [vmem:[%s17496_s2 + $0xfe0] sm:$0xff]  ;;  %v6799_v22 = vld [vmem:[%s17496_s2 + $0x1368] sm:$0xff] }
 0x250   : > { %2923 = vmatmul.f32.vlgmr.msra.gmra.mxu0 %v9853_v1  ;;  %2949 = vmatmul.f32.vlgmr.msra.gmra.mxu1 %v9855_v2  ;;  %v6927_v5 = vld [vmem:[%s17496_s2 + $0x1768] sm:$0xff] }
 0x251   : > { %3011 = vmatpush.msrb.mxu0 %v7401_v62  ;;  %3037 = vmatpush.msrb.mxu1 %v7402_v54  ;;  %v7404_v62 = vld [vmem:[%s17496_s2 + $0xfa0] sm:$0xff]  ;;  %v6791_v54 = vld [vmem:[%s17496_s2 + $0x1328] sm:$0xff] }
 0x252   : > { %2542 = vmatpush.msra.mxu2 %v6807_v21  ;;  %2568 = vmatpush.msra.mxu3 %v6935_v49  ;;  %v7405_v21 = vld [vmem:[%s17496_s2 + $0xb60] sm:$0xff]  ;;  %v6783_v49 = vld [vmem:[%s17496_s2 + $0x12e8] sm:$0xff] }
 0x253   : > { %3012 = vmatpush.msrb.mxu0 %v7403_v11  ;;  %3038 = vmatpush.msrb.mxu1 %v7404_v62  ;;  %v7406_v11 = vld [vmem:[%s17496_s2 + $0xf60] sm:$0xff]  ;;  %v11435_v62 = vpop.f32.mrf.mxu1 }
 0x254   : > { %2543 = vmatpush.msra.mxu2 %v6799_v22  ;;  %2569 = vmatpush.msra.mxu3 %v6927_v5  ;;  %v6911_v5 = vld [vmem:[%s17496_s2 + $0x16e8] sm:$0xff]  ;;  %v11433_v22 = vpop.f32.mrf.mxu0  ;;  %17583 = vst [vmem:[#allocation50_spill] sm:$0xff] %v11435_v62 }
 0x255   : > { %3013 = vmatpush.msrb.mxu0 %v7405_v21  ;;  %3039 = vmatpush.msrb.mxu1 %v7406_v11  ;;  %17582 = vst [vmem:[#allocation49_spill] sm:$0xff] %v11433_v22  ;;  %v7407_v21 = vld [vmem:[%s17496_s2 + $0xb20] sm:$0xff]  ;;  %v11445_v11 = vpop.f32.mrf.mxu3  ;;  %v6775_v62 = vld [vmem:[%s17496_s2 + $0x12a8] sm:$0xff] }
 0x256   : > { %2544 = vmatpush.msra.mxu2 %v6791_v54  ;;  %2570 = vmatpush.msra.mxu3 %v6919_v61  ;;  %v7408_v61 = vld [vmem:[%s17496_s2 + $0xf20] sm:$0xff]  ;;  %v11443_v54 = vpop.f32.mrf.mxu2  ;;  %v6895_v22 = vld [vmem:[%s17496_s2 + $0x1668] sm:$0xff] }
 0x257   : > { %3014 = vmatpush.msrb.mxu0 %v7407_v21  ;;  %3040 = vmatpush.msrb.mxu1 %v7408_v61  ;;  %v6903_v21 = vld [vmem:[%s17496_s2 + $0x16a8] sm:$0xff]  ;;  %v7409_v61 = vld [vmem:[%s17496_s2 + $0xae0] sm:$0xff] }
 0x258   : > { %2456 = vmatmul.f32.gmra.mxu2 %v9735_v13  ;;  %2482 = vmatmul.f32.gmra.mxu3 %v9737_v14 }
 0x259   : > { %2545 = vmatpush.msra.mxu2 %v6783_v49  ;;  %2571 = vmatpush.msra.mxu3 %v6911_v5  ;;  %v7410_v49 = vld [vmem:[%s17496_s2 + $0xee0] sm:$0xff]  ;;  %v6767_v5 = vld [vmem:[%s17496_s2 + $0x1268] sm:$0xff] }
 0x25a   : > { %2926 = vmatmul.f32.gmra.mxu0 %v9909_v23  ;;  %2952 = vmatmul.f32.gmra.mxu1 %v9911_v24 }
 0x25b   : > { %3015 = vmatpush.msrb.mxu0 %v7409_v61  ;;  %3041 = vmatpush.msrb.mxu1 %v7410_v49  ;;  %v7412_v61 = vld [vmem:[%s17496_s2 + $0xea0] sm:$0xff]  ;;  %v6759_v49 = vld [vmem:[%s17496_s2 + $0x1228] sm:$0xff]  ;;  %v11499_v10 = vpop.f32.mrf.mxu1 }
 0x25c   : > { %2546 = vmatpush.msra.mxu2 %v6775_v62  ;;  %2572 = vmatpush.msra.mxu3 %v6903_v21  ;;  %v7413_v62 = vld [vmem:[%s17496_s2 + $0xa60] sm:$0xff]  ;;  %17587 = vst [vmem:[#allocation54_spill] sm:$0xff] %v11499_v10 }
 0x25d   : > { %3016 = vmatpush.msrb.mxu0 %v7411_v32  ;;  %3042 = vmatpush.msrb.mxu1 %v7412_v61  ;;  %v7414_v32 = vld [vmem:[%s17496_s2 + $0xe60] sm:$0xff]  ;;  %v11489_v61 = vpop.f32.mrf.mxu3 }
 0x25e   : > { %2547 = vmatpush.msra.mxu2 %v6767_v5  ;;  %2573 = vmatpush.msra.mxu3 %v6895_v22  ;;  %v11487_v21 = vpop.f32.mrf.mxu2  ;;  %17585 = vst [vmem:[#allocation52_spill] sm:$0xff] %v11489_v61  ;;  %v6751_v22 = vld [vmem:[%s17496_s2 + $0x11e8] sm:$0xff]  ;;  %v7419_v10 = vld [vmem:[%s17496_s2 + $0x9a0] sm:$0xff] }
 0x25f   : > { %3017 = vmatpush.msrb.mxu0 %v7413_v62  ;;  %3043 = vmatpush.msrb.mxu1 %v7414_v32  ;;  %17584 = vst [vmem:[#allocation51_spill] sm:$0xff] %v11487_v21  ;;  %v6879_v5 = vld [vmem:[%s17496_s2 + $0x15e8] sm:$0xff]  ;;  %v11497_v62 = vpop.f32.mrf.mxu0  ;;  %v7415_v32 = vld [vmem:[%s17496_s2 + $0xa20] sm:$0xff] }
 0x260   : > { %2548 = vmatpush.msra.mxu2 %v6759_v49  ;;  %2574 = vmatpush.msra.mxu3 %v6887_v31  ;;  %17586 = vst [vmem:[#allocation53_spill] sm:$0xff] %v11497_v62  ;;  %v7416_v31 = vld [vmem:[%s17496_s2 + $0xe20] sm:$0xff]  ;;  %v6743_v49 = vld [vmem:[%s17496_s2 + $0x11a8] sm:$0xff] }
 0x261   : > { %3018 = vmatpush.msrb.mxu0 %v7415_v32  ;;  %3044 = vmatpush.msrb.mxu1 %v7416_v31  ;;  %v6871_v61 = vld [vmem:[%s17496_s2 + $0x15a8] sm:$0xff]  ;;  %v7417_v32 = vld [vmem:[%s17496_s2 + $0x9e0] sm:$0xff] }
 0x262   : > { %2459 = vmatmul.f32.gmra.mxu2 %v9797_v35  ;;  %2485 = vmatmul.f32.gmra.mxu3 %v9799_v36  ;;  %v6863_v31 = vld [vmem:[%s17496_s2 + $0x1568] sm:$0xff] }
 0x263   : > { %2549 = vmatpush.msra.mxu2 %v6751_v22  ;;  %2575 = vmatpush.msra.mxu3 %v6879_v5  ;;  %v7418_v22 = vld [vmem:[%s17496_s2 + $0xde0] sm:$0xff]  ;;  %v6735_v5 = vld [vmem:[%s17496_s2 + $0x1168] sm:$0xff]  ;;  %v11559_v21 = vpop.f32.mrf.mxu1 }
 0x264   : > { %2929 = vmatmul.f32.gmra.mxu0 %v9965_v51  ;;  %2955 = vmatmul.f32.gmra.mxu1 %v9967_v52  ;;  %v6855_v62 = vld [vmem:[%s17496_s2 + $0x1528] sm:$0xff]  ;;  %17591 = vst [vmem:[#allocation58_spill] sm:$0xff] %v11559_v21  ;;  %v8031_v21 = vld [vmem:[%s17496_s2 + $0x1118] sm:$0xff] }
 0x265   : > { %3019 = vmatpush.msrb.mxu0 %v7417_v32  ;;  %3045 = vmatpush.msrb.mxu1 %v7418_v22  ;;  %v7420_v32 = vld [vmem:[%s17496_s2 + $0xda0] sm:$0xff]  ;;  %v6727_v22 = vld [vmem:[%s17496_s2 + $0x1128] sm:$0xff] }
 0x266   : > { %2550 = vmatpush.msra.mxu2 %v6743_v49  ;;  %2576 = vmatpush.msra.mxu3 %v6871_v61  ;;  %v7421_v61 = vld [vmem:[%s17496_s2 + $0x960] sm:$0xff]  ;;  %v6719_v49 = vld [vmem:[%s17496_s2 + $0x10e8] sm:$0xff] }
 0x267   : > { %3020 = vmatpush.msrb.mxu0 %v7419_v10  ;;  %3046 = vmatpush.msrb.mxu1 %v7420_v32  ;;  %v7422_v10 = vld [vmem:[%s17496_s2 + $0xd60] sm:$0xff]  ;;  %v6847_v32 = vld [vmem:[%s17496_s2 + $0x14e8] sm:$0xff] }
 0x268   : > { %2551 = vmatpush.msra.mxu2 %v6735_v5  ;;  %2577 = vmatpush.msra.mxu3 %v6863_v31  ;;  %v11553_v5 = vpop.f32.mrf.mxu2  ;;  %v11555_v31 = vpop.f32.mrf.mxu3 }
 0x269   : > { %3021 = vmatpush.msrb.mxu0 %v7421_v61  ;;  %3047 = vmatpush.msrb.mxu1 %v7422_v10  ;;  %17588 = vst [vmem:[#allocation55_spill] sm:$0xff] %v11553_v5  ;;  %v11557_v61 = vpop.f32.mrf.mxu0  ;;  %v7423_v10 = vld [vmem:[%s17496_s2 + $0x920] sm:$0xff]  ;;  %v6831_v5 = vld [vmem:[%s17496_s2 + $0x1468] sm:$0xff] }
 0x26a   : > { %17589 = vst [vmem:[#allocation56_spill] sm:$0xff] %v11555_v31  ;;  %2552 = vmatpush.msra.mxu2 %v6727_v22  ;;  %2578 = vmatpush.msra.mxu3 %v6855_v62  ;;  %v6711_v31 = vld [vmem:[%s17496_s2 + $0x10a8] sm:$0xff]  ;;  %v7425_v22 = vld [vmem:[%s17496_s2 + $0x8e0] sm:$0xff] }
 0x26b   : > { %17590 = vst [vmem:[#allocation57_spill] sm:$0xff] %v11557_v61  ;;  %3022 = vmatpush.msrb.mxu0 %v7423_v10  ;;  %3048 = vmatpush.msrb.mxu1 %v7424_v9  ;;  %v6839_v62 = vld [vmem:[%s17496_s2 + $0x14a8] sm:$0xff]  ;;  %v7426_v10 = vld [vmem:[%s17496_s2 + $0xce0] sm:$0xff] }
 0x26c   : > { %2553 = vmatpush.msra.mxu2 %v6719_v49  ;;  %2579 = vmatpush.msra.mxu3 %v6847_v32  ;;  %v6703_v9 = vld [vmem:[%s17496_s2 + $0x1068] sm:$0xff]  ;;  %v7427_v49 = vld [vmem:[%s17496_s2 + $0x8a0] sm:$0xff] }
 0x26d   : > { %3023 = vmatpush.msrb.mxu0 %v7425_v22  ;;  %3049 = vmatpush.msrb.mxu1 %v7426_v10  ;;  %v7428_v32 = vld [vmem:[%s17496_s2 + $0xca0] sm:$0xff]  ;;  %v6695_v22 = vld [vmem:[%s17496_s2 + $0x1028] sm:$0xff] }
 0x26e   : > { %2554 = vmatpush.msra.mxu2 %v6711_v31  ;;  %2580 = vmatpush.msra.mxu3 %v6839_v62  ;;  %v6823_v10 = vld [vmem:[%s17496_s2 + $0x1428] sm:$0xff]  ;;  %v7429_v31 = vld [vmem:[%s17496_s2 + $0x860] sm:$0xff] }
 0x26f   : > { %3024 = vmatpush.msrb.mxu0 %v7427_v49  ;;  %3050 = vmatpush.msrb.mxu1 %v7428_v32  ;;  %v7430_v62 = vld [vmem:[%s17496_s2 + $0xc60] sm:$0xff]  ;;  %v1444_v49 = vadd.f32 %v10199_v63, %v10197_v29  ;;  %v2532_v63 = vpop.f32.mrf.mxu1  ;;  %v8062_v61 = vld [vmem:[%s17496_s2 + $0x1568] sm:$0xff] }
 0x270   : > { %2555 = vmatpush.msra.mxu2 %v6703_v9  ;;  %2581 = vmatpush.msra.mxu3 %v6831_v5  ;;  %v6817_v9 = vld [vmem:[%s17496_s2 + $0x13f8] sm:$0xff]  ;;  %v7431_v32 = vld [vmem:[%s17496_s2 + $0x820] sm:$0xff] }
 0x271   : > { %3025 = vmatpush.msrb.mxu0 %v7429_v31  ;;  %3051 = vmatpush.msrb.mxu1 %v7430_v62  ;;  %v6945_v5 = vld [vmem:[%s17496_s2 + $0x17f8] sm:$0xff]  ;;  %v7432_v31 = vld [vmem:[%s17496_s2 + $0xc20] sm:$0xff]  ;;  %v2506_v29 = vpop.f32.mrf.mxu0  ;;  %v11620_v62 = vpop.f32.mrf.mxu3 }
 0x272   : > { %2556 = vmatpush.msra.mxu2 %v6695_v22  ;;  %2582 = vmatpush.msra.mxu3 %v6823_v10  ;;  %v1834_v22 = vadd.f32 %v10913_v56, %v1444_v49  ;;  %v11618_v10 = vpop.f32.mrf.mxu2  ;;  %17593 = vst [vmem:[#allocation60_spill] sm:$0xff] %v11620_v62  ;;  %v2533_v56 = vadd.f32 %v2532_v63, %v2506_v29  ;;  %v7433_v49 = vld [vmem:[%s17496_s2 + $0xbf0] sm:$0xff]  ;;  %v6929_v62 = vld [vmem:[%s17496_s2 + $0x1778] sm:$0xff] }
 0x273   : > { %3026 = vmatpush.msrb.mxu0 %v7431_v32  ;;  %3052 = vmatpush.msrb.mxu1 %v7432_v31  ;;  %17592 = vst [vmem:[#allocation59_spill] sm:$0xff] %v11618_v10  ;;  %v6809_v32 = vld [vmem:[%s17496_s2 + $0x13b8] sm:$0xff]  ;;  %v7435_v63 = vld [vmem:[%s17496_s2 + $0xbb0] sm:$0xff] }
 0x274   : > { %2557 = vmatmul.f32.vlgmr.msra.gmra.mxu2 %v9679_v57  ;;  %2583 = vmatmul.f32.vlgmr.msra.gmra.mxu3 %v9681_v58  ;;  %v6937_v31 = vld [vmem:[%s17496_s2 + $0x17b8] sm:$0xff]  ;;  %v1860_v29 = vadd.f32 %v10915_v0, %v1834_v22 }
 0x275   : > { %2645 = vmatpush.msrb.mxu2 %v6817_v9  ;;  %2671 = vmatpush.msrb.mxu3 %v6945_v5  ;;  %v7434_v9 = vld [vmem:[%s17496_s2 + $0xff0] sm:$0xff]  ;;  %v6801_v5 = vld [vmem:[%s17496_s2 + $0x1378] sm:$0xff] }
 0x276   : > { %3027 = vmatmul.f32.vlgmr.msrb.gmra.mxu0 %v9853_v1  ;;  %3053 = vmatmul.f32.vlgmr.msrb.gmra.mxu1 %v9855_v2  ;;  %v6921_v0 = vld [vmem:[%s17496_s2 + $0x1738] sm:$0xff]  ;;  %v2701_v22 = vadd.f32 %v2533_v56, %v1860_v29  ;;  %v7439_v56 = vld [vmem:[%s17496_s2 + $0xb30] sm:$0xff] }
 0x277   : > { %3115 = vmatpush.msra.mxu0 %v7433_v49  ;;  %3141 = vmatpush.msra.mxu1 %v7434_v9  ;;  %v7436_v49 = vld [vmem:[%s17496_s2 + $0xfb0] sm:$0xff]  ;;  %v6793_v9 = vld [vmem:[%s17496_s2 + $0x1338] sm:$0xff]  ;;  %v2535_v29 = vpop.f32.mrf.mxu1 }
 0x278   : > { %2646 = vmatpush.msrb.mxu2 %v6809_v32  ;;  %2672 = vmatpush.msrb.mxu3 %v6937_v31  ;;  %v7437_v32 = vld [vmem:[%s17496_s2 + $0xb70] sm:$0xff] }
 0x279   : > { %3116 = vmatpush.msra.mxu0 %v7435_v63  ;;  %3142 = vmatpush.msra.mxu1 %v7436_v49  ;;  %v7438_v31 = vld [vmem:[%s17496_s2 + $0xf70] sm:$0xff]  ;;  %v1447_v63 = vadd.f32 %v10255_v60, %v10253_v18  ;;  %v11667_v10 = vpop.f32.mrf.mxu3  ;;  %v6913_v18 = vld [vmem:[%s17496_s2 + $0x16f8] sm:$0xff]  ;;  %v2509_v60 = vpop.f32.mrf.mxu0 }
 0x27a   : > { %2647 = vmatpush.msrb.mxu2 %v6801_v5  ;;  %2673 = vmatpush.msrb.mxu3 %v6929_v62  ;;  %v11665_v49 = vpop.f32.mrf.mxu2  ;;  %v6785_v62 = vld [vmem:[%s17496_s2 + $0x12f8] sm:$0xff]  ;;  %v7440_v5 = vld [vmem:[%s17496_s2 + $0xf30] sm:$0xff] }
 0x27b   : > { %3117 = vmatpush.msra.mxu0 %v7437_v32  ;;  %3143 = vmatpush.msra.mxu1 %v7438_v31  ;;  %v2536_v32 = vadd.f32 %v2535_v29, %v2509_v60  ;;  %v6769_v31 = vld [vmem:[%s17496_s2 + $0x1278] sm:$0xff] }
 0x27c   : > { %2648 = vmatpush.msrb.mxu2 %v6793_v9  ;;  %2674 = vmatpush.msrb.mxu3 %v6921_v0  ;;  %v1837_v9 = vadd.f32 %v10973_v39, %v1447_v63  ;;  %v6777_v0 = vld [vmem:[%s17496_s2 + $0x12b8] sm:$0xff] }
 0x27d   : > { %3118 = vmatpush.msra.mxu0 %v7439_v56  ;;  %3144 = vmatpush.msra.mxu1 %v7440_v5  ;;  %v6905_v39 = vld [vmem:[%s17496_s2 + $0x16b8] sm:$0xff]  ;;  %v7443_v5 = vld [vmem:[%s17496_s2 + $0xab0] sm:$0xff] }
 0x27e   : > { %2738 = vrot.lane.b32.xlu2 %v2701_v22, %s17516_s0  ;;  %2560 = vmatmul.f32.gmra.mxu2 %v9735_v13  ;;  %v7441_v22 = vld [vmem:[%s17496_s2 + $0xaf0] sm:$0xff]  ;;  %v1863_v63 = vadd.f32 %v10975_v40, %v1837_v9  ;;  %v6897_v56 = vld [vmem:[%s17496_s2 + $0x1678] sm:$0xff]  ;;  %s8499_s0 = smov 108  }
 0x27f   : > { %2586 = vmatmul.f32.gmra.mxu3 %v9737_v14  ;;  %2649 = vmatpush.msrb.mxu2 %v6785_v62  ;;  %v7442_v62 = vld [vmem:[%s17496_s2 + $0xef0] sm:$0xff]  ;;  %v6761_v40 = vld [vmem:[%s17496_s2 + $0x1238] sm:$0xff] }
 0x280   : > { %2675 = vmatpush.msrb.mxu3 %v6913_v18  ;;  %3030 = vmatmul.f32.gmra.mxu0 %v9909_v23  ;;  %v7444_v18 = vld [vmem:[%s17496_s2 + $0xeb0] sm:$0xff]  ;;  %v6889_v60 = vld [vmem:[%s17496_s2 + $0x1638] sm:$0xff]  ;;  %v2709_v29 = vadd.f32 %v2536_v32, %v1863_v63 }
 0x281   : > { %3056 = vmatmul.f32.gmra.mxu1 %v9911_v24  ;;  %3119 = vmatpush.msra.mxu0 %v7441_v22  ;;  %v7445_v9 = vld [vmem:[%s17496_s2 + $0xa70] sm:$0xff]  ;;  %v6753_v63 = vld [vmem:[%s17496_s2 + $0x11f8] sm:$0xff] }
 0x282   : > { %3145 = vmatpush.msra.mxu1 %v7442_v62  ;;  %2650 = vmatpush.msrb.mxu2 %v6777_v0  ;;  %v7446_v0 = vld [vmem:[%s17496_s2 + $0xe70] sm:$0xff]  ;;  %v11726_v22 = vpop.f32.mrf.mxu2  ;;  %v6881_v62 = vld [vmem:[%s17496_s2 + $0x15f8] sm:$0xff] }
 0x283   : > { %2676 = vmatpush.msrb.mxu3 %v6905_v39  ;;  %3120 = vmatpush.msra.mxu0 %v7443_v5  ;;  %v1450_v39 = vadd.f32 %v10311_v26, %v10309_v25  ;;  %v7447_v32 = vld [vmem:[%s17496_s2 + $0xa30] sm:$0xff]  ;;  %v2512_v26 = vpop.f32.mrf.mxu0 }
 0x284   : > { %3146 = vmatpush.msra.mxu1 %v7444_v18  ;;  %2651 = vmatpush.msrb.mxu2 %v6769_v31  ;;  %v11728_v31 = vpop.f32.mrf.mxu3  ;;  %v7448_v25 = vld [vmem:[%s17496_s2 + $0xe30] sm:$0xff]  ;;  %v6873_v18 = vld [vmem:[%s17496_s2 + $0x15b8] sm:$0xff] }
 0x285   : > { %2677 = vmatpush.msrb.mxu3 %v6897_v56  ;;  %3121 = vmatpush.msra.mxu0 %v7445_v9  ;;  %v2538_v56 = vpop.f32.mrf.mxu1  ;;  %v1840_v5 = vadd.f32 %v11033_v46, %v1450_v39  ;;  %v7449_v46 = vld [vmem:[%s17496_s2 + $0x9f0] sm:$0xff]  ;;  %v6737_v9 = vld [vmem:[%s17496_s2 + $0x1178] sm:$0xff] }
 0x286   : > { %3147 = vmatpush.msra.mxu1 %v7446_v0  ;;  %2652 = vmatpush.msrb.mxu2 %v6761_v40  ;;  %v6745_v40 = vld [vmem:[%s17496_s2 + $0x11b8] sm:$0xff] }
 0x287   : > { %2678 = vmatpush.msrb.mxu3 %v6889_v60  ;;  %3122 = vmatpush.msra.mxu0 %v7447_v32  ;;  %v2539_v60 = vadd.f32 %v2538_v56, %v2512_v26  ;;  %v6865_v0 = vld [vmem:[%s17496_s2 + $0x1578] sm:$0xff]  ;;  %v1866_v39 = vadd.f32 %v11035_v42, %v1840_v5  ;;  %v7451_v32 = vld [vmem:[%s17496_s2 + $0x9b0] sm:$0xff] }
 0x288   : > { %3148 = vmatpush.msra.mxu1 %v7448_v25  ;;  %2748 = vrot.lane.b32.xlu0 %v2709_v29, %s17594_s18  ;;  %v7450_v29 = vld [vmem:[%s17496_s2 + $0xdf0] sm:$0xff]  ;;  %v6857_v42 = vld [vmem:[%s17496_s2 + $0x1538] sm:$0xff] }
 0x289   : > { %2563 = vmatmul.f32.gmra.mxu2 %v9797_v35  ;;  %2589 = vmatmul.f32.gmra.mxu3 %v9799_v36  ;;  %v2717_v25 = vadd.f32 %v2539_v60, %v1866_v39  ;;  %v7453_v26 = vld [vmem:[%s17496_s2 + $0x970] sm:$0xff]  ;;  %v6721_v5 = vld [vmem:[%s17496_s2 + $0x10f8] sm:$0xff] }
 0x28a   : > { %2653 = vmatpush.msrb.mxu2 %v6753_v63  ;;  %2679 = vmatpush.msrb.mxu3 %v6881_v62  ;;  %v7452_v63 = vld [vmem:[%s17496_s2 + $0xdb0] sm:$0xff]  ;;  %v6729_v62 = vld [vmem:[%s17496_s2 + $0x1138] sm:$0xff] }
 0x28b   : > { %3033 = vmatmul.f32.gmra.mxu0 %v9965_v51  ;;  %3059 = vmatmul.f32.gmra.mxu1 %v9967_v52  ;;  %v7454_v56 = vld [vmem:[%s17496_s2 + $0xd70] sm:$0xff]  ;;  %v6849_v60 = vld [vmem:[%s17496_s2 + $0x14f8] sm:$0xff] }
 0x28c   : > { %3123 = vmatpush.msra.mxu0 %v7449_v46  ;;  %3149 = vmatpush.msra.mxu1 %v7450_v29  ;;  %v7455_v46 = vld [vmem:[%s17496_s2 + $0x930] sm:$0xff] }
 0x28d   : > { %2654 = vmatpush.msrb.mxu2 %v6745_v40  ;;  %2680 = vmatpush.msrb.mxu3 %v6873_v18  ;;  %v11788_v40 = vpop.f32.mrf.mxu2  ;;  %v11790_v18 = vpop.f32.mrf.mxu3  ;;  %v7456_v29 = vld [vmem:[%s17496_s2 + $0xd30] sm:$0xff] }
 0x28e   : > { %3124 = vmatpush.msra.mxu0 %v7451_v32  ;;  %3150 = vmatpush.msra.mxu1 %v7452_v63  ;;  %v7457_v39 = vld [vmem:[%s17496_s2 + $0x8f0] sm:$0xff]  ;;  %v6705_v32 = vld [vmem:[%s17496_s2 + $0x1078] sm:$0xff] }
 0x28f   : > { %2655 = vmatpush.msrb.mxu2 %v6737_v9  ;;  %2681 = vmatpush.msrb.mxu3 %v6865_v0  ;;  %v6713_v9 = vld [vmem:[%s17496_s2 + $0x10b8] sm:$0xff]  ;;  %v7458_v63 = vld [vmem:[%s17496_s2 + $0xcf0] sm:$0xff] }
 0x290   : > { %3125 = vmatpush.msra.mxu0 %v7453_v26  ;;  %3151 = vmatpush.msra.mxu1 %v7454_v56  ;;  %v6841_v0 = vld [vmem:[%s17496_s2 + $0x14b8] sm:$0xff]  ;;  %v7460_v26 = vld [vmem:[%s17496_s2 + $0xcb0] sm:$0xff] }
 0x291   : > { %2656 = vmatpush.msrb.mxu2 %v6729_v62  ;;  %2682 = vmatpush.msrb.mxu3 %v6857_v42  ;;  %v6833_v62 = vld [vmem:[%s17496_s2 + $0x1478] sm:$0xff]  ;;  %v7459_v42 = vld [vmem:[%s17496_s2 + $0x8b0] sm:$0xff] }
 0x292   : > { %3126 = vmatpush.msra.mxu0 %v7455_v46  ;;  %3152 = vmatpush.msra.mxu1 %v7456_v29  ;;  %v6825_v56 = vld [vmem:[%s17496_s2 + $0x1438] sm:$0xff] }
 0x293   : > { %2758 = vrot.lane.b32.xlu1 %v2717_v25, %s17594_s18  ;;  %2657 = vmatpush.msrb.mxu2 %v6721_v5  ;;  %v6697_v25 = vld [vmem:[%s17496_s2 + $0x1038] sm:$0xff]  ;;  %v7461_v5 = vld [vmem:[%s17496_s2 + $0x870] sm:$0xff] }
 0x294   : > { %2683 = vmatpush.msrb.mxu3 %v6849_v60  ;;  %3127 = vmatpush.msra.mxu0 %v7457_v39  ;;  %v1548_v60 = vadd.f32 %v10367_v17, %v10365_v59  ;;  %v2610_v39 = vpop.f32.mrf.mxu0  ;;  %v7464_v17 = vld [vmem:[%s17496_s2 + $0xc30] sm:$0xff] }
 0x295   : > { %3153 = vmatpush.msra.mxu1 %v7458_v63  ;;  %2658 = vmatpush.msrb.mxu2 %v6713_v9  ;;  %v11837_v46 = vpop.f32.mrf.mxu2  ;;  %v11839_v29 = vpop.f32.mrf.mxu3  ;;  %v7462_v9 = vld [vmem:[%s17496_s2 + $0xc70] sm:$0xff]  ;;  %v7465_v63 = vld [vmem:[%s17496_s2 + $0xbc8] sm:$0xff] }
 0x296   : > { %2684 = vmatpush.msrb.mxu3 %v6841_v0  ;;  %3128 = vmatpush.msra.mxu0 %v7459_v42  ;;  %v7463_v0 = vld [vmem:[%s17496_s2 + $0x830] sm:$0xff]  ;;  %v1938_v59 = vadd.f32 %v11085_v53, %v1548_v60  ;;  %v7467_v42 = vld [vmem:[%s17496_s2 + $0x3c0] sm:$0xff] }
 0x297   : > { %3154 = vmatpush.msra.mxu1 %v7460_v26  ;;  %2659 = vmatpush.msrb.mxu2 %v6705_v32  ;;  %v2636_v32 = vpop.f32.mrf.mxu1  ;;  %v7468_v26 = vld [vmem:[%s17496_s2 + $0x7c0] sm:$0xff] }
 0x298   : > { %2685 = vmatpush.msrb.mxu3 %v6833_v62  ;;  %3129 = vmatpush.msra.mxu0 %v7461_v5  ;;  %v7466_v62 = vld [vmem:[%s17496_s2 + $0xfc8] sm:$0xff]  ;;  %v2637_v53 = vadd.f32 %v2636_v32, %v2610_v39  ;;  %v7471_v60 = vld [vmem:[%s17496_s2 + $0x380] sm:$0xff] }
 0x299   : > { %3155 = vmatpush.msra.mxu1 %v7462_v9  ;;  %2660 = vmatpush.msrb.mxu2 %v6697_v25  ;;  %v1964_v25 = vadd.f32 %v11087_v3, %v1938_v59  ;;  %v7470_v5 = vld [vmem:[%s17496_s2 + $0xf88] sm:$0xff]  ;;  %v7472_v9 = vld [vmem:[%s17496_s2 + $0x780] sm:$0xff] }
 0x29a   : > { %2686 = vmatpush.msrb.mxu3 %v6825_v56  ;;  %3130 = vmatpush.msra.mxu0 %v7463_v0  ;;  %v7469_v56 = vld [vmem:[%s17496_s2 + $0xb88] sm:$0xff]  ;;  %v7475_v32 = vld [vmem:[%s17496_s2 + $0x340] sm:$0xff] }
 0x29b   : > { %3156 = vmatpush.msra.mxu1 %v7464_v17  ;;  %2661 = vmatmul.f32.vlgmr.msrb.gmra.mxu2 %v9679_v57  ;;  %v2703_v3 = vadd.f32 %v2637_v53, %v1964_v25  ;;  %v7473_v0 = vld [vmem:[%s17496_s2 + $0xb48] sm:$0xff]  ;;  %v7476_v59 = vld [vmem:[%s17496_s2 + $0x740] sm:$0xff] }
 0x29c   : > { %2687 = vmatmul.f32.vlgmr.msrb.gmra.mxu3 %v9681_v58  ;;  %2855 = vmatpush.msra.mxu2 %v7465_v63  ;;  %v7474_v39 = vld [vmem:[%s17496_s2 + $0xf48] sm:$0xff]  ;;  %v1551_v63 = vadd.f32 %v10435_v38, %v10433_v37  ;;  %v7479_v25 = vld [vmem:[%s17496_s2 + $0x300] sm:$0xff]  ;;  %v2613_v37 = vpop.f32.mrf.mxu0 }
 0x29d   : > { %2881 = vmatpush.msra.mxu3 %v7466_v62  ;;  %3131 = vmatmul.f32.vlgmr.msra.gmra.mxu0 %v9853_v1  ;;  %v7477_v17 = vld [vmem:[%s17496_s2 + $0xb08] sm:$0xff]  ;;  %v11897_v62 = vpop.f32.mrf.mxu2  ;;  %v11899_v53 = vpop.f32.mrf.mxu3 }
 0x29e   : > { %3157 = vmatmul.f32.vlgmr.msra.gmra.mxu1 %v9855_v2  ;;  %3219 = vmatpush.msrb.mxu0 %v7467_v42  ;;  %v7478_v42 = vld [vmem:[%s17496_s2 + $0xf08] sm:$0xff] }
 0x29f   : > { %3245 = vmatpush.msrb.mxu1 %v7468_v26  ;;  %2856 = vmatpush.msra.mxu2 %v7469_v56  ;;  %v7480_v26 = vld [vmem:[%s17496_s2 + $0x700] sm:$0xff]  ;;  %v2639_v38 = vpop.f32.mrf.mxu1  ;;  %v1941_v56 = vadd.f32 %v11149_v33, %v1551_v63  ;;  %v7489_v63 = vld [vmem:[%s17496_s2 + $0xa48] sm:$0xff] }
 0x2a0   : > { %2882 = vmatpush.msra.mxu3 %v7470_v5  ;;  %3220 = vmatpush.msrb.mxu0 %v7471_v60  ;;  %v7481_v5 = vld [vmem:[%s17496_s2 + $0xac8] sm:$0xff]  ;;  %v7483_v33 = vld [vmem:[%s17496_s2 + $0x2c0] sm:$0xff] }
 0x2a1   : > { %3246 = vmatpush.msrb.mxu1 %v7472_v9  ;;  %2857 = vmatpush.msra.mxu2 %v7473_v0  ;;  %v7482_v60 = vld [vmem:[%s17496_s2 + $0xec8] sm:$0xff]  ;;  %v7484_v9 = vld [vmem:[%s17496_s2 + $0x6c0] sm:$0xff]  ;;  %v1967_v0 = vadd.f32 %v11151_v19, %v1941_v56 }
 0x2a2   : > { %2883 = vmatpush.msra.mxu3 %v7474_v39  ;;  %3221 = vmatpush.msrb.mxu0 %v7475_v32  ;;  %v7485_v39 = vld [vmem:[%s17496_s2 + $0xa88] sm:$0xff] }
 0x2a3   : > { %3247 = vmatpush.msrb.mxu1 %v7476_v59  ;;  %2858 = vmatpush.msra.mxu2 %v7477_v17  ;;  %v7486_v32 = vld [vmem:[%s17496_s2 + $0xe88] sm:$0xff]  ;;  %v7487_v59 = vld [vmem:[%s17496_s2 + $0x280] sm:$0xff] }
 0x2a4   : > { %2884 = vmatpush.msra.mxu3 %v7478_v42  ;;  %3222 = vmatpush.msrb.mxu0 %v7479_v25  ;;  %v7488_v17 = vld [vmem:[%s17496_s2 + $0x680] sm:$0xff]  ;;  %v7490_v42 = vld [vmem:[%s17496_s2 + $0xe48] sm:$0xff] }
 0x2a5   : > { %3248 = vmatpush.msrb.mxu1 %v7480_v26  ;;  %2742 = vrot.lane.b32.xlu1 %v2703_v3, %s17594_s18  ;;  %v2640_v3 = vadd.f32 %v2639_v38, %v2613_v37  ;;  %v7491_v25 = vld [vmem:[%s17496_s2 + $0x240] sm:$0xff]  ;;  %v1554_v37 = vadd.f32 %v10495_v16, %v10493_v15  ;;  %v11955_v38 = vpop.f32.mrf.mxu2  ;;  %v11957_v56 = vpop.f32.mrf.mxu3 }
 0x2a6   : > { %2664 = vmatmul.f32.gmra.mxu2 %v9735_v13  ;;  %2690 = vmatmul.f32.gmra.mxu3 %v9737_v14  ;;  %v7492_v26 = vld [vmem:[%s17496_s2 + $0x640] sm:$0xff]  ;;  %v2616_v16 = vpop.f32.mrf.mxu0 }
 0x2a7   : > { %2859 = vmatpush.msra.mxu2 %v7481_v5  ;;  %2885 = vmatpush.msra.mxu3 %v7482_v60  ;;  %v2711_v19 = vadd.f32 %v2640_v3, %v1967_v0  ;;  %v7493_v5 = vld [vmem:[%s17496_s2 + $0xa08] sm:$0xff]  ;;  %v7495_v3 = vld [vmem:[%s17496_s2 + $0x200] sm:$0xff] }
 0x2a8   : > { %3134 = vmatmul.f32.gmra.mxu0 %v9909_v23  ;;  %3160 = vmatmul.f32.gmra.mxu1 %v9911_v24  ;;  %v7494_v60 = vld [vmem:[%s17496_s2 + $0xe08] sm:$0xff]  ;;  %v7496_v15 = vld [vmem:[%s17496_s2 + $0x600] sm:$0xff] }
 0x2a9   : > { %3223 = vmatpush.msrb.mxu0 %v7483_v33  ;;  %3249 = vmatpush.msrb.mxu1 %v7484_v9  ;;  %v2642_v33 = vpop.f32.mrf.mxu1  ;;  %v1944_v9 = vadd.f32 %v11209_v34, %v1554_v37  ;;  %v7497_v0 = vld [vmem:[%s17496_s2 + $0x9c8] sm:$0xff]  ;;  %v7499_v34 = vld [vmem:[%s17496_s2 + $0x1c0] sm:$0xff] }
 0x2aa   : > { %2860 = vmatpush.msra.mxu2 %v7485_v39  ;;  %2886 = vmatpush.msra.mxu3 %v7486_v32  ;;  %v7498_v39 = vld [vmem:[%s17496_s2 + $0xdc8] sm:$0xff]  ;;  %v2643_v32 = vadd.f32 %v2642_v33, %v2616_v16 }
 0x2ab   : > { %3224 = vmatpush.msrb.mxu0 %v7487_v59  ;;  %3250 = vmatpush.msrb.mxu1 %v7488_v17  ;;  %v1970_v59 = vadd.f32 %v11211_v48, %v1944_v9  ;;  %v7500_v17 = vld [vmem:[%s17496_s2 + $0x5c0] sm:$0xff]  ;;  %v7509_v16 = vld [vmem:[%s17496_s2 + $0x908] sm:$0xff] }
 0x2ac   : > { %2861 = vmatpush.msra.mxu2 %v7489_v63  ;;  %2887 = vmatpush.msra.mxu3 %v7490_v42  ;;  %v7502_v63 = vld [vmem:[%s17496_s2 + $0xd88] sm:$0xff]  ;;  %v7503_v42 = vld [vmem:[%s17496_s2 + $0x180] sm:$0xff] }
 0x2ad   : > { %3225 = vmatpush.msrb.mxu0 %v7491_v25  ;;  %3251 = vmatpush.msrb.mxu1 %v7492_v26  ;;  %v2719_v48 = vadd.f32 %v2643_v32, %v1970_v59  ;;  %v7504_v25 = vld [vmem:[%s17496_s2 + $0x580] sm:$0xff]  ;;  %v7505_v26 = vld [vmem:[%s17496_s2 + $0x948] sm:$0xff]  ;;  %v12005_v37 = vpop.f32.mrf.mxu2 }
 0x2ae   : > { %2862 = vmatpush.msra.mxu2 %v7493_v5  ;;  %2888 = vmatpush.msra.mxu3 %v7494_v60  ;;  %v12007_v5 = vpop.f32.mrf.mxu3  ;;  %v7506_v60 = vld [vmem:[%s17496_s2 + $0xd48] sm:$0xff]  ;;  %v7511_v9 = vld [vmem:[%s17496_s2 + $0x100] sm:$0xff] }
 0x2af   : > { %3226 = vmatpush.msrb.mxu0 %v7495_v3  ;;  %3252 = vmatpush.msrb.mxu1 %v7496_v15  ;;  %v7507_v3 = vld [vmem:[%s17496_s2 + $0x140] sm:$0xff]  ;;  %v7510_v33 = vld [vmem:[%s17496_s2 + $0xd08] sm:$0xff] }
 0x2b0   : > { %2752 = vrot.lane.b32.xlu2 %v2711_v19, %s17594_s18  ;;  %2667 = vmatmul.f32.gmra.mxu2 %v9797_v35  ;;  %v7501_v19 = vld [vmem:[%s17496_s2 + $0x988] sm:$0xff]  ;;  %v7508_v15 = vld [vmem:[%s17496_s2 + $0x540] sm:$0xff] }
 0x2b1   : > { %2693 = vmatmul.f32.gmra.mxu3 %v9799_v36  ;;  %2863 = vmatpush.msra.mxu2 %v7497_v0  ;;  %v7512_v0 = vld [vmem:[%s17496_s2 + $0x500] sm:$0xff]  ;;  %v7514_v32 = vld [vmem:[%s17496_s2 + $0xcc8] sm:$0xff] }
 0x2b2   : > { %2889 = vmatpush.msra.mxu3 %v7498_v39  ;;  %3137 = vmatmul.f32.gmra.mxu0 %v9965_v51  ;;  %v7513_v39 = vld [vmem:[%s17496_s2 + $0x8c8] sm:$0xff]  ;;  %v7516_v59 = vld [vmem:[%s17496_s2 + $0x4c0] sm:$0xff] }
 0x2b3   : > { %3163 = vmatmul.f32.gmra.mxu1 %v9967_v52  ;;  %3227 = vmatpush.msrb.mxu0 %v7499_v34  ;;  %v7515_v34 = vld [vmem:[%s17496_s2 + $0xc0] sm:$0xff] }
 0x2b4   : > { %3253 = vmatpush.msrb.mxu1 %v7500_v17  ;;  %2864 = vmatpush.msra.mxu2 %v7501_v19  ;;  %v7517_v17 = vld [vmem:[%s17496_s2 + $0x888] sm:$0xff] }
 0x2b5   : > { %2890 = vmatpush.msra.mxu3 %v7502_v63  ;;  %3228 = vmatpush.msrb.mxu0 %v7503_v42  ;;  %v7518_v19 = vld [vmem:[%s17496_s2 + $0xc88] sm:$0xff]  ;;  %v7519_v63 = vld [vmem:[%s17496_s2 + $0x80] sm:$0xff] }
 0x2b6   : > { %3254 = vmatpush.msrb.mxu1 %v7504_v25  ;;  %2865 = vmatpush.msra.mxu2 %v7505_v26  ;;  %v7520_v42 = vld [vmem:[%s17496_s2 + $0x480] sm:$0xff]  ;;  %v7522_v25 = vld [vmem:[%s17496_s2 + $0xc48] sm:$0xff] }
 0x2b7   : > { %2891 = vmatpush.msra.mxu3 %v7506_v60  ;;  %3229 = vmatpush.msrb.mxu0 %v7507_v3  ;;  %v7523_v26 = vld [vmem:[%s17496_s2 + $0x40] sm:$0xff]  ;;  %v12067_v3 = vpop.f32.mrf.mxu2 }
 0x2b8   : > { %3255 = vmatpush.msrb.mxu1 %v7508_v15  ;;  %2866 = vmatpush.msra.mxu2 %v7509_v16  ;;  %v7524_v60 = vld [vmem:[%s17496_s2 + $0x440] sm:$0xff]  ;;  %v12069_v15 = vpop.f32.mrf.mxu3  ;;  %v7525_v16 = vld [vmem:[%s17496_s2 + $0x808] sm:$0xff] }
 0x2b9   : > { %2892 = vmatpush.msra.mxu3 %v7510_v33  ;;  %3230 = vmatpush.msrb.mxu0 %v7511_v9  ;;  %v7526_v33 = vld [vmem:[%s17496_s2 + $0xc08] sm:$0xff]  ;;  %v7527_v9 = vld [vmem:[%s17496_s2] sm:$0xff] }
 0x2ba   : > { %3256 = vmatpush.msrb.mxu1 %v7512_v0  ;;  %2762 = vrot.lane.b32.xlu0 %v2719_v48, %s17594_s18  ;;  %v7521_v48 = vld [vmem:[%s17496_s2 + $0x848] sm:$0xff]  ;;  %v7528_v0 = vld [vmem:[%s17496_s2 + $0x400] sm:$0xff] }
 0x2bb   : > { %2867 = vmatpush.msra.mxu2 %v7513_v39  ;;  %2893 = vmatpush.msra.mxu3 %v7514_v32  ;;  %v7529_v39 = vld [vmem:[%s17496_s2 + $0xbd8] sm:$0xff] }
 0x2bc   : > { %3231 = vmatpush.msrb.mxu0 %v7515_v34  ;;  %3257 = vmatpush.msrb.mxu1 %v7516_v59  ;;  %v7530_v32 = vld [vmem:[%s17496_s2 + $0xfd8] sm:$0xff]  ;;  %v7531_v34 = vld [vmem:[%s17496_s2 + $0x3d0] sm:$0xff] }
 0x2bd   : > { %2868 = vmatpush.msra.mxu2 %v7517_v17  ;;  %2894 = vmatpush.msra.mxu3 %v7518_v19  ;;  %v7532_v59 = vld [vmem:[%s17496_s2 + $0x7d0] sm:$0xff]  ;;  %v7533_v17 = vld [vmem:[%s17496_s2 + $0xb98] sm:$0xff] }
 0x2be   : > { %3232 = vmatpush.msrb.mxu0 %v7519_v63  ;;  %3258 = vmatpush.msrb.mxu1 %v7520_v42  ;;  %v7534_v19 = vld [vmem:[%s17496_s2 + $0xf98] sm:$0xff]  ;;  %v7535_v63 = vld [vmem:[%s17496_s2 + $0x390] sm:$0xff] }
 0x2bf   : > { %2869 = vmatpush.msra.mxu2 %v7521_v48  ;;  %2895 = vmatpush.msra.mxu3 %v7522_v25  ;;  %v7536_v42 = vld [vmem:[%s17496_s2 + $0x790] sm:$0xff]  ;;  %v7537_v48 = vld [vmem:[%s17496_s2 + $0xb58] sm:$0xff] }
 0x2c0   : > { %3233 = vmatpush.msrb.mxu0 %v7523_v26  ;;  %3259 = vmatpush.msrb.mxu1 %v7524_v60  ;;  %v7538_v25 = vld [vmem:[%s17496_s2 + $0xf58] sm:$0xff]  ;;  %v7539_v26 = vld [vmem:[%s17496_s2 + $0x350] sm:$0xff] }
 0x2c1   : > { %2870 = vmatpush.msra.mxu2 %v7525_v16  ;;  %2896 = vmatpush.msra.mxu3 %v7526_v33  ;;  %v7540_v60 = vld [vmem:[%s17496_s2 + $0x750] sm:$0xff]  ;;  %v12123_v16 = vpop.f32.mrf.mxu2  ;;  %v12125_v33 = vpop.f32.mrf.mxu3 }
 0x2c2   : > { %3234 = vmatpush.msrb.mxu0 %v7527_v9  ;;  %3260 = vmatpush.msrb.mxu1 %v7528_v0  ;;  %v7541_v9 = vld [vmem:[%s17496_s2 + $0xb18] sm:$0xff] }
 0x2c3   : > { %2871 = vmatmul.f32.vlgmr.msra.gmra.mxu2 %v9853_v1  ;;  %2897 = vmatmul.f32.vlgmr.msra.gmra.mxu3 %v9855_v2  ;;  %v7542_v0 = vld [vmem:[%s17496_s2 + $0xf18] sm:$0xff] }
 0x2c4   : > { %2959 = vmatpush.msrb.mxu2 %v7529_v39  ;;  %2985 = vmatpush.msrb.mxu3 %v7530_v32  ;;  %v7543_v39 = vld [vmem:[%s17496_s2 + $0x310] sm:$0xff] }
 0x2c5   : > { %3235 = vmatmul.f32.vlgmr.msrb.gmra.mxu0 %v9679_v57  ;;  %3261 = vmatmul.f32.vlgmr.msrb.gmra.mxu1 %v9681_v58  ;;  %v7544_v32 = vld [vmem:[%s17496_s2 + $0x710] sm:$0xff] }
 0x2c6   : > { %3323 = vmatpush.msra.mxu0 %v7531_v34  ;;  %3349 = vmatpush.msra.mxu1 %v7532_v59  ;;  %v7545_v34 = vld [vmem:[%s17496_s2 + $0xad8] sm:$0xff] }
 0x2c7   : > { %2960 = vmatpush.msrb.mxu2 %v7533_v17  ;;  %2986 = vmatpush.msrb.mxu3 %v7534_v19  ;;  %v7546_v59 = vld [vmem:[%s17496_s2 + $0xed8] sm:$0xff]  ;;  %v7547_v17 = vld [vmem:[%s17496_s2 + $0x2d0] sm:$0xff] }
 0x2c8   : > { %3324 = vmatpush.msra.mxu0 %v7535_v63  ;;  %3350 = vmatpush.msra.mxu1 %v7536_v42  ;;  %v7548_v19 = vld [vmem:[%s17496_s2 + $0x6d0] sm:$0xff]  ;;  %v7549_v63 = vld [vmem:[%s17496_s2 + $0xa98] sm:$0xff] }
 0x2c9   : > { %2961 = vmatpush.msrb.mxu2 %v7537_v48  ;;  %2987 = vmatpush.msrb.mxu3 %v7538_v25  ;;  %v7550_v42 = vld [vmem:[%s17496_s2 + $0xe98] sm:$0xff]  ;;  %v7551_v48 = vld [vmem:[%s17496_s2 + $0x290] sm:$0xff] }
 0x2ca   : > { %3325 = vmatpush.msra.mxu0 %v7539_v26  ;;  %3351 = vmatpush.msra.mxu1 %v7540_v60  ;;  %v7552_v25 = vld [vmem:[%s17496_s2 + $0x690] sm:$0xff]  ;;  %v12167_v26 = vpop.f32.mrf.mxu2  ;;  %v12169_v60 = vpop.f32.mrf.mxu3 }
 0x2cb   : > { %2962 = vmatpush.msrb.mxu2 %v7541_v9  ;;  %2988 = vmatpush.msrb.mxu3 %v7542_v0  ;;  %17595 = vst [vmem:[#allocation61_spill] sm:$0xff] %v12167_v26  ;;  %v7553_v9 = vld [vmem:[%s17496_s2 + $0xa58] sm:$0xff] }
 0x2cc   : > { %3326 = vmatpush.msra.mxu0 %v7543_v39  ;;  %3352 = vmatpush.msra.mxu1 %v7544_v32  ;;  %17596 = vst [vmem:[#allocation62_spill] sm:$0xff] %v12169_v60  ;;  %v7554_v0 = vld [vmem:[%s17496_s2 + $0xe58] sm:$0xff]  ;;  %v7555_v39 = vld [vmem:[%s17496_s2 + $0x250] sm:$0xff] }
 0x2cd   : > { %2874 = vmatmul.f32.gmra.mxu2 %v9909_v23  ;;  %2900 = vmatmul.f32.gmra.mxu3 %v9911_v24  ;;  %v7556_v32 = vld [vmem:[%s17496_s2 + $0x650] sm:$0xff] }
 0x2ce   : > { %2963 = vmatpush.msrb.mxu2 %v7545_v34  ;;  %2989 = vmatpush.msrb.mxu3 %v7546_v59  ;;  %v7557_v34 = vld [vmem:[%s17496_s2 + $0xa18] sm:$0xff]  ;;  %v7976_v60 = vld [vmem:[%s17496_s2 + $0x1430] sm:$0xff] }
 0x2cf   : > { %3238 = vmatmul.f32.gmra.mxu0 %v9735_v13  ;;  %3264 = vmatmul.f32.gmra.mxu1 %v9737_v14  ;;  %v7558_v59 = vld [vmem:[%s17496_s2 + $0xe18] sm:$0xff] }
 0x2d0   : > { %3327 = vmatpush.msra.mxu0 %v7547_v17  ;;  %3353 = vmatpush.msra.mxu1 %v7548_v19  ;;  %v7559_v17 = vld [vmem:[%s17496_s2 + $0x210] sm:$0xff] }
 0x2d1   : > { %2964 = vmatpush.msrb.mxu2 %v7549_v63  ;;  %2990 = vmatpush.msrb.mxu3 %v7550_v42  ;;  %v7560_v19 = vld [vmem:[%s17496_s2 + $0x610] sm:$0xff]  ;;  %v7561_v63 = vld [vmem:[%s17496_s2 + $0x9d8] sm:$0xff] }
 0x2d2   : > { %3328 = vmatpush.msra.mxu0 %v7551_v48  ;;  %3354 = vmatpush.msra.mxu1 %v7552_v25  ;;  %v7562_v42 = vld [vmem:[%s17496_s2 + $0xdd8] sm:$0xff]  ;;  %v7563_v48 = vld [vmem:[%s17496_s2 + $0x1d0] sm:$0xff] }
 0x2d3   : > { %2965 = vmatpush.msrb.mxu2 %v7553_v9  ;;  %2991 = vmatpush.msrb.mxu3 %v7554_v0  ;;  %v7564_v25 = vld [vmem:[%s17496_s2 + $0x5d0] sm:$0xff]  ;;  %v7565_v9 = vld [vmem:[%s17496_s2 + $0x998] sm:$0xff] }
 0x2d4   : > { %3329 = vmatpush.msra.mxu0 %v7555_v39  ;;  %3355 = vmatpush.msra.mxu1 %v7556_v32  ;;  %v7566_v0 = vld [vmem:[%s17496_s2 + $0xd98] sm:$0xff]  ;;  %v7567_v39 = vld [vmem:[%s17496_s2 + $0x190] sm:$0xff] }
 0x2d5   : > { %2966 = vmatpush.msrb.mxu2 %v7557_v34  ;;  %2992 = vmatpush.msrb.mxu3 %v7558_v59  ;;  %v7568_v32 = vld [vmem:[%s17496_s2 + $0x590] sm:$0xff]  ;;  %v12223_v34 = vpop.f32.mrf.mxu2  ;;  %v12225_v59 = vpop.f32.mrf.mxu3 }
 0x2d6   : > { %3330 = vmatpush.msra.mxu0 %v7559_v17  ;;  %3356 = vmatpush.msra.mxu1 %v7560_v19  ;;  %17597 = vst [vmem:[#allocation63_spill] sm:$0xff] %v12223_v34  ;;  %v7569_v17 = vld [vmem:[%s17496_s2 + $0x958] sm:$0xff] }
 0x2d7   : > { %2877 = vmatmul.f32.gmra.mxu2 %v9965_v51  ;;  %2903 = vmatmul.f32.gmra.mxu3 %v9967_v52  ;;  %17598 = vst [vmem:[#allocation64_spill] sm:$0xff] %v12225_v59  ;;  %v7570_v19 = vld [vmem:[%s17496_s2 + $0xd58] sm:$0xff] }
 0x2d8   : > { %2967 = vmatpush.msrb.mxu2 %v7561_v63  ;;  %2993 = vmatpush.msrb.mxu3 %v7562_v42  ;;  %v7571_v63 = vld [vmem:[%s17496_s2 + $0x150] sm:$0xff] }
 0x2d9   : > { %3241 = vmatmul.f32.gmra.mxu0 %v9797_v35  ;;  %3267 = vmatmul.f32.gmra.mxu1 %v9799_v36  ;;  %v7572_v42 = vld [vmem:[%s17496_s2 + $0x550] sm:$0xff] }
 0x2da   : > { %3331 = vmatpush.msra.mxu0 %v7563_v48  ;;  %3357 = vmatpush.msra.mxu1 %v7564_v25  ;;  %v7573_v48 = vld [vmem:[%s17496_s2 + $0x918] sm:$0xff] }
 0x2db   : > { %2968 = vmatpush.msrb.mxu2 %v7565_v9  ;;  %2994 = vmatpush.msrb.mxu3 %v7566_v0  ;;  %v7574_v25 = vld [vmem:[%s17496_s2 + $0xd18] sm:$0xff]  ;;  %v7575_v9 = vld [vmem:[%s17496_s2 + $0x110] sm:$0xff] }
 0x2dc   : > { %3332 = vmatpush.msra.mxu0 %v7567_v39  ;;  %3358 = vmatpush.msra.mxu1 %v7568_v32  ;;  %v7576_v0 = vld [vmem:[%s17496_s2 + $0x510] sm:$0xff]  ;;  %v7577_v39 = vld [vmem:[%s17496_s2 + $0x8d8] sm:$0xff] }
 0x2dd   : > { %2969 = vmatpush.msrb.mxu2 %v7569_v17  ;;  %2995 = vmatpush.msrb.mxu3 %v7570_v19  ;;  %v7578_v32 = vld [vmem:[%s17496_s2 + $0xcd8] sm:$0xff]  ;;  %v7579_v17 = vld [vmem:[%s17496_s2 + $0xd0] sm:$0xff] }
 0x2de   : > { %3333 = vmatpush.msra.mxu0 %v7571_v63  ;;  %3359 = vmatpush.msra.mxu1 %v7572_v42  ;;  %v7580_v19 = vld [vmem:[%s17496_s2 + $0x4d0] sm:$0xff]  ;;  %v7581_v63 = vld [vmem:[%s17496_s2 + $0x898] sm:$0xff] }
 0x2df   : > { %2970 = vmatpush.msrb.mxu2 %v7573_v48  ;;  %2996 = vmatpush.msrb.mxu3 %v7574_v25  ;;  %v7582_v42 = vld [vmem:[%s17496_s2 + $0xc98] sm:$0xff]  ;;  %v7583_v48 = vld [vmem:[%s17496_s2 + $0x90] sm:$0xff] }
 0x2e0   : > { %3334 = vmatpush.msra.mxu0 %v7575_v9  ;;  %3360 = vmatpush.msra.mxu1 %v7576_v0  ;;  %v7584_v25 = vld [vmem:[%s17496_s2 + $0x490] sm:$0xff]  ;;  %v7585_v9 = vld [vmem:[%s17496_s2 + $0x858] sm:$0xff] }
 0x2e1   : > { %2971 = vmatpush.msrb.mxu2 %v7577_v39  ;;  %2997 = vmatpush.msrb.mxu3 %v7578_v32  ;;  %v7586_v0 = vld [vmem:[%s17496_s2 + $0xc58] sm:$0xff]  ;;  %v7587_v39 = vld [vmem:[%s17496_s2 + $0x50] sm:$0xff] }
 0x2e2   : > { %3335 = vmatpush.msra.mxu0 %v7579_v17  ;;  %3361 = vmatpush.msra.mxu1 %v7580_v19  ;;  %v7588_v32 = vld [vmem:[%s17496_s2 + $0x450] sm:$0xff]  ;;  %v12287_v17 = vpop.f32.mrf.mxu2  ;;  %v12289_v19 = vpop.f32.mrf.mxu3 }
 0x2e3   : > { %2972 = vmatpush.msrb.mxu2 %v7581_v63  ;;  %2998 = vmatpush.msrb.mxu3 %v7582_v42  ;;  %17599 = vst [vmem:[#allocation65_spill] sm:$0xff] %v12287_v17  ;;  %v7589_v63 = vld [vmem:[%s17496_s2 + $0x818] sm:$0xff]  ;;  %v8006_v17 = vld [vmem:[%s17496_s2 + $0x1448] sm:$0xff] }
 0x2e4   : > { %3336 = vmatpush.msra.mxu0 %v7583_v48  ;;  %3362 = vmatpush.msra.mxu1 %v7584_v25  ;;  %17600 = vst [vmem:[#allocation66_spill] sm:$0xff] %v12289_v19  ;;  %v7590_v42 = vld [vmem:[%s17496_s2 + $0xc18] sm:$0xff]  ;;  %v7591_v48 = vld [vmem:[%s17496_s2 + $0x10] sm:$0xff]  ;;  %v8003_v19 = vld [vmem:[%s17496_s2 + $0x1088] sm:$0xff] }
 0x2e5   : > { %2973 = vmatpush.msrb.mxu2 %v7585_v9  ;;  %2999 = vmatpush.msrb.mxu3 %v7586_v0  ;;  %v7592_v25 = vld [vmem:[%s17496_s2 + $0x410] sm:$0xff]  ;;  %v7593_v9 = vld [vmem:[%s17496_s2 + $0xbe8] sm:$0xff] }
 0x2e6   : > { %3337 = vmatpush.msra.mxu0 %v7587_v39  ;;  %3363 = vmatpush.msra.mxu1 %v7588_v32  ;;  %v7594_v0 = vld [vmem:[%s17496_s2 + $0xfe8] sm:$0xff]  ;;  %v7595_v39 = vld [vmem:[%s17496_s2 + $0x3e0] sm:$0xff] }
 0x2e7   : > { %2974 = vmatpush.msrb.mxu2 %v7589_v63  ;;  %3000 = vmatpush.msrb.mxu3 %v7590_v42  ;;  %v7596_v32 = vld [vmem:[%s17496_s2 + $0x7e0] sm:$0xff]  ;;  %v7597_v63 = vld [vmem:[%s17496_s2 + $0xba8] sm:$0xff] }
 0x2e8   : > { %3338 = vmatpush.msra.mxu0 %v7591_v48  ;;  %3364 = vmatpush.msra.mxu1 %v7592_v25  ;;  %v7598_v42 = vld [vmem:[%s17496_s2 + $0xfa8] sm:$0xff]  ;;  %v7599_v48 = vld [vmem:[%s17496_s2 + $0x3a0] sm:$0xff] }
 0x2e9   : > { %2975 = vmatmul.f32.vlgmr.msrb.gmra.mxu2 %v9853_v1  ;;  %3001 = vmatmul.f32.vlgmr.msrb.gmra.mxu3 %v9855_v2  ;;  %v7600_v25 = vld [vmem:[%s17496_s2 + $0x7a0] sm:$0xff] }
 0x2ea   : > { %3063 = vmatpush.msra.mxu2 %v7593_v9  ;;  %3089 = vmatpush.msra.mxu3 %v7594_v0  ;;  %v1392_v9 = vadd.f32 %v10957_v8, %v10955_v27  ;;  %v7601_v0 = vld [vmem:[%s17496_s2 + $0xb68] sm:$0xff]  ;;  %v7604_v27 = vld [vmem:[%s17496_s2 + $0x760] sm:$0xff] }
 0x2eb   : > { %3339 = vmatmul.f32.vlgmr.msra.gmra.mxu0 %v9679_v57  ;;  %3365 = vmatmul.f32.vlgmr.msra.gmra.mxu1 %v9681_v58 }
 0x2ec   : > { %3427 = vmatpush.msrb.mxu0 %v7595_v39  ;;  %3453 = vmatpush.msrb.mxu1 %v7596_v32  ;;  %v7602_v39 = vld [vmem:[%s17496_s2 + $0xf68] sm:$0xff]  ;;  %v2454_v32 = vpop.f32.mrf.mxu2  ;;  %v1782_v8 = vadd.f32 %v11665_v49, %v1392_v9 }
 0x2ed   : > { %3064 = vmatpush.msra.mxu2 %v7597_v63  ;;  %3090 = vmatpush.msra.mxu3 %v7598_v42  ;;  %v2480_v63 = vpop.f32.mrf.mxu3  ;;  %v7603_v42 = vld [vmem:[%s17496_s2 + $0x360] sm:$0xff]  ;;  %v7609_v9 = vld [vmem:[%s17496_s2 + $0xae8] sm:$0xff] }
 0x2ee   : > { %3428 = vmatpush.msrb.mxu0 %v7599_v48  ;;  %3454 = vmatpush.msrb.mxu1 %v7600_v25  ;;  %v7605_v48 = vld [vmem:[%s17496_s2 + $0xb28] sm:$0xff]  ;;  %v2481_v49 = vadd.f32 %v2480_v63, %v2454_v32  ;;  %v7611_v32 = vld [vmem:[%s17496_s2 + $0x2e0] sm:$0xff] }
 0x2ef   : > { %3065 = vmatpush.msra.mxu2 %v7601_v0  ;;  %3091 = vmatpush.msra.mxu3 %v7602_v39  ;;  %v7606_v25 = vld [vmem:[%s17496_s2 + $0xf28] sm:$0xff]  ;;  %v7607_v0 = vld [vmem:[%s17496_s2 + $0x320] sm:$0xff] }
 0x2f0   : > { %3429 = vmatpush.msrb.mxu0 %v7603_v42  ;;  %3455 = vmatpush.msrb.mxu1 %v7604_v27  ;;  %v7608_v39 = vld [vmem:[%s17496_s2 + $0x720] sm:$0xff]  ;;  %v7610_v42 = vld [vmem:[%s17496_s2 + $0xee8] sm:$0xff]  ;;  %v1808_v27 = vadd.f32 %v11667_v10, %v1782_v8 }
 0x2f1   : > { %3066 = vmatpush.msra.mxu2 %v7605_v48  ;;  %3092 = vmatpush.msra.mxu3 %v7606_v25  ;;  %v7612_v63 = vld [vmem:[%s17496_s2 + $0x6e0] sm:$0xff]  ;;  %v7613_v10 = vld [vmem:[%s17496_s2 + $0xaa8] sm:$0xff] }
 0x2f2   : > { %3430 = vmatpush.msrb.mxu0 %v7607_v0  ;;  %3456 = vmatpush.msrb.mxu1 %v7608_v39  ;;  %v12375_v48 = vadd.f32 %v2481_v49, %v1808_v27  ;;  %v7614_v8 = vld [vmem:[%s17496_s2 + $0xea8] sm:$0xff]  ;;  %v7615_v25 = vld [vmem:[%s17496_s2 + $0x2a0] sm:$0xff]  ;;  %v1395_v39 = vadd.f32 %v11017_v41, %v11015_v45 }
 0x2f3   : > { %2978 = vmatmul.f32.gmra.mxu2 %v9909_v23  ;;  %3004 = vmatmul.f32.gmra.mxu3 %v9911_v24  ;;  %v7616_v0 = vld [vmem:[%s17496_s2 + $0x6a0] sm:$0xff]  ;;  %v7617_v49 = vld [vmem:[%s17496_s2 + $0xa68] sm:$0xff] }
 0x2f4   : > { %3067 = vmatpush.msra.mxu2 %v7609_v9  ;;  %3093 = vmatpush.msra.mxu3 %v7610_v42  ;;  %17601 = vst [vmem:[#allocation67_spill] sm:$0xff] %v12375_v48  ;;  %v7618_v9 = vld [vmem:[%s17496_s2 + $0xe68] sm:$0xff]  ;;  %v2457_v42 = vpop.f32.mrf.mxu2  ;;  %v7620_v45 = vld [vmem:[%s17496_s2 + $0x660] sm:$0xff]  ;;  %v1785_v41 = vadd.f32 %v11726_v22, %v1395_v39 }
 0x2f5   : > { %3342 = vmatmul.f32.gmra.mxu0 %v9735_v13  ;;  %3368 = vmatmul.f32.gmra.mxu1 %v9737_v14  ;;  %v2483_v27 = vpop.f32.mrf.mxu3  ;;  %v7624_v22 = vld [vmem:[%s17496_s2 + $0x620] sm:$0xff] }
 0x2f6   : > { %3431 = vmatpush.msrb.mxu0 %v7611_v32  ;;  %3457 = vmatpush.msrb.mxu1 %v7612_v63  ;;  %v7619_v32 = vld [vmem:[%s17496_s2 + $0x260] sm:$0xff]  ;;  %v7621_v63 = vld [vmem:[%s17496_s2 + $0xa28] sm:$0xff]  ;;  %v1811_v39 = vadd.f32 %v11728_v31, %v1785_v41 }
 0x2f7   : > { %3068 = vmatpush.msra.mxu2 %v7613_v10  ;;  %3094 = vmatpush.msra.mxu3 %v7614_v8  ;;  %v7622_v10 = vld [vmem:[%s17496_s2 + $0xe28] sm:$0xff]  ;;  %v7623_v8 = vld [vmem:[%s17496_s2 + $0x220] sm:$0xff] }
 0x2f8   : > { %3432 = vmatpush.msrb.mxu0 %v7615_v25  ;;  %3458 = vmatpush.msrb.mxu1 %v7616_v0  ;;  %v2484_v25 = vadd.f32 %v2483_v27, %v2457_v42  ;;  %v7625_v0 = vld [vmem:[%s17496_s2 + $0x9e8] sm:$0xff]  ;;  %v7628_v31 = vld [vmem:[%s17496_s2 + $0x5e0] sm:$0xff] }
 0x2f9   : > { %3069 = vmatpush.msra.mxu2 %v7617_v49  ;;  %3095 = vmatpush.msra.mxu3 %v7618_v9  ;;  %v7626_v49 = vld [vmem:[%s17496_s2 + $0xde8] sm:$0xff]  ;;  %v7627_v9 = vld [vmem:[%s17496_s2 + $0x1e0] sm:$0xff] }
 0x2fa   : > { %3433 = vmatpush.msrb.mxu0 %v7619_v32  ;;  %3459 = vmatpush.msrb.mxu1 %v7620_v45  ;;  %v12432_v42 = vadd.f32 %v2484_v25, %v1811_v39  ;;  %v7629_v27 = vld [vmem:[%s17496_s2 + $0x9a8] sm:$0xff]  ;;  %v1398_v32 = vadd.f32 %v11083_v20, %v11081_v55  ;;  %v7631_v41 = vld [vmem:[%s17496_s2 + $0x1a0] sm:$0xff] }
 0x2fb   : > { %2736 = vrot.lane.b32.xlu1 %v12375_v48, %s17594_s18  ;;  %3070 = vmatpush.msra.mxu2 %v7621_v63  ;;  %v7630_v45 = vld [vmem:[%s17496_s2 + $0xda8] sm:$0xff]  ;;  %v7632_v63 = vld [vmem:[%s17496_s2 + $0x5a0] sm:$0xff] }
 0x2fc   : > { %3096 = vmatpush.msra.mxu3 %v7622_v10  ;;  %3434 = vmatpush.msrb.mxu0 %v7623_v8  ;;  %17602 = vst [vmem:[#allocation68_spill] sm:$0xff] %v12432_v42  ;;  %v7633_v10 = vld [vmem:[%s17496_s2 + $0x968] sm:$0xff]  ;;  %v2460_v55 = vpop.f32.mrf.mxu2  ;;  %v1788_v8 = vadd.f32 %v11788_v40, %v1398_v32  ;;  %v7635_v25 = vld [vmem:[%s17496_s2 + $0x160] sm:$0xff] }
 0x2fd   : > { %3460 = vmatpush.msrb.mxu1 %v7624_v22  ;;  %2981 = vmatmul.f32.gmra.mxu2 %v9965_v51  ;;  %v2486_v20 = vpop.f32.mrf.mxu3  ;;  %v7634_v22 = vld [vmem:[%s17496_s2 + $0xd68] sm:$0xff] }
 0x2fe   : > { %3007 = vmatmul.f32.gmra.mxu3 %v9967_v52  ;;  %3071 = vmatpush.msra.mxu2 %v7625_v0  ;;  %v7636_v0 = vld [vmem:[%s17496_s2 + $0x560] sm:$0xff]  ;;  %v7637_v40 = vld [vmem:[%s17496_s2 + $0x928] sm:$0xff] }
 0x2ff   : > { %3097 = vmatpush.msra.mxu3 %v7626_v49  ;;  %3345 = vmatmul.f32.gmra.mxu0 %v9797_v35  ;;  %v7638_v39 = vld [vmem:[%s17496_s2 + $0xd28] sm:$0xff]  ;;  %v2487_v49 = vadd.f32 %v2486_v20, %v2460_v55  ;;  %v7647_v20 = vld [vmem:[%s17496_s2 + $0xa0] sm:$0xff] }
 0x300   : > { %3371 = vmatmul.f32.gmra.mxu1 %v9799_v36  ;;  %3435 = vmatpush.msrb.mxu0 %v7627_v9  ;;  %v7639_v9 = vld [vmem:[%s17496_s2 + $0x120] sm:$0xff]  ;;  %v7641_v32 = vld [vmem:[%s17496_s2 + $0x8e8] sm:$0xff] }
 0x301   : > { %3461 = vmatpush.msrb.mxu1 %v7628_v31  ;;  %3072 = vmatpush.msra.mxu2 %v7629_v27  ;;  %v7640_v31 = vld [vmem:[%s17496_s2 + $0x520] sm:$0xff]  ;;  %v1814_v27 = vadd.f32 %v11790_v18, %v1788_v8  ;;  %v7646_v55 = vld [vmem:[%s17496_s2 + $0xca8] sm:$0xff] }
 0x302   : > { %3098 = vmatpush.msra.mxu3 %v7630_v45  ;;  %3436 = vmatpush.msrb.mxu0 %v7631_v41  ;;  %v7642_v45 = vld [vmem:[%s17496_s2 + $0xce8] sm:$0xff]  ;;  %v7643_v41 = vld [vmem:[%s17496_s2 + $0xe0] sm:$0xff] }
 0x303   : > { %3462 = vmatpush.msrb.mxu1 %v7632_v63  ;;  %3073 = vmatpush.msra.mxu2 %v7633_v10  ;;  %v7644_v63 = vld [vmem:[%s17496_s2 + $0x4e0] sm:$0xff]  ;;  %v12491_v18 = vadd.f32 %v2487_v49, %v1814_v27  ;;  %v7645_v10 = vld [vmem:[%s17496_s2 + $0x8a8] sm:$0xff]  ;;  %v7657_v27 = vld [vmem:[%s17496_s2 + $0xbf8] sm:$0xff] }
 0x304   : > { %3099 = vmatpush.msra.mxu3 %v7634_v22  ;;  %3437 = vmatpush.msrb.mxu0 %v7635_v25  ;;  %v7648_v8 = vld [vmem:[%s17496_s2 + $0x4a0] sm:$0xff]  ;;  %v7649_v22 = vld [vmem:[%s17496_s2 + $0x868] sm:$0xff] }
 0x305   : > { %3463 = vmatpush.msrb.mxu1 %v7636_v0  ;;  %2746 = vrot.lane.b32.xlu2 %v12432_v42, %s17594_s18  ;;  %17603 = vst [vmem:[#allocation69_spill] sm:$0xff] %v12491_v18  ;;  %v7650_v25 = vld [vmem:[%s17496_s2 + $0xc68] sm:$0xff]  ;;  %v7651_v0 = vld [vmem:[%s17496_s2 + $0x60] sm:$0xff] }
 0x306   : > { %3074 = vmatpush.msra.mxu2 %v7637_v40  ;;  %3100 = vmatpush.msra.mxu3 %v7638_v39  ;;  %v7652_v40 = vld [vmem:[%s17496_s2 + $0x460] sm:$0xff]  ;;  %v7653_v39 = vld [vmem:[%s17496_s2 + $0x828] sm:$0xff] }
 0x307   : > { %3438 = vmatpush.msrb.mxu0 %v7639_v9  ;;  %3464 = vmatpush.msrb.mxu1 %v7640_v31  ;;  %v7654_v49 = vld [vmem:[%s17496_s2 + $0xc28] sm:$0xff]  ;;  %v7655_v9 = vld [vmem:[%s17496_s2 + $0x20] sm:$0xff] }
 0x308   : > { %3075 = vmatpush.msra.mxu2 %v7641_v32  ;;  %3101 = vmatpush.msra.mxu3 %v7642_v45  ;;  %v7656_v31 = vld [vmem:[%s17496_s2 + $0x420] sm:$0xff]  ;;  %v7658_v32 = vld [vmem:[%s17496_s2 + $0xff8] sm:$0xff]  ;;  %v7659_v45 = vld [vmem:[%s17496_s2 + $0x3f0] sm:$0xff] }
 0x309   : > { %3439 = vmatpush.msrb.mxu0 %v7643_v41  ;;  %3465 = vmatpush.msrb.mxu1 %v7644_v63  ;;  %v7660_v41 = vld [vmem:[%s17496_s2 + $0x7f0] sm:$0xff]  ;;  %v7661_v63 = vld [vmem:[%s17496_s2 + $0xbb8] sm:$0xff] }
 0x30a   : > { %3076 = vmatpush.msra.mxu2 %v7645_v10  ;;  %3102 = vmatpush.msra.mxu3 %v7646_v55  ;;  %v7662_v10 = vld [vmem:[%s17496_s2 + $0xfb8] sm:$0xff]  ;;  %v7663_v55 = vld [vmem:[%s17496_s2 + $0x3b0] sm:$0xff] }
 0x30b   : > { %3440 = vmatpush.msrb.mxu0 %v7647_v20  ;;  %3466 = vmatpush.msrb.mxu1 %v7648_v8  ;;  %v1496_v20 = vadd.f32 %v11145_v47, %v11143_v44  ;;  %v7664_v8 = vld [vmem:[%s17496_s2 + $0x7b0] sm:$0xff] }
 0x30c   : > { %3077 = vmatpush.msra.mxu2 %v7649_v22  ;;  %3103 = vmatpush.msra.mxu3 %v7650_v25  ;;  %v7665_v22 = vld [vmem:[%s17496_s2 + $0xb78] sm:$0xff]  ;;  %v2558_v25 = vpop.f32.mrf.mxu2  ;;  %v7667_v44 = vld [vmem:[%s17496_s2 + $0x370] sm:$0xff] }
 0x30d   : > { %3441 = vmatpush.msrb.mxu0 %v7651_v0  ;;  %3467 = vmatpush.msrb.mxu1 %v7652_v40  ;;  %v2584_v0 = vpop.f32.mrf.mxu3  ;;  %v7666_v40 = vld [vmem:[%s17496_s2 + $0xf78] sm:$0xff]  ;;  %v1886_v47 = vadd.f32 %v11837_v46, %v1496_v20  ;;  %v7672_v46 = vld [vmem:[%s17496_s2 + $0x730] sm:$0xff] }
 0x30e   : > { %2756 = vrot.lane.b32.xlu0 %v12491_v18, %s17594_s18  ;;  %3078 = vmatpush.msra.mxu2 %v7653_v39  ;;  %v7668_v39 = vld [vmem:[%s17496_s2 + $0x770] sm:$0xff] }
 0x30f   : > { %3104 = vmatpush.msra.mxu3 %v7654_v49  ;;  %3442 = vmatpush.msrb.mxu0 %v7655_v9  ;;  %v7669_v49 = vld [vmem:[%s17496_s2 + $0xb38] sm:$0xff]  ;;  %v7956_v18 = vld [vmem:[%s17496_s2 + $0x1570] sm:$0xff] }
 0x310   : > { %3468 = vmatpush.msrb.mxu1 %v7656_v31  ;;  %3079 = vmatmul.f32.vlgmr.msra.gmra.mxu2 %v9853_v1  ;;  %v7670_v9 = vld [vmem:[%s17496_s2 + $0xf38] sm:$0xff]  ;;  %v7671_v31 = vld [vmem:[%s17496_s2 + $0x330] sm:$0xff] }
 0x311   : > { %3105 = vmatmul.f32.vlgmr.msra.gmra.mxu3 %v9855_v2  ;;  %3167 = vmatpush.msrb.mxu2 %v7657_v27  ;;  %v2585_v27 = vadd.f32 %v2584_v0, %v2558_v25  ;;  %v7679_v25 = vld [vmem:[%s17496_s2 + $0x2b0] sm:$0xff] }
 0x312   : > { %3193 = vmatpush.msrb.mxu3 %v7658_v32  ;;  %3443 = vmatmul.f32.vlgmr.msrb.gmra.mxu0 %v9679_v57  ;;  %v7673_v32 = vld [vmem:[%s17496_s2 + $0xaf8] sm:$0xff]  ;;  %v7680_v0 = vld [vmem:[%s17496_s2 + $0x6b0] sm:$0xff] }
 0x313   : > { %3469 = vmatmul.f32.vlgmr.msrb.gmra.mxu1 %v9681_v58  ;;  %3531 = vmatpush.msra.mxu0 %v7659_v45  ;;  %v1912_v45 = vadd.f32 %v11839_v29, %v1886_v47  ;;  %v7676_v29 = vld [vmem:[%s17496_s2 + $0x6f0] sm:$0xff] }
 0x314   : > { %3557 = vmatpush.msra.mxu1 %v7660_v41  ;;  %3168 = vmatpush.msrb.mxu2 %v7661_v63  ;;  %v12592_v41 = vpop.f32.mrf.mxu0  ;;  %v7674_v63 = vld [vmem:[%s17496_s2 + $0xef8] sm:$0xff] }
 0x315   : > { %3194 = vmatpush.msrb.mxu3 %v7662_v10  ;;  %3532 = vmatpush.msra.mxu0 %v7663_v55  ;;  %17604 = vst [vmem:[#allocation70_spill] sm:$0xff] %v12592_v41  ;;  %v12598_v10 = vpop.f32.mrf.mxu1  ;;  %v7675_v55 = vld [vmem:[%s17496_s2 + $0x2f0] sm:$0xff]  ;;  %v2702_v20 = vadd.f32 %v2585_v27, %v1912_v45  ;;  %v2587_v47 = vpop.f32.mrf.mxu3 }
 0x316   : > { %3558 = vmatpush.msra.mxu1 %v7664_v8  ;;  %3169 = vmatpush.msrb.mxu2 %v7665_v22  ;;  %17605 = vst [vmem:[#allocation71_spill] sm:$0xff] %v12598_v10  ;;  %v7677_v8 = vld [vmem:[%s17496_s2 + $0xab8] sm:$0xff]  ;;  %v7687_v27 = vld [vmem:[%s17496_s2 + $0x230] sm:$0xff] }
 0x317   : > { %3195 = vmatpush.msrb.mxu3 %v7666_v40  ;;  %3533 = vmatpush.msra.mxu0 %v7667_v44  ;;  %v7678_v22 = vld [vmem:[%s17496_s2 + $0xeb8] sm:$0xff]  ;;  %v2561_v44 = vpop.f32.mrf.mxu2 }
 0x318   : > { %3559 = vmatpush.msra.mxu1 %v7668_v39  ;;  %3170 = vmatpush.msrb.mxu2 %v7669_v49  ;;  %v7681_v40 = vld [vmem:[%s17496_s2 + $0xa78] sm:$0xff]  ;;  %v1499_v39 = vadd.f32 %v11205_v12, %v11203_v30 }
 0x319   : > { %3196 = vmatpush.msrb.mxu3 %v7670_v9  ;;  %3534 = vmatpush.msra.mxu0 %v7671_v31  ;;  %v7682_v49 = vld [vmem:[%s17496_s2 + $0xe78] sm:$0xff]  ;;  %v7683_v9 = vld [vmem:[%s17496_s2 + $0x270] sm:$0xff] }
 0x31a   : > { %3560 = vmatpush.msra.mxu1 %v7672_v46  ;;  %3082 = vmatmul.f32.gmra.mxu2 %v9909_v23  ;;  %v7684_v31 = vld [vmem:[%s17496_s2 + $0x670] sm:$0xff]  ;;  %v1889_v46 = vadd.f32 %v11897_v62, %v1499_v39  ;;  %v7685_v30 = vld [vmem:[%s17496_s2 + $0xa38] sm:$0xff]  ;;  %v2588_v62 = vadd.f32 %v2587_v47, %v2561_v44 }
 0x31b   : > { %3108 = vmatmul.f32.gmra.mxu3 %v9911_v24  ;;  %3171 = vmatpush.msrb.mxu2 %v7673_v32  ;;  %v7686_v12 = vld [vmem:[%s17496_s2 + $0xe38] sm:$0xff]  ;;  %v7688_v32 = vld [vmem:[%s17496_s2 + $0x630] sm:$0xff] }
 0x31c   : > { %3197 = vmatpush.msrb.mxu3 %v7674_v63  ;;  %3446 = vmatmul.f32.gmra.mxu0 %v9735_v13  ;;  %v12649_v45 = vpop.f32.mrf.mxu0  ;;  %v7689_v63 = vld [vmem:[%s17496_s2 + $0x9f8] sm:$0xff]  ;;  %v7695_v44 = vld [vmem:[%s17496_s2 + $0x1b0] sm:$0xff] }
 0x31d   : > { %3472 = vmatmul.f32.gmra.mxu1 %v9737_v14  ;;  %3535 = vmatpush.msra.mxu0 %v7675_v55  ;;  %17606 = vst [vmem:[#allocation72_spill] sm:$0xff] %v12649_v45  ;;  %v7690_v55 = vld [vmem:[%s17496_s2 + $0xdf8] sm:$0xff]  ;;  %v2590_v47 = vpop.f32.mrf.mxu3 }
 0x31e   : > { %3561 = vmatpush.msra.mxu1 %v7676_v29  ;;  %3172 = vmatpush.msrb.mxu2 %v7677_v8  ;;  %v12658_v29 = vpop.f32.mrf.mxu1  ;;  %v7691_v8 = vld [vmem:[%s17496_s2 + $0x1f0] sm:$0xff] }
 0x31f   : > { %3198 = vmatpush.msrb.mxu3 %v7678_v22  ;;  %3536 = vmatpush.msra.mxu0 %v7679_v25  ;;  %17607 = vst [vmem:[#allocation73_spill] sm:$0xff] %v12658_v29  ;;  %v7692_v22 = vld [vmem:[%s17496_s2 + $0x5f0] sm:$0xff]  ;;  %v1502_v25 = vadd.f32 %v11269_v50, %v11267_v43  ;;  %v2564_v50 = vpop.f32.mrf.mxu2 }
 0x320   : > { %3562 = vmatpush.msra.mxu1 %v7680_v0  ;;  %3173 = vmatpush.msrb.mxu2 %v7681_v40  ;;  %v7693_v0 = vld [vmem:[%s17496_s2 + $0x9b8] sm:$0xff]  ;;  %v7696_v43 = vld [vmem:[%s17496_s2 + $0x5b0] sm:$0xff] }
 0x321   : > { %3199 = vmatpush.msrb.mxu3 %v7682_v49  ;;  %3537 = vmatpush.msra.mxu0 %v7683_v9  ;;  %v7694_v40 = vld [vmem:[%s17496_s2 + $0xdb8] sm:$0xff]  ;;  %v1892_v39 = vadd.f32 %v11955_v38, %v1502_v25  ;;  %v7708_v25 = vld [vmem:[%s17496_s2 + $0x4f0] sm:$0xff] }
 0x322   : > { %3563 = vmatpush.msra.mxu1 %v7684_v31  ;;  %2740 = vrot.lane.b32.xlu0 %v2702_v20, %s17594_s18  ;;  %v1915_v20 = vadd.f32 %v11899_v53, %v1889_v46  ;;  %v7697_v49 = vld [vmem:[%s17496_s2 + $0x978] sm:$0xff]  ;;  %v7699_v31 = vld [vmem:[%s17496_s2 + $0x170] sm:$0xff] }
 0x323   : > { %3174 = vmatpush.msrb.mxu2 %v7685_v30  ;;  %3200 = vmatpush.msrb.mxu3 %v7686_v12  ;;  %v7698_v9 = vld [vmem:[%s17496_s2 + $0xd78] sm:$0xff]  ;;  %v7700_v46 = vld [vmem:[%s17496_s2 + $0x570] sm:$0xff]  ;;  %v2591_v30 = vadd.f32 %v2590_v47, %v2564_v50 }
 0x324   : > { %3538 = vmatpush.msra.mxu0 %v7687_v27  ;;  %3564 = vmatpush.msra.mxu1 %v7688_v32  ;;  %v2710_v53 = vadd.f32 %v2588_v62, %v1915_v20  ;;  %v7701_v38 = vld [vmem:[%s17496_s2 + $0x938] sm:$0xff]  ;;  %v7703_v27 = vld [vmem:[%s17496_s2 + $0x130] sm:$0xff]  ;;  %v1918_v32 = vadd.f32 %v11957_v56, %v1892_v39 }
 0x325   : > { %3085 = vmatmul.f32.gmra.mxu2 %v9965_v51  ;;  %3111 = vmatmul.f32.gmra.mxu3 %v9967_v52  ;;  %v7702_v12 = vld [vmem:[%s17496_s2 + $0xd38] sm:$0xff]  ;;  %v7704_v62 = vld [vmem:[%s17496_s2 + $0x530] sm:$0xff] }
 0x326   : > { %3175 = vmatpush.msrb.mxu2 %v7689_v63  ;;  %3201 = vmatpush.msrb.mxu3 %v7690_v55  ;;  %v7705_v63 = vld [vmem:[%s17496_s2 + $0x8f8] sm:$0xff]  ;;  %v12712_v55 = vpop.f32.mrf.mxu0  ;;  %v7707_v56 = vld [vmem:[%s17496_s2 + $0xf0] sm:$0xff] }
 0x327   : > { %3449 = vmatmul.f32.gmra.mxu0 %v9797_v35  ;;  %3475 = vmatmul.f32.gmra.mxu1 %v9799_v36  ;;  %17608 = vst [vmem:[#allocation74_spill] sm:$0xff] %v12712_v55  ;;  %v7706_v20 = vld [vmem:[%s17496_s2 + $0xcf8] sm:$0xff]  ;;  %v7715_v47 = vld [vmem:[%s17496_s2 + $0x70] sm:$0xff] }
 0x328   : > { %3539 = vmatpush.msra.mxu0 %v7691_v8  ;;  %3565 = vmatpush.msra.mxu1 %v7692_v22  ;;  %v12720_v8 = vpop.f32.mrf.mxu1  ;;  %v2718_v22 = vadd.f32 %v2591_v30, %v1918_v32  ;;  %v7714_v50 = vld [vmem:[%s17496_s2 + $0xc78] sm:$0xff]  ;;  %v7716_v39 = vld [vmem:[%s17496_s2 + $0x470] sm:$0xff]  ;;  %v7725_v32 = vld [vmem:[%s17496_s2 + $0x388] sm:$0xff] }
 0x329   : > { %3176 = vmatpush.msrb.mxu2 %v7693_v0  ;;  %3202 = vmatpush.msrb.mxu3 %v7694_v40  ;;  %17609 = vst [vmem:[#allocation75_spill] sm:$0xff] %v12720_v8  ;;  %v7710_v0 = vld [vmem:[%s17496_s2 + $0xcb8] sm:$0xff]  ;;  %v7711_v40 = vld [vmem:[%s17496_s2 + $0xb0] sm:$0xff] }
 0x32a   : > { %3540 = vmatpush.msra.mxu0 %v7695_v44  ;;  %3566 = vmatpush.msra.mxu1 %v7696_v43  ;;  %v7712_v44 = vld [vmem:[%s17496_s2 + $0x4b0] sm:$0xff]  ;;  %v7713_v43 = vld [vmem:[%s17496_s2 + $0x878] sm:$0xff] }
 0x32b   : > { %3177 = vmatpush.msrb.mxu2 %v7697_v49  ;;  %3203 = vmatpush.msrb.mxu3 %v7698_v9  ;;  %v7717_v49 = vld [vmem:[%s17496_s2 + $0x838] sm:$0xff] }
 0x32c   : > { %3541 = vmatpush.msra.mxu0 %v7699_v31  ;;  %3567 = vmatpush.msra.mxu1 %v7700_v46  ;;  %v7718_v9 = vld [vmem:[%s17496_s2 + $0xc38] sm:$0xff]  ;;  %v7719_v31 = vld [vmem:[%s17496_s2 + $0x30] sm:$0xff] }
 0x32d   : > { %2750 = vrot.lane.b32.xlu1 %v2710_v53, %s17594_s18  ;;  %3178 = vmatpush.msrb.mxu2 %v7701_v38  ;;  %v7709_v53 = vld [vmem:[%s17496_s2 + $0x8b8] sm:$0xff]  ;;  %v7720_v46 = vld [vmem:[%s17496_s2 + $0x430] sm:$0xff] }
 0x32e   : > { %3204 = vmatpush.msrb.mxu3 %v7702_v12  ;;  %3542 = vmatpush.msra.mxu0 %v7703_v27  ;;  %v12762_v38 = vpop.f32.mrf.mxu0  ;;  %v7721_v12 = vld [vmem:[%s17496_s2 + $0x3c8] sm:$0xff]  ;;  %v8016_v8 = vld [vmem:[%s17496_s2 + $0x1718] sm:$0xff] }
 0x32f   : > { %3568 = vmatpush.msra.mxu1 %v7704_v62  ;;  %3179 = vmatpush.msrb.mxu2 %v7705_v63  ;;  %17610 = vst [vmem:[#allocation76_spill] sm:$0xff] %v12762_v38  ;;  %v7722_v27 = vld [vmem:[%s17496_s2 + $0x7c8] sm:$0xff]  ;;  %v7727_v63 = vld [vmem:[%s17496_s2 + $0x1380] sm:$0xff]  ;;  %v8087_v38 = vld [vmem:[%s17496_s2 + $0x1238] sm:$0xff] }
 0x330   : > { %3205 = vmatpush.msrb.mxu3 %v7706_v20  ;;  %3543 = vmatpush.msra.mxu0 %v7707_v56  ;;  %v12766_v30 = vpop.f32.mrf.mxu1  ;;  %v7726_v62 = vld [vmem:[%s17496_s2 + $0x788] sm:$0xff]  ;;  %v7728_v20 = vld [vmem:[%s17496_s2 + $0x1780] sm:$0xff]  ;;  %v1600_v56 = vadd.f32 %v11319_v4, %v11317_v7 }
 0x331   : > { %3569 = vmatpush.msra.mxu1 %v7708_v25  ;;  %3180 = vmatpush.msrb.mxu2 %v7709_v53  ;;  %17611 = vst [vmem:[#allocation77_spill] sm:$0xff] %v12766_v30  ;;  %v7730_v25 = vld [vmem:[%s17496_s2 + $0x748] sm:$0xff]  ;;  %v2662_v53 = vpop.f32.mrf.mxu2  ;;  %v7732_v7 = vld [vmem:[%s17496_s2 + $0x1740] sm:$0xff] }
 0x332   : > { %3206 = vmatpush.msrb.mxu3 %v7710_v0  ;;  %3544 = vmatpush.msra.mxu0 %v7711_v40  ;;  %v2688_v0 = vpop.f32.mrf.mxu3  ;;  %v7731_v40 = vld [vmem:[%s17496_s2 + $0x1340] sm:$0xff]  ;;  %v1990_v4 = vadd.f32 %v12005_v37, %v1600_v56 }
 0x333   : > { %3570 = vmatpush.msra.mxu1 %v7712_v44  ;;  %3181 = vmatpush.msrb.mxu2 %v7713_v43  ;;  %v7733_v44 = vld [vmem:[%s17496_s2 + $0x308] sm:$0xff] }
 0x334   : > { %3207 = vmatpush.msrb.mxu3 %v7714_v50  ;;  %3545 = vmatpush.msra.mxu0 %v7715_v47  ;;  %v7734_v43 = vld [vmem:[%s17496_s2 + $0x708] sm:$0xff]  ;;  %v7735_v50 = vld [vmem:[%s17496_s2 + $0x1300] sm:$0xff] }
 0x335   : > { %3571 = vmatpush.msra.mxu1 %v7716_v39  ;;  %2760 = vrot.lane.b32.xlu0 %v2718_v22, %s17594_s18  ;;  %v7729_v22 = vld [vmem:[%s17496_s2 + $0x348] sm:$0xff]  ;;  %v7736_v47 = vld [vmem:[%s17496_s2 + $0x1700] sm:$0xff]  ;;  %v2689_v39 = vadd.f32 %v2688_v0, %v2662_v53 }
 0x336   : > { %3182 = vmatpush.msrb.mxu2 %v7717_v49  ;;  %3208 = vmatpush.msrb.mxu3 %v7718_v9  ;;  %v12821_v37 = vpop.f32.mrf.mxu0  ;;  %v7737_v9 = vld [vmem:[%s17496_s2 + $0x2c8] sm:$0xff]  ;;  %v7751_v0 = vld [vmem:[%s17496_s2 + $0x1200] sm:$0xff] }
 0x337   : > { %3546 = vmatpush.msra.mxu0 %v7719_v31  ;;  %3572 = vmatpush.msra.mxu1 %v7720_v46  ;;  %17612 = vst [vmem:[#allocation78_spill] sm:$0xff] %v12821_v37  ;;  %v7738_v31 = vld [vmem:[%s17496_s2 + $0x6c8] sm:$0xff]  ;;  %v2016_v46 = vadd.f32 %v12007_v5, %v1990_v4  ;;  %v8092_v37 = vld [vmem:[%s17496_s2 + $0x15b8] sm:$0xff] }
 0x338   : > { %3183 = vmatmul.f32.vlgmr.msrb.gmra.mxu2 %v9853_v1  ;;  %3209 = vmatmul.f32.vlgmr.msrb.gmra.mxu3 %v9855_v2  ;;  %v7723_v1 = vld [vmem:[%s17496_s2 + $0x13c0] sm:$0xff]  ;;  %v12825_v49 = vpop.f32.mrf.mxu1  ;;  %v7742_v5 = vld [vmem:[%s17496_s2 + $0x688] sm:$0xff] }
 0x339   : > { %3271 = vmatpush.msra.mxu2 %v7721_v12  ;;  %3297 = vmatpush.msra.mxu3 %v7722_v27  ;;  %v7724_v2 = vld [vmem:[%s17496_s2 + $0x17c0] sm:$0xff]  ;;  %17613 = vst [vmem:[#allocation79_spill] sm:$0xff] %v12825_v49  ;;  %v2704_v12 = vadd.f32 %v2689_v39, %v2016_v46  ;;  %v7741_v27 = vld [vmem:[%s17496_s2 + $0x288] sm:$0xff]  ;;  %v1606_v39 = vadd.f32 %v11445_v11, %v11443_v54 }
 0x33a   : > { %3547 = vmatmul.f32.vlgmr.msra.gmra.mxu0 %v9679_v57  ;;  %3573 = vmatmul.f32.vlgmr.msra.gmra.mxu1 %v9681_v58  ;;  %v2691_v56 = vpop.f32.mrf.mxu3  ;;  %v7750_v53 = vld [vmem:[%s17496_s2 + $0x608] sm:$0xff]  ;;  %v7760_v46 = vld [vmem:[%s17496_s2 + $0x1580] sm:$0xff] }
 0x33b   : > { %3635 = vmatpush.msrb.mxu0 %v7723_v1  ;;  %3661 = vmatpush.msrb.mxu1 %v7724_v2  ;;  %v7743_v1 = vld [vmem:[%s17496_s2 + $0x1280] sm:$0xff] }
 0x33c   : > { %3272 = vmatpush.msra.mxu2 %v7725_v32  ;;  %3298 = vmatpush.msra.mxu3 %v7726_v62  ;;  %v7744_v2 = vld [vmem:[%s17496_s2 + $0x1680] sm:$0xff]  ;;  %v1603_v32 = vadd.f32 %v11381_v6, %v11379_v28  ;;  %v7745_v62 = vld [vmem:[%s17496_s2 + $0x248] sm:$0xff] }
 0x33d   : > { %3636 = vmatpush.msrb.mxu0 %v7727_v63  ;;  %3662 = vmatpush.msrb.mxu1 %v7728_v20  ;;  %v7746_v63 = vld [vmem:[%s17496_s2 + $0x648] sm:$0xff]  ;;  %v2665_v20 = vpop.f32.mrf.mxu2  ;;  %v7748_v28 = vld [vmem:[%s17496_s2 + $0x1640] sm:$0xff] }
 0x33e   : > { %3273 = vmatpush.msra.mxu2 %v7729_v22  ;;  %3299 = vmatpush.msra.mxu3 %v7730_v25  ;;  %v7747_v22 = vld [vmem:[%s17496_s2 + $0x1240] sm:$0xff]  ;;  %v1993_v6 = vadd.f32 %v12067_v3, %v1603_v32  ;;  %v7749_v25 = vld [vmem:[%s17496_s2 + $0x208] sm:$0xff] }
 0x33f   : > { %3637 = vmatpush.msrb.mxu0 %v7731_v40  ;;  %3663 = vmatpush.msrb.mxu1 %v7732_v7  ;;  %v12879_v40 = vpop.f32.mrf.mxu0  ;;  %v7752_v3 = vld [vmem:[%s17496_s2 + $0x1600] sm:$0xff]  ;;  %v2692_v7 = vadd.f32 %v2691_v56, %v2665_v20  ;;  %v7766_v32 = vld [vmem:[%s17496_s2 + $0x508] sm:$0xff] }
 0x340   : > { %3274 = vmatpush.msra.mxu2 %v7733_v44  ;;  %3300 = vmatpush.msra.mxu3 %v7734_v43  ;;  %17614 = vst [vmem:[#allocation80_spill] sm:$0xff] %v12879_v40  ;;  %v12885_v4 = vpop.f32.mrf.mxu1  ;;  %v7753_v44 = vld [vmem:[%s17496_s2 + $0x1c8] sm:$0xff]  ;;  %v2019_v43 = vadd.f32 %v12069_v15, %v1993_v6  ;;  %v7768_v20 = vld [vmem:[%s17496_s2 + $0x1500] sm:$0xff]  ;;  %v8084_v40 = vld [vmem:[%s17496_s2 + $0x16b8] sm:$0xff] }
 0x341   : > { %3638 = vmatpush.msrb.mxu0 %v7735_v50  ;;  %3664 = vmatpush.msrb.mxu1 %v7736_v47  ;;  %17615 = vst [vmem:[#allocation81_spill] sm:$0xff] %v12885_v4  ;;  %v7754_v50 = vld [vmem:[%s17496_s2 + $0x5c8] sm:$0xff]  ;;  %v7756_v47 = vld [vmem:[%s17496_s2 + $0x15c0] sm:$0xff]  ;;  %v8080_v4 = vld [vmem:[%s17496_s2 + $0x1738] sm:$0xff] }
 0x342   : > { %3186 = vmatmul.f32.gmra.mxu2 %v9909_v23  ;;  %3212 = vmatmul.f32.gmra.mxu3 %v9911_v24  ;;  %v7739_v23 = vld [vmem:[%s17496_s2 + $0x12c0] sm:$0xff]  ;;  %v7757_v15 = vld [vmem:[%s17496_s2 + $0x188] sm:$0xff]  ;;  %v2694_v11 = vpop.f32.mrf.mxu3 }
 0x343   : > { %3275 = vmatpush.msra.mxu2 %v7737_v9  ;;  %3301 = vmatpush.msra.mxu3 %v7738_v31  ;;  %v7740_v24 = vld [vmem:[%s17496_s2 + $0x16c0] sm:$0xff]  ;;  %v7758_v9 = vld [vmem:[%s17496_s2 + $0x588] sm:$0xff] }
 0x344   : > { %3550 = vmatmul.f32.gmra.mxu0 %v9735_v13  ;;  %3576 = vmatmul.f32.gmra.mxu1 %v9737_v14  ;;  %v7759_v31 = vld [vmem:[%s17496_s2 + $0x1180] sm:$0xff] }
 0x345   : > { %3639 = vmatpush.msrb.mxu0 %v7739_v23  ;;  %3665 = vmatpush.msrb.mxu1 %v7740_v24  ;;  %v7761_v23 = vld [vmem:[%s17496_s2 + $0x148] sm:$0xff]  ;;  %v2668_v54 = vpop.f32.mrf.mxu2  ;;  %v1996_v24 = vadd.f32 %v12123_v16, %v1606_v39  ;;  %v7771_v6 = vld [vmem:[%s17496_s2 + $0x10c0] sm:$0xff] }
 0x346   : > { %3276 = vmatpush.msra.mxu2 %v7741_v27  ;;  %3302 = vmatpush.msra.mxu3 %v7742_v5  ;;  %v7763_v27 = vld [vmem:[%s17496_s2 + $0x1140] sm:$0xff] }
 0x347   : > { %3640 = vmatpush.msrb.mxu0 %v7743_v1  ;;  %3666 = vmatpush.msrb.mxu1 %v7744_v2  ;;  %v12927_v5 = vpop.f32.mrf.mxu0  ;;  %v7764_v1 = vld [vmem:[%s17496_s2 + $0x1540] sm:$0xff]  ;;  %v7765_v2 = vld [vmem:[%s17496_s2 + $0x108] sm:$0xff]  ;;  %v2022_v56 = vadd.f32 %v12125_v33, %v1996_v24  ;;  %v7787_v24 = vld [vmem:[%s17496_s2 + $0x13d0] sm:$0xff] }
 0x348   : > { %3277 = vmatpush.msra.mxu2 %v7745_v62  ;;  %3303 = vmatpush.msra.mxu3 %v7746_v63  ;;  %17616 = vst [vmem:[#allocation82_spill] sm:$0xff] %v12927_v5  ;;  %v12933_v16 = vpop.f32.mrf.mxu1  ;;  %v2695_v62 = vadd.f32 %v2694_v11, %v2668_v54  ;;  %v7767_v63 = vld [vmem:[%s17496_s2 + $0x1100] sm:$0xff]  ;;  %v17619_v11 = vld [vmem:[#allocation8_spill] sm:$0xff] }
 0x349   : > { %3641 = vmatpush.msrb.mxu0 %v7747_v22  ;;  %3667 = vmatpush.msrb.mxu1 %v7748_v28  ;;  %17617 = vst [vmem:[#allocation83_spill] sm:$0xff] %v12933_v16  ;;  %v7769_v22 = vld [vmem:[%s17496_s2 + $0xc8] sm:$0xff]  ;;  %v7783_v39 = vld [vmem:[%s17496_s2 + $0x1000] sm:$0xff] }
 0x34a   : > { %2744 = vrot.lane.b32.xlu2 %v2704_v12, %s17594_s18  ;;  %3278 = vmatpush.msra.mxu2 %v7749_v25  ;;  %v7762_v12 = vld [vmem:[%s17496_s2 + $0x548] sm:$0xff]  ;;  %v7772_v25 = vld [vmem:[%s17496_s2 + $0x14c0] sm:$0xff]  ;;  %v2720_v33 = vadd.f32 %v2695_v62, %v2022_v56  ;;  %v7793_v62 = vld [vmem:[%s17496_s2 + $0x358] sm:$0xff] }
 0x34b   : > { %3304 = vmatpush.msra.mxu3 %v7750_v53  ;;  %3642 = vmatpush.msrb.mxu0 %v7751_v0  ;;  %v7770_v28 = vld [vmem:[%s17496_s2 + $0x4c8] sm:$0xff]  ;;  %v7796_v56 = vld [vmem:[%s17496_s2 + $0x1750] sm:$0xff] }
 0x34c   : > { %3668 = vmatpush.msrb.mxu1 %v7752_v3  ;;  %3189 = vmatmul.f32.gmra.mxu2 %v9965_v51  ;;  %v7755_v51 = vld [vmem:[%s17496_s2 + $0x11c0] sm:$0xff]  ;;  %v7773_v53 = vld [vmem:[%s17496_s2 + $0x88] sm:$0xff] }
 0x34d   : > { %3215 = vmatmul.f32.gmra.mxu3 %v9967_v52  ;;  %3279 = vmatpush.msra.mxu2 %v7753_v44  ;;  %v2712_v52 = vadd.f32 %v2692_v7, %v2019_v43  ;;  %v7774_v0 = vld [vmem:[%s17496_s2 + $0x488] sm:$0xff]  ;;  %v7775_v3 = vld [vmem:[%s17496_s2 + $0x1080] sm:$0xff] }
 0x34e   : > { %3305 = vmatpush.msra.mxu3 %v7754_v50  ;;  %3553 = vmatmul.f32.gmra.mxu0 %v9797_v35  ;;  %v7776_v7 = vld [vmem:[%s17496_s2 + $0x1480] sm:$0xff]  ;;  %v7777_v44 = vld [vmem:[%s17496_s2 + $0x48] sm:$0xff] }
 0x34f   : > { %3579 = vmatmul.f32.gmra.mxu1 %v9799_v36  ;;  %3643 = vmatpush.msrb.mxu0 %v7755_v51  ;;  %v7778_v43 = vld [vmem:[%s17496_s2 + $0x448] sm:$0xff]  ;;  %v7779_v50 = vld [vmem:[%s17496_s2 + $0x1040] sm:$0xff] }
 0x350   : > { %3669 = vmatpush.msrb.mxu1 %v7756_v47  ;;  %3280 = vmatpush.msra.mxu2 %v7757_v15  ;;  %v7780_v51 = vld [vmem:[%s17496_s2 + $0x1440] sm:$0xff]  ;;  %v12988_v47 = vpop.f32.mrf.mxu0  ;;  %v7782_v15 = vld [vmem:[%s17496_s2 + $0x408] sm:$0xff] }
 0x351   : > { %3306 = vmatpush.msra.mxu3 %v7758_v9  ;;  %3644 = vmatpush.msrb.mxu0 %v7759_v31  ;;  %v12996_v9 = vpop.f32.mrf.mxu1  ;;  %v7784_v31 = vld [vmem:[%s17496_s2 + $0x1400] sm:$0xff] }
 0x352   : > { %3670 = vmatpush.msrb.mxu1 %v7760_v46  ;;  %3281 = vmatpush.msra.mxu2 %v7761_v23  ;;  %v7785_v46 = vld [vmem:[%s17496_s2 + $0x3d8] sm:$0xff]  ;;  %v17618_v54 = vld [vmem:[#allocation7_spill] sm:$0xff] }
 0x353   : > { %3307 = vmatpush.msra.mxu3 %v7762_v12  ;;  %3645 = vmatpush.msrb.mxu0 %v7763_v27  ;;  %v7786_v23 = vld [vmem:[%s17496_s2 + $0x7d8] sm:$0xff]  ;;  %v7788_v12 = vld [vmem:[%s17496_s2 + $0x17d0] sm:$0xff] }
 0x354   : > { %3671 = vmatpush.msrb.mxu1 %v7764_v1  ;;  %2754 = vrot.lane.b32.xlu2 %v2712_v52, %s17594_s18  ;;  %v7781_v52 = vld [vmem:[%s17496_s2 + $0x8] sm:$0xff]  ;;  %v7789_v27 = vld [vmem:[%s17496_s2 + $0x398] sm:$0xff] }
 0x355   : > { %3282 = vmatpush.msra.mxu2 %v7765_v2  ;;  %3308 = vmatpush.msra.mxu3 %v7766_v32  ;;  %v7790_v1 = vld [vmem:[%s17496_s2 + $0x798] sm:$0xff]  ;;  %v7791_v2 = vld [vmem:[%s17496_s2 + $0x1390] sm:$0xff] }
 0x356   : > { %3646 = vmatpush.msrb.mxu0 %v7767_v63  ;;  %3672 = vmatpush.msrb.mxu1 %v7768_v20  ;;  %v7792_v32 = vld [vmem:[%s17496_s2 + $0x1790] sm:$0xff]  ;;  %v7794_v63 = vld [vmem:[%s17496_s2 + $0x758] sm:$0xff] }
 0x357   : > { %3283 = vmatpush.msra.mxu2 %v7769_v22  ;;  %3309 = vmatpush.msra.mxu3 %v7770_v28  ;;  %v7795_v20 = vld [vmem:[%s17496_s2 + $0x1350] sm:$0xff]  ;;  %v7797_v22 = vld [vmem:[%s17496_s2 + $0x318] sm:$0xff] }
 0x358   : > { %3647 = vmatpush.msrb.mxu0 %v7771_v6  ;;  %3673 = vmatpush.msrb.mxu1 %v7772_v25  ;;  %v13044_v28 = vpop.f32.mrf.mxu0  ;;  %v7798_v6 = vld [vmem:[%s17496_s2 + $0x718] sm:$0xff]  ;;  %v7799_v25 = vld [vmem:[%s17496_s2 + $0x1310] sm:$0xff] }
 0x359   : > { %3284 = vmatpush.msra.mxu2 %v7773_v53  ;;  %3310 = vmatpush.msra.mxu3 %v7774_v0  ;;  %v7800_v53 = vld [vmem:[%s17496_s2 + $0x1710] sm:$0xff]  ;;  %v7801_v0 = vld [vmem:[%s17496_s2 + $0x2d8] sm:$0xff] }
 0x35a   : > { %3648 = vmatpush.msrb.mxu0 %v7775_v3  ;;  %3674 = vmatpush.msrb.mxu1 %v7776_v7  ;;  %v7802_v3 = vld [vmem:[%s17496_s2 + $0x6d8] sm:$0xff] }
 0x35b   : > { %3285 = vmatpush.msra.mxu2 %v7777_v44  ;;  %3311 = vmatpush.msra.mxu3 %v7778_v43  ;;  %v17620_v7 = vld [vmem:[#allocation9_spill] sm:$0xff]  ;;  %v17621_v44 = vld [vmem:[#allocation10_spill] sm:$0xff] }
 0x35c   : > { %3649 = vmatpush.msrb.mxu0 %v7779_v50  ;;  %3675 = vmatpush.msrb.mxu1 %v7780_v51  ;;  %v7803_v43 = vld [vmem:[%s17496_s2 + $0x12d0] sm:$0xff]  ;;  %v7805_v51 = vld [vmem:[%s17496_s2 + $0x298] sm:$0xff] }
 0x35d   : > { %2764 = vrot.lane.b32.xlu1 %v2720_v33, %s17594_s18  ;;  %3286 = vmatpush.msra.mxu2 %v7781_v52  ;;  %v13052_v33 = vpop.f32.mrf.mxu1  ;;  %v7804_v50 = vld [vmem:[%s17496_s2 + $0x16d0] sm:$0xff]  ;;  %v7806_v52 = vld [vmem:[%s17496_s2 + $0x698] sm:$0xff] }
 0x35e   : > { %3312 = vmatpush.msra.mxu3 %v7782_v15  ;;  %3650 = vmatpush.msrb.mxu0 %v7783_v39  ;;  %v7807_v15 = vld [vmem:[%s17496_s2 + $0x1290] sm:$0xff] }
 0x35f   : > { %3676 = vmatpush.msrb.mxu1 %v7784_v31  ;;  %3287 = vmatmul.f32.vlgmr.msra.gmra.mxu2 %v9679_v57  ;;  %v7808_v39 = vld [vmem:[%s17496_s2 + $0x1690] sm:$0xff]  ;;  %v7809_v31 = vld [vmem:[%s17496_s2 + $0x258] sm:$0xff] }
 0x360   : > { %3313 = vmatmul.f32.vlgmr.msra.gmra.mxu3 %v9681_v58  ;;  %3375 = vmatpush.msrb.mxu2 %v7785_v46  ;;  %v13088_v46 = vpop.f32.mrf.mxu0 }
 0x361   : > { %3401 = vmatpush.msrb.mxu3 %v7786_v23  ;;  %3651 = vmatmul.f32.vlgmr.msrb.gmra.mxu0 %v17618_v54  ;;  %v7810_v23 = vld [vmem:[%s17496_s2 + $0x658] sm:$0xff] }
 0x362   : > { %3677 = vmatmul.f32.vlgmr.msrb.gmra.mxu1 %v17619_v11  ;;  %3739 = vmatpush.msra.mxu0 %v7787_v24  ;;  %v7811_v24 = vld [vmem:[%s17496_s2 + $0x1250] sm:$0xff] }
 0x363   : > { %3765 = vmatpush.msra.mxu1 %v7788_v12  ;;  %3376 = vmatpush.msrb.mxu2 %v7789_v27  ;;  %v7812_v27 = vld [vmem:[%s17496_s2 + $0x1650] sm:$0xff] }
 0x364   : > { %3402 = vmatpush.msrb.mxu3 %v7790_v1  ;;  %3740 = vmatpush.msra.mxu0 %v7791_v2  ;;  %v7813_v1 = vld [vmem:[%s17496_s2 + $0x218] sm:$0xff] }
 0x365   : > { %3766 = vmatpush.msra.mxu1 %v7792_v32  ;;  %3377 = vmatpush.msrb.mxu2 %v7793_v62  ;;  %v13096_v12 = vpop.f32.mrf.mxu1  ;;  %v7814_v2 = vld [vmem:[%s17496_s2 + $0x618] sm:$0xff]  ;;  %v7815_v32 = vld [vmem:[%s17496_s2 + $0x1210] sm:$0xff] }
 0x366   : > { %3403 = vmatpush.msrb.mxu3 %v7794_v63  ;;  %3741 = vmatpush.msra.mxu0 %v7795_v20  ;;  %v7816_v62 = vld [vmem:[%s17496_s2 + $0x1610] sm:$0xff]  ;;  %v7817_v63 = vld [vmem:[%s17496_s2 + $0x1d8] sm:$0xff] }
 0x367   : > { %3767 = vmatpush.msra.mxu1 %v7796_v56  ;;  %3378 = vmatpush.msrb.mxu2 %v7797_v22  ;;  %v7818_v20 = vld [vmem:[%s17496_s2 + $0x5d8] sm:$0xff]  ;;  %v17622_v56 = vld [vmem:[#allocation11_spill] sm:$0xff]  ;;  %v17623_v22 = vld [vmem:[#allocation12_spill] sm:$0xff] }
 0x368   : > { %3404 = vmatpush.msrb.mxu3 %v7798_v6  ;;  %3742 = vmatpush.msra.mxu0 %v7799_v25  ;;  %v7819_v6 = vld [vmem:[%s17496_s2 + $0x11d0] sm:$0xff] }
 0x369   : > { %3768 = vmatpush.msra.mxu1 %v7800_v53  ;;  %3290 = vmatmul.f32.gmra.mxu2 %v9735_v13  ;;  %v7820_v25 = vld [vmem:[%s17496_s2 + $0x15d0] sm:$0xff]  ;;  %v7821_v53 = vld [vmem:[%s17496_s2 + $0x198] sm:$0xff] }
 0x36a   : > { %3316 = vmatmul.f32.gmra.mxu3 %v9737_v14  ;;  %3379 = vmatpush.msrb.mxu2 %v7801_v0  ;;  %v7822_v0 = vld [vmem:[%s17496_s2 + $0x598] sm:$0xff] }
 0x36b   : > { %3405 = vmatpush.msrb.mxu3 %v7802_v3  ;;  %3654 = vmatmul.f32.gmra.mxu0 %v17620_v7  ;;  %v7823_v3 = vld [vmem:[%s17496_s2 + $0x1190] sm:$0xff] }
 0x36c   : > { %3680 = vmatmul.f32.gmra.mxu1 %v17621_v44  ;;  %3743 = vmatpush.msra.mxu0 %v7803_v43  ;;  %v7824_v43 = vld [vmem:[%s17496_s2 + $0x1590] sm:$0xff] }
 0x36d   : > { %3769 = vmatpush.msra.mxu1 %v7804_v50  ;;  %3380 = vmatpush.msrb.mxu2 %v7805_v51  ;;  %v7825_v50 = vld [vmem:[%s17496_s2 + $0x158] sm:$0xff]  ;;  %v13144_v51 = vpop.f32.mrf.mxu0 }
 0x36e   : > { %3406 = vmatpush.msrb.mxu3 %v7806_v52  ;;  %3744 = vmatpush.msra.mxu0 %v7807_v15  ;;  %v7826_v52 = vld [vmem:[%s17496_s2 + $0x558] sm:$0xff]  ;;  %v7827_v15 = vld [vmem:[%s17496_s2 + $0x1150] sm:$0xff] }
 0x36f   : > { %3770 = vmatpush.msra.mxu1 %v7808_v39  ;;  %3381 = vmatpush.msrb.mxu2 %v7809_v31  ;;  %v13152_v39 = vpop.f32.mrf.mxu1  ;;  %v7828_v31 = vld [vmem:[%s17496_s2 + $0x1550] sm:$0xff] }
 0x370   : > { %3407 = vmatpush.msrb.mxu3 %v7810_v23  ;;  %3745 = vmatpush.msra.mxu0 %v7811_v24  ;;  %v7829_v23 = vld [vmem:[%s17496_s2 + $0x118] sm:$0xff] }
 0x371   : > { %3771 = vmatpush.msra.mxu1 %v7812_v27  ;;  %3382 = vmatpush.msrb.mxu2 %v7813_v1  ;;  %v7830_v24 = vld [vmem:[%s17496_s2 + $0x518] sm:$0xff]  ;;  %v7831_v27 = vld [vmem:[%s17496_s2 + $0x1110] sm:$0xff] }
 0x372   : > { %3408 = vmatpush.msrb.mxu3 %v7814_v2  ;;  %3746 = vmatpush.msra.mxu0 %v7815_v32  ;;  %v7832_v1 = vld [vmem:[%s17496_s2 + $0x1510] sm:$0xff]  ;;  %v7833_v2 = vld [vmem:[%s17496_s2 + $0xd8] sm:$0xff] }
 0x373   : > { %3772 = vmatpush.msra.mxu1 %v7816_v62  ;;  %3293 = vmatmul.f32.gmra.mxu2 %v9797_v35  ;;  %v7834_v32 = vld [vmem:[%s17496_s2 + $0x4d8] sm:$0xff]  ;;  %v7835_v62 = vld [vmem:[%s17496_s2 + $0x10d0] sm:$0xff] }
 0x374   : > { %3319 = vmatmul.f32.gmra.mxu3 %v9799_v36  ;;  %3383 = vmatpush.msrb.mxu2 %v7817_v63  ;;  %v7836_v63 = vld [vmem:[%s17496_s2 + $0x14d0] sm:$0xff] }
 0x375   : > { %3409 = vmatpush.msrb.mxu3 %v7818_v20  ;;  %3657 = vmatmul.f32.gmra.mxu0 %v17622_v56  ;;  %v7837_v20 = vld [vmem:[%s17496_s2 + $0x98] sm:$0xff] }
 0x376   : > { %3683 = vmatmul.f32.gmra.mxu1 %v17623_v22  ;;  %3747 = vmatpush.msra.mxu0 %v7819_v6  ;;  %v7838_v6 = vld [vmem:[%s17496_s2 + $0x498] sm:$0xff] }
 0x377   : > { %3773 = vmatpush.msra.mxu1 %v7820_v25  ;;  %3384 = vmatpush.msrb.mxu2 %v7821_v53  ;;  %v7839_v25 = vld [vmem:[%s17496_s2 + $0x1090] sm:$0xff] }
 0x378   : > { %3410 = vmatpush.msrb.mxu3 %v7822_v0  ;;  %3748 = vmatpush.msra.mxu0 %v7823_v3  ;;  %v7840_v53 = vld [vmem:[%s17496_s2 + $0x1490] sm:$0xff]  ;;  %v7841_v0 = vld [vmem:[%s17496_s2 + $0x58] sm:$0xff] }
 0x379   : > { %3774 = vmatpush.msra.mxu1 %v7824_v43  ;;  %3385 = vmatpush.msrb.mxu2 %v7825_v50  ;;  %v7842_v3 = vld [vmem:[%s17496_s2 + $0x458] sm:$0xff]  ;;  %v7843_v43 = vld [vmem:[%s17496_s2 + $0x1050] sm:$0xff] }
 0x37a   : > { %3411 = vmatpush.msrb.mxu3 %v7826_v52  ;;  %3749 = vmatpush.msra.mxu0 %v7827_v15  ;;  %v7844_v50 = vld [vmem:[%s17496_s2 + $0x1450] sm:$0xff]  ;;  %v7845_v52 = vld [vmem:[%s17496_s2 + $0x18] sm:$0xff]  ;;  %v13208_v15 = vpop.f32.mrf.mxu0 }
 0x37b   : > { %3775 = vmatpush.msra.mxu1 %v7828_v31  ;;  %3386 = vmatpush.msrb.mxu2 %v7829_v23  ;;  %v7846_v31 = vld [vmem:[%s17496_s2 + $0x418] sm:$0xff]  ;;  %v7847_v23 = vld [vmem:[%s17496_s2 + $0x1010] sm:$0xff] }
 0x37c   : > { %3412 = vmatpush.msrb.mxu3 %v7830_v24  ;;  %3750 = vmatpush.msra.mxu0 %v7831_v27  ;;  %v13216_v24 = vpop.f32.mrf.mxu1  ;;  %v7848_v27 = vld [vmem:[%s17496_s2 + $0x1410] sm:$0xff] }
 0x37d   : > { %3776 = vmatpush.msra.mxu1 %v7832_v1  ;;  %3387 = vmatpush.msrb.mxu2 %v7833_v2  ;;  %v7849_v1 = vld [vmem:[%s17496_s2 + $0x3e8] sm:$0xff] }
 0x37e   : > { %3413 = vmatpush.msrb.mxu3 %v7834_v32  ;;  %3751 = vmatpush.msra.mxu0 %v7835_v62  ;;  %v7850_v2 = vld [vmem:[%s17496_s2 + $0x7e8] sm:$0xff]  ;;  %v7851_v32 = vld [vmem:[%s17496_s2 + $0x13e0] sm:$0xff] }
 0x37f   : > { %3777 = vmatpush.msra.mxu1 %v7836_v63  ;;  %3388 = vmatpush.msrb.mxu2 %v7837_v20  ;;  %v7852_v62 = vld [vmem:[%s17496_s2 + $0x17e0] sm:$0xff]  ;;  %v7853_v63 = vld [vmem:[%s17496_s2 + $0x3a8] sm:$0xff] }
 0x380   : > { %3414 = vmatpush.msrb.mxu3 %v7838_v6  ;;  %3752 = vmatpush.msra.mxu0 %v7839_v25  ;;  %v7854_v20 = vld [vmem:[%s17496_s2 + $0x7a8] sm:$0xff]  ;;  %v7855_v6 = vld [vmem:[%s17496_s2 + $0x13a0] sm:$0xff] }
 0x381   : > { %3778 = vmatpush.msra.mxu1 %v7840_v53  ;;  %3389 = vmatpush.msrb.mxu2 %v7841_v0  ;;  %v7856_v25 = vld [vmem:[%s17496_s2 + $0x17a0] sm:$0xff]  ;;  %v7857_v53 = vld [vmem:[%s17496_s2 + $0x368] sm:$0xff] }
 0x382   : > { %3415 = vmatpush.msrb.mxu3 %v7842_v3  ;;  %3753 = vmatpush.msra.mxu0 %v7843_v43  ;;  %v13252_v0 = vpop.f32.mrf.mxu0  ;;  %v7858_v3 = vld [vmem:[%s17496_s2 + $0x768] sm:$0xff]  ;;  %v7859_v43 = vld [vmem:[%s17496_s2 + $0x1360] sm:$0xff] }
 0x383   : > { %3779 = vmatpush.msra.mxu1 %v7844_v50  ;;  %3390 = vmatpush.msrb.mxu2 %v7845_v52  ;;  %17624 = vst [vmem:[#allocation7_spill] sm:$0xff] %v13252_v0  ;;  %v7860_v52 = vld [vmem:[%s17496_s2 + $0x1760] sm:$0xff] }
 0x384   : > { %3416 = vmatpush.msrb.mxu3 %v7846_v31  ;;  %3754 = vmatpush.msra.mxu0 %v7847_v23  ;;  %v13260_v50 = vpop.f32.mrf.mxu1  ;;  %v7861_v31 = vld [vmem:[%s17496_s2 + $0x328] sm:$0xff] }
 0x385   : > { %3780 = vmatpush.msra.mxu1 %v7848_v27  ;;  %3391 = vmatmul.f32.vlgmr.msrb.gmra.mxu2 %v9679_v57  ;;  %17625 = vst [vmem:[#allocation8_spill] sm:$0xff] %v13260_v50  ;;  %v7862_v23 = vld [vmem:[%s17496_s2 + $0x728] sm:$0xff]  ;;  %v7863_v27 = vld [vmem:[%s17496_s2 + $0x1320] sm:$0xff]  ;;  %v7928_v50 = vld [vmem:[%s17496_s2 + $0x1730] sm:$0xff] }
 0x386   : > { %3417 = vmatmul.f32.vlgmr.msrb.gmra.mxu3 %v9681_v58  ;;  %3479 = vmatpush.msra.mxu2 %v7849_v1  ;;  %v7864_v1 = vld [vmem:[%s17496_s2 + $0x1720] sm:$0xff] }
 0x387   : > { %3505 = vmatpush.msra.mxu3 %v7850_v2  ;;  %3755 = vmatmul.f32.vlgmr.msra.gmra.mxu0 %v17618_v54  ;;  %v7865_v2 = vld [vmem:[%s17496_s2 + $0x2e8] sm:$0xff] }
 0x388   : > { %3781 = vmatmul.f32.vlgmr.msra.gmra.mxu1 %v17619_v11  ;;  %3843 = vmatpush.msrb.mxu0 %v7851_v32  ;;  %v7866_v32 = vld [vmem:[%s17496_s2 + $0x6e8] sm:$0xff] }
 0x389   : > { %3869 = vmatpush.msrb.mxu1 %v7852_v62  ;;  %3480 = vmatpush.msra.mxu2 %v7853_v63  ;;  %v7867_v62 = vld [vmem:[%s17496_s2 + $0x12e0] sm:$0xff] }
 0x38a   : > { %3506 = vmatpush.msra.mxu3 %v7854_v20  ;;  %3844 = vmatpush.msrb.mxu0 %v7855_v6  ;;  %v7868_v63 = vld [vmem:[%s17496_s2 + $0x16e0] sm:$0xff]  ;;  %v7869_v20 = vld [vmem:[%s17496_s2 + $0x2a8] sm:$0xff] }
 0x38b   : > { %3870 = vmatpush.msrb.mxu1 %v7856_v25  ;;  %3481 = vmatpush.msra.mxu2 %v7857_v53  ;;  %v7870_v6 = vld [vmem:[%s17496_s2 + $0x6a8] sm:$0xff]  ;;  %v7871_v25 = vld [vmem:[%s17496_s2 + $0x12a0] sm:$0xff] }
 0x38c   : > { %3507 = vmatpush.msra.mxu3 %v7858_v3  ;;  %3845 = vmatpush.msrb.mxu0 %v7859_v43  ;;  %v7872_v53 = vld [vmem:[%s17496_s2 + $0x16a0] sm:$0xff]  ;;  %v7873_v3 = vld [vmem:[%s17496_s2 + $0x268] sm:$0xff]  ;;  %v13308_v43 = vpop.f32.mrf.mxu0 }
 0x38d   : > { %3871 = vmatpush.msrb.mxu1 %v7860_v52  ;;  %3482 = vmatpush.msra.mxu2 %v7861_v31  ;;  %17626 = vst [vmem:[#allocation9_spill] sm:$0xff] %v13308_v43  ;;  %v7874_v52 = vld [vmem:[%s17496_s2 + $0x668] sm:$0xff]  ;;  %v7875_v31 = vld [vmem:[%s17496_s2 + $0x1260] sm:$0xff]  ;;  %v7950_v43 = vld [vmem:[%s17496_s2 + $0x5b8] sm:$0xff] }
 0x38e   : > { %3508 = vmatpush.msra.mxu3 %v7862_v23  ;;  %3846 = vmatpush.msrb.mxu0 %v7863_v27  ;;  %v13316_v23 = vpop.f32.mrf.mxu1  ;;  %v7876_v27 = vld [vmem:[%s17496_s2 + $0x1660] sm:$0xff] }
 0x38f   : > { %3872 = vmatpush.msrb.mxu1 %v7864_v1  ;;  %3394 = vmatmul.f32.gmra.mxu2 %v9735_v13  ;;  %17627 = vst [vmem:[#allocation10_spill] sm:$0xff] %v13316_v23  ;;  %v7877_v1 = vld [vmem:[%s17496_s2 + $0x228] sm:$0xff] }
 0x390   : > { %3420 = vmatmul.f32.gmra.mxu3 %v9737_v14  ;;  %3483 = vmatpush.msra.mxu2 %v7865_v2  ;;  %v7878_v2 = vld [vmem:[%s17496_s2 + $0x628] sm:$0xff] }
 0x391   : > { %3509 = vmatpush.msra.mxu3 %v7866_v32  ;;  %3758 = vmatmul.f32.gmra.mxu0 %v17620_v7  ;;  %v7879_v32 = vld [vmem:[%s17496_s2 + $0x1220] sm:$0xff] }
 0x392   : > { %3784 = vmatmul.f32.gmra.mxu1 %v17621_v44  ;;  %3847 = vmatpush.msrb.mxu0 %v7867_v62  ;;  %v7880_v62 = vld [vmem:[%s17496_s2 + $0x1620] sm:$0xff] }
 0x393   : > { %3873 = vmatpush.msrb.mxu1 %v7868_v63  ;;  %3484 = vmatpush.msra.mxu2 %v7869_v20  ;;  %v7881_v63 = vld [vmem:[%s17496_s2 + $0x1e8] sm:$0xff] }
 0x394   : > { %3510 = vmatpush.msra.mxu3 %v7870_v6  ;;  %3848 = vmatpush.msrb.mxu0 %v7871_v25  ;;  %v7882_v20 = vld [vmem:[%s17496_s2 + $0x5e8] sm:$0xff]  ;;  %v13342_v6 = vpop.f32.mrf.mxu2  ;;  %v7883_v25 = vld [vmem:[%s17496_s2 + $0x11e0] sm:$0xff] }
 0x395   : > { %3874 = vmatpush.msrb.mxu1 %v7872_v53  ;;  %3485 = vmatpush.msra.mxu2 %v7873_v3  ;;  %17628 = vst [vmem:[#allocation11_spill] sm:$0xff] %v13342_v6  ;;  %v13348_v53 = vpop.f32.mrf.mxu3  ;;  %v7884_v3 = vld [vmem:[%s17496_s2 + $0x15e0] sm:$0xff] }
 0x396   : > { %3511 = vmatpush.msra.mxu3 %v7874_v52  ;;  %3849 = vmatpush.msrb.mxu0 %v7875_v31  ;;  %17629 = vst [vmem:[#allocation12_spill] sm:$0xff] %v13348_v53  ;;  %v7885_v52 = vld [vmem:[%s17496_s2 + $0x1a8] sm:$0xff] }
 0x397   : > { %3875 = vmatpush.msrb.mxu1 %v7876_v27  ;;  %3486 = vmatpush.msra.mxu2 %v7877_v1  ;;  %v7886_v31 = vld [vmem:[%s17496_s2 + $0x5a8] sm:$0xff]  ;;  %v7887_v27 = vld [vmem:[%s17496_s2 + $0x11a0] sm:$0xff] }
 0x398   : > { %3512 = vmatpush.msra.mxu3 %v7878_v2  ;;  %3850 = vmatpush.msrb.mxu0 %v7879_v32  ;;  %v7888_v1 = vld [vmem:[%s17496_s2 + $0x15a0] sm:$0xff]  ;;  %v7889_v2 = vld [vmem:[%s17496_s2 + $0x168] sm:$0xff]  ;;  %v13368_v32 = vpop.f32.mrf.mxu0 }
 0x399   : > { %3876 = vmatpush.msrb.mxu1 %v7880_v62  ;;  %3397 = vmatmul.f32.gmra.mxu2 %v9797_v35  ;;  %17630 = vst [vmem:[#allocation84_spill] sm:$0xff] %v13368_v32  ;;  %v7890_v62 = vld [vmem:[%s17496_s2 + $0x568] sm:$0xff]  ;;  %v8012_v32 = vld [vmem:[%s17496_s2 + $0x1798] sm:$0xff] }
 0x39a   : > { %3423 = vmatmul.f32.gmra.mxu3 %v9799_v36  ;;  %3487 = vmatpush.msra.mxu2 %v7881_v63  ;;  %v7891_v63 = vld [vmem:[%s17496_s2 + $0x1160] sm:$0xff] }
 0x39b   : > { %3513 = vmatpush.msra.mxu3 %v7882_v20  ;;  %3761 = vmatmul.f32.gmra.mxu0 %v17622_v56  ;;  %v13376_v20 = vpop.f32.mrf.mxu1 }
 0x39c   : > { %3787 = vmatmul.f32.gmra.mxu1 %v17623_v22  ;;  %3851 = vmatpush.msrb.mxu0 %v7883_v25  ;;  %17631 = vst [vmem:[#allocation85_spill] sm:$0xff] %v13376_v20  ;;  %v7892_v25 = vld [vmem:[%s17496_s2 + $0x1560] sm:$0xff] }
 0x39d   : > { %3877 = vmatpush.msrb.mxu1 %v7884_v3  ;;  %3488 = vmatpush.msra.mxu2 %v7885_v52  ;;  %v7893_v3 = vld [vmem:[%s17496_s2 + $0x128] sm:$0xff] }
 0x39e   : > { %3514 = vmatpush.msra.mxu3 %v7886_v31  ;;  %3852 = vmatpush.msrb.mxu0 %v7887_v27  ;;  %v7894_v52 = vld [vmem:[%s17496_s2 + $0x528] sm:$0xff]  ;;  %v7895_v31 = vld [vmem:[%s17496_s2 + $0x1120] sm:$0xff] }
 0x39f   : > { %3878 = vmatpush.msrb.mxu1 %v7888_v1  ;;  %3489 = vmatpush.msra.mxu2 %v7889_v2  ;;  %v7896_v27 = vld [vmem:[%s17496_s2 + $0x1520] sm:$0xff]  ;;  %v7897_v1 = vld [vmem:[%s17496_s2 + $0xe8] sm:$0xff] }
 0x3a0   : > { %3515 = vmatpush.msra.mxu3 %v7890_v62  ;;  %3853 = vmatpush.msrb.mxu0 %v7891_v63  ;;  %v7898_v2 = vld [vmem:[%s17496_s2 + $0x4e8] sm:$0xff]  ;;  %v7899_v62 = vld [vmem:[%s17496_s2 + $0x10e0] sm:$0xff] }
 0x3a1   : > { %3879 = vmatpush.msrb.mxu1 %v7892_v25  ;;  %3490 = vmatpush.msra.mxu2 %v7893_v3  ;;  %v7900_v63 = vld [vmem:[%s17496_s2 + $0x14e0] sm:$0xff]  ;;  %v7901_v25 = vld [vmem:[%s17496_s2 + $0xa8] sm:$0xff]  ;;  %v13408_v3 = vpop.f32.mrf.mxu2 }
 0x3a2   : > { %3516 = vmatpush.msra.mxu3 %v7894_v52  ;;  %3854 = vmatpush.msrb.mxu0 %v7895_v31  ;;  %17632 = vst [vmem:[#allocation86_spill] sm:$0xff] %v13408_v3  ;;  %v7902_v52 = vld [vmem:[%s17496_s2 + $0x4a8] sm:$0xff]  ;;  %v7903_v31 = vld [vmem:[%s17496_s2 + $0x10a0] sm:$0xff]  ;;  %v7936_v3 = vld [vmem:[%s17496_s2 + $0x16b0] sm:$0xff] }
 0x3a3   : > { %3880 = vmatpush.msrb.mxu1 %v7896_v27  ;;  %3491 = vmatpush.msra.mxu2 %v7897_v1  ;;  %v13416_v27 = vpop.f32.mrf.mxu3  ;;  %v7904_v1 = vld [vmem:[%s17496_s2 + $0x14a0] sm:$0xff] }
 0x3a4   : > { %3517 = vmatpush.msra.mxu3 %v7898_v2  ;;  %3855 = vmatpush.msrb.mxu0 %v7899_v62  ;;  %17633 = vst [vmem:[#allocation87_spill] sm:$0xff] %v13416_v27  ;;  %v7905_v2 = vld [vmem:[%s17496_s2 + $0x68] sm:$0xff]  ;;  %v13424_v62 = vpop.f32.mrf.mxu0  ;;  %v7934_v27 = vld [vmem:[%s17496_s2 + $0x6b8] sm:$0xff] }
 0x3a5   : > { %3881 = vmatpush.msrb.mxu1 %v7900_v63  ;;  %3492 = vmatpush.msra.mxu2 %v7901_v25  ;;  %17634 = vst [vmem:[#allocation88_spill] sm:$0xff] %v13424_v62  ;;  %v7906_v63 = vld [vmem:[%s17496_s2 + $0x468] sm:$0xff]  ;;  %v7907_v25 = vld [vmem:[%s17496_s2 + $0x1060] sm:$0xff] }
 0x3a6   : > { %3518 = vmatpush.msra.mxu3 %v7902_v52  ;;  %3856 = vmatpush.msrb.mxu0 %v7903_v31  ;;  %v13432_v52 = vpop.f32.mrf.mxu1  ;;  %v7908_v31 = vld [vmem:[%s17496_s2 + $0x1460] sm:$0xff] }
 0x3a7   : > { %3882 = vmatpush.msrb.mxu1 %v7904_v1  ;;  %3493 = vmatpush.msra.mxu2 %v7905_v2  ;;  %17635 = vst [vmem:[#allocation89_spill] sm:$0xff] %v13432_v52  ;;  %v7909_v1 = vld [vmem:[%s17496_s2 + $0x28] sm:$0xff]  ;;  %v8021_v52 = vld [vmem:[%s17496_s2 + $0x1258] sm:$0xff] }
 0x3a8   : > { %3519 = vmatpush.msra.mxu3 %v7906_v63  ;;  %3857 = vmatpush.msrb.mxu0 %v7907_v25  ;;  %v7910_v2 = vld [vmem:[%s17496_s2 + $0x428] sm:$0xff]  ;;  %v7911_v63 = vld [vmem:[%s17496_s2 + $0x1020] sm:$0xff] }
 0x3a9   : > { %3883 = vmatpush.msrb.mxu1 %v7908_v31  ;;  %3494 = vmatpush.msra.mxu2 %v7909_v1  ;;  %v7912_v25 = vld [vmem:[%s17496_s2 + $0x1420] sm:$0xff]  ;;  %v7913_v31 = vld [vmem:[%s17496_s2 + $0x3f8] sm:$0xff] }
 0x3aa   : > { %3520 = vmatpush.msra.mxu3 %v7910_v2  ;;  %3858 = vmatpush.msrb.mxu0 %v7911_v63  ;;  %v7914_v1 = vld [vmem:[%s17496_s2 + $0x7f8] sm:$0xff]  ;;  %v7915_v2 = vld [vmem:[%s17496_s2 + $0x13f0] sm:$0xff] }
 0x3ab   : > { %3884 = vmatpush.msrb.mxu1 %v7912_v25  ;;  %3495 = vmatmul.f32.vlgmr.msra.gmra.mxu2 %v9679_v57  ;;  %v7916_v63 = vld [vmem:[%s17496_s2 + $0x17f0] sm:$0xff]  ;;  %v7917_v25 = vld [vmem:[%s17496_s2 + $0x3b8] sm:$0xff]  ;;  %v13476_v48 = vpop.f32.mrf.mxu3 }
 0x3ac   : > { %3521 = vmatmul.f32.vlgmr.msra.gmra.mxu3 %v9681_v58  ;;  %3583 = vmatpush.msrb.mxu2 %v7913_v31  ;;  %v13468_v31 = vpop.f32.mrf.mxu2  ;;  %17637 = vst [vmem:[#allocation91_spill] sm:$0xff] %v13476_v48  ;;  %v13484_v53 = vpop.f32.mrf.mxu0  ;;  %v7944_v48 = vld [vmem:[%s17496_s2 + $0x1630] sm:$0xff] }
 0x3ad   : > { %3609 = vmatpush.msrb.mxu3 %v7914_v1  ;;  %3859 = vmatmul.f32.vlgmr.msrb.gmra.mxu0 %v17618_v54  ;;  %17636 = vst [vmem:[#allocation90_spill] sm:$0xff] %v13468_v31  ;;  %v7918_v1 = vld [vmem:[%s17496_s2 + $0x7b8] sm:$0xff] }
 0x3ae   : > { %3885 = vmatmul.f32.vlgmr.msrb.gmra.mxu1 %v17619_v11  ;;  %3947 = vmatpush.msra.mxu0 %v7915_v2  ;;  %v7919_v2 = vld [vmem:[%s17496_s2 + $0x13b0] sm:$0xff]  ;;  %17638 = vst [vmem:[#allocation92_spill] sm:$0xff] %v13484_v53  ;;  %v13492_v6 = vpop.f32.mrf.mxu1  ;;  %v8077_v53 = vld [vmem:[%s17496_s2 + $0x1378] sm:$0xff] }
 0x3af   : > { %3973 = vmatpush.msra.mxu1 %v7916_v63  ;;  %3584 = vmatpush.msrb.mxu2 %v7917_v25  ;;  %v7920_v63 = vld [vmem:[%s17496_s2 + $0x17b0] sm:$0xff]  ;;  %v7921_v25 = vld [vmem:[%s17496_s2 + $0x378] sm:$0xff]  ;;  %17639 = vst [vmem:[#allocation93_spill] sm:$0xff] %v13492_v6 }
 0x3b0   : > { %3610 = vmatpush.msrb.mxu3 %v7918_v1  ;;  %3948 = vmatpush.msra.mxu0 %v7919_v2  ;;  %v7922_v1 = vld [vmem:[%s17496_s2 + $0x778] sm:$0xff]  ;;  %v7923_v2 = vld [vmem:[%s17496_s2 + $0x1370] sm:$0xff] }
 0x3b1   : > { %3974 = vmatpush.msra.mxu1 %v7920_v63  ;;  %3585 = vmatpush.msrb.mxu2 %v7921_v25  ;;  %v7924_v63 = vld [vmem:[%s17496_s2 + $0x1770] sm:$0xff]  ;;  %v7925_v25 = vld [vmem:[%s17496_s2 + $0x338] sm:$0xff] }
 0x3b2   : > { %3611 = vmatpush.msrb.mxu3 %v7922_v1  ;;  %3949 = vmatpush.msra.mxu0 %v7923_v2  ;;  %v7926_v1 = vld [vmem:[%s17496_s2 + $0x738] sm:$0xff]  ;;  %v7927_v2 = vld [vmem:[%s17496_s2 + $0x1330] sm:$0xff] }
 0x3b3   : > { %3975 = vmatpush.msra.mxu1 %v7924_v63  ;;  %3586 = vmatpush.msrb.mxu2 %v7925_v25  ;;  %v7929_v63 = vld [vmem:[%s17496_s2 + $0x2f8] sm:$0xff] }
 0x3b4   : > { %3612 = vmatpush.msrb.mxu3 %v7926_v1  ;;  %3950 = vmatpush.msra.mxu0 %v7927_v2  ;;  %v7930_v25 = vld [vmem:[%s17496_s2 + $0x6f8] sm:$0xff]  ;;  %v13518_v1 = vpop.f32.mrf.mxu2  ;;  %v13524_v2 = vpop.f32.mrf.mxu3 }
 0x3b5   : > { %3976 = vmatpush.msra.mxu1 %v7928_v50  ;;  %3498 = vmatmul.f32.gmra.mxu2 %v9735_v13  ;;  %v7931_v50 = vld [vmem:[%s17496_s2 + $0x12f0] sm:$0xff] }
 0x3b6   : > { %3524 = vmatmul.f32.gmra.mxu3 %v9737_v14  ;;  %3587 = vmatpush.msrb.mxu2 %v7929_v63  ;;  %v7932_v63 = vld [vmem:[%s17496_s2 + $0x16f0] sm:$0xff]  ;;  %v13552_v23 = vpop.f32.mrf.mxu1 }
 0x3b7   : > { %3613 = vmatpush.msrb.mxu3 %v7930_v25  ;;  %3862 = vmatmul.f32.gmra.mxu0 %v17620_v7  ;;  %v7933_v25 = vld [vmem:[%s17496_s2 + $0x2b8] sm:$0xff]  ;;  %17641 = vst [vmem:[#allocation95_spill] sm:$0xff] %v13552_v23 }
 0x3b8   : > { %3888 = vmatmul.f32.gmra.mxu1 %v17621_v44  ;;  %3951 = vmatpush.msra.mxu0 %v7931_v50  ;;  %v7935_v50 = vld [vmem:[%s17496_s2 + $0x12b0] sm:$0xff] }
 0x3b9   : > { %3977 = vmatpush.msra.mxu1 %v7932_v63  ;;  %3588 = vmatpush.msrb.mxu2 %v7933_v25  ;;  %v7937_v63 = vld [vmem:[%s17496_s2 + $0x278] sm:$0xff]  ;;  %v13544_v25 = vpop.f32.mrf.mxu0 }
 0x3ba   : > { %3614 = vmatpush.msrb.mxu3 %v7934_v27  ;;  %3952 = vmatpush.msra.mxu0 %v7935_v50  ;;  %17640 = vst [vmem:[#allocation94_spill] sm:$0xff] %v13544_v25  ;;  %v7938_v27 = vld [vmem:[%s17496_s2 + $0x678] sm:$0xff]  ;;  %v7939_v50 = vld [vmem:[%s17496_s2 + $0x1270] sm:$0xff] }
 0x3bb   : > { %3978 = vmatpush.msra.mxu1 %v7936_v3  ;;  %3589 = vmatpush.msrb.mxu2 %v7937_v63  ;;  %v7940_v3 = vld [vmem:[%s17496_s2 + $0x1670] sm:$0xff]  ;;  %v7941_v63 = vld [vmem:[%s17496_s2 + $0x238] sm:$0xff] }
 0x3bc   : > { %3615 = vmatpush.msrb.mxu3 %v7938_v27  ;;  %3953 = vmatpush.msra.mxu0 %v7939_v50  ;;  %v7942_v27 = vld [vmem:[%s17496_s2 + $0x638] sm:$0xff]  ;;  %v7943_v50 = vld [vmem:[%s17496_s2 + $0x1230] sm:$0xff] }
 0x3bd   : > { %3979 = vmatpush.msra.mxu1 %v7940_v3  ;;  %3590 = vmatpush.msrb.mxu2 %v7941_v63  ;;  %v7945_v3 = vld [vmem:[%s17496_s2 + $0x1f8] sm:$0xff] }
 0x3be   : > { %3616 = vmatpush.msrb.mxu3 %v7942_v27  ;;  %3954 = vmatpush.msra.mxu0 %v7943_v50  ;;  %v7946_v63 = vld [vmem:[%s17496_s2 + $0x5f8] sm:$0xff]  ;;  %v13578_v27 = vpop.f32.mrf.mxu2  ;;  %v13584_v50 = vpop.f32.mrf.mxu3 }
 0x3bf   : > { %3980 = vmatpush.msra.mxu1 %v7944_v48  ;;  %3501 = vmatmul.f32.gmra.mxu2 %v9797_v35  ;;  %v7947_v48 = vld [vmem:[%s17496_s2 + $0x11f0] sm:$0xff]  ;;  %17642 = vst [vmem:[#allocation96_spill] sm:$0xff] %v13584_v50  ;;  %v13600_v0 = vpop.f32.mrf.mxu1 }
 0x3c0   : > { %3527 = vmatmul.f32.gmra.mxu3 %v9799_v36  ;;  %3591 = vmatpush.msrb.mxu2 %v7945_v3  ;;  %v7948_v3 = vld [vmem:[%s17496_s2 + $0x15f0] sm:$0xff]  ;;  %17644 = vst [vmem:[#allocation98_spill] sm:$0xff] %v13600_v0 }
 0x3c1   : > { %3617 = vmatpush.msrb.mxu3 %v7946_v63  ;;  %3865 = vmatmul.f32.gmra.mxu0 %v17622_v56  ;;  %v7949_v63 = vld [vmem:[%s17496_s2 + $0x1b8] sm:$0xff]  ;;  %v13592_v31 = vpop.f32.mrf.mxu0 }
 0x3c2   : > { %3891 = vmatmul.f32.gmra.mxu1 %v17623_v22  ;;  %3955 = vmatpush.msra.mxu0 %v7947_v48  ;;  %17643 = vst [vmem:[#allocation97_spill] sm:$0xff] %v13592_v31  ;;  %v7951_v48 = vld [vmem:[%s17496_s2 + $0x11b0] sm:$0xff] }
 0x3c3   : > { %3981 = vmatpush.msra.mxu1 %v7948_v3  ;;  %3592 = vmatpush.msrb.mxu2 %v7949_v63  ;;  %v7952_v3 = vld [vmem:[%s17496_s2 + $0x15b0] sm:$0xff]  ;;  %v7953_v63 = vld [vmem:[%s17496_s2 + $0x178] sm:$0xff] }
 0x3c4   : > { %3618 = vmatpush.msrb.mxu3 %v7950_v43  ;;  %3956 = vmatpush.msra.mxu0 %v7951_v48  ;;  %v7954_v43 = vld [vmem:[%s17496_s2 + $0x578] sm:$0xff]  ;;  %v7955_v48 = vld [vmem:[%s17496_s2 + $0x1170] sm:$0xff] }
 0x3c5   : > { %3982 = vmatpush.msra.mxu1 %v7952_v3  ;;  %3593 = vmatpush.msrb.mxu2 %v7953_v63  ;;  %v7957_v3 = vld [vmem:[%s17496_s2 + $0x138] sm:$0xff] }
 0x3c6   : > { %3619 = vmatpush.msrb.mxu3 %v7954_v43  ;;  %3957 = vmatpush.msra.mxu0 %v7955_v48  ;;  %v7958_v63 = vld [vmem:[%s17496_s2 + $0x538] sm:$0xff]  ;;  %v7959_v43 = vld [vmem:[%s17496_s2 + $0x1130] sm:$0xff]  ;;  %v13652_v42 = vpop.f32.mrf.mxu3 }
 0x3c7   : > { %3983 = vmatpush.msra.mxu1 %v7956_v18  ;;  %3594 = vmatpush.msrb.mxu2 %v7957_v3  ;;  %v7960_v48 = vld [vmem:[%s17496_s2 + $0x1530] sm:$0xff]  ;;  %v7961_v18 = vld [vmem:[%s17496_s2 + $0xf8] sm:$0xff]  ;;  %v13668_v45 = vpop.f32.mrf.mxu1 }
 0x3c8   : > { %3620 = vmatpush.msrb.mxu3 %v7958_v63  ;;  %3958 = vmatpush.msra.mxu0 %v7959_v43  ;;  %v7962_v3 = vld [vmem:[%s17496_s2 + $0x4f8] sm:$0xff]  ;;  %v7963_v63 = vld [vmem:[%s17496_s2 + $0x10f0] sm:$0xff] }
 0x3c9   : > { %3984 = vmatpush.msra.mxu1 %v7960_v48  ;;  %3595 = vmatpush.msrb.mxu2 %v7961_v18  ;;  %v7964_v43 = vld [vmem:[%s17496_s2 + $0x14f0] sm:$0xff]  ;;  %v7965_v48 = vld [vmem:[%s17496_s2 + $0xb8] sm:$0xff]  ;;  %v13644_v18 = vpop.f32.mrf.mxu2  ;;  %v13660_v29 = vpop.f32.mrf.mxu0 }
 0x3ca   : > { %3621 = vmatpush.msrb.mxu3 %v7962_v3  ;;  %3959 = vmatpush.msra.mxu0 %v7963_v63  ;;  %v7966_v3 = vld [vmem:[%s17496_s2 + $0x4b8] sm:$0xff]  ;;  %v7967_v63 = vld [vmem:[%s17496_s2 + $0x10b0] sm:$0xff] }
 0x3cb   : > { %3985 = vmatpush.msra.mxu1 %v7964_v43  ;;  %3596 = vmatpush.msrb.mxu2 %v7965_v48  ;;  %v7968_v43 = vld [vmem:[%s17496_s2 + $0x14b0] sm:$0xff]  ;;  %v7969_v48 = vld [vmem:[%s17496_s2 + $0x78] sm:$0xff] }
 0x3cc   : > { %3622 = vmatpush.msrb.mxu3 %v7966_v3  ;;  %3960 = vmatpush.msra.mxu0 %v7967_v63  ;;  %v7970_v3 = vld [vmem:[%s17496_s2 + $0x478] sm:$0xff]  ;;  %v7971_v63 = vld [vmem:[%s17496_s2 + $0x1070] sm:$0xff] }
 0x3cd   : > { %3986 = vmatpush.msra.mxu1 %v7968_v43  ;;  %3597 = vmatpush.msrb.mxu2 %v7969_v48  ;;  %v7972_v43 = vld [vmem:[%s17496_s2 + $0x1470] sm:$0xff]  ;;  %v7973_v48 = vld [vmem:[%s17496_s2 + $0x38] sm:$0xff] }
 0x3ce   : > { %3623 = vmatpush.msrb.mxu3 %v7970_v3  ;;  %3961 = vmatpush.msra.mxu0 %v7971_v63  ;;  %v7974_v3 = vld [vmem:[%s17496_s2 + $0x438] sm:$0xff]  ;;  %v7975_v63 = vld [vmem:[%s17496_s2 + $0x1030] sm:$0xff] }
 0x3cf   : > { %3987 = vmatpush.msra.mxu1 %v7972_v43  ;;  %3598 = vmatpush.msrb.mxu2 %v7973_v48  ;;  %v7977_v43 = vld [vmem:[%s17496_s2 + $0x13c8] sm:$0xff]  ;;  %v13716_v26 = vpop.f32.mrf.mxu1 }
 0x3d0   : > { %3624 = vmatpush.msrb.mxu3 %v7974_v3  ;;  %3962 = vmatpush.msra.mxu0 %v7975_v63  ;;  %v7978_v48 = vld [vmem:[%s17496_s2 + $0x17c8] sm:$0xff] }
 0x3d1   : > { %3988 = vmatpush.msra.mxu1 %v7976_v60  ;;  %3599 = vmatmul.f32.vlgmr.msrb.gmra.mxu2 %v9679_v57  ;;  %v13694_v3 = vpop.f32.mrf.mxu2  ;;  %v7979_v57 = vld [vmem:[%s17496_s2 + $0x1388] sm:$0xff] }
 0x3d2   : > { %3625 = vmatmul.f32.vlgmr.msrb.gmra.mxu3 %v9681_v58  ;;  %3687 = vmatpush.msra.mxu2 %v7977_v43  ;;  %v13700_v58 = vpop.f32.mrf.mxu3  ;;  %v7980_v60 = vld [vmem:[%s17496_s2 + $0x1788] sm:$0xff] }
 0x3d3   : > { %3713 = vmatpush.msra.mxu3 %v7978_v48  ;;  %3963 = vmatmul.f32.vlgmr.msra.gmra.mxu0 %v17618_v54  ;;  %v7981_v63 = vld [vmem:[%s17496_s2 + $0x1348] sm:$0xff]  ;;  %v13711_v48 = vpop.f32.mrf.mxu0 }
 0x3d4   : > { %3989 = vmatmul.f32.vlgmr.msra.gmra.mxu1 %v17619_v11  ;;  %3688 = vmatpush.msra.mxu2 %v7979_v57  ;;  %v7982_v43 = vld [vmem:[%s17496_s2 + $0x1748] sm:$0xff] }
 0x3d5   : > { %3714 = vmatpush.msra.mxu3 %v7980_v60  ;;  %v7983_v57 = vld [vmem:[%s17496_s2 + $0x1308] sm:$0xff] }
 0x3d6   : > { %3689 = vmatpush.msra.mxu2 %v7981_v63  ;;  %v7984_v60 = vld [vmem:[%s17496_s2 + $0x1708] sm:$0xff] }
 0x3d7   : > { %3715 = vmatpush.msra.mxu3 %v7982_v43  ;;  %v7985_v63 = vld [vmem:[%s17496_s2 + $0x12c8] sm:$0xff]  ;;  %v13752_v10 = vpop.f32.mrf.mxu1 }
 0x3d8   : > { %3690 = vmatpush.msra.mxu2 %v7983_v57  ;;  %v7986_v43 = vld [vmem:[%s17496_s2 + $0x16c8] sm:$0xff] }
 0x3d9   : > { %3716 = vmatpush.msra.mxu3 %v7984_v60  ;;  %3602 = vmatmul.f32.gmra.mxu2 %v9735_v13  ;;  %v7987_v13 = vld [vmem:[%s17496_s2 + $0x1288] sm:$0xff]  ;;  %v13737_v57 = vpop.f32.mrf.mxu2 }
 0x3da   : > { %3628 = vmatmul.f32.gmra.mxu3 %v9737_v14  ;;  %3691 = vmatpush.msra.mxu2 %v7985_v63  ;;  %v7988_v14 = vld [vmem:[%s17496_s2 + $0x1688] sm:$0xff]  ;;  %v13742_v63 = vpop.f32.mrf.mxu3 }
 0x3db   : > { %3717 = vmatpush.msra.mxu3 %v7986_v43  ;;  %3966 = vmatmul.f32.gmra.mxu0 %v17620_v7  ;;  %v7989_v60 = vld [vmem:[%s17496_s2 + $0x1248] sm:$0xff] }
 0x3dc   : > { %3992 = vmatmul.f32.gmra.mxu1 %v17621_v44  ;;  %3692 = vmatpush.msra.mxu2 %v7987_v13  ;;  %v7990_v43 = vld [vmem:[%s17496_s2 + $0x1648] sm:$0xff]  ;;  %v13747_v13 = vpop.f32.mrf.mxu0 }
 0x3dd   : > { %3718 = vmatpush.msra.mxu3 %v7988_v14  ;;  %v7991_v14 = vld [vmem:[%s17496_s2 + $0x1208] sm:$0xff] }
 0x3de   : > { %3693 = vmatpush.msra.mxu2 %v7989_v60  ;;  %v7992_v60 = vld [vmem:[%s17496_s2 + $0x1608] sm:$0xff] }
 0x3df   : > { %3719 = vmatpush.msra.mxu3 %v7990_v43  ;;  %v7993_v43 = vld [vmem:[%s17496_s2 + $0x11c8] sm:$0xff]  ;;  %v13794_v20 = vpop.f32.mrf.mxu1 }
 0x3e0   : > { %3694 = vmatpush.msra.mxu2 %v7991_v14  ;;  %v7994_v14 = vld [vmem:[%s17496_s2 + $0x15c8] sm:$0xff] }
 0x3e1   : > { %3720 = vmatpush.msra.mxu3 %v7992_v60  ;;  %3605 = vmatmul.f32.gmra.mxu2 %v9797_v35  ;;  %v7995_v35 = vld [vmem:[%s17496_s2 + $0x1188] sm:$0xff] }
 0x3e2   : > { %3631 = vmatmul.f32.gmra.mxu3 %v9799_v36  ;;  %3695 = vmatpush.msra.mxu2 %v7993_v43  ;;  %v7996_v36 = vld [vmem:[%s17496_s2 + $0x1588] sm:$0xff]  ;;  %v13784_v41 = vpop.f32.mrf.mxu3 }
 0x3e3   : > { %3721 = vmatpush.msra.mxu3 %v7994_v14  ;;  %3969 = vmatmul.f32.gmra.mxu0 %v17622_v56  ;;  %v7997_v60 = vld [vmem:[%s17496_s2 + $0x1148] sm:$0xff]  ;;  %v13779_v14 = vpop.f32.mrf.mxu2 }
 0x3e4   : > { %3995 = vmatmul.f32.gmra.mxu1 %v17623_v22  ;;  %3696 = vmatpush.msra.mxu2 %v7995_v35  ;;  %v7998_v43 = vld [vmem:[%s17496_s2 + $0x1548] sm:$0xff] }
 0x3e5   : > { %3722 = vmatpush.msra.mxu3 %v7996_v36  ;;  %v7999_v35 = vld [vmem:[%s17496_s2 + $0x1108] sm:$0xff] }
 0x3e6   : > { %3697 = vmatpush.msra.mxu2 %v7997_v60  ;;  %v8000_v36 = vld [vmem:[%s17496_s2 + $0x1508] sm:$0xff]  ;;  %v13789_v60 = vpop.f32.mrf.mxu0 }
 0x3e7   : > { %3723 = vmatpush.msra.mxu3 %v7998_v43  ;;  %v8001_v43 = vld [vmem:[%s17496_s2 + $0x10c8] sm:$0xff]  ;;  %v13834_v34 = vpop.f32.mrf.mxu1 }
 0x3e8   : > { %3698 = vmatpush.msra.mxu2 %v7999_v35  ;;  %v8002_v35 = vld [vmem:[%s17496_s2 + $0x14c8] sm:$0xff] }
 0x3e9   : > { %3724 = vmatpush.msra.mxu3 %v8000_v36  ;;  %v8004_v36 = vld [vmem:[%s17496_s2 + $0x1488] sm:$0xff] }
 0x3ea   : > { %3699 = vmatpush.msra.mxu2 %v8001_v43  ;;  %v8005_v43 = vld [vmem:[%s17496_s2 + $0x1048] sm:$0xff]  ;;  %v13816_v59 = vpop.f32.mrf.mxu3 }
 0x3eb   : > { %3725 = vmatpush.msra.mxu3 %v8002_v35  ;;  %v13811_v35 = vpop.f32.mrf.mxu2 }
 0x3ec   : > { %3700 = vmatpush.msra.mxu2 %v8003_v19  ;;  %v8007_v19 = vld [vmem:[%s17496_s2 + $0x1008] sm:$0xff] }
 0x3ed   : > { %3726 = vmatpush.msra.mxu3 %v8004_v36  ;;  %v8008_v36 = vld [vmem:[%s17496_s2 + $0x1408] sm:$0xff] }
 0x3ee   : > { %3701 = vmatpush.msra.mxu2 %v8005_v43  ;;  %v8010_v43 = vld [vmem:[%s17496_s2 + $0x17d8] sm:$0xff] }
 0x3ef   : > { %3727 = vmatpush.msra.mxu3 %v8006_v17  ;;  %v8009_v17 = vld [vmem:[%s17496_s2 + $0x13d8] sm:$0xff]  ;;  %v13868_v23 = vpop.f32.mrf.mxu1 }
 0x3f0   : > { %3702 = vmatpush.msra.mxu2 %v8007_v19  ;;  %v13829_v19 = vpop.f32.mrf.mxu0  ;;  %17646 = vst [vmem:[#allocation100_spill] sm:$0xff] %v13868_v23  ;;  %v8024_v23 = vld [vmem:[%s17496_s2 + $0x1618] sm:$0xff] }
 0x3f1   : > { %3728 = vmatpush.msra.mxu3 %v8008_v36  ;;  %3703 = vmatmul.f32.vlgmr.msra.gmra.mxu2 %v17618_v54  ;;  %v8011_v36 = vld [vmem:[%s17496_s2 + $0x1398] sm:$0xff] }
 0x3f2   : > { %3729 = vmatmul.f32.vlgmr.msra.gmra.mxu3 %v17619_v11  ;;  %3791 = vmatpush.msrb.mxu2 %v8009_v17  ;;  %v8013_v17 = vld [vmem:[%s17496_s2 + $0x1358] sm:$0xff] }
 0x3f3   : > { %3817 = vmatpush.msrb.mxu3 %v8010_v43  ;;  %v8014_v43 = vld [vmem:[%s17496_s2 + $0x1758] sm:$0xff] }
 0x3f4   : > { %3792 = vmatpush.msrb.mxu2 %v8011_v36  ;;  %v8015_v36 = vld [vmem:[%s17496_s2 + $0x1318] sm:$0xff] }
 0x3f5   : > { %3818 = vmatpush.msrb.mxu3 %v8012_v32  ;;  %v13852_v32 = vpop.f32.mrf.mxu2 }
 0x3f6   : > { %3793 = vmatpush.msrb.mxu2 %v8013_v17  ;;  %v8017_v17 = vld [vmem:[%s17496_s2 + $0x12d8] sm:$0xff] }
 0x3f7   : > { %3819 = vmatpush.msrb.mxu3 %v8014_v43  ;;  %v13858_v43 = vpop.f32.mrf.mxu3  ;;  %v13908_v6 = vpop.f32.mrf.mxu1 }
 0x3f8   : > { %3794 = vmatpush.msrb.mxu2 %v8015_v36  ;;  %v8018_v36 = vld [vmem:[%s17496_s2 + $0x16d8] sm:$0xff]  ;;  %v13863_v55 = vpop.f32.mrf.mxu0  ;;  %17648 = vst [vmem:[#allocation102_spill] sm:$0xff] %v13908_v6 }
 0x3f9   : > { %3820 = vmatpush.msrb.mxu3 %v8016_v8  ;;  %3706 = vmatmul.f32.gmra.mxu2 %v17620_v7  ;;  %17645 = vst [vmem:[#allocation99_spill] sm:$0xff] %v13863_v55  ;;  %v8019_v8 = vld [vmem:[%s17496_s2 + $0x1298] sm:$0xff] }
 0x3fa   : > { %3732 = vmatmul.f32.gmra.mxu3 %v17621_v44  ;;  %3795 = vmatpush.msrb.mxu2 %v8017_v17  ;;  %v8020_v17 = vld [vmem:[%s17496_s2 + $0x1698] sm:$0xff] }
 0x3fb   : > { %3821 = vmatpush.msrb.mxu3 %v8018_v36  ;;  %v8022_v36 = vld [vmem:[%s17496_s2 + $0x1658] sm:$0xff] }
 0x3fc   : > { %3796 = vmatpush.msrb.mxu2 %v8019_v8  ;;  %v8023_v8 = vld [vmem:[%s17496_s2 + $0x1218] sm:$0xff] }
 0x3fd   : > { %3822 = vmatpush.msrb.mxu3 %v8020_v17  ;;  %v8026_v17 = vld [vmem:[%s17496_s2 + $0x15d8] sm:$0xff] }
 0x3fe   : > { %3797 = vmatpush.msrb.mxu2 %v8021_v52  ;;  %v8025_v52 = vld [vmem:[%s17496_s2 + $0x11d8] sm:$0xff] }
 0x3ff   : > { %3823 = vmatpush.msrb.mxu3 %v8022_v36  ;;  %v13893_v36 = vpop.f32.mrf.mxu2  ;;  %v8028_v55 = vld [vmem:[%s17496_s2 + $0x1598] sm:$0xff] }
 0x400   : > { %3798 = vmatpush.msrb.mxu2 %v8023_v8  ;;  %v13898_v8 = vpop.f32.mrf.mxu3  ;;  %v8034_v6 = vld [vmem:[%s17496_s2 + $0x14d8] sm:$0xff] }
 0x401   : > { %3824 = vmatpush.msrb.mxu3 %v8024_v23  ;;  %3709 = vmatmul.f32.gmra.mxu2 %v17622_v56  ;;  %v8027_v23 = vld [vmem:[%s17496_s2 + $0x1198] sm:$0xff] }
 0x402   : > { %3735 = vmatmul.f32.gmra.mxu3 %v17623_v22  ;;  %3799 = vmatpush.msrb.mxu2 %v8025_v52  ;;  %v13903_v52 = vpop.f32.mrf.mxu0 }
 0x403   : > { %3825 = vmatpush.msrb.mxu3 %v8026_v17  ;;  %17647 = vst [vmem:[#allocation101_spill] sm:$0xff] %v13903_v52  ;;  %v8029_v17 = vld [vmem:[%s17496_s2 + $0x1158] sm:$0xff] }
 0x404   : > { %3800 = vmatpush.msrb.mxu2 %v8027_v23  ;;  %v8030_v23 = vld [vmem:[%s17496_s2 + $0x1558] sm:$0xff] }
 0x405   : > { %3826 = vmatpush.msrb.mxu3 %v8028_v55  ;;  %v8032_v55 = vld [vmem:[%s17496_s2 + $0x1518] sm:$0xff] }
 0x406   : > { %3801 = vmatpush.msrb.mxu2 %v8029_v17  ;;  %v8033_v17 = vld [vmem:[%s17496_s2 + $0x10d8] sm:$0xff] }
 0x407   : > { %3827 = vmatpush.msrb.mxu3 %v8030_v23  ;;  %v13925_v23 = vpop.f32.mrf.mxu2 }
 0x408   : > { %3802 = vmatpush.msrb.mxu2 %v8031_v21  ;;  %17649 = vst [vmem:[#allocation103_spill] sm:$0xff] %v13925_v23  ;;  %v8035_v21 = vld [vmem:[%s17496_s2 + $0x1098] sm:$0xff]  ;;  %v13930_v52 = vpop.f32.mrf.mxu3 }
 0x409   : > { %3828 = vmatpush.msrb.mxu3 %v8032_v55  ;;  %17650 = vst [vmem:[#allocation104_spill] sm:$0xff] %v13930_v52  ;;  %v8036_v55 = vld [vmem:[%s17496_s2 + $0x1498] sm:$0xff]  ;;  %v13946_v52 = vpop.f32.mrf.mxu1 }
 0x40a   : > { %3803 = vmatpush.msrb.mxu2 %v8033_v17  ;;  %v8037_v17 = vld [vmem:[%s17496_s2 + $0x1058] sm:$0xff]  ;;  %v13941_v23 = vpop.f32.mrf.mxu0  ;;  %17652 = vst [vmem:[#allocation106_spill] sm:$0xff] %v13946_v52 }
 0x40b   : > { %3829 = vmatpush.msrb.mxu3 %v8034_v6  ;;  %v8038_v6 = vld [vmem:[%s17496_s2 + $0x1458] sm:$0xff]  ;;  %17651 = vst [vmem:[#allocation105_spill] sm:$0xff] %v13941_v23 }
 0x40c   : > { %3804 = vmatpush.msrb.mxu2 %v8035_v21  ;;  %v8039_v21 = vld [vmem:[%s17496_s2 + $0x1018] sm:$0xff] }
 0x40d   : > { %3830 = vmatpush.msrb.mxu3 %v8036_v55  ;;  %v8040_v55 = vld [vmem:[%s17496_s2 + $0x1418] sm:$0xff] }
 0x40e   : > { %3805 = vmatpush.msrb.mxu2 %v8037_v17  ;;  %v8041_v17 = vld [vmem:[%s17496_s2 + $0x13e8] sm:$0xff] }
 0x40f   : > { %3831 = vmatpush.msrb.mxu3 %v8038_v6  ;;  %v8042_v6 = vld [vmem:[%s17496_s2 + $0x17e8] sm:$0xff]  ;;  %v13965_v52 = vpop.f32.mrf.mxu2 }
 0x410   : > { %3806 = vmatpush.msrb.mxu2 %v8039_v21  ;;  %v8043_v21 = vld [vmem:[%s17496_s2 + $0x13a8] sm:$0xff]  ;;  %17653 = vst [vmem:[#allocation107_spill] sm:$0xff] %v13965_v52  ;;  %v13970_v23 = vpop.f32.mrf.mxu3 }
 0x411   : > { %3832 = vmatpush.msrb.mxu3 %v8040_v55  ;;  %3807 = vmatmul.f32.vlgmr.msrb.gmra.mxu2 %v17618_v54  ;;  %v8044_v55 = vld [vmem:[%s17496_s2 + $0x17a8] sm:$0xff]  ;;  %17654 = vst [vmem:[#allocation108_spill] sm:$0xff] %v13970_v23  ;;  %v13980_v52 = vpop.f32.mrf.mxu1 }
 0x412   : > { %3833 = vmatmul.f32.vlgmr.msrb.gmra.mxu3 %v17619_v11  ;;  %3895 = vmatpush.msra.mxu2 %v8041_v17  ;;  %v8045_v17 = vld [vmem:[%s17496_s2 + $0x1368] sm:$0xff]  ;;  %17656 = vst [vmem:[#allocation110_spill] sm:$0xff] %v13980_v52 }
 0x413   : > { %3921 = vmatpush.msra.mxu3 %v8042_v6  ;;  %v8046_v6 = vld [vmem:[%s17496_s2 + $0x1768] sm:$0xff] }
 0x414   : > { %3896 = vmatpush.msra.mxu2 %v8043_v21  ;;  %v13975_v21 = vpop.f32.mrf.mxu0  ;;  %v8051_v23 = vld [vmem:[%s17496_s2 + $0x12a8] sm:$0xff] }
 0x415   : > { %3922 = vmatpush.msra.mxu3 %v8044_v55  ;;  %17655 = vst [vmem:[#allocation109_spill] sm:$0xff] %v13975_v21  ;;  %v8047_v55 = vld [vmem:[%s17496_s2 + $0x1328] sm:$0xff] }
 0x416   : > { %3897 = vmatpush.msra.mxu2 %v8045_v17  ;;  %v8048_v17 = vld [vmem:[%s17496_s2 + $0x1728] sm:$0xff] }
 0x417   : > { %3923 = vmatpush.msra.mxu3 %v8046_v6  ;;  %v8049_v6 = vld [vmem:[%s17496_s2 + $0x12e8] sm:$0xff] }
 0x418   : > { %3898 = vmatpush.msra.mxu2 %v8047_v55  ;;  %v8050_v55 = vld [vmem:[%s17496_s2 + $0x16e8] sm:$0xff]  ;;  %v14010_v21 = vpop.f32.mrf.mxu3 }
 0x419   : > { %3924 = vmatpush.msra.mxu3 %v8048_v17  ;;  %3810 = vmatmul.f32.gmra.mxu2 %v17620_v7  ;;  %v8052_v17 = vld [vmem:[%s17496_s2 + $0x16a8] sm:$0xff]  ;;  %17658 = vst [vmem:[#allocation112_spill] sm:$0xff] %v14010_v21 }
 0x41a   : > { %3836 = vmatmul.f32.gmra.mxu3 %v17621_v44  ;;  %3899 = vmatpush.msra.mxu2 %v8049_v6  ;;  %v8053_v52 = vld [vmem:[%s17496_s2 + $0x1268] sm:$0xff] }
 0x41b   : > { %3925 = vmatpush.msra.mxu3 %v8050_v55  ;;  %v8054_v6 = vld [vmem:[%s17496_s2 + $0x1668] sm:$0xff]  ;;  %v14005_v55 = vpop.f32.mrf.mxu2 }
 0x41c   : > { %3900 = vmatpush.msra.mxu2 %v8051_v23  ;;  %17657 = vst [vmem:[#allocation111_spill] sm:$0xff] %v14005_v55  ;;  %v8055_v23 = vld [vmem:[%s17496_s2 + $0x1228] sm:$0xff]  ;;  %v14022_v55 = vpop.f32.mrf.mxu1 }
 0x41d   : > { %3926 = vmatpush.msra.mxu3 %v8052_v17  ;;  %v8056_v17 = vld [vmem:[%s17496_s2 + $0x1628] sm:$0xff]  ;;  %17660 = vst [vmem:[#allocation114_spill] sm:$0xff] %v14022_v55 }
 0x41e   : > { %3901 = vmatpush.msra.mxu2 %v8053_v52  ;;  %v14016_v52 = vpop.f32.mrf.mxu0  ;;  %v8060_v21 = vld [vmem:[%s17496_s2 + $0x15a8] sm:$0xff] }
 0x41f   : > { %3927 = vmatpush.msra.mxu3 %v8054_v6  ;;  %17659 = vst [vmem:[#allocation113_spill] sm:$0xff] %v14016_v52  ;;  %v8057_v6 = vld [vmem:[%s17496_s2 + $0x11e8] sm:$0xff] }
 0x420   : > { %3902 = vmatpush.msra.mxu2 %v8055_v23  ;;  %v8058_v23 = vld [vmem:[%s17496_s2 + $0x15e8] sm:$0xff]  ;;  %v14044_v55 = vpop.f32.mrf.mxu3 }
 0x421   : > { %3928 = vmatpush.msra.mxu3 %v8056_v17  ;;  %3813 = vmatmul.f32.gmra.mxu2 %v17622_v56  ;;  %v8059_v17 = vld [vmem:[%s17496_s2 + $0x11a8] sm:$0xff] }
 0x422   : > { %3839 = vmatmul.f32.gmra.mxu3 %v17623_v22  ;;  %3903 = vmatpush.msra.mxu2 %v8057_v6  ;;  %v8061_v6 = vld [vmem:[%s17496_s2 + $0x1168] sm:$0xff] }
 0x423   : > { %3929 = vmatpush.msra.mxu3 %v8058_v23  ;;  %v14039_v23 = vpop.f32.mrf.mxu2 }
 0x424   : > { %3904 = vmatpush.msra.mxu2 %v8059_v17  ;;  %v8063_v17 = vld [vmem:[%s17496_s2 + $0x1128] sm:$0xff]  ;;  %v14060_v25 = vpop.f32.mrf.mxu1 }
 0x425   : > { %3930 = vmatpush.msra.mxu3 %v8060_v21  ;;  %v8064_v21 = vld [vmem:[%s17496_s2 + $0x1528] sm:$0xff]  ;;  %17662 = vst [vmem:[#allocation116_spill] sm:$0xff] %v14060_v25 }
 0x426   : > { %3905 = vmatpush.msra.mxu2 %v8061_v6  ;;  %v8065_v6 = vld [vmem:[%s17496_s2 + $0x10e8] sm:$0xff]  ;;  %v14055_v52 = vpop.f32.mrf.mxu0 }
 0x427   : > { %3931 = vmatpush.msra.mxu3 %v8062_v61  ;;  %v8066_v61 = vld [vmem:[%s17496_s2 + $0x14e8] sm:$0xff]  ;;  %17661 = vst [vmem:[#allocation115_spill] sm:$0xff] %v14055_v52 }
 0x428   : > { %3906 = vmatpush.msra.mxu2 %v8063_v17  ;;  %v8067_v17 = vld [vmem:[%s17496_s2 + $0x10a8] sm:$0xff] }
 0x429   : > { %3932 = vmatpush.msra.mxu3 %v8064_v21  ;;  %v8068_v21 = vld [vmem:[%s17496_s2 + $0x14a8] sm:$0xff] }
 0x42a   : > { %3907 = vmatpush.msra.mxu2 %v8065_v6  ;;  %v8069_v6 = vld [vmem:[%s17496_s2 + $0x1068] sm:$0xff] }
 0x42b   : > { %3933 = vmatpush.msra.mxu3 %v8066_v61  ;;  %v8070_v61 = vld [vmem:[%s17496_s2 + $0x1468] sm:$0xff] }
 0x42c   : > { %3908 = vmatpush.msra.mxu2 %v8067_v17  ;;  %v8071_v17 = vld [vmem:[%s17496_s2 + $0x1028] sm:$0xff]  ;;  %v14094_v62 = vpop.f32.mrf.mxu1 }
 0x42d   : > { %3934 = vmatpush.msra.mxu3 %v8068_v21  ;;  %v8072_v25 = vld [vmem:[%s17496_s2 + $0x1428] sm:$0xff]  ;;  %v14078_v21 = vpop.f32.mrf.mxu2  ;;  %17666 = vst [vmem:[#allocation120_spill] sm:$0xff] %v14094_v62 }
 0x42e   : > { %3909 = vmatpush.msra.mxu2 %v8069_v6  ;;  %17663 = vst [vmem:[#allocation117_spill] sm:$0xff] %v14078_v21  ;;  %v8073_v6 = vld [vmem:[%s17496_s2 + $0x13f8] sm:$0xff]  ;;  %v14089_v52 = vpop.f32.mrf.mxu0 }
 0x42f   : > { %3935 = vmatpush.msra.mxu3 %v8070_v61  ;;  %v14084_v61 = vpop.f32.mrf.mxu3  ;;  %17665 = vst [vmem:[#allocation119_spill] sm:$0xff] %v14089_v52  ;;  %v3159_v52 = vadd.f32 %v13096_v12, %v13088_v46  ;;  %v8102_v12 = vld [vmem:[%s17496_s2 + $0x1478] sm:$0xff] }
 0x430   : > { %3910 = vmatpush.msra.mxu2 %v8071_v17  ;;  %17664 = vst [vmem:[#allocation118_spill] sm:$0xff] %v14084_v61  ;;  %v8074_v17 = vld [vmem:[%s17496_s2 + $0x17f8] sm:$0xff] }
 0x431   : > { %3936 = vmatpush.msra.mxu3 %v8072_v25  ;;  %3911 = vmatmul.f32.vlgmr.msra.gmra.mxu2 %v17618_v54  ;;  %v8075_v25 = vld [vmem:[%s17496_s2 + $0x13b8] sm:$0xff] }
 0x432   : > { %3937 = vmatmul.f32.vlgmr.msra.gmra.mxu3 %v17619_v11  ;;  %3999 = vmatpush.msrb.mxu2 %v8073_v6  ;;  %v8076_v6 = vld [vmem:[%s17496_s2 + $0x17b8] sm:$0xff] }
 0x433   : > { %4025 = vmatpush.msrb.mxu3 %v8074_v17  ;;  %v8078_v17 = vld [vmem:[%s17496_s2 + $0x1778] sm:$0xff] }
 0x434   : > { %4000 = vmatpush.msrb.mxu2 %v8075_v25  ;;  %v8079_v25 = vld [vmem:[%s17496_s2 + $0x1338] sm:$0xff] }
 0x435   : > { %4026 = vmatpush.msrb.mxu3 %v8076_v6  ;;  %v8082_v6 = vld [vmem:[%s17496_s2 + $0x16f8] sm:$0xff]  ;;  %v14134_v30 = vpop.f32.mrf.mxu1 }
 0x436   : > { %4001 = vmatpush.msrb.mxu2 %v8077_v53  ;;  %v8081_v53 = vld [vmem:[%s17496_s2 + $0x12f8] sm:$0xff] }
 0x437   : > { %4027 = vmatpush.msrb.mxu3 %v8078_v17  ;;  %v14119_v17 = vpop.f32.mrf.mxu2 }
 0x438   : > { %4002 = vmatpush.msrb.mxu2 %v8079_v25  ;;  %v14124_v25 = vpop.f32.mrf.mxu3 }
 0x439   : > { %4028 = vmatpush.msrb.mxu3 %v8080_v4  ;;  %3914 = vmatmul.f32.gmra.mxu2 %v17620_v7  ;;  %v8083_v4 = vld [vmem:[%s17496_s2 + $0x12b8] sm:$0xff] }
 0x43a   : > { %3940 = vmatmul.f32.gmra.mxu3 %v17621_v44  ;;  %4003 = vmatpush.msrb.mxu2 %v8081_v53  ;;  %v14129_v53 = vpop.f32.mrf.mxu0 }
 0x43b   : > { %4029 = vmatpush.msrb.mxu3 %v8082_v6  ;;  %v8085_v6 = vld [vmem:[%s17496_s2 + $0x1278] sm:$0xff] }
 0x43c   : > { %4004 = vmatpush.msrb.mxu2 %v8083_v4  ;;  %v8086_v4 = vld [vmem:[%s17496_s2 + $0x1678] sm:$0xff] }
 0x43d   : > { %4030 = vmatpush.msrb.mxu3 %v8084_v40  ;;  %v8088_v40 = vld [vmem:[%s17496_s2 + $0x1638] sm:$0xff] }
 0x43e   : > { %4005 = vmatpush.msrb.mxu2 %v8085_v6  ;;  %v8089_v6 = vld [vmem:[%s17496_s2 + $0x11f8] sm:$0xff] }
 0x43f   : > { %4031 = vmatpush.msrb.mxu3 %v8086_v4  ;;  %v8090_v4 = vld [vmem:[%s17496_s2 + $0x15f8] sm:$0xff]  ;;  %v3892_v62 = vpop.f32.mrf.mxu1 }
 0x440   : > { %4006 = vmatpush.msrb.mxu2 %v8087_v38  ;;  %v14153_v38 = vpop.f32.mrf.mxu2  ;;  %v14158_v49 = vpop.f32.mrf.mxu3 }
 0x441   : > { %4032 = vmatpush.msrb.mxu3 %v8088_v40  ;;  %3917 = vmatmul.f32.gmra.mxu2 %v17622_v56  ;;  %v8091_v40 = vld [vmem:[%s17496_s2 + $0x11b8] sm:$0xff] }
 0x442   : > { %3943 = vmatmul.f32.gmra.mxu3 %v17623_v22  ;;  %4007 = vmatpush.msrb.mxu2 %v8089_v6  ;;  %v8093_v6 = vld [vmem:[%s17496_s2 + $0x1178] sm:$0xff]  ;;  %v3866_v0 = vpop.f32.mrf.mxu0 }
 0x443   : > { %4033 = vmatpush.msrb.mxu3 %v8090_v4  ;;  %v8094_v4 = vld [vmem:[%s17496_s2 + $0x1578] sm:$0xff] }
 0x444   : > { %4008 = vmatpush.msrb.mxu2 %v8091_v40  ;;  %v8095_v40 = vld [vmem:[%s17496_s2 + $0x1138] sm:$0xff] }
 0x445   : > { %4034 = vmatpush.msrb.mxu3 %v8092_v37  ;;  %v8096_v37 = vld [vmem:[%s17496_s2 + $0x1538] sm:$0xff] }
 0x446   : > { %4009 = vmatpush.msrb.mxu2 %v8093_v6  ;;  %v8097_v6 = vld [vmem:[%s17496_s2 + $0x10f8] sm:$0xff] }
 0x447   : > { %4035 = vmatpush.msrb.mxu3 %v8094_v4  ;;  %v8098_v4 = vld [vmem:[%s17496_s2 + $0x14f8] sm:$0xff] }
 0x448   : > { %4010 = vmatpush.msrb.mxu2 %v8095_v40  ;;  %v8099_v40 = vld [vmem:[%s17496_s2 + $0x10b8] sm:$0xff]  ;;  %v14190_v31 = vpop.f32.mrf.mxu2  ;;  %v14195_v46 = vpop.f32.mrf.mxu3 }
 0x449   : > { %4036 = vmatpush.msrb.mxu3 %v8096_v37  ;;  %v8100_v37 = vld [vmem:[%s17496_s2 + $0x14b8] sm:$0xff] }
 0x44a   : > { %4011 = vmatpush.msrb.mxu2 %v8097_v6  ;;  %v3549_v6 = vadd.f32 %v13747_v13, %v3159_v52  ;;  %v8104_v52 = vld [vmem:[%s17496_s2 + $0x1438] sm:$0xff] }
 0x44b   : > { %4037 = vmatpush.msrb.mxu3 %v8098_v4  ;;  %v8101_v4 = vld [vmem:[%s17496_s2 + $0x1078] sm:$0xff] }
 0x44c   : > { %4012 = vmatpush.msrb.mxu2 %v8099_v40  ;;  %v8103_v40 = vld [vmem:[%s17496_s2 + $0x1038] sm:$0xff] }
 0x44d   : > { %4038 = vmatpush.msrb.mxu3 %v8100_v37 }
 0x44e   : > { %4013 = vmatpush.msrb.mxu2 %v8101_v4  ;;  %v3575_v4 = vadd.f32 %v13752_v10, %v3549_v6 }
 0x44f   : > { %4039 = vmatpush.msrb.mxu3 %v8102_v12  ;;  %v3162_v12 = vadd.f32 %v13152_v39, %v13144_v51 }
 0x450   : > { %4014 = vmatpush.msrb.mxu2 %v8103_v40  ;;  %v3964_v13 = vpop.f32.mrf.mxu0  ;;  %v3502_v61 = vpop.f32.mrf.mxu2 }
 0x451   : > { %4040 = vmatpush.msrb.mxu3 %v8104_v52  ;;  %4015 = vmatmul.f32.vlgmr.msrb.gmra.mxu2 %v17618_v54  ;;  %v3990_v37 = vpop.f32.mrf.mxu1  ;;  %v3552_v40 = vadd.f32 %v13789_v60, %v3162_v12  ;;  %v3528_v50 = vpop.f32.mrf.mxu3 }
 0x452   : > { %4041 = vmatmul.f32.vlgmr.msrb.gmra.mxu3 %v17619_v11  ;;  %v3991_v16 = vadd.f32 %v3990_v37, %v3964_v13  ;;  %v3165_v11 = vadd.f32 %v13216_v24, %v13208_v15  ;;  %v3061_v15 = vadd.f32 %v13052_v33, %v13044_v28 }
 0x453   : > { %v3578_v52 = vadd.f32 %v13794_v20, %v3552_v40 }
 0x454   : > { %v4057_v5 = vadd.f32 %v3991_v16, %v3575_v4  ;;  %v3555_v16 = vadd.f32 %v13829_v19, %v3165_v11  ;;  %v3451_v19 = vadd.f32 %v13711_v48, %v3061_v15  ;;  %v3107_v11 = vadd.f32 %v13700_v58, %v13694_v3 }
 0x455   : > { %v3113_v58 = vadd.f32 %v13784_v41, %v13779_v14  ;;  %v3058_v41 = vadd.f32 %v12996_v9, %v12988_v47  ;;  %v3211_v14 = vadd.f32 %v13816_v59, %v13811_v35  ;;  %v3003_v59 = vadd.f32 %v13524_v2, %v13518_v1 }
 0x456   : > { %4108 = vrot.lane.b32.xlu0 %v4057_v5, %s17594_s18  ;;  %v3581_v20 = vadd.f32 %v13834_v34, %v3555_v16  ;;  %v3477_v6 = vadd.f32 %v13716_v26, %v3451_v19 }
 0x458   : > { %v3967_v21 = vpop.f32.mrf.mxu0  ;;  %v14220_v5 = vpop.f32.mrf.mxu2 }
 0x459   : > { %4018 = vmatmul.f32.gmra.mxu2 %v17620_v7  ;;  %v3993_v54 = vpop.f32.mrf.mxu1  ;;  %v14222_v60 = vpop.f32.mrf.mxu3 }
 0x45a   : > { %4044 = vmatmul.f32.gmra.mxu3 %v17621_v44  ;;  %v3994_v10 = vadd.f32 %v3993_v54, %v3967_v21  ;;  %v3893_v21 = vadd.f32 %v3892_v62, %v3866_v0 }
 0x45c   : > { %v4065_v51 = vadd.f32 %v3994_v10, %v3578_v52  ;;  %v4071_v37 = vadd.f32 %v3893_v21, %v3477_v6 }
 0x45e   : > { %4118 = vrot.lane.b32.xlu1 %v4065_v51, %s17594_s18  ;;  %v3497_v51 = vadd.f32 %v14153_v38, %v3107_v11 }
 0x460   : > { %v3970_v39 = vpop.f32.mrf.mxu0  ;;  %v14232_v13 = vpop.f32.mrf.mxu2 }
 0x461   : > { %4021 = vmatmul.f32.gmra.mxu2 %v17622_v56  ;;  %v3996_v7 = vpop.f32.mrf.mxu1  ;;  %v14234_v56 = vpop.f32.mrf.mxu3 }
 0x462   : > { %4047 = vmatmul.f32.gmra.mxu3 %v17623_v22  ;;  %v3997_v44 = vadd.f32 %v3996_v7, %v3970_v39  ;;  %v3523_v7 = vadd.f32 %v14158_v49, %v3497_v51 }
 0x464   : > { %v4073_v24 = vadd.f32 %v3997_v44, %v3581_v20  ;;  %v3110_v44 = vadd.f32 %v13742_v63, %v13737_v57 }
 0x466   : > { %4128 = vrot.lane.b32.xlu1 %v4073_v24, %s17594_s18  ;;  %v3500_v24 = vadd.f32 %v14190_v31, %v3110_v44  ;;  %v3009_v31 = vadd.f32 %v13652_v42, %v13644_v18  ;;  %v3601_v42 = vadd.f32 %v14220_v5, %v3211_v14  ;;  %v3890_v18 = vadd.f32 %v14134_v30, %v14129_v53 }
 0x468   : > { %v14237_v34 = vpop.f32.mrf.mxu2  ;;  %v3526_v6 = vadd.f32 %v14195_v46, %v3500_v24  ;;  %v3627_v47 = vadd.f32 %v14222_v60, %v3601_v42  ;;  %v17669_v24 = vld [vmem:[#allocation118_spill] sm:$0xff] }
 0x469   : > { %v14239_v22 = vpop.f32.mrf.mxu3 }
 0x46e   : > { %4124 = vrot.lane.b32.xlu1 %v4071_v37, %s17594_s18  ;;  %v3503_v37 = vadd.f32 %v3502_v61, %v3113_v58 }
 0x470   : > { %v3529_v57 = vadd.f32 %v3528_v50, %v3503_v37  ;;  %v3448_v50 = vadd.f32 %v13660_v29, %v3058_v41  ;;  %v3214_v29 = vadd.f32 %v13858_v43, %v13852_v32  ;;  %v3217_v32 = vadd.f32 %v13898_v8, %v13893_v36  ;;  %v17668_v36 = vld [vmem:[#allocation117_spill] sm:$0xff]  ;;  %v17674_v37 = vld [vmem:[#allocation120_spill] sm:$0xff] }
 0x474   : > { %v14241_v28 = vpop.f32.mrf.mxu2 }
 0x475   : > { %v14243_v33 = vpop.f32.mrf.mxu3 }
 0x47c   : > { %v14245_v48 = vpop.f32.mrf.mxu2 }
 0x47d   : > { %v14247_v0 = vpop.f32.mrf.mxu3 }
 0x484   : > { %v14249_v26 = vpop.f32.mrf.mxu2 }
 0x485   : > { %v14251_v62 = vpop.f32.mrf.mxu3 }
 0x494   : > { %v3808_v4 = vpop.f32.mrf.mxu2 }
 0x495   : > { %v3834_v12 = vpop.f32.mrf.mxu3 }
 0x49c   : > { %v14253_v40 = vpop.f32.mrf.mxu2 }
 0x49d   : > { %v14255_v54 = vpop.f32.mrf.mxu3 }
 0x4a4   : > { %v3814_v52 = vpop.f32.mrf.mxu2 }
 0x4a5   : > { %v3840_v10 = vpop.f32.mrf.mxu3 }
 0x4a6   : > { %v3841_v46 = vadd.f32 %v3840_v10, %v3814_v52  ;;  %v3474_v52 = vadd.f32 %v13668_v45, %v3448_v50  ;;  %v3393_v10 = vadd.f32 %v14039_v23, %v3003_v59  ;;  %v3835_v45 = vadd.f32 %v3834_v12, %v3808_v4  ;;  %v17678_v59 = vld [vmem:[#allocation15_spill] sm:$0xff] }
 0x4a8   : > { %v4063_v35 = vadd.f32 %v3890_v18, %v3474_v52  ;;  %v3419_v60 = vadd.f32 %v14044_v55, %v3393_v10  ;;  %v17676_v52 = vld [vmem:[#allocation13_spill] sm:$0xff]  ;;  %v17681_v10 = vld [vmem:[#allocation18_spill] sm:$0xff] }
 0x4aa   : > { %v14300_v43 = vadd.f32 %v3835_v45, %v3419_v60  ;;  %v17682_v45 = vld [vmem:[#allocation19_spill] sm:$0xff]  ;;  %v17684_v60 = vld [vmem:[#allocation34_spill] sm:$0xff] }
 0x4b4   : > { %v3912_v16 = vpop.f32.mrf.mxu2 }
 0x4b5   : > { %v3938_v39 = vpop.f32.mrf.mxu3 }
 0x4b6   : > { %v3939_v20 = vadd.f32 %v3938_v39, %v3912_v16  ;;  %v3399_v16 = vadd.f32 %v14119_v17, %v3009_v31  ;;  %v14329_v31 = vpop.permute.xlu2 %2738 }
 0x4b8   : > { %v4056_v15 = vadd.f32 %v3939_v20, %v3523_v7  ;;  %v3425_v39 = vadd.f32 %v14124_v25, %v3399_v16  ;;  %v3604_v7 = vadd.f32 %v14232_v13, %v3214_v29  ;;  %v3607_v13 = vadd.f32 %v14237_v34, %v3217_v32  ;;  %v17679_v29 = vld [vmem:[#allocation16_spill] sm:$0xff]  ;;  %v17686_v32 = vld [vmem:[#allocation38_spill] sm:$0xff] }
 0x4b9   : > { %v3838_v34 = vadd.f32 %v14255_v54, %v14253_v40  ;;  %v14325_v40 = vpop.permute.xlu0 %2748  ;;  %v14327_v54 = vpop.permute.xlu1 %2758 }
 0x4ba   : > { %4106 = vrot.lane.b32.xlu2 %v4056_v15, %s17594_s18  ;;  %v14278_v61 = vadd.f32 %v3841_v46, %v3425_v39  ;;  %v3630_v1 = vadd.f32 %v14234_v56, %v3604_v7  ;;  %v3633_v55 = vadd.f32 %v14239_v22, %v3607_v13  ;;  %v17667_v56 = vld [vmem:[#allocation96_spill] sm:$0xff]  ;;  %v17672_v22 = vld [vmem:[#allocation97_spill] sm:$0xff] }
 0x4bb   : > { %v3006_v44 = vadd.f32 %v17667_v56, %v13578_v27  ;;  %v17673_v27 = vld [vmem:[#allocation119_spill] sm:$0xff]  ;;  %v17687_v13 = vld [vmem:[#allocation41_spill] sm:$0xff] }
 0x4bc   : > { %v3915_v19 = vpop.f32.mrf.mxu2 }
 0x4bd   : > { %v3941_v21 = vpop.f32.mrf.mxu3  ;;  %v3396_v8 = vadd.f32 %v17668_v36, %v3006_v44  ;;  %v17691_v44 = vld [vmem:[#allocation23_spill] sm:$0xff] }
 0x4be   : > { %v3942_v3 = vadd.f32 %v3941_v21, %v3915_v19  ;;  %v17670_v21 = vld [vmem:[#allocation82_spill] sm:$0xff]  ;;  %v14335_v46 = vpop.permute.xlu2 %2752 }
 0x4bf   : > { %v3422_v19 = vadd.f32 %v17669_v24, %v3396_v8 }
 0x4c0   : > { %v4064_v38 = vadd.f32 %v3942_v3, %v3526_v6  ;;  %v17671_v6 = vld [vmem:[#allocation83_spill] sm:$0xff] }
 0x4c1   : > { %v3055_v3 = vadd.f32 %v17671_v6, %v17670_v21  ;;  %v14316_v58 = vadd.f32 %v3838_v34, %v3422_v19  ;;  %v14333_v16 = vpop.permute.xlu1 %2742  ;;  %v17692_v34 = vld [vmem:[#allocation27_spill] sm:$0xff] }
 0x4c2   : > { %4116 = vrot.lane.b32.xlu0 %v4064_v38, %s17594_s18  ;;  %v17693_v19 = vld [vmem:[#allocation31_spill] sm:$0xff] }
 0x4c3   : > { %v3445_v38 = vadd.f32 %v17672_v22, %v3055_v3  ;;  %v17694_v6 = vld [vmem:[#allocation35_spill] sm:$0xff] }
 0x4c4   : > { %v3918_v49 = vpop.f32.mrf.mxu2  ;;  %v17695_v22 = vld [vmem:[#allocation39_spill] sm:$0xff] }
 0x4c5   : > { %v3944_v11 = vpop.f32.mrf.mxu3 }
 0x4c6   : > { %v3945_v63 = vadd.f32 %v3944_v11, %v3918_v49  ;;  %v3887_v49 = vadd.f32 %v17674_v37, %v17673_v27  ;;  %v17675_v11 = vld [vmem:[#allocation98_spill] sm:$0xff]  ;;  %v14341_v14 = vpop.permute.xlu2 %2746  ;;  %v17696_v27 = vld [vmem:[#allocation25_spill] sm:$0xff] }
 0x4c7   : > { %v17697_v37 = vld [vmem:[#allocation26_spill] sm:$0xff] }
 0x4c8   : > { %v4072_v51 = vadd.f32 %v3945_v63, %v3529_v57  ;;  %v3471_v57 = vadd.f32 %v17675_v11, %v3445_v38  ;;  %v17698_v11 = vld [vmem:[#allocation78_spill] sm:$0xff] }
 0x4c9   : > { %v14339_v41 = vpop.permute.xlu1 %2736 }
 0x4ca   : > { %4126 = vrot.lane.b32.xlu0 %v4072_v51, %s17594_s18  ;;  %v4055_v63 = vadd.f32 %v3887_v49, %v3471_v57  ;;  %v14331_v51 = vpop.permute.xlu0 %2762  ;;  %v1291_v49 = vadd.f32 %v17697_v37, %v17696_v27  ;;  %v17699_v57 = vld [vmem:[#allocation79_spill] sm:$0xff]  ;;  %v17715_v27 = vld [vmem:[#allocation40_spill] sm:$0xff]  ;;  %v17716_v37 = vld [vmem:[#allocation53_spill] sm:$0xff] }
 0x4ce   : > { %v14347_v18 = vpop.permute.xlu2 %2744 }
 0x4d1   : > { %v14345_v42 = vpop.permute.xlu1 %2750 }
 0x4d2   : > { %4122 = vrot.lane.b32.xlu0 %v14278_v61, %s17594_s18  ;;  %v14337_v39 = vpop.permute.xlu0 %2756 }
 0x4d4   : > { %v4016_v17 = vpop.f32.mrf.mxu2 }
 0x4d5   : > { %v4042_v25 = vpop.f32.mrf.mxu3 }
 0x4d6   : > { %v4043_v9 = vadd.f32 %v4042_v25, %v4016_v17  ;;  %v14369_v36 = vpop.permute.xlu2 %2754 }
 0x4d8   : > { %v4058_v5 = vadd.f32 %v4043_v9, %v3627_v47  ;;  %v17677_v47 = vld [vmem:[#allocation14_spill] sm:$0xff] }
 0x4d9   : > { %v14351_v25 = vpop.permute.xlu1 %2764  ;;  %v1236_v9 = vadd.f32 %v17677_v47, %v17676_v52  ;;  %v17700_v52 = vld [vmem:[#allocation29_spill] sm:$0xff]  ;;  %v17701_v47 = vld [vmem:[#allocation30_spill] sm:$0xff] }
 0x4da   : > { %4110 = vrot.lane.b32.xlu1 %v4058_v5, %s17594_s18  ;;  %4114 = vrot.lane.b32.xlu0 %v4063_v35, %s17594_s18  ;;  %v14343_v50 = vpop.permute.xlu0 %2740  ;;  %v1239_v35 = vadd.f32 %v17679_v29, %v17678_v59  ;;  %v17680_v5 = vld [vmem:[#allocation17_spill] sm:$0xff]  ;;  %v17702_v59 = vld [vmem:[#allocation20_spill] sm:$0xff] }
 0x4db   : > { %v1242_v7 = vadd.f32 %v17681_v10, %v17680_v5  ;;  %v17704_v5 = vld [vmem:[#allocation44_spill] sm:$0xff] }
 0x4dc   : > { %v4019_v30 = vpop.f32.mrf.mxu2 }
 0x4dd   : > { %v4045_v53 = vpop.f32.mrf.mxu3  ;;  %v1632_v24 = vadd.f32 %v17692_v34, %v1242_v7  ;;  %v17705_v7 = vld [vmem:[#allocation51_spill] sm:$0xff] }
 0x4de   : > { %v4046_v2 = vadd.f32 %v4045_v53, %v4019_v30  ;;  %v1626_v30 = vadd.f32 %v17682_v45, %v1236_v9  ;;  %v17683_v53 = vld [vmem:[#allocation33_spill] sm:$0xff]  ;;  %v1294_v9 = vadd.f32 %v17701_v47, %v17700_v52  ;;  %v17719_v47 = vld [vmem:[#allocation94_spill] sm:$0xff] }
 0x4e0   : > { %v4066_v23 = vadd.f32 %v4046_v2, %v3630_v1  ;;  %v1340_v1 = vadd.f32 %v17684_v60, %v17683_v53  ;;  %v17685_v2 = vld [vmem:[#allocation37_spill] sm:$0xff]  ;;  %v1652_v29 = vadd.f32 %v17702_v59, %v1626_v30  ;;  %v17706_v60 = vld [vmem:[#allocation24_spill] sm:$0xff] }
 0x4e1   : > { %v14387_v53 = vpop.permute.xlu1 %4118  ;;  %v17713_v30 = vld [vmem:[#allocation32_spill] sm:$0xff] }
 0x4e2   : > { %4120 = vrot.lane.b32.xlu2 %v4066_v23, %s17594_s18  ;;  %4102 = vrot.lane.b32.xlu1 %v14300_v43, %s17594_s18  ;;  %v14349_v17 = vpop.permute.xlu0 %2760  ;;  %v1343_v23 = vadd.f32 %v17686_v32, %v17685_v2  ;;  %v1730_v21 = vadd.f32 %v17693_v19, %v1340_v1  ;;  %v17707_v2 = vld [vmem:[#allocation76_spill] sm:$0xff]  ;;  %v17708_v32 = vld [vmem:[#allocation77_spill] sm:$0xff] }
 0x4e4   : > { %v4022_v4 = vpop.f32.mrf.mxu2  ;;  %v1733_v3 = vadd.f32 %v17694_v6, %v1343_v23  ;;  %v2951_v23 = vadd.f32 %v17708_v32, %v17707_v2  ;;  %v1756_v19 = vadd.f32 %v17713_v30, %v1730_v21  ;;  %v17714_v6 = vld [vmem:[#allocation36_spill] sm:$0xff]  ;;  %v17724_v21 = vld [vmem:[#allocation49_spill] sm:$0xff]  ;;  %v17725_v2 = vld [vmem:[#allocation50_spill] sm:$0xff] }
 0x4e5   : > { %v4048_v12 = vpop.f32.mrf.mxu3  ;;  %v17726_v32 = vld [vmem:[#allocation57_spill] sm:$0xff]  ;;  %v17731_v30 = vld [vmem:[#allocation115_spill] sm:$0xff] }
 0x4e6   : > { %v4049_v20 = vadd.f32 %v4048_v12, %v4022_v4  ;;  %v17688_v4 = vld [vmem:[#allocation42_spill] sm:$0xff] }
 0x4e7   : > { %v1346_v12 = vadd.f32 %v17688_v4, %v17687_v13  ;;  %v17709_v13 = vld [vmem:[#allocation80_spill] sm:$0xff]  ;;  %v17710_v4 = vld [vmem:[#allocation81_spill] sm:$0xff] }
 0x4e8   : > { %v4074_v15 = vadd.f32 %v4049_v20, %v3633_v55  ;;  %v17689_v55 = vld [vmem:[#allocation21_spill] sm:$0xff]  ;;  %v17690_v20 = vld [vmem:[#allocation22_spill] sm:$0xff] }
 0x4e9   : > { %v1288_v56 = vadd.f32 %v17690_v20, %v17689_v55  ;;  %v1736_v38 = vadd.f32 %v17695_v22, %v1346_v12  ;;  %v2957_v12 = vadd.f32 %v17710_v4, %v17709_v13  ;;  %v17711_v55 = vld [vmem:[#allocation92_spill] sm:$0xff]  ;;  %v1759_v22 = vadd.f32 %v17714_v6, %v1733_v3  ;;  %v17728_v4 = vld [vmem:[#allocation93_spill] sm:$0xff] }
 0x4ea   : > { %4130 = vrot.lane.b32.xlu2 %v4074_v15, %s17594_s18  ;;  %v1629_v15 = vadd.f32 %v17691_v44, %v1239_v35  ;;  %v14371_v8 = vpop.permute.xlu0 %4108  ;;  %v17703_v35 = vld [vmem:[#allocation43_spill] sm:$0xff]  ;;  %v17712_v44 = vld [vmem:[#allocation28_spill] sm:$0xff]  ;;  %v2429_v3 = vadd.f32 %v17725_v2, %v17724_v21  ;;  %v17738_v2 = vld [vmem:[#allocation89_spill] sm:$0xff] }
 0x4eb   : > { %v2325_v10 = vadd.f32 %v17704_v5, %v17703_v35  ;;  %v1678_v45 = vadd.f32 %v17705_v7, %v1288_v56  ;;  %v1658_v34 = vadd.f32 %v17712_v44, %v1632_v24  ;;  %v1762_v56 = vadd.f32 %v17715_v27, %v1736_v38  ;;  %v17720_v35 = vld [vmem:[#allocation113_spill] sm:$0xff]  ;;  %v17721_v5 = vld [vmem:[#allocation114_spill] sm:$0xff]  ;;  %v17732_v6 = vld [vmem:[#allocation116_spill] sm:$0xff] }
 0x4ec   : > { %v1655_v1 = vadd.f32 %v17706_v60, %v1629_v15  ;;  %v17718_v15 = vld [vmem:[#allocation88_spill] sm:$0xff]  ;;  %v3347_v59 = vadd.f32 %v17719_v47, %v2957_v12  ;;  %v3786_v7 = vadd.f32 %v17721_v5, %v17720_v35  ;;  %v17727_v38 = vld [vmem:[#allocation58_spill] sm:$0xff]  ;;  %v3789_v27 = vadd.f32 %v17732_v6, %v17731_v30  ;;  %v17736_v35 = vld [vmem:[#allocation47_spill] sm:$0xff] }
 0x4ed   : > { %v3341_v52 = vadd.f32 %v17718_v15, %v2951_v23  ;;  %v14405_v60 = vadd.f32 %v2325_v10, %v1652_v29  ;;  %v2435_v13 = vadd.f32 %v17727_v38, %v17726_v32  ;;  %v17729_v23 = vld [vmem:[#allocation109_spill] sm:$0xff]  ;;  %v17730_v44 = vld [vmem:[#allocation110_spill] sm:$0xff]  ;;  %v17735_v15 = vld [vmem:[#allocation55_spill] sm:$0xff] }
 0x4ee   : > { %v3783_v12 = vadd.f32 %v17730_v44, %v17729_v23  ;;  %v1681_v47 = vadd.f32 %v17735_v15, %v1291_v49  ;;  %v17737_v5 = vld [vmem:[#allocation48_spill] sm:$0xff]  ;;  %v17739_v38 = vld [vmem:[#allocation95_spill] sm:$0xff]  ;;  %v2699_v44 = vadd.f32 %v2429_v3, %v1756_v19  ;;  %v17740_v30 = vld [vmem:[#allocation74_spill] sm:$0xff]  ;;  %v2769_v49 = vsel %vm2766_vm1, %v14343_v50, %v14333_v16 }
 0x4ef   : > { %17722 = vst [vmem:[#allocation96_spill] sm:$0xff] %v14405_v60  ;;  %v3367_v32 = vadd.f32 %v17738_v2, %v3341_v52  ;;  %v17741_v6 = vld [vmem:[#allocation75_spill] sm:$0xff]  ;;  %v17743_v19 = vld [vmem:[#allocation84_spill] sm:$0xff] }
 0x4f0   : > { %v2853_v60 = vadd.f32 %v17741_v6, %v17740_v30  ;;  %v2793_v2 = vmax.f32 %v2699_v44, %v2769_v49  ;;  %v17744_v6 = vld [vmem:[#allocation59_spill] sm:$0xff]  ;;  %v17751_v49 = vld [vmem:[#allocation85_spill] sm:$0xff] }
 0x4f2   : > { %4112 = vrot.lane.b32.xlu2 %v14316_v58, %s17594_s18  ;;  %v3243_v3 = vadd.f32 %v17743_v19, %v2853_v60 }
 0x4fa   : > { %4104 = vrot.lane.b32.xlu2 %v4055_v63, %s17594_s18  ;;  %v2954_v63 = vadd.f32 %v17699_v57, %v17698_v11  ;;  %v17717_v11 = vld [vmem:[#allocation54_spill] sm:$0xff]  ;;  %s8501_s18 = smov 40  }
 0x4fb   : > { %v2432_v57 = vadd.f32 %v17717_v11, %v17716_v37  ;;  %v17734_v37 = vld [vmem:[#allocation46_spill] sm:$0xff] }
 0x4fc   : > { %v3344_v20 = vadd.f32 %v17711_v55, %v2954_v63  ;;  %v17723_v63 = vld [vmem:[#allocation52_spill] sm:$0xff] }
 0x4fd   : > { %v14408_v24 = vadd.f32 %v17723_v63, %v1678_v45  ;;  %v17733_v45 = vld [vmem:[#allocation45_spill] sm:$0xff]  ;;  %v2331_v63 = vadd.f32 %v17737_v5, %v17736_v35  ;;  %v2707_v21 = vadd.f32 %v2432_v57, %v1759_v22  ;;  %v4053_v22 = vadd.f32 %v3783_v12, %v3367_v32  ;;  %v17746_v12 = vld [vmem:[#allocation64_spill] sm:$0xff] }
 0x4fe   : > { %v3370_v55 = vadd.f32 %v17728_v4, %v3344_v20  ;;  %v2328_v11 = vadd.f32 %v17734_v37, %v17733_v45  ;;  %v2773_v20 = vsel %vm2766_vm1, %v14345_v42, %v14335_v46  ;;  %v3373_v4 = vadd.f32 %v17739_v38, %v3347_v59  ;;  %v17742_v59 = vld [vmem:[#allocation56_spill] sm:$0xff] }
 0x4ff   : > { %v2777_v45 = vsel %vm2766_vm1, %v14349_v17, %v14331_v51  ;;  %v2715_v37 = vadd.f32 %v2435_v13, %v1762_v56  ;;  %v2797_v15 = vmax.f32 %v2707_v21, %v2773_v20  ;;  %v2713_v5 = vadd.f32 %v2331_v63, %v1658_v34  ;;  %v17745_v13 = vld [vmem:[#allocation63_spill] sm:$0xff]  ;;  %v17749_v34 = vld [vmem:[#allocation65_spill] sm:$0xff]  ;;  %v17750_v63 = vld [vmem:[#allocation66_spill] sm:$0xff] }
 0x500   : > { %v4061_v23 = vadd.f32 %v3786_v7, %v3370_v55  ;;  %v4069_v57 = vadd.f32 %v3789_v27, %v3373_v4  ;;  %v14441_v52 = vadd.f32 %v2328_v11, %v1655_v1  ;;  %v1707_v7 = vadd.f32 %v17742_v59, %v1681_v47  ;;  %v4129_v55 = vpop.permute.xlu1 %4128  ;;  %v17747_v1 = vld [vmem:[#allocation105_spill] sm:$0xff]  ;;  %v17748_v11 = vld [vmem:[#allocation106_spill] sm:$0xff] }
 0x501   : > { %v2801_v38 = vmax.f32 %v2715_v37, %v2777_v45  ;;  %v1684_v56 = vadd.f32 %v17744_v6, %v1294_v9  ;;  %v2380_v27 = vadd.f32 %v17746_v12, %v17745_v13  ;;  %v3685_v20 = vadd.f32 %v17748_v11, %v17747_v1  ;;  %v14459_v47 = vld [vmem:[%s17497_s3] sm:$0xf]  ;;  %v17755_v6 = vld [vmem:[#allocation61_spill] sm:$0xff] }
 0x502   : > { %v4081_v30 = vmax.f32 %v2797_v15, %v4061_v23  ;;  %v2383_v21 = vadd.f32 %v17750_v63, %v17749_v34  ;;  %v4077_v32 = vmax.f32 %v2793_v2, %v4053_v22  ;;  %v3269_v45 = vadd.f32 %v17751_v49, %v3243_v3  ;;  %v17752_v3 = vld [vmem:[#allocation60_spill] sm:$0xff]  ;;  %v17756_v13 = vld [vmem:[#allocation62_spill] sm:$0xff]  ;;  %v17758_v1 = vld [vmem:[#allocation73_spill] sm:$0xff] }
 0x503   : > { %v4085_v23 = vmax.f32 %v2801_v38, %v4069_v57  ;;  %v2775_v37 = vsel %vm2766_vm1, %v14337_v39, %v14327_v54  ;;  %v2774_v15 = vsel %vm2766_vm1, %v14335_v46, %v14369_v36  ;;  %v2778_v22 = vsel %vm2766_vm1, %v14331_v51, %v14351_v25  ;;  %v17753_v38 = vld [vmem:[#allocation70_spill] sm:$0xff]  ;;  %v17757_v36 = vld [vmem:[#allocation72_spill] sm:$0xff] }
 0x504   : > { %v4172_v19 = vperm.slane %v14459_v47, 2  ;;  %v1710_v2 = vadd.f32 %v17752_v3, %v1684_v56  ;;  %v14483_v12 = vadd.f32 %v17756_v13, %v17755_v6  ;;  %v4067_v46 = vadd.f32 %v3685_v20, %v3269_v45  ;;  %v17759_v34 = vld [vmem:[#allocation68_spill] sm:$0xff]  ;;  %v17762_v6 = vld [vmem:[#allocation9_spill] sm:$0xff] }
 0x505   : > { %v2850_v11 = vadd.f32 %v17758_v1, %v17757_v36  ;;  %v2798_v63 = vmax.f32 %v17759_v34, %v2774_v15  ;;  %v17767_v34 = vld [vmem:[#allocation10_spill] sm:$0xff] }
 0x507   : > { %v4082_v3 = vmax.f32 %v2798_v63, %v14316_v58  ;;  %v3240_v15 = vadd.f32 %v17762_v6, %v2850_v11  ;;  %v14517_v11 = vld [vmem:[%s17498_s4] sm:$0xff] }
 0x509   : > { %v3266_v63 = vadd.f32 %v17767_v34, %v3240_v15  ;;  %v17772_v15 = vld [vmem:[#allocation11_spill] sm:$0xff] }
 0x514   : > { %v14419_v29 = vpop.permute.xlu2 %4106 }
 0x515   : > { %v4134_v60 = vsel %vm2766_vm1, %v14419_v29, %v14371_v8 }
 0x516   : > { %v4158_v57 = vmax.f32 %v4077_v32, %v4134_v60  ;;  %v14488_v60 = vadd.f32 %v2380_v27, %v1707_v7  ;;  %v2799_v32 = vmax.f32 %v2713_v5, %v2775_v37  ;;  %v17763_v37 = vld [vmem:[#allocation90_spill] sm:$0xff] }
 0x518   : > { %v4180_v45 = vadd.f32 %v4172_v19, %v4158_v57  ;;  %v4083_v5 = vmax.f32 %v2799_v32, %v4067_v46 }
 0x51a   : > { %v4192_v1 = vmax.f32 %v4180_v45, 0.0 }
 0x534   : > { %v14421_v10 = vpop.permute.xlu0 %4116 }
 0x535   : > { %v4138_v35 = vsel %vm2766_vm1, %v14421_v10, %v14387_v53 }
 0x536   : > { %v4162_v9 = vmax.f32 %v4081_v30, %v4138_v35  ;;  %v17754_v30 = vld [vmem:[#allocation71_spill] sm:$0xff] }
 0x537   : > { %v2847_v39 = vadd.f32 %v17754_v30, %v17753_v38  ;;  %v17761_v38 = vld [vmem:[#allocation7_spill] sm:$0xff] }
 0x538   : > { %v4184_v25 = vadd.f32 %v4172_v19, %v4162_v9  ;;  %v14502_v9 = vperm.slane %v14459_v47, 3 }
 0x539   : > { %v3237_v30 = vadd.f32 %v17761_v38, %v2847_v39  ;;  %v17771_v38 = vld [vmem:[#allocation8_spill] sm:$0xff] }
 0x53b   : > { %v3263_v6 = vadd.f32 %v17771_v38, %v3237_v30  ;;  %v2776_v30 = vsel %vm2766_vm1, %v14327_v54, %v14349_v17  ;;  %v2767_v54 = vsel %vm2766_vm1, %v14339_v41, %v14329_v31  ;;  %v17780_v17 = vld [vmem:[#allocation108_spill] sm:$0xff] }
 0x53c   : > { %v4121_v4 = vpop.permute.xlu2 %4120  ;;  %v14463_v44 = vpop.permute.xlu0 %4126  ;;  %v14564_v41 = vld [vmem:[%s17498_s4 + $0x8] sm:$0xff] }
 0x53d   : > { %v4142_v59 = vsel %vm2766_vm1, %v14463_v44, %v4129_v55  ;;  %v4139_v49 = vsel %vm2766_vm1, %v14387_v53, %v4121_v4  ;;  %v4196_v4 = vmax.f32 %v4184_v25, 0.0  ;;  %v17769_v25 = vld [vmem:[#allocation87_spill] sm:$0xff]  ;;  %v17782_v38 = vld [vmem:[#allocation96_spill] sm:$0xff] }
 0x53e   : > { %v4166_v35 = vmax.f32 %v4085_v23, %v4142_v59  ;;  %v17760_v23 = vld [vmem:[#allocation69_spill] sm:$0xff]  ;;  %v14493_v59 = vadd.f32 %v2383_v21, %v1710_v2  ;;  %v4163_v27 = vmax.f32 %v4082_v3, %v4139_v49  ;;  %v14505_v21 = vperm.slane %v14459_v47, 0  ;;  %v17766_v2 = vld [vmem:[#allocation102_spill] sm:$0xff] }
 0x53f   : > { %v2802_v56 = vmax.f32 %v17760_v23, %v2778_v22  ;;  %v17764_v22 = vld [vmem:[#allocation91_spill] sm:$0xff]  ;;  %v2770_v23 = vsel %vm2766_vm1, %v14333_v16, %v14347_v18 }
 0x540   : > { %v4188_v51 = vadd.f32 %v4172_v19, %v4166_v35  ;;  %v14498_v35 = vpop.permute.xlu1 %4124  ;;  %v2905_v57 = vadd.f32 %v17764_v22, %v17763_v37  ;;  %v17765_v19 = vld [vmem:[#allocation101_spill] sm:$0xff]  ;;  %v4185_v45 = vadd.f32 %v14502_v9, %v4163_v27  ;;  %v17775_v16 = vld [vmem:[#allocation67_spill] sm:$0xff] }
 0x541   : > { %v4086_v7 = vmax.f32 %v2802_v56, %v14278_v61  ;;  %v3682_v39 = vadd.f32 %v17766_v2, %v17765_v19  ;;  %v17770_v56 = vld [vmem:[#allocation111_spill] sm:$0xff]  ;;  %v2794_v18 = vmax.f32 %v17775_v16, %v2770_v23  ;;  %v17777_v19 = vld [vmem:[#allocation100_spill] sm:$0xff] }
 0x542   : > { %v4200_v20 = vmax.f32 %v4188_v51, 0.0  ;;  %v17768_v51 = vld [vmem:[#allocation86_spill] sm:$0xff]  ;;  %v3295_v49 = vadd.f32 %v17770_v56, %v2905_v57  ;;  %v17776_v57 = vld [vmem:[#allocation99_spill] sm:$0xff]  ;;  %v17781_v56 = vld [vmem:[#allocation104_spill] sm:$0xff] }
 0x543   : > { %v2902_v32 = vadd.f32 %v17769_v25, %v17768_v51  ;;  %v3679_v2 = vadd.f32 %v17777_v19, %v17776_v57 }
 0x544   : > { %v4131_v53 = vpop.permute.xlu2 %4130  ;;  %v4123_v58 = vpop.permute.xlu0 %4122  ;;  %4310 = vmatpush.msra.mxu2 %v4200_v20 }
 0x545   : > { %v4143_v61 = vsel %vm2766_vm1, %v4129_v55, %v4131_v53  ;;  %v4140_v13 = vsel %vm2766_vm1, %v4123_v58, %v14498_v35  ;;  %v2771_v55 = vsel %vm2766_vm1, %v14341_v14, %v14325_v40  ;;  %v4059_v53 = vadd.f32 %v3682_v39, %v3266_v63  ;;  %v17774_v14 = vld [vmem:[#allocation107_spill] sm:$0xff] }
 0x546   : > { %v4167_v46 = vmax.f32 %v4086_v7, %v4143_v61  ;;  %v4164_v36 = vmax.f32 %v4083_v5, %v4140_v13  ;;  %4311 = vmatpush.msra.mxu2 %v4196_v4  ;;  %v17773_v7 = vld [vmem:[#allocation12_spill] sm:$0xff]  ;;  %v3292_v58 = vadd.f32 %v17774_v14, %v2902_v32  ;;  %v3737_v4 = vadd.f32 %v14251_v62, %v14249_v26  ;;  %v17778_v39 = vld [vmem:[#allocation103_spill] sm:$0xff] }
 0x547   : > { %v2899_v5 = vadd.f32 %v17773_v7, %v17772_v15  ;;  %v2795_v27 = vmax.f32 %v14441_v52, %v2771_v55  ;;  %v17779_v13 = vld [vmem:[#allocation112_spill] sm:$0xff]  ;;  %v4078_v26 = vmax.f32 %v2794_v18, %v14300_v43  ;;  %v4197_v52 = vmax.f32 %v4185_v45, 0.0 }
 0x548   : > { %v4189_v3 = vadd.f32 %v14502_v9, %v4167_v46  ;;  %v4186_v20 = vadd.f32 %v14505_v21, %v4164_v36  ;;  %4312 = vmatpush.msra.mxu2 %v4192_v1  ;;  %v3321_v46 = vadd.f32 %v17779_v13, %v3295_v49  ;;  %v3734_v36 = vadd.f32 %v14247_v0, %v14245_v48 }
 0x549   : > { %6958 = vmatmul.msk.f32.vlgmr.msra.gmra.mxu2 %vm4208_vm2, %v14517_v11  ;;  %v3289_v61 = vadd.f32 %v17778_v39, %v2899_v5  ;;  %v3318_v34 = vadd.f32 %v17780_v17, %v3292_v58  ;;  %v4079_v51 = vmax.f32 %v2795_v27, %v4059_v53  ;;  %v3731_v48 = vadd.f32 %v14243_v33, %v14241_v28  ;;  %v14604_v27 = vld [vmem:[%s17498_s4 + $0x28] sm:$0xff]  ;;  %v7062_v39 = vld [vmem:[%s17499_s5 + $0x6a0] sm:$0xff] }
 0x54a   : > { %v4201_v37 = vmax.f32 %v4189_v3, 0.0  ;;  %v4198_v22 = vmax.f32 %v4186_v20, 0.0  ;;  %v4068_v0 = vadd.f32 %v3737_v4, %v3321_v46  ;;  %v2772_v55 = vsel %vm2766_vm1, %v14325_v40, %v14345_v42  ;;  %v7060_v46 = vld [vmem:[%s17499_s5 + $0x690] sm:$0xff]  ;;  %v7030_v17 = vld [vmem:[%s17499_s5 + $0x5a0] sm:$0xff] }
 0x54b   : > { %v2800_v28 = vmax.f32 %v14493_v59, %v2776_v30  ;;  %v4051_v23 = vadd.f32 %v3679_v2, %v3263_v6  ;;  %v3315_v49 = vadd.f32 %v17781_v56, %v3289_v61  ;;  %v4060_v3 = vadd.f32 %v3734_v36, %v3318_v34  ;;  %v7000_v61 = vld [vmem:[%s17499_s5 + $0x4b0] sm:$0xff]  ;;  %v6998_v36 = vld [vmem:[%s17499_s5 + $0x4a0] sm:$0xff] }
 0x54c   : > { %v4113_v1 = vpop.permute.xlu2 %4112  ;;  %4345 = vmatpush.msra.mxu3 %v4201_v37  ;;  %v4111_v62 = vpop.permute.xlu1 %4110  ;;  %4240 = vmatpush.msrb.mxu0 %v4198_v22  ;;  %v2698_v45 = vadd.f32 %v14483_v12, %v14408_v24  ;;  %v2791_v15 = vmax.f32 %v17782_v38, %v2767_v54  ;;  %v4171_v7 = vperm.slane %v14459_v47, 1  ;;  %v6994_v54 = vld [vmem:[%s17499_s5 + $0x480] sm:$0xff]  ;;  %v7056_v34 = vld [vmem:[%s17499_s5 + $0x670] sm:$0xff] }
 0x54d   : > { %v4135_v63 = vsel %vm2766_vm1, %v14371_v8, %v4111_v62  ;;  %v4115_v25 = vpop.permute.xlu0 %4114  ;;  %7281 = vmatpush.msrb.mxu1 %v4198_v22  ;;  %v2768_v8 = vsel %vm2766_vm1, %v14329_v31, %v14343_v50  ;;  %v4141_v31 = vsel %vm2766_vm1, %v14498_v35, %v14463_v44  ;;  %v2796_v50 = vmax.f32 %v14488_v60, %v2772_v55  ;;  %v14636_v62 = vld [vmem:[%s17498_s4 + $0x18] sm:$0xff]  ;;  %v7050_v55 = vld [vmem:[%s17499_s5 + $0x640] sm:$0xff]  ;;  %v7080_v38 = vld [vmem:[%s17499_s5 + $0x730] sm:$0xff] }
 0x54e   : > { %v4159_v43 = vmax.f32 %v4078_v26, %v4135_v63  ;;  %v4136_v32 = vsel %vm2766_vm1, %v4113_v1, %v4115_v25  ;;  %4346 = vmatpush.msra.mxu3 %v4197_v52  ;;  %v4052_v42 = vadd.f32 %v3731_v48, %v3315_v49  ;;  %v4084_v59 = vmax.f32 %v2800_v28, %v4068_v0  ;;  %v6996_v1 = vld [vmem:[%s17499_s5 + $0x490] sm:$0xff]  ;;  %v7058_v52 = vld [vmem:[%s17499_s5 + $0x680] sm:$0xff] }
 0x54f   : > { %v4160_v33 = vmax.f32 %v4079_v51, %v4136_v32  ;;  %v4137_v24 = vsel %vm2766_vm1, %v4115_v25, %v14421_v10  ;;  %v4080_v53 = vmax.f32 %v2796_v50, %v4060_v3  ;;  %v4075_v35 = vmax.f32 %v2791_v15, %v4051_v23  ;;  %v14596_v10 = vld [vmem:[%s17498_s4 + $0x10] sm:$0xff]  ;;  %v7054_v25 = vld [vmem:[%s17499_s5 + $0x660] sm:$0xff] }
 0x550   : > { %v4181_v20 = vadd.f32 %v14502_v9, %v4159_v43  ;;  %v2792_v9 = vmax.f32 %v2698_v45, %v2768_v8  ;;  %v4165_v5 = vmax.f32 %v4084_v59, %v4141_v31  ;;  %v7032_v26 = vld [vmem:[%s17499_s5 + $0x5b0] sm:$0xff]  ;;  %v7086_v48 = vld [vmem:[%s17499_s5 + $0x760] sm:$0xff] }
 0x551   : > { %6959 = vmatmul.msk.f32.gmra.mxu2 %vm4208_vm2, %v14564_v41  ;;  %v4182_v40 = vadd.f32 %v14505_v21, %v4160_v33  ;;  %v4161_v16 = vmax.f32 %v4080_v53, %v4137_v24  ;;  %v7088_v63 = vld [vmem:[%s17499_s5 + $0x770] sm:$0xff]  ;;  %v6990_v0 = vld [vmem:[%s17499_s5 + $0x460] sm:$0xff] }
 0x552   : > { %v4193_v6 = vmax.f32 %v4181_v20, 0.0  ;;  %v4076_v18 = vmax.f32 %v2792_v9, %v4052_v42  ;;  %v4187_v47 = vadd.f32 %v4171_v7, %v4165_v5  ;;  %v6992_v51 = vld [vmem:[%s17499_s5 + $0x470] sm:$0xff]  ;;  %v7026_v43 = vld [vmem:[%s17499_s5 + $0x580] sm:$0xff] }
 0x553   : > { %v4194_v12 = vmax.f32 %v4182_v40, 0.0  ;;  %v4183_v30 = vadd.f32 %v4171_v7, %v4161_v16  ;;  %v7052_v32 = vld [vmem:[%s17499_s5 + $0x650] sm:$0xff]  ;;  %v6986_v56 = vld [vmem:[%s17499_s5 + $0x440] sm:$0xff] }
 0x554   : > { %v4105_v44 = vpop.permute.xlu2 %4104  ;;  %4347 = vmatpush.msra.mxu3 %v4193_v6  ;;  %v4103_v14 = vpop.permute.xlu1 %4102  ;;  %v4199_v57 = vmax.f32 %v4187_v47, 0.0  ;;  %v7084_v8 = vld [vmem:[%s17499_s5 + $0x750] sm:$0xff]  ;;  %v7022_v49 = vld [vmem:[%s17499_s5 + $0x560] sm:$0xff]  ;;  %v7061_v47 = vld [vmem:[%s17499_s5 + $0x698] sm:$0xff] }
 0x555   : > { %v4133_v58 = vsel %vm2766_vm1, %v4105_v44, %v14419_v29  ;;  %v4132_v60 = vsel %vm2766_vm1, %v4103_v14, %v4105_v44  ;;  %4241 = vmatpush.msrb.mxu0 %v4194_v12  ;;  %7282 = vmatpush.msrb.mxu1 %v4194_v12  ;;  %v4195_v2 = vmax.f32 %v4183_v30, 0.0  ;;  %v6988_v28 = vld [vmem:[%s17499_s5 + $0x450] sm:$0xff]  ;;  %v7082_v3 = vld [vmem:[%s17499_s5 + $0x740] sm:$0xff] }
 0x556   : > { %v4156_v4 = vmax.f32 %v4075_v35, %v4132_v60  ;;  %6964 = vmatmul.msk.f32.vlgmr.msra.gmra.mxu3 %vm4208_vm2, %v14517_v11  ;;  %v4157_v37 = vmax.f32 %v4076_v18, %v4133_v58  ;;  %v7024_v33 = vld [vmem:[%s17499_s5 + $0x570] sm:$0xff]  ;;  %v6982_v31 = vld [vmem:[%s17499_s5 + $0x420] sm:$0xff]  ;;  %v7065_v18 = vld [vmem:[%s17499_s5 + $0x6b8] sm:$0xff] }
 0x557   : > { %4712 = vmatpush.msrb.mxu3 %v7088_v63  ;;  %v7048_v23 = vld [vmem:[%s17499_s5 + $0x630] sm:$0xff]  ;;  %v7042_v40 = vld [vmem:[%s17499_s5 + $0x600] sm:$0xff] }
 0x558   : > { %v4178_v22 = vadd.f32 %v14505_v21, %v4156_v4  ;;  %v4179_v19 = vadd.f32 %v4171_v7, %v4157_v37  ;;  %v7064_v21 = vld [vmem:[%s17499_s5 + $0x6b0] sm:$0xff]  ;;  %v7018_v42 = vld [vmem:[%s17499_s5 + $0x540] sm:$0xff]  ;;  %v7059_v37 = vld [vmem:[%s17499_s5 + $0x688] sm:$0xff] }
 0x559   : > { %6960 = vmatmul.msk.f32.gmra.mxu2 %vm4208_vm2, %v14596_v10  ;;  %4713 = vmatpush.msrb.mxu3 %v7086_v48  ;;  %v6984_v20 = vld [vmem:[%s17499_s5 + $0x430] sm:$0xff]  ;;  %v6978_v6 = vld [vmem:[%s17499_s5 + $0x400] sm:$0xff]  ;;  %v7087_v48 = vld [vmem:[%s17499_s5 + $0x768] sm:$0xff] }
 0x55a   : > { %v4190_v29 = vmax.f32 %v4178_v22, 0.0  ;;  %4685 = vmatpush.msrb.mxu2 %v7064_v21  ;;  %v4191_v13 = vmax.f32 %v4179_v19, 0.0  ;;  %v7020_v45 = vld [vmem:[%s17499_s5 + $0x550] sm:$0xff]  ;;  %v4206_v9 = vld [vmem:[%s17498_s4 + $0x20] sm:$0xff]  ;;  %v7057_v22 = vld [vmem:[%s17499_s5 + $0x678] sm:$0xff] }
 0x55b   : > { %4714 = vmatpush.msrb.mxu3 %v7084_v8  ;;  %v7044_v15 = vld [vmem:[%s17499_s5 + $0x610] sm:$0xff]  ;;  %v7078_v12 = vld [vmem:[%s17499_s5 + $0x720] sm:$0xff]  ;;  %v7053_v21 = vld [vmem:[%s17499_s5 + $0x658] sm:$0xff] }
 0x55c   : > { %4242 = vmatpush.msrb.mxu0 %v4190_v29  ;;  %7283 = vmatpush.msrb.mxu1 %v4190_v29  ;;  %v6980_v50 = vld [vmem:[%s17499_s5 + $0x410] sm:$0xff]  ;;  %v7038_v7 = vld [vmem:[%s17499_s5 + $0x5e0] sm:$0xff]  ;;  %v7055_v29 = vld [vmem:[%s17499_s5 + $0x668] sm:$0xff] }
 0x55d   : > { %6946 = vmatmul.msk.f32.vlgmr.msrb.gmra.mxu0 %vm4208_vm2, %v14517_v11  ;;  %6951 = vmatmul.msk.f32.vlgmr.msrb.gmra.mxu1 %vm4208_vm2, %v14604_v27  ;;  %v7040_v59 = vld [vmem:[%s17499_s5 + $0x5f0] sm:$0xff]  ;;  %v7014_v53 = vld [vmem:[%s17499_s5 + $0x520] sm:$0xff]  ;;  %v7085_v8 = vld [vmem:[%s17499_s5 + $0x758] sm:$0xff] }
 0x55e   : > { %4275 = vmatpush.msra.mxu1 %v4199_v57  ;;  %6965 = vmatmul.msk.f32.gmra.mxu3 %vm4208_vm2, %v14564_v41  ;;  %v7016_v24 = vld [vmem:[%s17499_s5 + $0x530] sm:$0xff]  ;;  %v6974_v14 = vld [vmem:[%s17499_s5 + $0x3e0] sm:$0xff] }
 0x55f   : > { %4639 = vmatpush.msra.mxu0 %v7000_v61  ;;  %4686 = vmatpush.msrb.mxu2 %v7062_v39  ;;  %v6976_v5 = vld [vmem:[%s17499_s5 + $0x3f0] sm:$0xff]  ;;  %v7034_v60 = vld [vmem:[%s17499_s5 + $0x5c0] sm:$0xff]  ;;  %v7051_v61 = vld [vmem:[%s17499_s5 + $0x648] sm:$0xff] }
 0x560   : > { %4276 = vmatpush.msra.mxu1 %v4195_v2  ;;  %4715 = vmatpush.msrb.mxu3 %v7082_v3  ;;  %v7076_v44 = vld [vmem:[%s17499_s5 + $0x710] sm:$0xff]  ;;  %v7074_v4 = vld [vmem:[%s17499_s5 + $0x700] sm:$0xff]  ;;  %v7027_v3 = vld [vmem:[%s17499_s5 + $0x588] sm:$0xff] }
 0x561   : > { %4640 = vmatpush.msra.mxu0 %v6998_v36  ;;  %4687 = vmatpush.msrb.mxu2 %v7060_v46  ;;  %v7036_v35 = vld [vmem:[%s17499_s5 + $0x5d0] sm:$0xff]  ;;  %v6970_v30 = vld [vmem:[%s17499_s5 + $0x3c0] sm:$0xff] }
 0x562   : > { %4277 = vmatpush.msra.mxu1 %v4191_v13  ;;  %6961 = vmatmul.msk.f32.gmra.mxu2 %vm4208_vm2, %v14636_v62  ;;  %v7012_v58 = vld [vmem:[%s17499_s5 + $0x510] sm:$0xff]  ;;  %v7010_v57 = vld [vmem:[%s17499_s5 + $0x500] sm:$0xff]  ;;  %v6999_v13 = vld [vmem:[%s17499_s5 + $0x4a8] sm:$0xff] }
 0x563   : > { %4641 = vmatpush.msra.mxu0 %v6996_v1  ;;  %4688 = vmatpush.msrb.mxu2 %v7058_v52  ;;  %v6972_v16 = vld [vmem:[%s17499_s5 + $0x3d0] sm:$0xff]  ;;  %v7070_v39 = vld [vmem:[%s17499_s5 + $0x6e0] sm:$0xff]  ;;  %v7049_v1 = vld [vmem:[%s17499_s5 + $0x638] sm:$0xff] }
 0x564   : > { %4662 = vmatpush.msrb.mxu1 %v7032_v26  ;;  %4716 = vmatpush.msrb.mxu3 %v7080_v38  ;;  %v7072_v19 = vld [vmem:[%s17499_s5 + $0x6f0] sm:$0xff]  ;;  %v7006_v46 = vld [vmem:[%s17499_s5 + $0x4e0] sm:$0xff]  ;;  %v6997_v26 = vld [vmem:[%s17499_s5 + $0x498] sm:$0xff] }
 0x565   : > { %6947 = vmatmul.msk.f32.gmra.mxu0 %vm4208_vm2, %v14564_v41  ;;  %6952 = vmatmul.msk.f32.vlgmr.msra.gmra.mxu1 %vm4208_vm2, %v14517_v11  ;;  %v7028_v11 = vld [vmem:[%s17499_s5 + $0x590] sm:$0xff]  ;;  %v7066_v52 = vld [vmem:[%s17499_s5 + $0x6c0] sm:$0xff]  ;;  %v7025_v38 = vld [vmem:[%s17499_s5 + $0x578] sm:$0xff] }
 0x566   : > { %6966 = vmatmul.msk.f32.gmra.mxu3 %vm4208_vm2, %v14596_v10  ;;  %4642 = vmatpush.msra.mxu0 %v6994_v54  ;;  %v7008_v2 = vld [vmem:[%s17499_s5 + $0x4f0] sm:$0xff]  ;;  %v7047_v54 = vld [vmem:[%s17499_s5 + $0x628] sm:$0xff]  ;;  %v7002_v63 = vld [vmem:[%s17499_s5 + $0x4c0] sm:$0xff] }
 0x567   : > { %4663 = vmatpush.msrb.mxu1 %v7030_v17  ;;  %4689 = vmatpush.msrb.mxu2 %v7056_v34  ;;  %v7068_v36 = vld [vmem:[%s17499_s5 + $0x6d0] sm:$0xff]  ;;  %v6995_v17 = vld [vmem:[%s17499_s5 + $0x488] sm:$0xff]  ;;  %v7089_v34 = vld [vmem:[%s17499_s5 + $0x778] sm:$0xff] }
 0x568   : > { %4643 = vmatpush.msra.mxu0 %v6992_v51  ;;  %4717 = vmatpush.msrb.mxu3 %v7078_v12  ;;  %v7045_v51 = vld [vmem:[%s17499_s5 + $0x618] sm:$0xff]  ;;  %v7019_v12 = vld [vmem:[%s17499_s5 + $0x548] sm:$0xff] }
 0x569   : > { %4664 = vmatpush.msrb.mxu1 %v7028_v11  ;;  %4690 = vmatpush.msrb.mxu2 %v7054_v25  ;;  %v6993_v11 = vld [vmem:[%s17499_s5 + $0x478] sm:$0xff] }
 0x56a   : > { %4644 = vmatpush.msra.mxu0 %v6990_v0  ;;  %4718 = vmatpush.msrb.mxu3 %v7076_v44  ;;  %v7033_v25 = vld [vmem:[%s17499_s5 + $0x5b8] sm:$0xff]  ;;  %v7043_v0 = vld [vmem:[%s17499_s5 + $0x608] sm:$0xff] }
 0x56b   : > { %4665 = vmatpush.msrb.mxu1 %v7026_v43  ;;  %4691 = vmatpush.msrb.mxu2 %v7052_v32  ;;  %v6991_v43 = vld [vmem:[%s17499_s5 + $0x468] sm:$0xff] }
 0x56c   : > { %4645 = vmatpush.msra.mxu0 %v6988_v28  ;;  %4719 = vmatpush.msrb.mxu3 %v7074_v4  ;;  %v7031_v32 = vld [vmem:[%s17499_s5 + $0x5a8] sm:$0xff]  ;;  %v6989_v28 = vld [vmem:[%s17499_s5 + $0x458] sm:$0xff] }
 0x56d   : > { %6948 = vmatmul.msk.f32.gmra.mxu0 %vm4208_vm2, %v14596_v10  ;;  %6953 = vmatmul.msk.f32.gmra.mxu1 %vm4208_vm2, %v14564_v41  ;;  %v7046_v41 = vld [vmem:[%s17499_s5 + $0x620] sm:$0xff]  ;;  %v7071_v44 = vld [vmem:[%s17499_s5 + $0x6e8] sm:$0xff] }
 0x56e   : > { %4692 = vmatpush.msrb.mxu2 %v7050_v55  ;;  %6967 = vmatmul.msk.f32.gmra.mxu3 %vm4208_vm2, %v14636_v62  ;;  %v7041_v55 = vld [vmem:[%s17499_s5 + $0x5f8] sm:$0xff] }
 0x56f   : > { %4666 = vmatpush.msrb.mxu1 %v7024_v33  ;;  %4646 = vmatpush.msra.mxu0 %v6986_v56  ;;  %v7029_v33 = vld [vmem:[%s17499_s5 + $0x598] sm:$0xff]  ;;  %v7039_v56 = vld [vmem:[%s17499_s5 + $0x5e8] sm:$0xff] }
 0x570   : > { %4693 = vmatpush.msrb.mxu2 %v7048_v23  ;;  %4720 = vmatpush.msrb.mxu3 %v7072_v19  ;;  %v7083_v23 = vld [vmem:[%s17499_s5 + $0x748] sm:$0xff] }
 0x571   : > { %4667 = vmatpush.msrb.mxu1 %v7022_v49  ;;  %4647 = vmatpush.msra.mxu0 %v6984_v20  ;;  %v6987_v49 = vld [vmem:[%s17499_s5 + $0x448] sm:$0xff]  ;;  %v7037_v20 = vld [vmem:[%s17499_s5 + $0x5d8] sm:$0xff] }
 0x572   : > { %4694 = vmatpush.msrb.mxu2 %v7046_v41  ;;  %4721 = vmatpush.msrb.mxu3 %v7070_v39  ;;  %v7081_v41 = vld [vmem:[%s17499_s5 + $0x738] sm:$0xff] }
 0x573   : > { %4668 = vmatpush.msrb.mxu1 %v7020_v45  ;;  %4648 = vmatpush.msra.mxu0 %v6982_v31  ;;  %v6985_v45 = vld [vmem:[%s17499_s5 + $0x438] sm:$0xff]  ;;  %v7035_v31 = vld [vmem:[%s17499_s5 + $0x5c8] sm:$0xff] }
 0x574   : > { %4695 = vmatpush.msrb.mxu2 %v7044_v15  ;;  %4722 = vmatpush.msrb.mxu3 %v7068_v36  ;;  %v7079_v15 = vld [vmem:[%s17499_s5 + $0x728] sm:$0xff]  ;;  %v4483_v36 = vld [vmem:[%s17499_s5 + $0x3a0] sm:$0xff] }
 0x575   : > { %6949 = vmatmul.msk.f32.gmra.mxu0 %vm4208_vm2, %v14636_v62  ;;  %6954 = vmatmul.msk.f32.gmra.mxu1 %vm4208_vm2, %v14596_v10  ;;  %v7063_v10 = vld [vmem:[%s17499_s5 + $0x6a8] sm:$0xff] }
 0x576   : > { %4696 = vmatpush.msrb.mxu2 %v7042_v40  ;;  %4649 = vmatpush.msra.mxu0 %v6980_v50  ;;  %v6983_v40 = vld [vmem:[%s17499_s5 + $0x428] sm:$0xff] }
 0x577   : > { %4669 = vmatpush.msrb.mxu1 %v7018_v42  ;;  %6968 = vmatmul.msk.f32.gmra.mxu3 %vm4208_vm2, %v4206_v9  ;;  %v7023_v50 = vld [vmem:[%s17499_s5 + $0x568] sm:$0xff]  ;;  %v7077_v42 = vld [vmem:[%s17499_s5 + $0x718] sm:$0xff] }
 0x578   : > { %4697 = vmatpush.msrb.mxu2 %v7040_v59  ;;  %4650 = vmatpush.msra.mxu0 %v6978_v6  ;;  %v6981_v59 = vld [vmem:[%s17499_s5 + $0x418] sm:$0xff] }
 0x579   : > { %4670 = vmatpush.msrb.mxu1 %v7016_v24  ;;  %6962 = vmatmul.msk.f32.gmra.mxu2 %vm4208_vm2, %v4206_v9  ;;  %v7021_v6 = vld [vmem:[%s17499_s5 + $0x558] sm:$0xff]  ;;  %v6979_v24 = vld [vmem:[%s17499_s5 + $0x408] sm:$0xff] }
 0x57a   : > { %4698 = vmatpush.msrb.mxu2 %v7038_v7  ;;  %4651 = vmatpush.msra.mxu0 %v6976_v5  ;;  %v7073_v7 = vld [vmem:[%s17499_s5 + $0x6f8] sm:$0xff] }
 0x57b   : > { %4671 = vmatpush.msrb.mxu1 %v7014_v53  ;;  %4723 = vmatpush.msrb.mxu3 %v7066_v52  ;;  %v6977_v5 = vld [vmem:[%s17499_s5 + $0x3f8] sm:$0xff]  ;;  %v4481_v52 = vld [vmem:[%s17499_s5 + $0x390] sm:$0xff] }
 0x57c   : > { %4699 = vmatpush.msrb.mxu2 %v7036_v35  ;;  %4652 = vmatpush.msra.mxu0 %v6974_v14  ;;  %v7017_v53 = vld [vmem:[%s17499_s5 + $0x538] sm:$0xff]  ;;  %v6975_v35 = vld [vmem:[%s17499_s5 + $0x3e8] sm:$0xff] }
 0x57d   : > { %6950 = vmatmul.msk.f32.gmra.mxu0 %vm4208_vm2, %v4206_v9  ;;  %4672 = vmatpush.msrb.mxu1 %v7012_v58  ;;  %v7015_v14 = vld [vmem:[%s17499_s5 + $0x528] sm:$0xff]  ;;  %v7069_v58 = vld [vmem:[%s17499_s5 + $0x6d8] sm:$0xff] }
 0x57e   : > { %4700 = vmatpush.msrb.mxu2 %v7034_v60  ;;  %4653 = vmatpush.msra.mxu0 %v6972_v16  ;;  %v6973_v60 = vld [vmem:[%s17499_s5 + $0x3d8] sm:$0xff] }
 0x57f   : > { %6955 = vmatmul.msk.f32.gmra.mxu1 %vm4208_vm2, %v14636_v62  ;;  %6969 = vmatmul.msk.f32.gmra.mxu3 %vm4208_vm2, %v14604_v27  ;;  %v7004_v62 = vld [vmem:[%s17499_s5 + $0x4d0] sm:$0xff]  ;;  %v7013_v16 = vld [vmem:[%s17499_s5 + $0x518] sm:$0xff] }
 0x580   : > { %4777 = vmatpush.msra.mxu2 %v7065_v18  ;;  %4654 = vmatpush.msra.mxu0 %v6970_v30  ;;  %v7067_v18 = vld [vmem:[%s17499_s5 + $0x6c8] sm:$0xff]  ;;  %v7005_v30 = vld [vmem:[%s17499_s5 + $0x4d8] sm:$0xff] }
 0x581   : > { %6963 = vmatmul.msk.f32.gmra.mxu2 %vm4208_vm2, %v14604_v27  ;;  %4673 = vmatpush.msrb.mxu1 %v7010_v57  ;;  %v7003_v57 = vld [vmem:[%s17499_s5 + $0x4c8] sm:$0xff] }
 0x582   : > { %4778 = vmatpush.msra.mxu2 %v7063_v10  ;;  %4804 = vmatpush.msra.mxu3 %v7089_v34  ;;  %v6971_v10 = vld [vmem:[%s17499_s5 + $0x3c8] sm:$0xff] }
 0x583   : > { %4674 = vmatpush.msrb.mxu1 %v7008_v2 }
 0x584   : > { %4779 = vmatpush.msra.mxu2 %v7061_v47  ;;  %4805 = vmatpush.msra.mxu3 %v7087_v48  ;;  %v7011_v47 = vld [vmem:[%s17499_s5 + $0x508] sm:$0xff] }
 0x585   : > { %4675 = vmatpush.msrb.mxu1 %v7006_v46 }
 0x586   : > { %4780 = vmatpush.msra.mxu2 %v7059_v37  ;;  %4806 = vmatpush.msra.mxu3 %v7085_v8  ;;  %v7009_v37 = vld [vmem:[%s17499_s5 + $0x4f8] sm:$0xff]  ;;  %v4461_v8 = vld [vmem:[%s17499_s5 + $0x2f0] sm:$0xff] }
 0x587   : > { %6956 = vmatmul.msk.f32.gmra.mxu1 %vm4208_vm2, %v4206_v9  ;;  %v7075_v9 = vld [vmem:[%s17499_s5 + $0x708] sm:$0xff] }
 0x588   : > { %4781 = vmatpush.msra.mxu2 %v7057_v22  ;;  %4676 = vmatpush.msrb.mxu1 %v7004_v62  ;;  %v7007_v22 = vld [vmem:[%s17499_s5 + $0x4e8] sm:$0xff] }
 0x589   : > { %4807 = vmatpush.msra.mxu3 %v7083_v23 }
 0x58a   : > { %4782 = vmatpush.msra.mxu2 %v7055_v29  ;;  %4677 = vmatpush.msrb.mxu1 %v7002_v63  ;;  %v4475_v63 = vld [vmem:[%s17499_s5 + $0x360] sm:$0xff] }
 0x58b   : > { %4808 = vmatpush.msra.mxu3 %v7081_v41  ;;  %v4457_v41 = vld [vmem:[%s17499_s5 + $0x2d0] sm:$0xff] }
 0x58c   : > { %4783 = vmatpush.msra.mxu2 %v7053_v21  ;;  %4754 = vmatpush.msra.mxu1 %v7033_v25 }
 0x58d   : > { %4809 = vmatpush.msra.mxu3 %v7079_v15 }
 0x58e   : > { %4784 = vmatpush.msra.mxu2 %v7051_v61  ;;  %4755 = vmatpush.msra.mxu1 %v7031_v32 }
 0x58f   : > { %6957 = vmatmul.msk.f32.gmra.mxu1 %vm4208_vm2, %v14604_v27  ;;  %v7001_v27 = vld [vmem:[%s17499_s5 + $0x4b8] sm:$0xff]  ;;  %4810 = vmatpush.msra.mxu3 %v7077_v42  ;;  %v4453_v42 = vld [vmem:[%s17499_s5 + $0x2b0] sm:$0xff]  ;;  %vm6328_vm2 = vcmask 16384  }
 0x590   : > { %4731 = vmatpush.msrb.mxu0 %v7001_v27  ;;  %4785 = vmatpush.msra.mxu2 %v7049_v1 }
 0x591   : > { %4756 = vmatpush.msra.mxu1 %v7029_v33  ;;  %4811 = vmatpush.msra.mxu3 %v7075_v9  ;;  %v4471_v33 = vld [vmem:[%s17499_s5 + $0x340] sm:$0xff]  ;;  %v4389_v9 = vld [vmem:[%s17499_s5 + $0xb0] sm:$0xff] }
 0x592   : > { %4732 = vmatpush.msrb.mxu0 %v6999_v13  ;;  %4786 = vmatpush.msra.mxu2 %v7047_v54  ;;  %v4485_v13 = vld [vmem:[%s17499_s5 + $0x3b0] sm:$0xff]  ;;  %v4479_v54 = vld [vmem:[%s17499_s5 + $0x380] sm:$0xff] }
 0x593   : > { %4757 = vmatpush.msra.mxu1 %v7027_v3  ;;  %4812 = vmatpush.msra.mxu3 %v7073_v7  ;;  %v4469_v3 = vld [vmem:[%s17499_s5 + $0x330] sm:$0xff]  ;;  %v4463_v7 = vld [vmem:[%s17499_s5 + $0x300] sm:$0xff] }
 0x594   : > { %4733 = vmatpush.msrb.mxu0 %v6997_v26  ;;  %4787 = vmatpush.msra.mxu2 %v7045_v51 }
 0x595   : > { %4758 = vmatpush.msra.mxu1 %v7025_v38  ;;  %4813 = vmatpush.msra.mxu3 %v7071_v44  ;;  %v4455_v38 = vld [vmem:[%s17499_s5 + $0x2c0] sm:$0xff]  ;;  %v4449_v44 = vld [vmem:[%s17499_s5 + $0x290] sm:$0xff] }
 0x596   : > { %4734 = vmatpush.msrb.mxu0 %v6995_v17  ;;  %4788 = vmatpush.msra.mxu2 %v7043_v0  ;;  %v4477_v17 = vld [vmem:[%s17499_s5 + $0x370] sm:$0xff] }
 0x597   : > { %4759 = vmatpush.msra.mxu1 %v7023_v50  ;;  %4814 = vmatpush.msra.mxu3 %v7069_v58  ;;  %v4473_v0 = vld [vmem:[%s17499_s5 + $0x350] sm:$0xff] }
 0x598   : > { %4735 = vmatpush.msrb.mxu0 %v6993_v11  ;;  %4789 = vmatpush.msra.mxu2 %v7041_v55  ;;  %v4425_v58 = vld [vmem:[%s17499_s5 + $0x1d0] sm:$0xff] }
 0x599   : > { %4760 = vmatpush.msra.mxu1 %v7021_v6  ;;  %4815 = vmatpush.msra.mxu3 %v7067_v18  ;;  %v4383_v18 = vld [vmem:[%s17499_s5 + $0x80] sm:$0xff] }
 0x59a   : > { %4736 = vmatpush.msrb.mxu0 %v6991_v43  ;;  %4790 = vmatpush.msra.mxu2 %v7039_v56  ;;  %v4459_v56 = vld [vmem:[%s17499_s5 + $0x2e0] sm:$0xff] }
 0x59b   : > { %4761 = vmatpush.msra.mxu1 %v7019_v12  ;;  %v4451_v12 = vld [vmem:[%s17499_s5 + $0x2a0] sm:$0xff] }
 0x59c   : > { %4737 = vmatpush.msrb.mxu0 %v6989_v28  ;;  %4791 = vmatpush.msra.mxu2 %v7037_v20  ;;  %v4397_v28 = vld [vmem:[%s17499_s5 + $0xf0] sm:$0xff] }
 0x59d   : > { %4762 = vmatpush.msra.mxu1 %v7017_v53  ;;  %v4393_v20 = vld [vmem:[%s17499_s5 + $0xd0] sm:$0xff]  ;;  %v4427_v53 = vld [vmem:[%s17499_s5 + $0x1e0] sm:$0xff] }
 0x59e   : > { %4738 = vmatpush.msrb.mxu0 %v6987_v49  ;;  %4792 = vmatpush.msra.mxu2 %v7035_v31  ;;  %v4395_v49 = vld [vmem:[%s17499_s5 + $0xe0] sm:$0xff] }
 0x59f   : > { %4763 = vmatpush.msra.mxu1 %v7015_v14  ;;  %v4391_v31 = vld [vmem:[%s17499_s5 + $0xc0] sm:$0xff]  ;;  %v4385_v14 = vld [vmem:[%s17499_s5 + $0x90] sm:$0xff] }
 0x5a0   : > { %4739 = vmatpush.msrb.mxu0 %v6985_v45  ;;  %v4467_v45 = vld [vmem:[%s17499_s5 + $0x320] sm:$0xff] }
 0x5a1   : > { %4764 = vmatpush.msra.mxu1 %v7013_v16  ;;  %v4460_v16 = vld [vmem:[%s17499_s5 + $0x2e8] sm:$0xff] }
 0x5a2   : > { %4740 = vmatpush.msrb.mxu0 %v6983_v40 }
 0x5a3   : > { %4765 = vmatpush.msra.mxu1 %v7011_v47  ;;  %v4445_v47 = vld [vmem:[%s17499_s5 + $0x270] sm:$0xff] }
 0x5a4   : > { %4741 = vmatpush.msrb.mxu0 %v6981_v59  ;;  %v4465_v59 = vld [vmem:[%s17499_s5 + $0x310] sm:$0xff] }
 0x5a5   : > { %4766 = vmatpush.msra.mxu1 %v7009_v37  ;;  %v4458_v37 = vld [vmem:[%s17499_s5 + $0x2d8] sm:$0xff] }
 0x5a6   : > { %4742 = vmatpush.msrb.mxu0 %v6979_v24  ;;  %v4429_v24 = vld [vmem:[%s17499_s5 + $0x1f0] sm:$0xff] }
 0x5a7   : > { %4767 = vmatpush.msra.mxu1 %v7007_v22  ;;  %v4381_v22 = vld [vmem:[%s17499_s5 + $0x70] sm:$0xff] }
 0x5a8   : > { %4743 = vmatpush.msrb.mxu0 %v6977_v5  ;;  %v4387_v5 = vld [vmem:[%s17499_s5 + $0xa0] sm:$0xff] }
 0x5a9   : > { %4768 = vmatpush.msra.mxu1 %v7005_v30  ;;  %v4421_v30 = vld [vmem:[%s17499_s5 + $0x1b0] sm:$0xff] }
 0x5aa   : > { %4744 = vmatpush.msrb.mxu0 %v6975_v35  ;;  %v4462_v35 = vld [vmem:[%s17499_s5 + $0x2f8] sm:$0xff] }
 0x5ab   : > { %4769 = vmatpush.msra.mxu1 %v7003_v57  ;;  %v4443_v57 = vld [vmem:[%s17499_s5 + $0x260] sm:$0xff] }
 0x5ac   : > { %4745 = vmatpush.msrb.mxu0 %v6973_v60  ;;  %v4447_v60 = vld [vmem:[%s17499_s5 + $0x280] sm:$0xff] }
 0x5ae   : > { %4746 = vmatpush.msrb.mxu0 %v6971_v10  ;;  %v4423_v10 = vld [vmem:[%s17499_s5 + $0x1c0] sm:$0xff] }
 0x5cc   : > { %v14992_v4 = vpop.f32.mrf.mxu2 }
 0x5d4   : > { %v15006_v29 = vpop.f32.mrf.mxu2 }
 0x5d5   : > { %v4623_v2 = vrot.slane %v15006_v29, 4 }
 0x5d9   : > { %v15014_v19 = vpop.f32.mrf.mxu3 }
 0x5da   : > { %v15016_v21 = vpop.f32.mrf.mxu0  ;;  %v15018_v27 = vpop.f32.mrf.mxu1 }
 0x5dc   : > { %v4320_v39 = vpop.f32.mrf.mxu2 }
 0x5dd   : > { %v15021_v61 = vrot.slane %v4320_v39, 4  ;;  %v4379_v39 = vld [vmem:[%s17499_s5 + $0x60] sm:$0xff] }
 0x5df   : > { %v15028_v46 = vsel %vm4616_vm3, %v4623_v2, %v15021_v61  ;;  %v4456_v2 = vld [vmem:[%s17499_s5 + $0x2c8] sm:$0xff] }
 0x5e0   : > { %4701 = vmatmul.f32.vlgmr.msrb.gmra.mxu2 %v15028_v46 }
 0x5e1   : > { %v15034_v1 = vpop.f32.mrf.mxu3  ;;  %4901 = vmatpush.msrb.mxu2 %v4485_v13  ;;  %v4419_v13 = vld [vmem:[%s17499_s5 + $0x1a0] sm:$0xff] }
 0x5e2   : > { %v15036_v26 = vpop.f32.mrf.mxu0  ;;  %v15038_v62 = vpop.f32.mrf.mxu1  ;;  %v4626_v34 = vrot.slane %v15034_v1, 4 }
 0x5e3   : > { %4902 = vmatpush.msrb.mxu2 %v4483_v36  ;;  %v4617_v43 = vrot.slane %v15036_v26, 4  ;;  %v4441_v36 = vld [vmem:[%s17499_s5 + $0x250] sm:$0xff] }
 0x5e5   : > { %4903 = vmatpush.msrb.mxu2 %v4481_v52  ;;  %v4454_v52 = vld [vmem:[%s17499_s5 + $0x2b8] sm:$0xff] }
 0x5e7   : > { %4904 = vmatpush.msrb.mxu2 %v4479_v54  ;;  %v4377_v54 = vld [vmem:[%s17499_s5 + $0x50] sm:$0xff] }
 0x5e8   : > { %4704 = vmatmul.f32.gmra.mxu2 %v15021_v61 }
 0x5e9   : > { %v4355_v51 = vpop.f32.mrf.mxu3  ;;  %4905 = vmatpush.msrb.mxu2 %v4477_v17  ;;  %v4417_v17 = vld [vmem:[%s17499_s5 + $0x190] sm:$0xff] }
 0x5ea   : > { %v15054_v11 = vrot.slane %v4355_v51, 4  ;;  %v4250_v25 = vpop.f32.mrf.mxu0  ;;  %v15056_v48 = vpop.f32.mrf.mxu1  ;;  %v4375_v51 = vld [vmem:[%s17499_s5 + $0x40] sm:$0xff] }
 0x5eb   : > { %v15062_v32 = vrot.slane %v4250_v25, 4  ;;  %4906 = vmatpush.msrb.mxu2 %v4475_v63  ;;  %v4620_v40 = vrot.slane %v15056_v48, 4  ;;  %v4452_v63 = vld [vmem:[%s17499_s5 + $0x2a8] sm:$0xff]  ;;  %v4415_v25 = vld [vmem:[%s17499_s5 + $0x180] sm:$0xff] }
 0x5ec   : > { %v15069_v55 = vsel %vm4616_vm3, %v4626_v34, %v15054_v11  ;;  %v4439_v34 = vld [vmem:[%s17499_s5 + $0x240] sm:$0xff] }
 0x5ed   : > { %7090 = vmatmul.msk.f32.vlgmr.msrb.gmra.mxu3 %vm509_vm0, %v15069_v55  ;;  %4907 = vmatpush.msrb.mxu2 %v4473_v0  ;;  %v15081_v23 = vsel %vm4616_vm3, %v4617_v43, %v15062_v32  ;;  %v4437_v0 = vld [vmem:[%s17499_s5 + $0x230] sm:$0xff]  ;;  %v4450_v43 = vld [vmem:[%s17499_s5 + $0x298] sm:$0xff] }
 0x5ee   : > { %4874 = vmatpush.msrb.mxu3 %v4461_v8  ;;  %4655 = vmatmul.f32.vlgmr.msra.gmra.mxu0 %v15081_v23  ;;  %v4373_v8 = vld [vmem:[%s17499_s5 + $0x30] sm:$0xff] }
 0x5ef   : > { %4828 = vmatpush.msra.mxu0 %v4397_v28  ;;  %4908 = vmatpush.msrb.mxu2 %v4471_v33  ;;  %v4413_v28 = vld [vmem:[%s17499_s5 + $0x170] sm:$0xff]  ;;  %v4435_v33 = vld [vmem:[%s17499_s5 + $0x220] sm:$0xff] }
 0x5f0   : > { %4875 = vmatpush.msrb.mxu3 %v4459_v56  ;;  %4793 = vmatmul.f32.vlgmr.msra.gmra.mxu2 %v15028_v46  ;;  %v4448_v56 = vld [vmem:[%s17499_s5 + $0x288] sm:$0xff] }
 0x5f1   : > { %4829 = vmatpush.msra.mxu0 %v4395_v49  ;;  %4909 = vmatpush.msrb.mxu2 %v4469_v3  ;;  %v4371_v49 = vld [vmem:[%s17499_s5 + $0x20] sm:$0xff] }
 0x5f2   : > { %4876 = vmatpush.msrb.mxu3 %v4457_v41  ;;  %v4285_v15 = vpop.f32.mrf.mxu1  ;;  %v4411_v3 = vld [vmem:[%s17499_s5 + $0x160] sm:$0xff]  ;;  %v4433_v41 = vld [vmem:[%s17499_s5 + $0x210] sm:$0xff] }
 0x5f3   : > { %v15110_v50 = vrot.slane %v4285_v15, 4  ;;  %4830 = vmatpush.msra.mxu0 %v4393_v20  ;;  %4910 = vmatpush.msrb.mxu2 %v4467_v45  ;;  %v4446_v20 = vld [vmem:[%s17499_s5 + $0x278] sm:$0xff]  ;;  %v4369_v45 = vld [vmem:[%s17499_s5 + $0x10] sm:$0xff]  ;;  %v4431_v15 = vld [vmem:[%s17499_s5 + $0x200] sm:$0xff] }
 0x5f4   : > { %4877 = vmatpush.msrb.mxu3 %v4455_v38  ;;  %v4409_v38 = vld [vmem:[%s17499_s5 + $0x150] sm:$0xff] }
 0x5f5   : > { %7091 = vmatmul.msk.f32.gmra.mxu3 %vm509_vm0, %v15054_v11  ;;  %4831 = vmatpush.msra.mxu0 %v4391_v31  ;;  %v15122_v6 = vsel %vm4616_vm3, %v4620_v40, %v15110_v50  ;;  %v4444_v31 = vld [vmem:[%s17499_s5 + $0x268] sm:$0xff]  ;;  %v4486_v40 = vld [vmem:[%s17499_s5 + $0x3b8] sm:$0xff] }
 0x5f6   : > { %4878 = vmatpush.msrb.mxu3 %v4453_v42  ;;  %4911 = vmatpush.msrb.mxu2 %v4465_v59  ;;  %v4367_v42 = vld [vmem:[%s17499_s5] sm:$0xff] }
 0x5f7   : > { %4658 = vmatmul.f32.gmra.mxu0 %v15062_v32  ;;  %4678 = vmatmul.f32.vlgmr.msrb.gmra.mxu1 %v15122_v6  ;;  %v4407_v59 = vld [vmem:[%s17499_s5 + $0x140] sm:$0xff] }
 0x5f8   : > { %4832 = vmatpush.msra.mxu0 %v4389_v9  ;;  %4851 = vmatpush.msrb.mxu1 %v4429_v24  ;;  %v4442_v9 = vld [vmem:[%s17499_s5 + $0x258] sm:$0xff] }
 0x5f9   : > { %4879 = vmatpush.msrb.mxu3 %v4451_v12  ;;  %4912 = vmatpush.msrb.mxu2 %v4463_v7  ;;  %v4398_v24 = vld [vmem:[%s17499_s5 + $0xf8] sm:$0xff]  ;;  %v4484_v12 = vld [vmem:[%s17499_s5 + $0x3a8] sm:$0xff]  ;;  %v4405_v7 = vld [vmem:[%s17499_s5 + $0x130] sm:$0xff] }
 0x5fa   : > { %4833 = vmatpush.msra.mxu0 %v4387_v5  ;;  %4852 = vmatpush.msrb.mxu1 %v4427_v53  ;;  %v4440_v5 = vld [vmem:[%s17499_s5 + $0x248] sm:$0xff] }
 0x5fb   : > { %4880 = vmatpush.msrb.mxu3 %v4449_v44  ;;  %4966 = vmatpush.msra.mxu2 %v4462_v35  ;;  %v4396_v53 = vld [vmem:[%s17499_s5 + $0xe8] sm:$0xff]  ;;  %v4482_v44 = vld [vmem:[%s17499_s5 + $0x398] sm:$0xff]  ;;  %v4403_v35 = vld [vmem:[%s17499_s5 + $0x120] sm:$0xff] }
 0x5fc   : > { %4796 = vmatmul.f32.gmra.mxu2 %v15021_v61  ;;  %4834 = vmatpush.msra.mxu0 %v4385_v14  ;;  %v4438_v14 = vld [vmem:[%s17499_s5 + $0x238] sm:$0xff] }
 0x5fd   : > { %4853 = vmatpush.msrb.mxu1 %v4425_v58  ;;  %4881 = vmatpush.msrb.mxu3 %v4447_v60  ;;  %v4394_v58 = vld [vmem:[%s17499_s5 + $0xd8] sm:$0xff]  ;;  %v4480_v60 = vld [vmem:[%s17499_s5 + $0x388] sm:$0xff] }
 0x5fe   : > { %4967 = vmatpush.msra.mxu2 %v4460_v16  ;;  %7092 = vmatmul.msk.f32.vlgmr.msra.gmra.mxu3 %vm509_vm0, %v15069_v55  ;;  %v4401_v16 = vld [vmem:[%s17499_s5 + $0x110] sm:$0xff] }
 0x5ff   : > { %4835 = vmatpush.msra.mxu0 %v4383_v18  ;;  %4854 = vmatpush.msrb.mxu1 %v4423_v10  ;;  %v4436_v18 = vld [vmem:[%s17499_s5 + $0x228] sm:$0xff] }
 0x600   : > { %4882 = vmatpush.msrb.mxu3 %v4445_v47  ;;  %4968 = vmatpush.msra.mxu2 %v4458_v37  ;;  %v4392_v10 = vld [vmem:[%s17499_s5 + $0xc8] sm:$0xff]  ;;  %v4478_v47 = vld [vmem:[%s17499_s5 + $0x378] sm:$0xff]  ;;  %v4399_v37 = vld [vmem:[%s17499_s5 + $0x100] sm:$0xff] }
 0x601   : > { %4681 = vmatmul.f32.gmra.mxu1 %v15110_v50  ;;  %4747 = vmatmul.f32.vlgmr.msrb.gmra.mxu0 %v15081_v23 }
 0x602   : > { %4836 = vmatpush.msra.mxu0 %v4381_v22  ;;  %4855 = vmatpush.msrb.mxu1 %v4421_v30  ;;  %v4434_v22 = vld [vmem:[%s17499_s5 + $0x218] sm:$0xff] }
 0x603   : > { %4883 = vmatpush.msrb.mxu3 %v4443_v57  ;;  %4969 = vmatpush.msra.mxu2 %v4456_v2  ;;  %v4390_v30 = vld [vmem:[%s17499_s5 + $0xb8] sm:$0xff]  ;;  %v4476_v2 = vld [vmem:[%s17499_s5 + $0x368] sm:$0xff] }
 0x604   : > { %4837 = vmatpush.msra.mxu0 %v4379_v39  ;;  %4856 = vmatpush.msrb.mxu1 %v4419_v13  ;;  %v4430_v57 = vld [vmem:[%s17499_s5 + $0x1f8] sm:$0xff]  ;;  %v4432_v39 = vld [vmem:[%s17499_s5 + $0x208] sm:$0xff] }
 0x605   : > { %4884 = vmatpush.msrb.mxu3 %v4441_v36  ;;  %4970 = vmatpush.msra.mxu2 %v4454_v52  ;;  %v4388_v13 = vld [vmem:[%s17499_s5 + $0xa8] sm:$0xff]  ;;  %v4474_v52 = vld [vmem:[%s17499_s5 + $0x358] sm:$0xff] }
 0x606   : > { %7094 = vmatmul.msk.f32.vlgmr.msrb.gmra.mxu2 %vm509_vm0, %v15014_v19  ;;  %4838 = vmatpush.msra.mxu0 %v4377_v54  ;;  %v4428_v36 = vld [vmem:[%s17499_s5 + $0x1e8] sm:$0xff]  ;;  %v7216_v54 = vld [vmem:[%s17499_s5 + $0xb30] sm:$0xff] }
 0x607   : > { %4857 = vmatpush.msrb.mxu1 %v4417_v17  ;;  %4885 = vmatpush.msrb.mxu3 %v4439_v34  ;;  %v4386_v17 = vld [vmem:[%s17499_s5 + $0x98] sm:$0xff] }
 0x608   : > { %4971 = vmatpush.msra.mxu2 %v4452_v63  ;;  %7093 = vmatmul.msk.f32.gmra.mxu3 %vm509_vm0, %v15054_v11  ;;  %v4426_v34 = vld [vmem:[%s17499_s5 + $0x1d8] sm:$0xff]  ;;  %v4472_v63 = vld [vmem:[%s17499_s5 + $0x348] sm:$0xff] }
 0x609   : > { %4839 = vmatpush.msra.mxu0 %v4375_v51  ;;  %4858 = vmatpush.msrb.mxu1 %v4415_v25  ;;  %v7214_v51 = vld [vmem:[%s17499_s5 + $0xb20] sm:$0xff]  ;;  %v4384_v25 = vld [vmem:[%s17499_s5 + $0x88] sm:$0xff] }
 0x60a   : > { %4886 = vmatpush.msrb.mxu3 %v4437_v0  ;;  %4972 = vmatpush.msra.mxu2 %v4450_v43  ;;  %v4424_v0 = vld [vmem:[%s17499_s5 + $0x1c8] sm:$0xff]  ;;  %v7212_v43 = vld [vmem:[%s17499_s5 + $0xb10] sm:$0xff] }
 0x60b   : > { %4750 = vmatmul.f32.gmra.mxu0 %v15062_v32  ;;  %4770 = vmatmul.f32.vlgmr.msra.gmra.mxu1 %v15122_v6 }
 0x60c   : > { %4840 = vmatpush.msra.mxu0 %v4373_v8  ;;  %4859 = vmatpush.msrb.mxu1 %v4413_v28  ;;  %v4382_v8 = vld [vmem:[%s17499_s5 + $0x78] sm:$0xff] }
 0x60d   : > { %4887 = vmatpush.msrb.mxu3 %v4435_v33  ;;  %4973 = vmatpush.msra.mxu2 %v4448_v56  ;;  %v4422_v28 = vld [vmem:[%s17499_s5 + $0x1b8] sm:$0xff]  ;;  %v4468_v33 = vld [vmem:[%s17499_s5 + $0x328] sm:$0xff]  ;;  %v7210_v56 = vld [vmem:[%s17499_s5 + $0xb00] sm:$0xff] }
 0x60e   : > { %4841 = vmatpush.msra.mxu0 %v4371_v49  ;;  %4860 = vmatpush.msrb.mxu1 %v4411_v3  ;;  %v4380_v49 = vld [vmem:[%s17499_s5 + $0x68] sm:$0xff] }
 0x60f   : > { %4888 = vmatpush.msrb.mxu3 %v4433_v41  ;;  %4974 = vmatpush.msra.mxu2 %v4446_v20  ;;  %v4420_v3 = vld [vmem:[%s17499_s5 + $0x1a8] sm:$0xff]  ;;  %v4466_v41 = vld [vmem:[%s17499_s5 + $0x318] sm:$0xff]  ;;  %v7208_v20 = vld [vmem:[%s17499_s5 + $0xaf0] sm:$0xff] }
 0x610   : > { %7095 = vmatmul.msk.f32.gmra.mxu2 %vm509_vm0, %v15034_v1  ;;  %4842 = vmatpush.msra.mxu0 %v4369_v45  ;;  %v4378_v45 = vld [vmem:[%s17499_s5 + $0x58] sm:$0xff] }
 0x611   : > { %4861 = vmatpush.msrb.mxu1 %v4409_v38  ;;  %4889 = vmatpush.msrb.mxu3 %v4431_v15  ;;  %v4418_v38 = vld [vmem:[%s17499_s5 + $0x198] sm:$0xff]  ;;  %v4464_v15 = vld [vmem:[%s17499_s5 + $0x308] sm:$0xff] }
 0x612   : > { %4975 = vmatpush.msra.mxu2 %v4444_v31  ;;  %4843 = vmatpush.msra.mxu0 %v4367_v42  ;;  %v7206_v31 = vld [vmem:[%s17499_s5 + $0xae0] sm:$0xff]  ;;  %v4416_v42 = vld [vmem:[%s17499_s5 + $0x188] sm:$0xff] }
 0x613   : > { %4993 = vmatpush.msra.mxu3 %v4486_v40  ;;  %4862 = vmatpush.msrb.mxu1 %v4407_v59  ;;  %v4376_v40 = vld [vmem:[%s17499_s5 + $0x48] sm:$0xff]  ;;  %v7204_v59 = vld [vmem:[%s17499_s5 + $0xad0] sm:$0xff] }
 0x614   : > { %4890 = vmatmul.f32.vlgmr.msrb.gmra.mxu3 %v14992_v4  ;;  %4976 = vmatpush.msra.mxu2 %v4442_v9  ;;  %v4374_v9 = vld [vmem:[%s17499_s5 + $0x38] sm:$0xff] }
 0x615   : > { %4920 = vmatpush.msrb.mxu0 %v4398_v24  ;;  %4994 = vmatpush.msra.mxu3 %v4484_v12  ;;  %v7190_v24 = vld [vmem:[%s17499_s5 + $0xa60] sm:$0xff]  ;;  %v4414_v12 = vld [vmem:[%s17499_s5 + $0x178] sm:$0xff] }
 0x616   : > { %4773 = vmatmul.f32.gmra.mxu1 %v15110_v50  ;;  %4844 = vmatmul.f32.vlgmr.msra.gmra.mxu0 %v15016_v21 }
 0x617   : > { %4863 = vmatpush.msrb.mxu1 %v4405_v7  ;;  %4977 = vmatpush.msra.mxu2 %v4440_v5  ;;  %v7202_v7 = vld [vmem:[%s17499_s5 + $0xac0] sm:$0xff]  ;;  %v4372_v5 = vld [vmem:[%s17499_s5 + $0x28] sm:$0xff] }
 0x618   : > { %4921 = vmatpush.msrb.mxu0 %v4396_v53  ;;  %4995 = vmatpush.msra.mxu3 %v4482_v44  ;;  %v4412_v53 = vld [vmem:[%s17499_s5 + $0x168] sm:$0xff]  ;;  %v7200_v44 = vld [vmem:[%s17499_s5 + $0xab0] sm:$0xff] }
 0x619   : > { %4864 = vmatpush.msrb.mxu1 %v4403_v35  ;;  %4978 = vmatpush.msra.mxu2 %v4438_v14  ;;  %v4370_v35 = vld [vmem:[%s17499_s5 + $0x18] sm:$0xff]  ;;  %v7186_v14 = vld [vmem:[%s17499_s5 + $0xa40] sm:$0xff] }
 0x61a   : > { %4922 = vmatpush.msrb.mxu0 %v4394_v58  ;;  %4996 = vmatpush.msra.mxu3 %v4480_v60  ;;  %v4410_v58 = vld [vmem:[%s17499_s5 + $0x158] sm:$0xff]  ;;  %v7198_v60 = vld [vmem:[%s17499_s5 + $0xaa0] sm:$0xff] }
 0x61b   : > { %4865 = vmatpush.msrb.mxu1 %v4401_v16  ;;  %4979 = vmatpush.msra.mxu2 %v4436_v18  ;;  %v7184_v16 = vld [vmem:[%s17499_s5 + $0xa30] sm:$0xff]  ;;  %v4368_v18 = vld [vmem:[%s17499_s5 + $0x8] sm:$0xff] }
 0x61c   : > { %4923 = vmatpush.msrb.mxu0 %v4392_v10  ;;  %4997 = vmatpush.msra.mxu3 %v4478_v47  ;;  %v4408_v10 = vld [vmem:[%s17499_s5 + $0x148] sm:$0xff]  ;;  %v7196_v47 = vld [vmem:[%s17499_s5 + $0xa90] sm:$0xff] }
 0x61d   : > { %4866 = vmatpush.msrb.mxu1 %v4399_v37  ;;  %4893 = vmatmul.f32.gmra.mxu3 %v15006_v29  ;;  %v7182_v37 = vld [vmem:[%s17499_s5 + $0xa20] sm:$0xff] }
 0x61e   : > { %4980 = vmatpush.msra.mxu2 %v4434_v22  ;;  %4924 = vmatpush.msrb.mxu0 %v4390_v30  ;;  %v7128_v22 = vld [vmem:[%s17499_s5 + $0x870] sm:$0xff]  ;;  %v4406_v30 = vld [vmem:[%s17499_s5 + $0x138] sm:$0xff] }
 0x61f   : > { %4943 = vmatpush.msra.mxu1 %v4430_v57  ;;  %4998 = vmatpush.msra.mxu3 %v4476_v2  ;;  %v7180_v57 = vld [vmem:[%s17499_s5 + $0xa10] sm:$0xff]  ;;  %v7126_v2 = vld [vmem:[%s17499_s5 + $0x860] sm:$0xff] }
 0x620   : > { %4847 = vmatmul.f32.gmra.mxu0 %v15036_v26  ;;  %4867 = vmatmul.f32.vlgmr.msrb.gmra.mxu1 %v15038_v62 }
 0x621   : > { %4981 = vmatpush.msra.mxu2 %v4432_v39  ;;  %4925 = vmatpush.msrb.mxu0 %v4388_v13  ;;  %v7193_v39 = vld [vmem:[%s17499_s5 + $0xa78] sm:$0xff]  ;;  %v4404_v13 = vld [vmem:[%s17499_s5 + $0x128] sm:$0xff] }
 0x622   : > { %4944 = vmatpush.msra.mxu1 %v4428_v36  ;;  %4982 = vmatmul.f32.vlgmr.msra.gmra.mxu2 %v14992_v4  ;;  %v4470_v4 = vld [vmem:[%s17499_s5 + $0x338] sm:$0xff]  ;;  %v7178_v36 = vld [vmem:[%s17499_s5 + $0xa00] sm:$0xff] }
 0x623   : > { %4999 = vmatpush.msra.mxu3 %v4474_v52  ;;  %5212 = vmatpush.msrb.mxu2 %v7216_v54  ;;  %v7191_v52 = vld [vmem:[%s17499_s5 + $0xa68] sm:$0xff]  ;;  %v4402_v54 = vld [vmem:[%s17499_s5 + $0x118] sm:$0xff] }
 0x624   : > { %4926 = vmatpush.msrb.mxu0 %v4386_v17  ;;  %4945 = vmatpush.msra.mxu1 %v4426_v34  ;;  %v7176_v17 = vld [vmem:[%s17499_s5 + $0x9f0] sm:$0xff]  ;;  %v7122_v34 = vld [vmem:[%s17499_s5 + $0x840] sm:$0xff] }
 0x625   : > { %5000 = vmatpush.msra.mxu3 %v4472_v63  ;;  %5213 = vmatpush.msrb.mxu2 %v7214_v51  ;;  %v7189_v63 = vld [vmem:[%s17499_s5 + $0xa58] sm:$0xff]  ;;  %v4400_v51 = vld [vmem:[%s17499_s5 + $0x108] sm:$0xff] }
 0x626   : > { %4927 = vmatpush.msrb.mxu0 %v4384_v25  ;;  %4946 = vmatpush.msra.mxu1 %v4424_v0  ;;  %v7120_v25 = vld [vmem:[%s17499_s5 + $0x830] sm:$0xff] }
 0x627   : > { %5001 = vmatpush.msra.mxu3 %v4470_v4  ;;  %5214 = vmatpush.msrb.mxu2 %v7212_v43  ;;  %v7160_v0 = vld [vmem:[%s17499_s5 + $0x970] sm:$0xff]  ;;  %v7174_v4 = vld [vmem:[%s17499_s5 + $0x9e0] sm:$0xff]  ;;  %v7187_v43 = vld [vmem:[%s17499_s5 + $0xa48] sm:$0xff] }
 0x628   : > { %4928 = vmatpush.msrb.mxu0 %v4382_v8  ;;  %4947 = vmatpush.msra.mxu1 %v4422_v28  ;;  %v7118_v8 = vld [vmem:[%s17499_s5 + $0x820] sm:$0xff] }
 0x629   : > { %5002 = vmatpush.msra.mxu3 %v4468_v33  ;;  %5215 = vmatpush.msrb.mxu2 %v7210_v56  ;;  %v7158_v28 = vld [vmem:[%s17499_s5 + $0x960] sm:$0xff]  ;;  %v7172_v33 = vld [vmem:[%s17499_s5 + $0x9d0] sm:$0xff] }
 0x62a   : > { %4870 = vmatmul.f32.gmra.mxu1 %v15056_v48  ;;  %4929 = vmatpush.msrb.mxu0 %v4380_v49  ;;  %v7116_v56 = vld [vmem:[%s17499_s5 + $0x810] sm:$0xff]  ;;  %v7170_v49 = vld [vmem:[%s17499_s5 + $0x9c0] sm:$0xff] }
 0x62b   : > { %4948 = vmatpush.msra.mxu1 %v4420_v3  ;;  %4985 = vmatmul.f32.gmra.mxu2 %v15006_v29  ;;  %v7192_v29 = vld [vmem:[%s17499_s5 + $0xa70] sm:$0xff]  ;;  %v7183_v3 = vld [vmem:[%s17499_s5 + $0xa28] sm:$0xff] }
 0x62c   : > { %5003 = vmatpush.msra.mxu3 %v4466_v41  ;;  %5216 = vmatpush.msrb.mxu2 %v7208_v20  ;;  %v7114_v41 = vld [vmem:[%s17499_s5 + $0x800] sm:$0xff] }
 0x62d   : > { %4930 = vmatpush.msrb.mxu0 %v4378_v45  ;;  %4949 = vmatpush.msra.mxu1 %v4418_v38  ;;  %v7154_v20 = vld [vmem:[%s17499_s5 + $0x940] sm:$0xff]  ;;  %v7168_v45 = vld [vmem:[%s17499_s5 + $0x9b0] sm:$0xff]  ;;  %v7181_v38 = vld [vmem:[%s17499_s5 + $0xa18] sm:$0xff] }
 0x62e   : > { %5004 = vmatpush.msra.mxu3 %v4464_v15  ;;  %5217 = vmatpush.msrb.mxu2 %v7206_v31  ;;  %v7112_v15 = vld [vmem:[%s17499_s5 + $0x7f0] sm:$0xff] }
 0x62f   : > { %7096 = vmatmul.msk.f32.vlgmr.msra.gmra.mxu3 %vm509_vm0, %v15014_v19  ;;  %4931 = vmatpush.msrb.mxu0 %v4376_v40  ;;  %v7188_v19 = vld [vmem:[%s17499_s5 + $0xa50] sm:$0xff]  ;;  %v7166_v40 = vld [vmem:[%s17499_s5 + $0x9a0] sm:$0xff] }
 0x630   : > { %5185 = vmatpush.msrb.mxu3 %v7192_v29  ;;  %4950 = vmatpush.msra.mxu1 %v4416_v42  ;;  %v7152_v31 = vld [vmem:[%s17499_s5 + $0x930] sm:$0xff]  ;;  %v7179_v29 = vld [vmem:[%s17499_s5 + $0xa08] sm:$0xff]  ;;  %v7110_v42 = vld [vmem:[%s17499_s5 + $0x7e0] sm:$0xff] }
 0x631   : > { %5218 = vmatpush.msrb.mxu2 %v7204_v59  ;;  %4932 = vmatpush.msrb.mxu0 %v4374_v9  ;;  %v7150_v59 = vld [vmem:[%s17499_s5 + $0x920] sm:$0xff]  ;;  %v7164_v9 = vld [vmem:[%s17499_s5 + $0x990] sm:$0xff] }
 0x632   : > { %5186 = vmatpush.msrb.mxu3 %v7190_v24  ;;  %4951 = vmatpush.msra.mxu1 %v4414_v12  ;;  %v7177_v24 = vld [vmem:[%s17499_s5 + $0x9f8] sm:$0xff]  ;;  %v7148_v12 = vld [vmem:[%s17499_s5 + $0x910] sm:$0xff] }
 0x633   : > { %5219 = vmatpush.msrb.mxu2 %v7202_v7  ;;  %4933 = vmatpush.msrb.mxu0 %v4372_v5  ;;  %v7162_v7 = vld [vmem:[%s17499_s5 + $0x980] sm:$0xff]  ;;  %v7175_v5 = vld [vmem:[%s17499_s5 + $0x9e8] sm:$0xff] }
 0x634   : > { %5187 = vmatpush.msrb.mxu3 %v7188_v19  ;;  %4952 = vmatpush.msra.mxu1 %v4412_v53  ;;  %v7217_v19 = vld [vmem:[%s17499_s5 + $0xb38] sm:$0xff]  ;;  %v7106_v53 = vld [vmem:[%s17499_s5 + $0x7c0] sm:$0xff] }
 0x635   : > { %5220 = vmatpush.msrb.mxu2 %v7200_v44  ;;  %4934 = vmatpush.msrb.mxu0 %v4370_v35  ;;  %v7146_v44 = vld [vmem:[%s17499_s5 + $0x900] sm:$0xff]  ;;  %v7173_v35 = vld [vmem:[%s17499_s5 + $0x9d8] sm:$0xff] }
 0x636   : > { %5188 = vmatpush.msrb.mxu3 %v7186_v14  ;;  %4953 = vmatpush.msra.mxu1 %v4410_v58  ;;  %v15636_v14 = vpop.f32.mrf.mxu3  ;;  %v7215_v58 = vld [vmem:[%s17499_s5 + $0xb28] sm:$0xff] }
 0x637   : > { %5221 = vmatpush.msrb.mxu2 %v7198_v60  ;;  %7097 = vmatmul.msk.f32.gmra.mxu3 %vm509_vm0, %v15034_v1  ;;  %v7194_v1 = vld [vmem:[%s17499_s5 + $0xa80] sm:$0xff]  ;;  %v7104_v60 = vld [vmem:[%s17499_s5 + $0x7b0] sm:$0xff] }
 0x638   : > { %5189 = vmatpush.msrb.mxu3 %v7184_v16  ;;  %4935 = vmatpush.msrb.mxu0 %v4368_v18  ;;  %v7144_v16 = vld [vmem:[%s17499_s5 + $0x8f0] sm:$0xff]  ;;  %v7171_v18 = vld [vmem:[%s17499_s5 + $0x9c8] sm:$0xff] }
 0x639   : > { %4954 = vmatpush.msra.mxu1 %v4408_v10  ;;  %5222 = vmatpush.msrb.mxu2 %v7196_v47  ;;  %v7213_v10 = vld [vmem:[%s17499_s5 + $0xb18] sm:$0xff]  ;;  %v7102_v47 = vld [vmem:[%s17499_s5 + $0x7a0] sm:$0xff] }
 0x63a   : > { %4936 = vmatmul.f32.vlgmr.msrb.gmra.mxu0 %v15016_v21  ;;  %5190 = vmatpush.msrb.mxu3 %v7182_v37  ;;  %v7124_v21 = vld [vmem:[%s17499_s5 + $0x850] sm:$0xff]  ;;  %v7142_v37 = vld [vmem:[%s17499_s5 + $0x8e0] sm:$0xff] }
 0x63b   : > { %5139 = vmatpush.msra.mxu0 %v7128_v22  ;;  %4955 = vmatpush.msra.mxu1 %v4406_v30  ;;  %v7169_v22 = vld [vmem:[%s17499_s5 + $0x9b8] sm:$0xff]  ;;  %v7211_v30 = vld [vmem:[%s17499_s5 + $0xb08] sm:$0xff] }
 0x63c   : > { %5223 = vmatpush.msrb.mxu2 %v7194_v1  ;;  %5191 = vmatpush.msrb.mxu3 %v7180_v57  ;;  %v7100_v1 = vld [vmem:[%s17499_s5 + $0x790] sm:$0xff] }
 0x63d   : > { %5140 = vmatpush.msra.mxu0 %v7126_v2  ;;  %4956 = vmatpush.msra.mxu1 %v4404_v13  ;;  %v7140_v57 = vld [vmem:[%s17499_s5 + $0x8d0] sm:$0xff]  ;;  %v7167_v2 = vld [vmem:[%s17499_s5 + $0x9a8] sm:$0xff]  ;;  %v7098_v13 = vld [vmem:[%s17499_s5 + $0x780] sm:$0xff] }
 0x63e   : > { %5277 = vmatpush.msra.mxu2 %v7193_v39  ;;  %5192 = vmatpush.msrb.mxu3 %v7178_v36  ;;  %v7209_v39 = vld [vmem:[%s17499_s5 + $0xaf8] sm:$0xff]  ;;  %v7138_v36 = vld [vmem:[%s17499_s5 + $0x8c0] sm:$0xff] }
 0x63f   : > { %5141 = vmatpush.msra.mxu0 %v7124_v21  ;;  %4957 = vmatpush.msra.mxu1 %v4402_v54  ;;  %v15685_v21 = vpop.f32.mrf.mxu2  ;;  %v15693_v54 = vld [vmem:[%s17499_s5 + $0x878] sm:$0xff] }
 0x640   : > { %5278 = vmatpush.msra.mxu2 %v7191_v52  ;;  %5193 = vmatpush.msrb.mxu3 %v7176_v17  ;;  %v7165_v52 = vld [vmem:[%s17499_s5 + $0x998] sm:$0xff]  ;;  %v7207_v17 = vld [vmem:[%s17499_s5 + $0xae8] sm:$0xff] }
 0x641   : > { %5142 = vmatpush.msra.mxu0 %v7122_v34  ;;  %4958 = vmatpush.msra.mxu1 %v4400_v51  ;;  %v7136_v34 = vld [vmem:[%s17499_s5 + $0x8b0] sm:$0xff]  ;;  %v15703_v51 = vpop.f32.mrf.mxu3 }
 0x642   : > { %5279 = vmatpush.msra.mxu2 %v7189_v63  ;;  %4939 = vmatmul.f32.gmra.mxu0 %v15036_v26  ;;  %v7185_v26 = vld [vmem:[%s17499_s5 + $0xa38] sm:$0xff]  ;;  %v15701_v63 = vpop.f32.mrf.mxu1 }
 0x643   : > { %4959 = vmatmul.f32.vlgmr.msra.gmra.mxu1 %v15038_v62  ;;  %5143 = vmatpush.msra.mxu0 %v7120_v25  ;;  %v7156_v62 = vld [vmem:[%s17499_s5 + $0x950] sm:$0xff]  ;;  %v15708_v25 = vld [vmem:[%s17499_s5 + $0x868] sm:$0xff] }
 0x644   : > { %5162 = vmatpush.msrb.mxu1 %v7160_v0  ;;  %5194 = vmatpush.msrb.mxu3 %v7174_v4  ;;  %v7163_v0 = vld [vmem:[%s17499_s5 + $0x988] sm:$0xff]  ;;  %v7205_v4 = vld [vmem:[%s17499_s5 + $0xad8] sm:$0xff] }
 0x645   : > { %5280 = vmatpush.msra.mxu2 %v7187_v43  ;;  %5144 = vmatpush.msra.mxu0 %v7118_v8  ;;  %v7134_v43 = vld [vmem:[%s17499_s5 + $0x8a0] sm:$0xff]  ;;  %v15726_v8 = vld [vmem:[%s17499_s5 + $0x858] sm:$0xff] }
 0x646   : > { %5163 = vmatpush.msrb.mxu1 %v7158_v28  ;;  %5195 = vmatpush.msrb.mxu3 %v7172_v33  ;;  %v7203_v28 = vld [vmem:[%s17499_s5 + $0xac8] sm:$0xff]  ;;  %v8105_v33 = vld [vmem:[%s17499_s5 + $0x770] sm:$0xff] }
 0x647   : > { %5281 = vmatpush.msra.mxu2 %v7185_v26  ;;  %5145 = vmatpush.msra.mxu0 %v7116_v56  ;;  %v7132_v26 = vld [vmem:[%s17499_s5 + $0x890] sm:$0xff]  ;;  %v15740_v56 = vld [vmem:[%s17499_s5 + $0x848] sm:$0xff] }
 0x648   : > { %5164 = vmatpush.msrb.mxu1 %v7156_v62  ;;  %5196 = vmatpush.msrb.mxu3 %v7170_v49  ;;  %v15742_v62 = vpop.f32.mrf.mxu0  ;;  %v7201_v49 = vld [vmem:[%s17499_s5 + $0xab8] sm:$0xff] }
 0x649   : > { %5282 = vmatpush.msra.mxu2 %v7183_v3  ;;  %5146 = vmatpush.msra.mxu0 %v7114_v41  ;;  %v8106_v3 = vld [vmem:[%s17499_s5 + $0x760] sm:$0xff] }
 0x64a   : > { %5165 = vmatpush.msrb.mxu1 %v7154_v20  ;;  %5197 = vmatpush.msrb.mxu3 %v7168_v45  ;;  %v7130_v41 = vld [vmem:[%s17499_s5 + $0x880] sm:$0xff]  ;;  %v15755_v20 = vpop.f32.mrf.mxu2  ;;  %v15761_v45 = vld [vmem:[%s17499_s5 + $0x838] sm:$0xff] }
 0x64b   : > { %5283 = vmatpush.msra.mxu2 %v7181_v38  ;;  %4962 = vmatmul.f32.gmra.mxu1 %v15056_v48  ;;  %v7108_v48 = vld [vmem:[%s17499_s5 + $0x7d0] sm:$0xff]  ;;  %17783 = vst [vmem:[#allocation117_spill] sm:$0xff] %v15755_v20 }
 0x64c   : > { %5147 = vmatpush.msra.mxu0 %v7112_v15  ;;  %5166 = vmatpush.msrb.mxu1 %v7152_v31  ;;  %v8107_v38 = vld [vmem:[%s17499_s5 + $0x750] sm:$0xff]  ;;  %v15769_v15 = vld [vmem:[%s17499_s5 + $0x978] sm:$0xff]  ;;  %v7199_v31 = vld [vmem:[%s17499_s5 + $0xaa8] sm:$0xff] }
 0x64d   : > { %5198 = vmatpush.msrb.mxu3 %v7166_v40  ;;  %5284 = vmatpush.msra.mxu2 %v7179_v29  ;;  %v15774_v40 = vpop.f32.mrf.mxu1  ;;  %v15780_v29 = vld [vmem:[%s17499_s5 + $0x828] sm:$0xff] }
 0x64e   : > { %5148 = vmatpush.msra.mxu0 %v7110_v42  ;;  %5167 = vmatpush.msrb.mxu1 %v7150_v59  ;;  %17784 = vst [vmem:[#allocation118_spill] sm:$0xff] %v15774_v40  ;;  %v15787_v42 = vld [vmem:[%s17499_s5 + $0x968] sm:$0xff]  ;;  %v7197_v59 = vld [vmem:[%s17499_s5 + $0xa98] sm:$0xff] }
 0x64f   : > { %5199 = vmatpush.msrb.mxu3 %v7164_v9  ;;  %5285 = vmatpush.msra.mxu2 %v7177_v24  ;;  %v8108_v9 = vld [vmem:[%s17499_s5 + $0x740] sm:$0xff]  ;;  %v15800_v24 = vld [vmem:[%s17499_s5 + $0x818] sm:$0xff] }
 0x650   : > { %5149 = vmatpush.msra.mxu0 %v7108_v48  ;;  %5168 = vmatpush.msrb.mxu1 %v7148_v12  ;;  %v15807_v48 = vld [vmem:[%s17499_s5 + $0x958] sm:$0xff]  ;;  %v7195_v12 = vld [vmem:[%s17499_s5 + $0xa88] sm:$0xff] }
 0x651   : > { %5200 = vmatpush.msrb.mxu3 %v7162_v7  ;;  %5286 = vmatpush.msra.mxu2 %v7175_v5  ;;  %v8109_v7 = vld [vmem:[%s17499_s5 + $0x730] sm:$0xff]  ;;  %v15815_v5 = vpop.f32.mrf.mxu0 }
 0x652   : > { %5150 = vmatpush.msra.mxu0 %v7106_v53  ;;  %5169 = vmatpush.msrb.mxu1 %v7146_v44  ;;  %v15827_v53 = vld [vmem:[%s17499_s5 + $0x948] sm:$0xff]  ;;  %v15830_v44 = vpop.f32.mrf.mxu2 }
 0x653   : > { %5304 = vmatpush.msra.mxu3 %v7217_v19  ;;  %5287 = vmatpush.msra.mxu2 %v7173_v35  ;;  %v15822_v19 = vld [vmem:[%s17499_s5 + $0x808] sm:$0xff]  ;;  %17785 = vst [vmem:[#allocation82_spill] sm:$0xff] %v15830_v44 }
 0x654   : > { %5151 = vmatpush.msra.mxu0 %v7104_v60  ;;  %5170 = vmatpush.msrb.mxu1 %v7144_v16  ;;  %v8111_v60 = vld [vmem:[%s17499_s5 + $0x4b0] sm:$0xff]  ;;  %v15845_v16 = vld [vmem:[%s17499_s5 + $0x7f8] sm:$0xff] }
 0x655   : > { %5305 = vmatpush.msra.mxu3 %v7215_v58  ;;  %7218 = vmatmul.msk.f32.vlgmr.msrb.gmra.mxu2 %vm509_vm0, %v15636_v14  ;;  %v15832_v35 = vpop.f32.mrf.mxu1  ;;  %v8110_v58 = vld [vmem:[%s17499_s5 + $0x720] sm:$0xff] }
 0x656   : > { %5288 = vmatpush.msra.mxu2 %v7171_v18  ;;  %5152 = vmatpush.msra.mxu0 %v7102_v47  ;;  %17786 = vst [vmem:[#allocation83_spill] sm:$0xff] %v15832_v35  ;;  %v15850_v18 = vld [vmem:[%s17499_s5 + $0x938] sm:$0xff]  ;;  %v8112_v47 = vld [vmem:[%s17499_s5 + $0x710] sm:$0xff] }
 0x657   : > { %5306 = vmatpush.msra.mxu3 %v7213_v10  ;;  %5171 = vmatpush.msrb.mxu1 %v7142_v37  ;;  %v15852_v10 = vpop.f32.mrf.mxu3  ;;  %v8113_v37 = vld [vmem:[%s17499_s5 + $0x4a0] sm:$0xff] }
 0x658   : > { %5289 = vmatpush.msra.mxu2 %v7169_v22  ;;  %5153 = vmatpush.msra.mxu0 %v7100_v1  ;;  %v15865_v22 = vld [vmem:[%s17499_s5 + $0x7e8] sm:$0xff]  ;;  %v8114_v1 = vld [vmem:[%s17499_s5 + $0x700] sm:$0xff] }
 0x659   : > { %5307 = vmatpush.msra.mxu3 %v7211_v30  ;;  %5172 = vmatpush.msrb.mxu1 %v7140_v57  ;;  %v15872_v30 = vld [vmem:[%s17499_s5 + $0x928] sm:$0xff]  ;;  %v8115_v57 = vld [vmem:[%s17499_s5 + $0x490] sm:$0xff] }
 0x65a   : > { %5290 = vmatpush.msra.mxu2 %v7167_v2  ;;  %5154 = vmatpush.msra.mxu0 %v7098_v13  ;;  %v15883_v2 = vld [vmem:[%s17499_s5 + $0x7d8] sm:$0xff]  ;;  %v8116_v13 = vld [vmem:[%s17499_s5 + $0x6f0] sm:$0xff] }
 0x65b   : > { %5308 = vmatpush.msra.mxu3 %v7209_v39  ;;  %5173 = vmatpush.msrb.mxu1 %v7138_v36  ;;  %v15890_v39 = vld [vmem:[%s17499_s5 + $0x918] sm:$0xff]  ;;  %v15899_v36 = vld [vmem:[%s17499_s5 + $0x7c8] sm:$0xff] }
 0x65c   : > { %5291 = vmatpush.msra.mxu2 %v7165_v52  ;;  %5231 = vmatpush.msrb.mxu0 %v15693_v54 }
 0x65d   : > { %5309 = vmatpush.msra.mxu3 %v7207_v17  ;;  %5174 = vmatpush.msrb.mxu1 %v7136_v34  ;;  %v8117_v34 = vld [vmem:[%s17499_s5 + $0x480] sm:$0xff] }
 0x65e   : > { %7219 = vmatmul.msk.f32.gmra.mxu2 %vm509_vm0, %v15703_v51  ;;  %5232 = vmatpush.msrb.mxu0 %v15708_v25 }
 0x65f   : > { %5292 = vmatpush.msra.mxu2 %v7163_v0  ;;  %5310 = vmatpush.msra.mxu3 %v7205_v4  ;;  %v15912_v0 = vld [vmem:[%s17499_s5 + $0x908] sm:$0xff]  ;;  %v8118_v4 = vld [vmem:[%s17499_s5 + $0x6e0] sm:$0xff] }
 0x660   : > { %5175 = vmatpush.msrb.mxu1 %v7134_v43  ;;  %5201 = vmatmul.f32.vlgmr.msrb.gmra.mxu3 %v15685_v21  ;;  %17787 = vst [vmem:[#allocation97_spill] sm:$0xff] %v15912_v0  ;;  %v15921_v43 = vld [vmem:[%s17499_s5 + $0x7b8] sm:$0xff] }
 0x661   : > { %5419 = vmatpush.msrb.mxu2 %v8105_v33  ;;  %5233 = vmatpush.msrb.mxu0 %v15726_v8  ;;  %v8119_v33 = vld [vmem:[%s17499_s5 + $0x470] sm:$0xff] }
 0x662   : > { %5311 = vmatpush.msra.mxu3 %v7203_v28  ;;  %5176 = vmatpush.msrb.mxu1 %v7132_v26  ;;  %v15932_v26 = vld [vmem:[%s17499_s5 + $0x8f8] sm:$0xff] }
 0x663   : > { %5420 = vmatpush.msrb.mxu2 %v8106_v3  ;;  %5234 = vmatpush.msrb.mxu0 %v15740_v56  ;;  %v15923_v28 = vpop.f32.mrf.mxu2  ;;  %17788 = vst [vmem:[#allocation119_spill] sm:$0xff] %v15932_v26  ;;  %v15941_v3 = vld [vmem:[%s17499_s5 + $0x7a8] sm:$0xff] }
 0x664   : > { %5312 = vmatpush.msra.mxu3 %v7201_v49  ;;  %5177 = vmatpush.msrb.mxu1 %v7130_v41  ;;  %v8120_v49 = vld [vmem:[%s17499_s5 + $0x6d0] sm:$0xff] }
 0x665   : > { %5421 = vmatpush.msrb.mxu2 %v8107_v38  ;;  %5155 = vmatmul.f32.vlgmr.msra.gmra.mxu0 %v15742_v62  ;;  %v8121_v38 = vld [vmem:[%s17499_s5 + $0x460] sm:$0xff] }
 0x666   : > { %5178 = vmatmul.f32.vlgmr.msrb.gmra.mxu1 %v15701_v63  ;;  %5235 = vmatpush.msrb.mxu0 %v15761_v45 }
 0x667   : > { %5254 = vmatpush.msra.mxu1 %v15769_v15  ;;  %5313 = vmatpush.msra.mxu3 %v7199_v31  ;;  %v15955_v31 = vld [vmem:[%s17499_s5 + $0x8e8] sm:$0xff] }
 0x668   : > { %5422 = vmatpush.msrb.mxu2 %v8108_v9  ;;  %5236 = vmatpush.msrb.mxu0 %v15780_v29  ;;  %17789 = vst [vmem:[#allocation120_spill] sm:$0xff] %v15955_v31  ;;  %v15964_v9 = vld [vmem:[%s17499_s5 + $0x798] sm:$0xff] }
 0x669   : > { %5293 = vmatmul.f32.vlgmr.msra.gmra.mxu2 %v15685_v21  ;;  %5255 = vmatpush.msra.mxu1 %v15787_v42 }
 0x66a   : > { %5314 = vmatpush.msra.mxu3 %v7197_v59  ;;  %5423 = vmatpush.msrb.mxu2 %v8109_v7  ;;  %v8122_v59 = vld [vmem:[%s17499_s5 + $0x6c0] sm:$0xff]  ;;  %v15974_v7 = vld [vmem:[%s17499_s5 + $0x8d8] sm:$0xff] }
 0x66b   : > { %5204 = vmatmul.f32.gmra.mxu3 %v15755_v20  ;;  %5237 = vmatpush.msrb.mxu0 %v15800_v24  ;;  %v15901_v52 = vpop.f32.mrf.mxu0  ;;  %17790 = vst [vmem:[#allocation98_spill] sm:$0xff] %v15974_v7 }
 0x66c   : > { %5256 = vmatpush.msra.mxu1 %v15807_v48  ;;  %5315 = vmatpush.msra.mxu3 %v7195_v12  ;;  %v8123_v12 = vld [vmem:[%s17499_s5 + $0x450] sm:$0xff] }
 0x66d   : > { %5424 = vmatpush.msrb.mxu2 %v8110_v58  ;;  %5238 = vmatpush.msrb.mxu0 %v15822_v19  ;;  %v8124_v58 = vld [vmem:[%s17499_s5 + $0x4b8] sm:$0xff] }
 0x66e   : > { %5346 = vmatpush.msrb.mxu3 %v8111_v60  ;;  %5257 = vmatpush.msra.mxu1 %v15827_v53  ;;  %v15983_v60 = vld [vmem:[%s17499_s5 + $0x788] sm:$0xff] }
 0x66f   : > { %5425 = vmatpush.msrb.mxu2 %v8112_v47  ;;  %5158 = vmatmul.f32.gmra.mxu0 %v15815_v5  ;;  %v8125_v47 = vld [vmem:[%s17499_s5 + $0x440] sm:$0xff] }
 0x670   : > { %5347 = vmatpush.msrb.mxu3 %v8113_v37  ;;  %5181 = vmatmul.f32.gmra.mxu1 %v15774_v40  ;;  %v15943_v41 = vpop.f32.mrf.mxu3  ;;  %v15992_v37 = vld [vmem:[%s17499_s5 + $0x8c8] sm:$0xff] }
 0x671   : > { %5239 = vmatpush.msrb.mxu0 %v15845_v16  ;;  %5258 = vmatpush.msra.mxu1 %v15850_v18  ;;  %17791 = vst [vmem:[#allocation13_spill] sm:$0xff] %v15992_v37 }
 0x672   : > { %5426 = vmatpush.msrb.mxu2 %v8114_v1  ;;  %5348 = vmatpush.msrb.mxu3 %v8115_v57 }
 0x673   : > { %5296 = vmatmul.f32.gmra.mxu2 %v15755_v20  ;;  %5240 = vmatpush.msrb.mxu0 %v15865_v22 }
 0x674   : > { %5259 = vmatpush.msra.mxu1 %v15872_v30  ;;  %5427 = vmatpush.msrb.mxu2 %v8116_v13  ;;  %v15903_v17 = vpop.f32.mrf.mxu1  ;;  %v15994_v1 = vpop.f32.mrf.mxu0  ;;  %v8126_v13 = vld [vmem:[%s17499_s5 + $0x4a8] sm:$0xff] }
 0x675   : > { %5349 = vmatpush.msrb.mxu3 %v8117_v34  ;;  %5241 = vmatpush.msrb.mxu0 %v15883_v2  ;;  %v8127_v34 = vld [vmem:[%s17499_s5 + $0x430] sm:$0xff] }
 0x676   : > { %5260 = vmatpush.msra.mxu1 %v15890_v39  ;;  %5428 = vmatpush.msrb.mxu2 %v8118_v4  ;;  %v16006_v4 = vpop.f32.mrf.mxu2 }
 0x677   : > { %5350 = vmatpush.msrb.mxu3 %v8119_v33  ;;  %5242 = vmatpush.msrb.mxu0 %v15899_v36  ;;  %v8128_v33 = vld [vmem:[%s17499_s5 + $0x498] sm:$0xff] }
 0x678   : > { %5261 = vmatpush.msra.mxu1 %v15912_v0  ;;  %5429 = vmatpush.msrb.mxu2 %v8120_v49  ;;  %v16015_v49 = vld [vmem:[%s17499_s5 + $0x8b8] sm:$0xff] }
 0x679   : > { %7220 = vmatmul.msk.f32.vlgmr.msra.gmra.mxu3 %vm509_vm0, %v15636_v14  ;;  %5243 = vmatpush.msrb.mxu0 %v15921_v43  ;;  %17792 = vst [vmem:[#allocation14_spill] sm:$0xff] %v16015_v49 }
 0x67a   : > { %5351 = vmatpush.msrb.mxu3 %v8121_v38  ;;  %5262 = vmatpush.msra.mxu1 %v15932_v26  ;;  %v16020_v38 = vpop.f32.mrf.mxu3  ;;  %v8305_v26 = vld [vmem:[%s17499_s5 + $0x358] sm:$0xff] }
 0x67b   : > { %5430 = vmatpush.msrb.mxu2 %v8122_v59  ;;  %5244 = vmatpush.msrb.mxu0 %v15941_v3  ;;  %v8129_v59 = vld [vmem:[%s17499_s5 + $0x420] sm:$0xff] }
 0x67c   : > { %5352 = vmatpush.msrb.mxu3 %v8123_v12  ;;  %7222 = vmatmul.msk.f32.vlgmr.msrb.gmra.mxu2 %vm509_vm0, %v15636_v14  ;;  %v8130_v12 = vld [vmem:[%s17499_s5 + $0x5b0] sm:$0xff] }
 0x67d   : > { %5438 = vmatpush.msra.mxu2 %v8124_v58  ;;  %5263 = vmatpush.msra.mxu1 %v15955_v31  ;;  %v16031_v58 = vld [vmem:[%s17499_s5 + $0x8a8] sm:$0xff] }
 0x67e   : > { %5353 = vmatpush.msrb.mxu3 %v8125_v47  ;;  %5245 = vmatpush.msrb.mxu0 %v15964_v9  ;;  %v15996_v57 = vpop.f32.mrf.mxu1  ;;  %17793 = vst [vmem:[#allocation15_spill] sm:$0xff] %v16031_v58  ;;  %v8131_v47 = vld [vmem:[%s17499_s5 + $0x488] sm:$0xff] }
 0x67f   : > { %5439 = vmatpush.msra.mxu2 %v8126_v13  ;;  %5264 = vmatpush.msra.mxu1 %v15974_v7  ;;  %v8132_v13 = vld [vmem:[%s17499_s5 + $0x410] sm:$0xff] }
 0x680   : > { %5354 = vmatpush.msrb.mxu3 %v8127_v34  ;;  %5246 = vmatpush.msrb.mxu0 %v15983_v60  ;;  %v8133_v34 = vld [vmem:[%s17499_s5 + $0x5a0] sm:$0xff]  ;;  %v8295_v7 = vld [vmem:[%s17499_s5 + $0x310] sm:$0xff] }
 0x681   : > { %5440 = vmatpush.msra.mxu2 %v8128_v33  ;;  %5265 = vmatpush.msra.mxu1 %v15992_v37  ;;  %v16046_v33 = vld [vmem:[%s17499_s5 + $0x898] sm:$0xff]  ;;  %v8139_v37 = vld [vmem:[%s17499_s5 + $0x580] sm:$0xff] }
 0x682   : > { %5247 = vmatmul.f32.vlgmr.msrb.gmra.mxu0 %v15742_v62  ;;  %7221 = vmatmul.msk.f32.gmra.mxu3 %vm509_vm0, %v15703_v51  ;;  %17794 = vst [vmem:[#allocation16_spill] sm:$0xff] %v16046_v33 }
 0x683   : > { %5355 = vmatpush.msrb.mxu3 %v8129_v59  ;;  %5369 = vmatpush.msra.mxu0 %v8130_v12  ;;  %v8134_v59 = vld [vmem:[%s17499_s5 + $0x478] sm:$0xff]  ;;  %v8135_v12 = vld [vmem:[%s17499_s5 + $0x400] sm:$0xff] }
 0x684   : > { %5441 = vmatpush.msra.mxu2 %v8131_v47  ;;  %5266 = vmatpush.msra.mxu1 %v16015_v49  ;;  %v16060_v47 = vld [vmem:[%s17499_s5 + $0x888] sm:$0xff] }
 0x685   : > { %5356 = vmatpush.msrb.mxu3 %v8132_v13  ;;  %5370 = vmatpush.msra.mxu0 %v8133_v34  ;;  %17795 = vst [vmem:[#allocation17_spill] sm:$0xff] %v16060_v47  ;;  %v8136_v13 = vld [vmem:[%s17499_s5 + $0x590] sm:$0xff]  ;;  %v4748_v34 = vpop.f32.mrf.mxu0 }
 0x686   : > { %7223 = vmatmul.msk.f32.gmra.mxu2 %vm509_vm0, %v15703_v51  ;;  %5267 = vmatpush.msra.mxu1 %v16031_v58 }
 0x687   : > { %5442 = vmatpush.msra.mxu2 %v8134_v59  ;;  %5357 = vmatpush.msrb.mxu3 %v8135_v12  ;;  %v8137_v59 = vld [vmem:[%s17499_s5 + $0x468] sm:$0xff]  ;;  %v8138_v12 = vld [vmem:[%s17499_s5 + $0x3f0] sm:$0xff] }
 0x688   : > { %5371 = vmatpush.msra.mxu0 %v8136_v13  ;;  %5268 = vmatpush.msra.mxu1 %v16046_v33  ;;  %v4771_v58 = vpop.f32.mrf.mxu1  ;;  %v4794_v13 = vpop.f32.mrf.mxu2  ;;  %v8140_v33 = vld [vmem:[%s17499_s5 + $0x458] sm:$0xff] }
 0x689   : > { %5443 = vmatpush.msra.mxu2 %v8137_v59  ;;  %5358 = vmatpush.msrb.mxu3 %v8138_v12  ;;  %v4772_v49 = vadd.f32 %v4771_v58, %v4748_v34  ;;  %v8141_v58 = vld [vmem:[%s17499_s5 + $0x3e0] sm:$0xff]  ;;  %v4817_v34 = vpop.f32.mrf.mxu3 }
 0x68a   : > { %5372 = vmatpush.msra.mxu0 %v8139_v37  ;;  %5269 = vmatpush.msra.mxu1 %v16060_v47  ;;  %v8142_v37 = vld [vmem:[%s17499_s5 + $0x570] sm:$0xff] }
 0x68b   : > { %5444 = vmatpush.msra.mxu2 %v8140_v33  ;;  %5250 = vmatmul.f32.gmra.mxu0 %v15815_v5  ;;  %v4795_v59 = vadd.f32 %v4794_v13, %v4772_v49  ;;  %v8143_v33 = vld [vmem:[%s17499_s5 + $0x6b0] sm:$0xff]  ;;  %v8144_v49 = vld [vmem:[%s17499_s5 + $0x448] sm:$0xff] }
 0x68c   : > { %5270 = vmatmul.f32.vlgmr.msra.gmra.mxu1 %v15701_v63  ;;  %5359 = vmatpush.msrb.mxu3 %v8141_v58  ;;  %v8145_v13 = vld [vmem:[%s17499_s5 + $0x3d0] sm:$0xff]  ;;  %v8146_v58 = vld [vmem:[%s17499_s5 + $0x560] sm:$0xff] }
 0x68d   : > { %5373 = vmatpush.msra.mxu0 %v8142_v37  ;;  %5392 = vmatpush.msrb.mxu1 %v8143_v33  ;;  %v16090_v12 = vadd.f32 %v4817_v34, %v4795_v59  ;;  %v8147_v59 = vld [vmem:[%s17499_s5 + $0x6a0] sm:$0xff]  ;;  %v8148_v34 = vld [vmem:[%s17499_s5 + $0x438] sm:$0xff]  ;;  %v8150_v33 = vld [vmem:[%s17499_s5 + $0x550] sm:$0xff] }
 0x68e   : > { %5445 = vmatpush.msra.mxu2 %v8144_v49  ;;  %5360 = vmatpush.msrb.mxu3 %v8145_v13  ;;  %v8149_v37 = vld [vmem:[%s17499_s5 + $0x3c0] sm:$0xff]  ;;  %v8151_v49 = vld [vmem:[%s17499_s5 + $0x690] sm:$0xff]  ;;  %v8152_v13 = vld [vmem:[%s17499_s5 + $0x428] sm:$0xff] }
 0x68f   : > { %5374 = vmatpush.msra.mxu0 %v8146_v58  ;;  %5393 = vmatpush.msrb.mxu1 %v8147_v59  ;;  %v8153_v58 = vld [vmem:[%s17499_s5 + $0x5b8] sm:$0xff]  ;;  %v8154_v59 = vld [vmem:[%s17499_s5 + $0x540] sm:$0xff]  ;;  %v8158_v47 = vld [vmem:[%s17499_s5 + $0x530] sm:$0xff] }
 0x690   : > { %5446 = vmatpush.msra.mxu2 %v8148_v34  ;;  %5361 = vmatpush.msrb.mxu3 %v8149_v37  ;;  %v4751_v34 = vpop.f32.mrf.mxu0 }
 0x691   : > { %5375 = vmatpush.msra.mxu0 %v8150_v33  ;;  %5394 = vmatpush.msrb.mxu1 %v8151_v49  ;;  %v8155_v33 = vld [vmem:[%s17499_s5 + $0x680] sm:$0xff]  ;;  %v8156_v49 = vld [vmem:[%s17499_s5 + $0x418] sm:$0xff] }
 0x692   : > { %5447 = vmatpush.msra.mxu2 %v8152_v13  ;;  %5362 = vmatmul.f32.vlgmr.msrb.gmra.mxu3 %v15742_v62 }
 0x693   : > { %5461 = vmatpush.msra.mxu3 %v8153_v58  ;;  %5376 = vmatpush.msra.mxu0 %v8154_v59  ;;  %v4774_v37 = vpop.f32.mrf.mxu1  ;;  %v8157_v58 = vld [vmem:[%s17499_s5 + $0x5a8] sm:$0xff]  ;;  %v4797_v59 = vpop.f32.mrf.mxu2 }
 0x694   : > { %5395 = vmatpush.msrb.mxu1 %v8155_v33  ;;  %5448 = vmatpush.msra.mxu2 %v8156_v49  ;;  %v4775_v13 = vadd.f32 %v4774_v37, %v4751_v34  ;;  %v8159_v33 = vld [vmem:[%s17499_s5 + $0x670] sm:$0xff]  ;;  %v8160_v34 = vld [vmem:[%s17499_s5 + $0x408] sm:$0xff]  ;;  %v8161_v37 = vld [vmem:[%s17499_s5 + $0x598] sm:$0xff] }
 0x695   : > { %5462 = vmatpush.msra.mxu3 %v8157_v58  ;;  %5273 = vmatmul.f32.gmra.mxu1 %v15774_v40  ;;  %v4820_v58 = vpop.f32.mrf.mxu3 }
 0x696   : > { %5377 = vmatpush.msra.mxu0 %v8158_v47  ;;  %5396 = vmatpush.msrb.mxu1 %v8159_v33  ;;  %v4798_v49 = vadd.f32 %v4797_v59, %v4775_v13  ;;  %v8162_v47 = vld [vmem:[%s17499_s5 + $0x520] sm:$0xff]  ;;  %v8164_v33 = vld [vmem:[%s17499_s5 + $0x3f8] sm:$0xff] }
 0x697   : > { %5449 = vmatpush.msra.mxu2 %v8160_v34  ;;  %5463 = vmatpush.msra.mxu3 %v8161_v37  ;;  %v8163_v13 = vld [vmem:[%s17499_s5 + $0x660] sm:$0xff]  ;;  %v8165_v34 = vld [vmem:[%s17499_s5 + $0x588] sm:$0xff]  ;;  %v8166_v37 = vld [vmem:[%s17499_s5 + $0x510] sm:$0xff] }
 0x698   : > { %5378 = vmatpush.msra.mxu0 %v8162_v47  ;;  %5397 = vmatpush.msrb.mxu1 %v8163_v13  ;;  %v16154_v59 = vadd.f32 %v4820_v58, %v4798_v49  ;;  %v8167_v49 = vld [vmem:[%s17499_s5 + $0x650] sm:$0xff]  ;;  %v8168_v58 = vld [vmem:[%s17499_s5 + $0x3e8] sm:$0xff]  ;;  %v8169_v47 = vld [vmem:[%s17499_s5 + $0x578] sm:$0xff] }
 0x699   : > { %5450 = vmatpush.msra.mxu2 %v8164_v33  ;;  %5464 = vmatpush.msra.mxu3 %v8165_v34  ;;  %v8170_v13 = vld [vmem:[%s17499_s5 + $0x500] sm:$0xff]  ;;  %v8172_v34 = vld [vmem:[%s17499_s5 + $0x3d8] sm:$0xff] }
 0x69a   : > { %5379 = vmatpush.msra.mxu0 %v8166_v37  ;;  %5398 = vmatpush.msrb.mxu1 %v8167_v49  ;;  %v8171_v33 = vld [vmem:[%s17499_s5 + $0x640] sm:$0xff]  ;;  %v8173_v37 = vld [vmem:[%s17499_s5 + $0x568] sm:$0xff]  ;;  %v8174_v49 = vld [vmem:[%s17499_s5 + $0x4f0] sm:$0xff] }
 0x69b   : > { %5451 = vmatpush.msra.mxu2 %v8168_v58  ;;  %5365 = vmatmul.f32.gmra.mxu3 %v15815_v5  ;;  %v8175_v58 = vld [vmem:[%s17499_s5 + $0x630] sm:$0xff] }
 0x69c   : > { %5465 = vmatpush.msra.mxu3 %v8169_v47  ;;  %5380 = vmatpush.msra.mxu0 %v8170_v13  ;;  %v8176_v47 = vld [vmem:[%s17499_s5 + $0x3c8] sm:$0xff]  ;;  %v8177_v13 = vld [vmem:[%s17499_s5 + $0x558] sm:$0xff] }
 0x69d   : > { %5399 = vmatpush.msrb.mxu1 %v8171_v33  ;;  %5452 = vmatpush.msra.mxu2 %v8172_v34  ;;  %v8178_v33 = vld [vmem:[%s17499_s5 + $0x1f0] sm:$0xff]  ;;  %v8179_v34 = vld [vmem:[%s17499_s5 + $0x4e0] sm:$0xff] }
 0x69e   : > { %5466 = vmatpush.msra.mxu3 %v8173_v37  ;;  %5381 = vmatpush.msra.mxu0 %v8174_v49  ;;  %v8180_v37 = vld [vmem:[%s17499_s5 + $0x620] sm:$0xff] }
 0x69f   : > { %5400 = vmatpush.msrb.mxu1 %v8175_v58  ;;  %5453 = vmatpush.msra.mxu2 %v8176_v47  ;;  %v8182_v49 = vld [vmem:[%s17499_s5 + $0x1e0] sm:$0xff]  ;;  %v8183_v58 = vld [vmem:[%s17499_s5 + $0x4d0] sm:$0xff] }
 0x6a0   : > { %5454 = vmatmul.f32.vlgmr.msra.gmra.mxu2 %v15742_v62  ;;  %5467 = vmatpush.msra.mxu3 %v8177_v13  ;;  %v8181_v62 = vld [vmem:[%s17499_s5 + $0x548] sm:$0xff]  ;;  %v8184_v47 = vld [vmem:[%s17499_s5 + $0x610] sm:$0xff]  ;;  %v8185_v13 = vld [vmem:[%s17499_s5 + $0x538] sm:$0xff] }
 0x6a1   : > { %5553 = vmatpush.msrb.mxu2 %v8178_v33  ;;  %5382 = vmatpush.msra.mxu0 %v8179_v34  ;;  %v8186_v33 = vld [vmem:[%s17499_s5 + $0x1d0] sm:$0xff]  ;;  %v8187_v34 = vld [vmem:[%s17499_s5 + $0x4c0] sm:$0xff] }
 0x6a2   : > { %5401 = vmatpush.msrb.mxu1 %v8180_v37  ;;  %5468 = vmatpush.msra.mxu3 %v8181_v62  ;;  %v8188_v37 = vld [vmem:[%s17499_s5 + $0x600] sm:$0xff]  ;;  %v8189_v62 = vld [vmem:[%s17499_s5 + $0x528] sm:$0xff] }
 0x6a3   : > { %5554 = vmatpush.msrb.mxu2 %v8182_v49  ;;  %5383 = vmatpush.msra.mxu0 %v8183_v58  ;;  %v8190_v49 = vld [vmem:[%s17499_s5 + $0x6b8] sm:$0xff]  ;;  %v8191_v58 = vld [vmem:[%s17499_s5 + $0x1c0] sm:$0xff] }
 0x6a4   : > { %5402 = vmatpush.msrb.mxu1 %v8184_v47  ;;  %5469 = vmatpush.msra.mxu3 %v8185_v13  ;;  %v8192_v47 = vld [vmem:[%s17499_s5 + $0x5f0] sm:$0xff]  ;;  %v8193_v13 = vld [vmem:[%s17499_s5 + $0x518] sm:$0xff] }
 0x6a5   : > { %5555 = vmatpush.msrb.mxu2 %v8186_v33  ;;  %5384 = vmatpush.msra.mxu0 %v8187_v34  ;;  %v8194_v33 = vld [vmem:[%s17499_s5 + $0x6a8] sm:$0xff]  ;;  %v8195_v34 = vld [vmem:[%s17499_s5 + $0x1b0] sm:$0xff] }
 0x6a6   : > { %5403 = vmatpush.msrb.mxu1 %v8188_v37  ;;  %5385 = vmatmul.f32.vlgmr.msra.gmra.mxu0 %v15701_v63  ;;  %v8196_v37 = vld [vmem:[%s17499_s5 + $0x5e0] sm:$0xff] }
 0x6a7   : > { %5470 = vmatpush.msra.mxu3 %v8189_v62  ;;  %5484 = vmatpush.msrb.mxu0 %v8190_v49  ;;  %v8197_v62 = vld [vmem:[%s17499_s5 + $0x508] sm:$0xff]  ;;  %v8198_v49 = vld [vmem:[%s17499_s5 + $0x698] sm:$0xff] }
 0x6a8   : > { %5556 = vmatpush.msrb.mxu2 %v8191_v58  ;;  %5404 = vmatpush.msrb.mxu1 %v8192_v47  ;;  %v8199_v58 = vld [vmem:[%s17499_s5 + $0x1a0] sm:$0xff]  ;;  %v8200_v47 = vld [vmem:[%s17499_s5 + $0x5d0] sm:$0xff] }
 0x6a9   : > { %5457 = vmatmul.f32.gmra.mxu2 %v15815_v5  ;;  %5471 = vmatpush.msra.mxu3 %v8193_v13  ;;  %v8201_v13 = vld [vmem:[%s17499_s5 + $0x4f8] sm:$0xff] }
 0x6aa   : > { %5485 = vmatpush.msrb.mxu0 %v8194_v33  ;;  %5557 = vmatpush.msrb.mxu2 %v8195_v34  ;;  %v8202_v33 = vld [vmem:[%s17499_s5 + $0x688] sm:$0xff]  ;;  %v8203_v34 = vld [vmem:[%s17499_s5 + $0x190] sm:$0xff] }
 0x6ab   : > { %5405 = vmatpush.msrb.mxu1 %v8196_v37  ;;  %5472 = vmatpush.msra.mxu3 %v8197_v62  ;;  %v8204_v37 = vld [vmem:[%s17499_s5 + $0x5c0] sm:$0xff]  ;;  %v8205_v62 = vld [vmem:[%s17499_s5 + $0x4e8] sm:$0xff] }
 0x6ac   : > { %5486 = vmatpush.msrb.mxu0 %v8198_v49  ;;  %5558 = vmatpush.msrb.mxu2 %v8199_v58  ;;  %v8206_v49 = vld [vmem:[%s17499_s5 + $0x678] sm:$0xff] }
 0x6ad   : > { %5406 = vmatpush.msrb.mxu1 %v8200_v47  ;;  %5473 = vmatpush.msra.mxu3 %v8201_v13  ;;  %v8207_v58 = vld [vmem:[%s17499_s5 + $0x778] sm:$0xff]  ;;  %v8208_v47 = vld [vmem:[%s17499_s5 + $0x180] sm:$0xff] }
 0x6ae   : > { %5487 = vmatpush.msrb.mxu0 %v8202_v33  ;;  %5559 = vmatpush.msrb.mxu2 %v8203_v34  ;;  %v8209_v13 = vld [vmem:[%s17499_s5 + $0x4d8] sm:$0xff]  ;;  %v8210_v33 = vld [vmem:[%s17499_s5 + $0x668] sm:$0xff] }
 0x6af   : > { %5407 = vmatpush.msrb.mxu1 %v8204_v37  ;;  %5388 = vmatmul.f32.gmra.mxu0 %v15774_v40  ;;  %v8211_v34 = vld [vmem:[%s17499_s5 + $0x768] sm:$0xff]  ;;  %v8212_v37 = vld [vmem:[%s17499_s5 + $0x170] sm:$0xff] }
 0x6b0   : > { %5408 = vmatmul.f32.vlgmr.msrb.gmra.mxu1 %v15685_v21  ;;  %5474 = vmatpush.msra.mxu3 %v8205_v62  ;;  %v8213_v62 = vld [vmem:[%s17499_s5 + $0x4c8] sm:$0xff] }
 0x6b1   : > { %5488 = vmatpush.msrb.mxu0 %v8206_v49  ;;  %5511 = vmatpush.msra.mxu1 %v8207_v58  ;;  %v8214_v49 = vld [vmem:[%s17499_s5 + $0x658] sm:$0xff] }
 0x6b2   : > { %5560 = vmatpush.msrb.mxu2 %v8208_v47  ;;  %5475 = vmatpush.msra.mxu3 %v8209_v13  ;;  %v8215_v58 = vld [vmem:[%s17499_s5 + $0x758] sm:$0xff]  ;;  %v8216_v47 = vld [vmem:[%s17499_s5 + $0x160] sm:$0xff]  ;;  %v8217_v13 = vld [vmem:[%s17499_s5 + $0x2f0] sm:$0xff] }
 0x6b3   : > { %5489 = vmatpush.msrb.mxu0 %v8210_v33  ;;  %5512 = vmatpush.msra.mxu1 %v8211_v34  ;;  %v8218_v33 = vld [vmem:[%s17499_s5 + $0x648] sm:$0xff] }
 0x6b4   : > { %5561 = vmatpush.msrb.mxu2 %v8212_v37  ;;  %5476 = vmatpush.msra.mxu3 %v8213_v62  ;;  %v8219_v34 = vld [vmem:[%s17499_s5 + $0x748] sm:$0xff]  ;;  %v8220_v37 = vld [vmem:[%s17499_s5 + $0x150] sm:$0xff]  ;;  %v8222_v62 = vld [vmem:[%s17499_s5 + $0x638] sm:$0xff] }
 0x6b5   : > { %5490 = vmatpush.msrb.mxu0 %v8214_v49  ;;  %5513 = vmatpush.msra.mxu1 %v8215_v58  ;;  %v8223_v49 = vld [vmem:[%s17499_s5 + $0x738] sm:$0xff]  ;;  %v8224_v58 = vld [vmem:[%s17499_s5 + $0x140] sm:$0xff] }
 0x6b6   : > { %5562 = vmatpush.msrb.mxu2 %v8216_v47  ;;  %5477 = vmatmul.f32.vlgmr.msra.gmra.mxu3 %v15701_v63  ;;  %v8221_v63 = vld [vmem:[%s17499_s5 + $0x2e0] sm:$0xff]  ;;  %v8225_v47 = vld [vmem:[%s17499_s5 + $0x2d0] sm:$0xff] }
 0x6b7   : > { %5576 = vmatpush.msrb.mxu3 %v8217_v13  ;;  %5491 = vmatpush.msrb.mxu0 %v8218_v33  ;;  %v8226_v13 = vld [vmem:[%s17499_s5 + $0x628] sm:$0xff] }
 0x6b8   : > { %5514 = vmatpush.msra.mxu1 %v8219_v34  ;;  %5563 = vmatpush.msrb.mxu2 %v8220_v37  ;;  %v8227_v33 = vld [vmem:[%s17499_s5 + $0x728] sm:$0xff]  ;;  %v8228_v34 = vld [vmem:[%s17499_s5 + $0x130] sm:$0xff]  ;;  %v8229_v37 = vld [vmem:[%s17499_s5 + $0x2c0] sm:$0xff] }
 0x6b9   : > { %5577 = vmatpush.msrb.mxu3 %v8221_v63  ;;  %5411 = vmatmul.f32.gmra.mxu1 %v15755_v20  ;;  %v8230_v63 = vld [vmem:[%s17499_s5 + $0x618] sm:$0xff] }
 0x6ba   : > { %5492 = vmatpush.msrb.mxu0 %v8222_v62  ;;  %5515 = vmatpush.msra.mxu1 %v8223_v49  ;;  %v8231_v62 = vld [vmem:[%s17499_s5 + $0x718] sm:$0xff]  ;;  %v8232_v49 = vld [vmem:[%s17499_s5 + $0x120] sm:$0xff] }
 0x6bb   : > { %5564 = vmatpush.msrb.mxu2 %v8224_v58  ;;  %5578 = vmatpush.msrb.mxu3 %v8225_v47  ;;  %v8233_v58 = vld [vmem:[%s17499_s5 + $0x2b0] sm:$0xff]  ;;  %v8234_v47 = vld [vmem:[%s17499_s5 + $0x608] sm:$0xff] }
 0x6bc   : > { %5493 = vmatpush.msrb.mxu0 %v8226_v13  ;;  %5516 = vmatpush.msra.mxu1 %v8227_v33  ;;  %v8235_v13 = vld [vmem:[%s17499_s5 + $0x708] sm:$0xff]  ;;  %v8236_v33 = vld [vmem:[%s17499_s5 + $0x110] sm:$0xff] }
 0x6bd   : > { %5565 = vmatpush.msrb.mxu2 %v8228_v34  ;;  %5579 = vmatpush.msrb.mxu3 %v8229_v37  ;;  %v8237_v34 = vld [vmem:[%s17499_s5 + $0x2a0] sm:$0xff]  ;;  %v8238_v37 = vld [vmem:[%s17499_s5 + $0x5f8] sm:$0xff] }
 0x6be   : > { %5494 = vmatpush.msrb.mxu0 %v8230_v63  ;;  %5517 = vmatpush.msra.mxu1 %v8231_v62  ;;  %v8239_v63 = vld [vmem:[%s17499_s5 + $0x6f8] sm:$0xff]  ;;  %v8240_v62 = vld [vmem:[%s17499_s5 + $0x100] sm:$0xff] }
 0x6bf   : > { %5566 = vmatpush.msrb.mxu2 %v8232_v49  ;;  %5480 = vmatmul.f32.gmra.mxu3 %v15774_v40  ;;  %v8241_v49 = vld [vmem:[%s17499_s5 + $0x290] sm:$0xff] }
 0x6c0   : > { %5580 = vmatpush.msrb.mxu3 %v8233_v58  ;;  %5495 = vmatpush.msrb.mxu0 %v8234_v47  ;;  %v8242_v58 = vld [vmem:[%s17499_s5 + $0x2f8] sm:$0xff]  ;;  %v8243_v47 = vld [vmem:[%s17499_s5 + $0x5e8] sm:$0xff]  ;;  %v8312_v40 = vld [vmem:[%s17499_s5 + $0x10] sm:$0xff] }
 0x6c1   : > { %5518 = vmatpush.msra.mxu1 %v8235_v13  ;;  %5567 = vmatpush.msrb.mxu2 %v8236_v33  ;;  %v8244_v13 = vld [vmem:[%s17499_s5 + $0x6e8] sm:$0xff]  ;;  %v8245_v33 = vld [vmem:[%s17499_s5 + $0x280] sm:$0xff] }
 0x6c2   : > { %5581 = vmatpush.msrb.mxu3 %v8237_v34  ;;  %5496 = vmatpush.msrb.mxu0 %v8238_v37  ;;  %v8246_v34 = vld [vmem:[%s17499_s5 + $0x2e8] sm:$0xff]  ;;  %v8247_v37 = vld [vmem:[%s17499_s5 + $0x5d8] sm:$0xff] }
 0x6c3   : > { %5519 = vmatpush.msra.mxu1 %v8239_v63  ;;  %5568 = vmatpush.msrb.mxu2 %v8240_v62  ;;  %v8248_v63 = vld [vmem:[%s17499_s5 + $0x6d8] sm:$0xff]  ;;  %v8249_v62 = vld [vmem:[%s17499_s5 + $0x270] sm:$0xff] }
 0x6c4   : > { %5569 = vmatmul.f32.vlgmr.msrb.gmra.mxu2 %v15122_v6  ;;  %5582 = vmatpush.msrb.mxu3 %v8241_v49  ;;  %v8250_v49 = vld [vmem:[%s17499_s5 + $0x2d8] sm:$0xff] }
 0x6c5   : > { %5668 = vmatpush.msra.mxu2 %v8242_v58  ;;  %5497 = vmatpush.msrb.mxu0 %v8243_v47  ;;  %v8251_v58 = vld [vmem:[%s17499_s5 + $0x5c8] sm:$0xff] }
 0x6c6   : > { %5520 = vmatpush.msra.mxu1 %v8244_v13  ;;  %5583 = vmatpush.msrb.mxu3 %v8245_v33  ;;  %v8252_v47 = vld [vmem:[%s17499_s5 + $0x6c8] sm:$0xff]  ;;  %v8253_v13 = vld [vmem:[%s17499_s5 + $0x260] sm:$0xff]  ;;  %v8254_v33 = vld [vmem:[%s17499_s5 + $0xf0] sm:$0xff] }
 0x6c7   : > { %5669 = vmatpush.msra.mxu2 %v8246_v34  ;;  %5498 = vmatpush.msrb.mxu0 %v8247_v37  ;;  %v8255_v34 = vld [vmem:[%s17499_s5 + $0x3b0] sm:$0xff]  ;;  %v8258_v37 = vld [vmem:[%s17499_s5 + $0xe0] sm:$0xff] }
 0x6c8   : > { %5521 = vmatpush.msra.mxu1 %v8248_v63  ;;  %5584 = vmatpush.msrb.mxu3 %v8249_v62  ;;  %v16455_v63 = vpop.f32.mrf.mxu0  ;;  %v16457_v62 = vpop.f32.mrf.mxu1 }
 0x6c9   : > { %5670 = vmatpush.msra.mxu2 %v8250_v49  ;;  %5499 = vmatpush.msrb.mxu0 %v8251_v58  ;;  %v8259_v49 = vld [vmem:[%s17499_s5 + $0x3a0] sm:$0xff]  ;;  %v8260_v58 = vld [vmem:[%s17499_s5 + $0x2b8] sm:$0xff] }
 0x6ca   : > { %5522 = vmatpush.msra.mxu1 %v8252_v47  ;;  %5500 = vmatmul.f32.vlgmr.msrb.gmra.mxu0 %v15685_v21  ;;  %v8256_v21 = vld [vmem:[%s17499_s5 + $0x2c8] sm:$0xff]  ;;  %v8261_v47 = vld [vmem:[%s17499_s5 + $0xd0] sm:$0xff] }
 0x6cb   : > { %7224 = vmatmul.msk.f32.vlgmr.msra.gmra.mxu1 %vm509_vm0, %v15636_v14  ;;  %5585 = vmatpush.msrb.mxu3 %v8253_v13  ;;  %v8257_v14 = vld [vmem:[%s17499_s5 + $0x250] sm:$0xff]  ;;  %v8262_v13 = vld [vmem:[%s17499_s5 + $0x240] sm:$0xff] }
 0x6cc   : > { %5530 = vmatpush.msrb.mxu1 %v8254_v33  ;;  %5603 = vmatpush.msra.mxu0 %v8255_v34  ;;  %v8263_v33 = vld [vmem:[%s17499_s5 + $0x390] sm:$0xff]  ;;  %v8264_v34 = vld [vmem:[%s17499_s5 + $0x2a8] sm:$0xff] }
 0x6cd   : > { %5671 = vmatpush.msra.mxu2 %v8256_v21  ;;  %5586 = vmatpush.msrb.mxu3 %v8257_v14  ;;  %v8265_v21 = vld [vmem:[%s17499_s5 + $0xc0] sm:$0xff]  ;;  %v8266_v14 = vld [vmem:[%s17499_s5 + $0x230] sm:$0xff] }
 0x6ce   : > { %5531 = vmatpush.msrb.mxu1 %v8258_v37  ;;  %5572 = vmatmul.f32.gmra.mxu2 %v15110_v50  ;;  %v16483_v37 = vpop.f32.mrf.mxu3 }
 0x6cf   : > { %5604 = vmatpush.msra.mxu0 %v8259_v49  ;;  %5672 = vmatpush.msra.mxu2 %v8260_v58  ;;  %v8267_v49 = vld [vmem:[%s17499_s5 + $0x380] sm:$0xff]  ;;  %v8268_v58 = vld [vmem:[%s17499_s5 + $0x298] sm:$0xff] }
 0x6d0   : > { %5532 = vmatpush.msrb.mxu1 %v8261_v47  ;;  %5587 = vmatpush.msrb.mxu3 %v8262_v13  ;;  %v8269_v47 = vld [vmem:[%s17499_s5 + $0xb0] sm:$0xff]  ;;  %v8270_v13 = vld [vmem:[%s17499_s5 + $0x220] sm:$0xff] }
 0x6d1   : > { %5605 = vmatpush.msra.mxu0 %v8263_v33  ;;  %5673 = vmatpush.msra.mxu2 %v8264_v34  ;;  %v8271_v33 = vld [vmem:[%s17499_s5 + $0x370] sm:$0xff]  ;;  %v8272_v34 = vld [vmem:[%s17499_s5 + $0x288] sm:$0xff] }
 0x6d2   : > { %5533 = vmatpush.msrb.mxu1 %v8265_v21  ;;  %5588 = vmatpush.msrb.mxu3 %v8266_v14  ;;  %v8273_v21 = vld [vmem:[%s17499_s5 + $0xa0] sm:$0xff]  ;;  %v8274_v14 = vld [vmem:[%s17499_s5 + $0x210] sm:$0xff] }
 0x6d3   : > { %5606 = vmatpush.msra.mxu0 %v8267_v49  ;;  %5674 = vmatpush.msra.mxu2 %v8268_v58  ;;  %v16512_v49 = vpop.f32.mrf.mxu2  ;;  %v8275_v58 = vld [vmem:[%s17499_s5 + $0x360] sm:$0xff] }
 0x6d4   : > { %5503 = vmatmul.f32.gmra.mxu0 %v15755_v20  ;;  %7225 = vmatmul.msk.f32.gmra.mxu1 %vm509_vm0, %v15703_v51  ;;  %v8288_v20 = vld [vmem:[%s17499_s5 + $0x248] sm:$0xff] }
 0x6d5   : > { %5534 = vmatpush.msrb.mxu1 %v8269_v47  ;;  %5589 = vmatpush.msrb.mxu3 %v8270_v13  ;;  %v8276_v47 = vld [vmem:[%s17499_s5 + $0x278] sm:$0xff]  ;;  %v16520_v13 = vpop.f32.mrf.mxu0 }
 0x6d6   : > { %5607 = vmatpush.msra.mxu0 %v8271_v33  ;;  %5675 = vmatpush.msra.mxu2 %v8272_v34  ;;  %v16522_v33 = vpop.f32.mrf.mxu1  ;;  %v8277_v34 = vld [vmem:[%s17499_s5 + $0x90] sm:$0xff] }
 0x6d7   : > { %5535 = vmatpush.msrb.mxu1 %v8273_v21  ;;  %5590 = vmatpush.msrb.mxu3 %v8274_v14  ;;  %v8278_v21 = vld [vmem:[%s17499_s5 + $0x200] sm:$0xff]  ;;  %v8279_v14 = vld [vmem:[%s17499_s5 + $0x350] sm:$0xff] }
 0x6d8   : > { %5608 = vmatpush.msra.mxu0 %v8275_v58  ;;  %5676 = vmatpush.msra.mxu2 %v8276_v47  ;;  %v8280_v58 = vld [vmem:[%s17499_s5 + $0x268] sm:$0xff]  ;;  %v8281_v47 = vld [vmem:[%s17499_s5 + $0x80] sm:$0xff] }
 0x6d9   : > { %5536 = vmatpush.msrb.mxu1 %v8277_v34  ;;  %5591 = vmatpush.msrb.mxu3 %v8278_v21  ;;  %v8282_v34 = vld [vmem:[%s17499_s5 + $0x3b8] sm:$0xff]  ;;  %v8283_v21 = vld [vmem:[%s17499_s5 + $0x340] sm:$0xff] }
 0x6da   : > { %5609 = vmatpush.msra.mxu0 %v8279_v14  ;;  %5677 = vmatpush.msra.mxu2 %v8280_v58  ;;  %v16546_v14 = vpop.f32.mrf.mxu3  ;;  %v8284_v58 = vld [vmem:[%s17499_s5 + $0x258] sm:$0xff] }
 0x6db   : > { %5592 = vmatmul.f32.vlgmr.msrb.gmra.mxu3 %v15028_v46  ;;  %5537 = vmatpush.msrb.mxu1 %v8281_v47  ;;  %v8285_v47 = vld [vmem:[%s17499_s5 + $0x70] sm:$0xff] }
 0x6dc   : > { %5695 = vmatpush.msra.mxu3 %v8282_v34  ;;  %5610 = vmatpush.msra.mxu0 %v8283_v21  ;;  %v8286_v34 = vld [vmem:[%s17499_s5 + $0x3a8] sm:$0xff]  ;;  %v8287_v21 = vld [vmem:[%s17499_s5 + $0x330] sm:$0xff] }
 0x6dd   : > { %5678 = vmatpush.msra.mxu2 %v8284_v58  ;;  %5538 = vmatpush.msrb.mxu1 %v8285_v47  ;;  %v8289_v58 = vld [vmem:[%s17499_s5 + $0x60] sm:$0xff]  ;;  %v8290_v47 = vld [vmem:[%s17499_s5 + $0x398] sm:$0xff] }
 0x6de   : > { %5696 = vmatpush.msra.mxu3 %v8286_v34  ;;  %5611 = vmatpush.msra.mxu0 %v8287_v21  ;;  %v8291_v34 = vld [vmem:[%s17499_s5 + $0x320] sm:$0xff]  ;;  %v16572_v21 = vpop.f32.mrf.mxu0  ;;  %v16574_v44 = vpop.f32.mrf.mxu1 }
 0x6df   : > { %5679 = vmatpush.msra.mxu2 %v8288_v20  ;;  %5539 = vmatpush.msrb.mxu1 %v8289_v58  ;;  %v8292_v20 = vld [vmem:[%s17499_s5 + $0x238] sm:$0xff]  ;;  %v8293_v58 = vld [vmem:[%s17499_s5 + $0x50] sm:$0xff] }
 0x6e0   : > { %5697 = vmatpush.msra.mxu3 %v8290_v47  ;;  %5612 = vmatpush.msra.mxu0 %v8291_v34  ;;  %v16582_v47 = vpop.f32.mrf.mxu2  ;;  %v8294_v34 = vld [vmem:[%s17499_s5 + $0x388] sm:$0xff] }
 0x6e1   : > { %5680 = vmatpush.msra.mxu2 %v8292_v20  ;;  %5540 = vmatpush.msrb.mxu1 %v8293_v58  ;;  %v8296_v20 = vld [vmem:[%s17499_s5 + $0x228] sm:$0xff]  ;;  %v8297_v58 = vld [vmem:[%s17499_s5 + $0x378] sm:$0xff] }
 0x6e2   : > { %5698 = vmatpush.msra.mxu3 %v8294_v34  ;;  %5613 = vmatpush.msra.mxu0 %v8295_v7  ;;  %v8298_v34 = vld [vmem:[%s17499_s5 + $0x40] sm:$0xff]  ;;  %v16600_v31 = vpop.f32.mrf.mxu3 }
 0x6e3   : > { %5681 = vmatpush.msra.mxu2 %v8296_v20  ;;  %5595 = vmatmul.f32.gmra.mxu3 %v15021_v61  ;;  %v8299_v7 = vld [vmem:[%s17499_s5 + $0x300] sm:$0xff]  ;;  %v8300_v20 = vld [vmem:[%s17499_s5 + $0x218] sm:$0xff] }
 0x6e4   : > { %5699 = vmatpush.msra.mxu3 %v8297_v58  ;;  %5541 = vmatpush.msrb.mxu1 %v8298_v34  ;;  %v8301_v58 = vld [vmem:[%s17499_s5 + $0x368] sm:$0xff]  ;;  %v8302_v34 = vld [vmem:[%s17499_s5 + $0xf8] sm:$0xff] }
 0x6e5   : > { %5614 = vmatpush.msra.mxu0 %v8299_v7  ;;  %5682 = vmatpush.msra.mxu2 %v8300_v20  ;;  %v8303_v7 = vld [vmem:[%s17499_s5 + $0x30] sm:$0xff]  ;;  %v8304_v20 = vld [vmem:[%s17499_s5 + $0x208] sm:$0xff] }
 0x6e6   : > { %7226 = vmatmul.msk.f32.vlgmr.msra.gmra.mxu0 %vm509_vm0, %v15069_v55  ;;  %5700 = vmatpush.msra.mxu3 %v8301_v58  ;;  %v8306_v58 = vld [vmem:[%s17499_s5 + $0xe8] sm:$0xff]  ;;  %v16639_v0 = vpop.f32.mrf.mxu1 }
 0x6e7   : > { %5622 = vmatpush.msrb.mxu0 %v8302_v34  ;;  %5542 = vmatpush.msrb.mxu1 %v8303_v7  ;;  %v8307_v7 = vld [vmem:[%s17499_s5 + $0xb30] sm:$0xff] }
 0x6e8   : > { %5683 = vmatpush.msra.mxu2 %v8304_v20  ;;  %5701 = vmatpush.msra.mxu3 %v8305_v26  ;;  %v16629_v34 = vpop.f32.mrf.mxu2  ;;  %v8308_v20 = vld [vmem:[%s17499_s5 + $0x20] sm:$0xff]  ;;  %v16637_v26 = vpop.f32.mrf.mxu0 }
 0x6e9   : > { %5623 = vmatpush.msrb.mxu0 %v8306_v58  ;;  %5684 = vmatmul.f32.vlgmr.msra.gmra.mxu2 %v15028_v46  ;;  %v8309_v46 = vld [vmem:[%s17499_s5 + $0xd8] sm:$0xff]  ;;  %v8310_v58 = vld [vmem:[%s17499_s5 + $0x348] sm:$0xff] }
 0x6ea   : > { %5816 = vmatpush.msrb.mxu2 %v8307_v7  ;;  %5543 = vmatpush.msrb.mxu1 %v8308_v20  ;;  %v4680_v7 = vadd.f32 %v15903_v17, %v15901_v52  ;;  %v8311_v20 = vld [vmem:[%s17499_s5 + $0xb20] sm:$0xff]  ;;  %v8315_v52 = vld [vmem:[%s17499_s5 + $0xb10] sm:$0xff] }
 0x6eb   : > { %5624 = vmatpush.msrb.mxu0 %v8309_v46  ;;  %5702 = vmatpush.msra.mxu3 %v8310_v58  ;;  %v8313_v46 = vld [vmem:[%s17499_s5 + $0xc8] sm:$0xff]  ;;  %v8314_v58 = vld [vmem:[%s17499_s5 + $0x338] sm:$0xff]  ;;  %v8316_v17 = vld [vmem:[%s17499_s5] sm:$0xff] }
 0x6ec   : > { %5817 = vmatpush.msrb.mxu2 %v8311_v20  ;;  %5544 = vmatpush.msrb.mxu1 %v8312_v40  ;;  %v16667_v40 = vpop.f32.mrf.mxu3  ;;  %v4703_v20 = vadd.f32 %v15923_v28, %v4680_v7  ;;  %v8321_v28 = vld [vmem:[%s17499_s5 + $0xa8] sm:$0xff] }
 0x6ed   : > { %5625 = vmatpush.msrb.mxu0 %v8313_v46  ;;  %5703 = vmatpush.msra.mxu3 %v8314_v58  ;;  %v8317_v46 = vld [vmem:[%s17499_s5 + $0xb8] sm:$0xff]  ;;  %v8322_v7 = vld [vmem:[%s17499_s5 + $0x1e8] sm:$0xff] }
 0x6ee   : > { %5818 = vmatpush.msrb.mxu2 %v8315_v52  ;;  %5545 = vmatpush.msrb.mxu1 %v8316_v17  ;;  %v8318_v58 = vld [vmem:[%s17499_s5 + $0x1f8] sm:$0xff]  ;;  %v8319_v52 = vld [vmem:[%s17499_s5 + $0x328] sm:$0xff]  ;;  %v8320_v17 = vld [vmem:[%s17499_s5 + $0xb00] sm:$0xff] }
 0x6ef   : > { %5546 = vmatmul.f32.vlgmr.msrb.gmra.mxu1 %v15081_v23  ;;  %7227 = vmatmul.msk.f32.gmra.mxu0 %vm509_vm0, %v15054_v11 }
 0x6f0   : > { %5626 = vmatpush.msrb.mxu0 %v8317_v46  ;;  %5645 = vmatpush.msra.mxu1 %v8318_v58  ;;  %v8323_v46 = vld [vmem:[%s17499_s5 + $0x318] sm:$0xff]  ;;  %v5156_v58 = vpop.f32.mrf.mxu0  ;;  %v16696_v35 = vpop.f32.mrf.mxu2 }
 0x6f1   : > { %5704 = vmatpush.msra.mxu3 %v8319_v52  ;;  %5819 = vmatpush.msrb.mxu2 %v8320_v17  ;;  %v5179_v52 = vpop.f32.mrf.mxu1  ;;  %v4726_v17 = vadd.f32 %v15943_v41, %v4703_v20  ;;  %v8327_v41 = vld [vmem:[%s17499_s5 + $0x308] sm:$0xff]  ;;  %v4683_v20 = vadd.f32 %v15996_v57, %v15994_v1 }
 0x6f2   : > { %5627 = vmatpush.msrb.mxu0 %v8321_v28  ;;  %5646 = vmatpush.msra.mxu1 %v8322_v7  ;;  %v8324_v28 = vld [vmem:[%s17499_s5 + $0xaf0] sm:$0xff]  ;;  %v8326_v7 = vld [vmem:[%s17499_s5 + $0x1d8] sm:$0xff]  ;;  %v8330_v1 = vld [vmem:[%s17499_s5 + $0x88] sm:$0xff] }
 0x6f3   : > { %5687 = vmatmul.f32.gmra.mxu2 %v15021_v61  ;;  %5705 = vmatpush.msra.mxu3 %v8323_v46  ;;  %v8325_v61 = vld [vmem:[%s17499_s5 + $0x98] sm:$0xff]  ;;  %v4846_v46 = vadd.f32 %v16455_v63, %v4726_v17  ;;  %v8331_v17 = vld [vmem:[%s17499_s5 + $0x1c8] sm:$0xff] }
 0x6f4   : > { %5820 = vmatpush.msrb.mxu2 %v8324_v28  ;;  %5628 = vmatpush.msrb.mxu0 %v8325_v61  ;;  %v8328_v28 = vld [vmem:[%s17499_s5 + $0xae0] sm:$0xff]  ;;  %v5180_v61 = vadd.f32 %v5179_v52, %v5156_v58  ;;  %v5202_v57 = vpop.f32.mrf.mxu3  ;;  %v4706_v52 = vadd.f32 %v16006_v4, %v4683_v20  ;;  %v8337_v4 = vld [vmem:[%s17499_s5 + $0x850] sm:$0xff] }
 0x6f5   : > { %5647 = vmatpush.msra.mxu1 %v8326_v7  ;;  %5706 = vmatpush.msra.mxu3 %v8327_v41  ;;  %v8329_v7 = vld [vmem:[%s17499_s5 + $0x870] sm:$0xff]  ;;  %v4869_v63 = vadd.f32 %v16457_v62, %v4846_v46  ;;  %v8333_v58 = vld [vmem:[%s17499_s5 + $0x860] sm:$0xff]  ;;  %v8334_v62 = vld [vmem:[%s17499_s5 + $0x78] sm:$0xff] }
 0x6f6   : > { %5821 = vmatpush.msrb.mxu2 %v8328_v28  ;;  %7228 = vmatmul.msk.f32.vlgmr.msra.gmra.mxu3 %vm509_vm0, %v15069_v55  ;;  %v8332_v55 = vld [vmem:[%s17499_s5 + $0xad0] sm:$0xff]  ;;  %v8335_v41 = vld [vmem:[%s17499_s5 + $0x1b8] sm:$0xff]  ;;  %v5203_v46 = vadd.f32 %v5202_v57, %v5180_v61  ;;  %v8336_v28 = vld [vmem:[%s17499_s5 + $0xac0] sm:$0xff] }
 0x6f7   : > { %5743 = vmatpush.msrb.mxu3 %v8329_v7  ;;  %5629 = vmatpush.msrb.mxu0 %v8330_v1  ;;  %v4892_v20 = vadd.f32 %v16483_v37, %v4869_v63  ;;  %v8338_v1 = vld [vmem:[%s17499_s5 + $0x68] sm:$0xff]  ;;  %v8340_v57 = vld [vmem:[%s17499_s5 + $0xab0] sm:$0xff]  ;;  %v8341_v37 = vld [vmem:[%s17499_s5 + $0x840] sm:$0xff] }
 0x6f8   : > { %5648 = vmatpush.msra.mxu1 %v8331_v17  ;;  %5822 = vmatpush.msrb.mxu2 %v8332_v55  ;;  %v5225_v7 = vpop.f32.mrf.mxu2  ;;  %v8339_v61 = vld [vmem:[%s17499_s5 + $0x1a8] sm:$0xff]  ;;  %v5159_v63 = vpop.f32.mrf.mxu0  ;;  %v4729_v55 = vadd.f32 %v16020_v38, %v4706_v52  ;;  %v8344_v38 = vld [vmem:[%s17499_s5 + $0xaa0] sm:$0xff] }
 0x6f9   : > { %5744 = vmatpush.msrb.mxu3 %v8333_v58  ;;  %5549 = vmatmul.f32.gmra.mxu1 %v15062_v32  ;;  %v5182_v17 = vpop.f32.mrf.mxu1  ;;  %v5226_v58 = vadd.f32 %v5225_v7, %v5203_v46  ;;  %v4915_v46 = vadd.f32 %v16512_v49, %v4892_v20  ;;  %v8345_v7 = vld [vmem:[%s17499_s5 + $0x830] sm:$0xff]  ;;  %v8349_v20 = vld [vmem:[%s17499_s5 + $0x820] sm:$0xff] }
 0x6fa   : > { %5630 = vmatpush.msrb.mxu0 %v8334_v62  ;;  %5649 = vmatpush.msra.mxu1 %v8335_v41  ;;  %v8342_v62 = vld [vmem:[%s17499_s5 + $0x58] sm:$0xff]  ;;  %v4849_v52 = vadd.f32 %v16520_v13, %v4729_v55 }
 0x6fb   : > { %5823 = vmatpush.msrb.mxu2 %v8336_v28  ;;  %5745 = vmatpush.msrb.mxu3 %v8337_v4  ;;  %v8343_v41 = vld [vmem:[%s17499_s5 + $0x198] sm:$0xff]  ;;  %v5730_v28 = vrot.slane %v15703_v51, 4  ;;  %v16770_v4 = vrot.slane %v15852_v10, 4  ;;  %v8346_v51 = vld [vmem:[%s17499_s5 + $0x48] sm:$0xff]  ;;  %v5183_v10 = vadd.f32 %v5182_v17, %v5159_v63  ;;  %v8352_v63 = vld [vmem:[%s17499_s5 + $0xa80] sm:$0xff] }
 0x6fc   : > { %5631 = vmatpush.msrb.mxu0 %v8338_v1  ;;  %5650 = vmatpush.msra.mxu1 %v8339_v61  ;;  %v8347_v1 = vld [vmem:[%s17499_s5 + $0x188] sm:$0xff]  ;;  %v5205_v49 = vpop.f32.mrf.mxu3  ;;  %v4872_v13 = vadd.f32 %v16522_v33, %v4849_v52  ;;  %v8350_v61 = vld [vmem:[%s17499_s5 + $0x38] sm:$0xff]  ;;  %v8353_v17 = vld [vmem:[%s17499_s5 + $0x810] sm:$0xff] }
 0x6fd   : > { %5824 = vmatpush.msrb.mxu2 %v8340_v57  ;;  %5746 = vmatpush.msrb.mxu3 %v8341_v37  ;;  %v16798_v57 = vadd.f32 %v5226_v58, %v4915_v46  ;;  %v16802_v37 = vsel %vm4616_vm3, %v5730_v28, %v16770_v4  ;;  %v8351_v33 = vld [vmem:[%s17499_s5 + $0x178] sm:$0xff]  ;;  %v5206_v55 = vadd.f32 %v5205_v49, %v5183_v10  ;;  %v8354_v58 = vld [vmem:[%s17499_s5 + $0x28] sm:$0xff]  ;;  %v8359_v46 = vld [vmem:[%s17499_s5 + $0x7f0] sm:$0xff] }
 0x6fe   : > { %5632 = vmatpush.msrb.mxu0 %v8342_v62  ;;  %5651 = vmatpush.msra.mxu1 %v8343_v41  ;;  %v4895_v62 = vadd.f32 %v16546_v14, %v4872_v13  ;;  %v8355_v41 = vld [vmem:[%s17499_s5 + $0x168] sm:$0xff]  ;;  %v8357_v14 = vld [vmem:[%s17499_s5 + $0x18] sm:$0xff]  ;;  %v8362_v10 = vld [vmem:[%s17499_s5 + $0x7e0] sm:$0xff] }
 0x6ff   : > { %5825 = vmatpush.msrb.mxu2 %v8344_v38  ;;  %7229 = vmatmul.msk.f32.gmra.mxu3 %vm509_vm0, %v15054_v11  ;;  %v8348_v11 = vld [vmem:[%s17499_s5 + $0xa90] sm:$0xff]  ;;  %v8358_v52 = vld [vmem:[%s17499_s5 + $0x158] sm:$0xff]  ;;  %v8368_v49 = vld [vmem:[%s17499_s5 + $0x7c0] sm:$0xff] }
 0x700   : > { %5747 = vmatpush.msrb.mxu3 %v8345_v7  ;;  %5633 = vmatpush.msrb.mxu0 %v8346_v51  ;;  %v5228_v28 = vpop.f32.mrf.mxu2  ;;  %v8360_v7 = vld [vmem:[%s17499_s5 + $0x8] sm:$0xff] }
 0x701   : > { %5652 = vmatpush.msra.mxu1 %v8347_v1  ;;  %5826 = vmatpush.msrb.mxu2 %v8348_v11  ;;  %v5229_v38 = vadd.f32 %v5228_v28, %v5206_v55  ;;  %v8361_v51 = vld [vmem:[%s17499_s5 + $0x148] sm:$0xff]  ;;  %v8364_v1 = vld [vmem:[%s17499_s5 + $0x138] sm:$0xff]  ;;  %v8366_v11 = vld [vmem:[%s17499_s5 + $0x960] sm:$0xff] }
 0x702   : > { %5748 = vmatpush.msrb.mxu3 %v8349_v20  ;;  %5634 = vmatpush.msrb.mxu0 %v8350_v61  ;;  %v8369_v20 = vld [vmem:[%s17499_s5 + $0x950] sm:$0xff]  ;;  %v8379_v28 = vld [vmem:[%s17499_s5 + $0xa60] sm:$0xff] }
 0x703   : > { %5653 = vmatpush.msra.mxu1 %v8351_v33  ;;  %5827 = vmatpush.msrb.mxu2 %v8352_v63  ;;  %v8371_v61 = vld [vmem:[%s17499_s5 + $0x7b0] sm:$0xff]  ;;  %v5248_v33 = vpop.f32.mrf.mxu0  ;;  %v8372_v63 = vld [vmem:[%s17499_s5 + $0x940] sm:$0xff] }
 0x704   : > { %5749 = vmatpush.msrb.mxu3 %v8353_v17  ;;  %7230 = vmatmul.msk.f32.vlgmr.msrb.gmra.mxu2 %vm509_vm0, %v16802_v37  ;;  %v8374_v17 = vld [vmem:[%s17499_s5 + $0x7a0] sm:$0xff] }
 0x705   : > { %5835 = vmatpush.msra.mxu2 %v15693_v54  ;;  %5635 = vmatpush.msrb.mxu0 %v8354_v58  ;;  %v8356_v54 = vld [vmem:[%s17499_s5 + $0x800] sm:$0xff]  ;;  %v8375_v58 = vld [vmem:[%s17499_s5 + $0x930] sm:$0xff] }
 0x706   : > { %5654 = vmatpush.msra.mxu1 %v8355_v41  ;;  %5331 = vrot.lane.b32.xlu2 %v16798_v57, %s8498_s26  ;;  %v8378_v41 = vld [vmem:[%s17499_s5 + $0x920] sm:$0xff] }
 0x707   : > { %5750 = vmatpush.msrb.mxu3 %v8356_v54  ;;  %5836 = vmatpush.msra.mxu2 %v15708_v25  ;;  %v4918_v25 = vadd.f32 %v16582_v47, %v4895_v62  ;;  %v16910_v62 = vrot.slane %v15018_v27, 4  ;;  %v8381_v27 = vld [vmem:[%s17499_s5 + $0x910] sm:$0xff] }
 0x708   : > { %5636 = vmatpush.msrb.mxu0 %v8357_v14  ;;  %5655 = vmatpush.msra.mxu1 %v8358_v52  ;;  %v5294_v55 = vpop.f32.mrf.mxu2  ;;  %v8382_v54 = vld [vmem:[%s17499_s5 + $0xa50] sm:$0xff]  ;;  %v4938_v14 = vadd.f32 %v16572_v21, %v16090_v12  ;;  %v8384_v12 = vld [vmem:[%s17499_s5 + $0xa40] sm:$0xff] }
 0x709   : > { %5751 = vmatpush.msrb.mxu3 %v8359_v46  ;;  %5837 = vmatpush.msra.mxu2 %v15726_v8  ;;  %v8363_v8 = vld [vmem:[%s17499_s5 + $0x970] sm:$0xff]  ;;  %v16854_v47 = vadd.f32 %v5229_v38, %v4918_v25  ;;  %v5271_v13 = vpop.f32.mrf.mxu1  ;;  %v8383_v46 = vld [vmem:[%s17499_s5 + $0x900] sm:$0xff] }
 0x70a   : > { %5637 = vmatpush.msrb.mxu0 %v8360_v7  ;;  %5656 = vmatpush.msra.mxu1 %v8361_v51  ;;  %v5272_v52 = vadd.f32 %v5271_v13, %v5248_v33  ;;  %v4941_v7 = vadd.f32 %v16637_v26, %v16154_v59  ;;  %v4961_v51 = vadd.f32 %v16574_v44, %v4938_v14  ;;  %v8385_v59 = vld [vmem:[%s17499_s5 + $0x8f0] sm:$0xff]  ;;  %v8400_v33 = vld [vmem:[%s17499_s5 + $0x9c0] sm:$0xff] }
 0x70b   : > { %5638 = vmatmul.f32.vlgmr.msrb.gmra.mxu0 %v15081_v23  ;;  %5752 = vmatpush.msrb.mxu3 %v8362_v10  ;;  %v8365_v23 = vld [vmem:[%s17499_s5 + $0x7d0] sm:$0xff]  ;;  %v5251_v25 = vpop.f32.mrf.mxu0 }
 0x70c   : > { %5766 = vmatpush.msra.mxu0 %v8363_v8  ;;  %5838 = vmatpush.msra.mxu2 %v15740_v56  ;;  %v8367_v56 = vld [vmem:[%s17499_s5 + $0x128] sm:$0xff]  ;;  %v8386_v44 = vld [vmem:[%s17499_s5 + $0xa30] sm:$0xff]  ;;  %v5295_v21 = vadd.f32 %v5294_v55, %v5272_v52 }
 0x70d   : > { %5657 = vmatpush.msra.mxu1 %v8364_v1  ;;  %5753 = vmatpush.msrb.mxu3 %v8365_v23  ;;  %v8390_v10 = vld [vmem:[%s17499_s5 + $0xa10] sm:$0xff]  ;;  %v8392_v1 = vld [vmem:[%s17499_s5 + $0xa00] sm:$0xff]  ;;  %v8407_v52 = vld [vmem:[%s17499_s5 + $0xa48] sm:$0xff] }
 0x70e   : > { %5767 = vmatpush.msra.mxu0 %v8366_v11  ;;  %7231 = vmatmul.msk.f32.gmra.mxu2 %vm509_vm0, %v16770_v4  ;;  %v8394_v23 = vld [vmem:[%s17499_s5 + $0x9f0] sm:$0xff] }
 0x70f   : > { %5839 = vmatpush.msra.mxu2 %v15761_v45  ;;  %5658 = vmatpush.msra.mxu1 %v8367_v56  ;;  %v8370_v45 = vld [vmem:[%s17499_s5 + $0x118] sm:$0xff]  ;;  %v8396_v56 = vld [vmem:[%s17499_s5 + $0x9e0] sm:$0xff]  ;;  %v8402_v55 = vld [vmem:[%s17499_s5 + $0x9b0] sm:$0xff] }
 0x710   : > { %5335 = vrot.lane.b32.xlu0 %v16854_v47, %s8498_s26  ;;  %5754 = vmatpush.msrb.mxu3 %v8368_v49  ;;  %v5297_v26 = vpop.f32.mrf.mxu2  ;;  %v17797_v49 = vld [vmem:[#allocation118_spill] sm:$0xff] }
 0x711   : > { %5768 = vmatpush.msra.mxu0 %v8369_v20  ;;  %5840 = vmatpush.msra.mxu2 %v15780_v29  ;;  %v8373_v29 = vld [vmem:[%s17499_s5 + $0x108] sm:$0xff]  ;;  %v5724_v13 = vrot.slane %v17797_v49, 4  ;;  %v8398_v20 = vld [vmem:[%s17499_s5 + $0x9d0] sm:$0xff] }
 0x712   : > { %5659 = vmatpush.msra.mxu1 %v8370_v45  ;;  %5755 = vmatpush.msrb.mxu3 %v8371_v61  ;;  %v17799_v45 = vld [vmem:[#allocation119_spill] sm:$0xff] }
 0x713   : > { %5769 = vmatpush.msra.mxu0 %v8372_v63  ;;  %5841 = vmatpush.msra.mxu2 %v15800_v24  ;;  %v8376_v24 = vld [vmem:[%s17499_s5 + $0xa70] sm:$0xff]  ;;  %v8399_v61 = vld [vmem:[%s17499_s5 + $0x880] sm:$0xff] }
 0x714   : > { %5660 = vmatpush.msra.mxu1 %v8373_v29  ;;  %5641 = vmatmul.f32.gmra.mxu0 %v15062_v32  ;;  %v5721_v32 = vrot.slane %v15815_v5, 4  ;;  %v8380_v5 = vld [vmem:[%s17499_s5 + $0x780] sm:$0xff]  ;;  %v17800_v29 = vld [vmem:[#allocation120_spill] sm:$0xff] }
 0x715   : > { %5661 = vmatmul.f32.vlgmr.msra.gmra.mxu1 %v15122_v6  ;;  %5756 = vmatpush.msrb.mxu3 %v8374_v17  ;;  %v8377_v6 = vld [vmem:[%s17499_s5 + $0x790] sm:$0xff]  ;;  %v8401_v17 = vld [vmem:[%s17499_s5 + $0xa78] sm:$0xff] }
 0x716   : > { %5770 = vmatpush.msra.mxu0 %v8375_v58  ;;  %5789 = vmatpush.msrb.mxu1 %v8376_v24  ;;  %v5723_v38 = vsel %vm4616_vm3, %v5721_v32, %v16910_v62  ;;  %v17801_v24 = vld [vmem:[#allocation98_spill] sm:$0xff] }
 0x717   : > { %5842 = vmatpush.msra.mxu2 %v15822_v19  ;;  %5757 = vmatpush.msrb.mxu3 %v8377_v6  ;;  %v5317_v19 = vpop.f32.mrf.mxu3  ;;  %v17802_v32 = vld [vmem:[#allocation82_spill] sm:$0xff] }
 0x718   : > { %5771 = vmatpush.msra.mxu0 %v8378_v41  ;;  %5790 = vmatpush.msrb.mxu1 %v8379_v28  ;;  %v17032_v6 = vrot.slane %v17802_v32, 4  ;;  %v8403_v41 = vld [vmem:[%s17499_s5 + $0xa68] sm:$0xff]  ;;  %v8404_v28 = vld [vmem:[%s17499_s5 + $0x9a0] sm:$0xff] }
 0x719   : > { %5843 = vmatpush.msra.mxu2 %v15845_v16  ;;  %5758 = vmatpush.msrb.mxu3 %v8380_v5  ;;  %v5274_v16 = vpop.f32.mrf.mxu1  ;;  %v17803_v5 = vld [vmem:[#allocation117_spill] sm:$0xff] }
 0x71a   : > { %5772 = vmatpush.msra.mxu0 %v8381_v27  ;;  %5791 = vmatpush.msrb.mxu1 %v8382_v54  ;;  %v17041_v27 = vpop.f32.mrf.mxu2  ;;  %v8405_v54 = vld [vmem:[%s17499_s5 + $0xa58] sm:$0xff] }
 0x71b   : > { %5844 = vmatpush.msra.mxu2 %v15865_v22  ;;  %5759 = vmatmul.f32.vlgmr.msrb.gmra.mxu3 %v5723_v38  ;;  %v5275_v22 = vadd.f32 %v5274_v16, %v5251_v25  ;;  %v17805_v16 = vld [vmem:[#allocation14_spill] sm:$0xff] }
 0x71c   : > { %5858 = vmatpush.msra.mxu3 %v15769_v15  ;;  %5773 = vmatpush.msra.mxu0 %v8383_v46  ;;  %v4964_v15 = vadd.f32 %v16639_v0, %v4941_v7  ;;  %v8408_v46 = vld [vmem:[%s17499_s5 + $0x980] sm:$0xff] }
 0x71d   : > { %5792 = vmatpush.msrb.mxu1 %v8384_v12  ;;  %5845 = vmatpush.msra.mxu2 %v15883_v2  ;;  %v8388_v2 = vld [vmem:[%s17499_s5 + $0xa20] sm:$0xff]  ;;  %v5298_v0 = vadd.f32 %v5297_v26, %v5275_v22  ;;  %v8409_v12 = vld [vmem:[%s17499_s5 + $0xa38] sm:$0xff] }
 0x71e   : > { %5859 = vmatpush.msra.mxu3 %v15787_v42  ;;  %5664 = vmatmul.f32.gmra.mxu1 %v15110_v50  ;;  %v4984_v50 = vadd.f32 %v16629_v34, %v4961_v51  ;;  %v8387_v42 = vld [vmem:[%s17499_s5 + $0x8e0] sm:$0xff]  ;;  %v8389_v34 = vld [vmem:[%s17499_s5 + $0x8d0] sm:$0xff]  ;;  %v8410_v22 = vld [vmem:[%s17499_s5 + $0xb38] sm:$0xff] }
 0x71f   : > { %5774 = vmatpush.msra.mxu0 %v8385_v59  ;;  %5793 = vmatpush.msrb.mxu1 %v8386_v44  ;;  %v5320_v8 = vpop.f32.mrf.mxu3  ;;  %v17806_v51 = vld [vmem:[#allocation15_spill] sm:$0xff]  ;;  %v17808_v26 = vld [vmem:[#allocation17_spill] sm:$0xff] }
 0x720   : > { %5846 = vmatpush.msra.mxu2 %v15899_v36  ;;  %5860 = vmatpush.msra.mxu3 %v15807_v48  ;;  %v4987_v36 = vadd.f32 %v16696_v35, %v4964_v15  ;;  %v5318_v48 = vadd.f32 %v5317_v19, %v5295_v21  ;;  %v8391_v35 = vld [vmem:[%s17499_s5 + $0x8c0] sm:$0xff]  ;;  %v5727_v19 = vrot.slane %v17803_v5, 4  ;;  %v17807_v15 = vld [vmem:[#allocation16_spill] sm:$0xff] }
 0x721   : > { %5775 = vmatpush.msra.mxu0 %v8387_v42  ;;  %5794 = vmatpush.msrb.mxu1 %v8388_v2  ;;  %v8411_v59 = vld [vmem:[%s17499_s5 + $0xa28] sm:$0xff]  ;;  %v8414_v2 = vld [vmem:[%s17499_s5 + $0xb18] sm:$0xff] }
 0x722   : > { %5847 = vmatpush.msra.mxu2 %v15921_v43  ;;  %5861 = vmatpush.msra.mxu3 %v15827_v53  ;;  %v5007_v53 = vadd.f32 %v16600_v31, %v4984_v50  ;;  %v5321_v43 = vadd.f32 %v5320_v8, %v5298_v0  ;;  %v17061_v25 = vsel %vm4616_vm3, %v5727_v19, %v17032_v6  ;;  %v8412_v21 = vld [vmem:[%s17499_s5 + $0xb28] sm:$0xff]  ;;  %v8413_v50 = vld [vmem:[%s17499_s5 + $0xa18] sm:$0xff]  ;;  %v17087_v42 = vpop.f32.mrf.mxu2 }
 0x723   : > { %5776 = vmatpush.msra.mxu0 %v8389_v34  ;;  %5795 = vmatpush.msrb.mxu1 %v8390_v10  ;;  %v17051_v14 = vpop.f32.mrf.mxu0  ;;  %v8415_v0 = vld [vmem:[%s17499_s5 + $0xa08] sm:$0xff]  ;;  %v8417_v34 = vld [vmem:[%s17499_s5 + $0x9f8] sm:$0xff] }
 0x724   : > { %5848 = vmatpush.msra.mxu2 %v15941_v3  ;;  %5762 = vmatmul.f32.gmra.mxu3 %v16910_v62  ;;  %v5010_v3 = vadd.f32 %v16667_v40, %v4987_v36  ;;  %v5324_v31 = vadd.f32 %v5318_v48, %v5007_v53  ;;  %v17796_v40 = vld [vmem:[#allocation83_spill] sm:$0xff]  ;;  %v8418_v10 = vld [vmem:[%s17499_s5 + $0xaf8] sm:$0xff] }
 0x725   : > { %5862 = vmatpush.msra.mxu3 %v15850_v18  ;;  %5777 = vmatpush.msra.mxu0 %v8391_v35  ;;  %v8393_v18 = vld [vmem:[%s17499_s5 + $0x8b0] sm:$0xff]  ;;  %v16993_v11 = vrot.slane %v17796_v40, 4  ;;  %v8416_v36 = vld [vmem:[%s17499_s5 + $0xb08] sm:$0xff] }
 0x726   : > { %5796 = vmatpush.msrb.mxu1 %v8392_v1  ;;  %5849 = vmatpush.msra.mxu2 %v15964_v9  ;;  %v5326_v9 = vadd.f32 %v5321_v43, %v5010_v3  ;;  %v8419_v53 = vld [vmem:[%s17499_s5 + $0x9e8] sm:$0xff]  ;;  %v8421_v1 = vld [vmem:[%s17499_s5 + $0x9d8] sm:$0xff] }
 0x727   : > { %5863 = vmatpush.msra.mxu3 %v15872_v30  ;;  %5778 = vmatpush.msra.mxu0 %v8393_v18  ;;  %v8395_v30 = vld [vmem:[%s17499_s5 + $0x8a0] sm:$0xff]  ;;  %v5726_v63 = vsel %vm4616_vm3, %v5724_v13, %v16993_v11  ;;  %v17027_v58 = vpop.f32.mrf.mxu3  ;;  %v8420_v35 = vld [vmem:[%s17499_s5 + $0xae8] sm:$0xff]  ;;  %v8422_v18 = vld [vmem:[%s17499_s5 + $0xad8] sm:$0xff] }
 0x728   : > { %5797 = vmatpush.msrb.mxu1 %v8394_v23  ;;  %5850 = vmatpush.msra.mxu2 %v15983_v60  ;;  %v17798_v60 = vld [vmem:[#allocation97_spill] sm:$0xff]  ;;  %v8427_v13 = vld [vmem:[%s17499_s5 + $0x9a8] sm:$0xff] }
 0x729   : > { %5851 = vmatmul.f32.vlgmr.msra.gmra.mxu2 %v5723_v38  ;;  %5864 = vmatpush.msra.mxu3 %v15890_v39  ;;  %v8397_v39 = vld [vmem:[%s17499_s5 + $0x890] sm:$0xff] }
 0x72a   : > { %5779 = vmatpush.msra.mxu0 %v8395_v30  ;;  %5798 = vmatpush.msrb.mxu1 %v8396_v56  ;;  %v8406_v38 = vld [vmem:[%s17499_s5 + $0x990] sm:$0xff]  ;;  %v5455_v3 = vpop.f32.mrf.mxu2  ;;  %v8425_v30 = vld [vmem:[%s17499_s5 + $0x9b8] sm:$0xff] }
 0x72b   : > { %5333 = vrot.lane.b32.xlu0 %v5324_v31, %s8498_s26  ;;  %5865 = vmatpush.msra.mxu3 %v17798_v60  ;;  %v8423_v31 = vld [vmem:[%s17499_s5 + $0x9c8] sm:$0xff] }
 0x72c   : > { %5780 = vmatpush.msra.mxu0 %v8397_v39  ;;  %5799 = vmatpush.msrb.mxu1 %v8398_v20  ;;  %v17098_v48 = vpop.f32.mrf.mxu0  ;;  %v8428_v39 = vld [vmem:[%s17499_s5 + $0xaa8] sm:$0xff]  ;;  %v8429_v20 = vld [vmem:[%s17499_s5 + $0x998] sm:$0xff] }
 0x72d   : > { %5866 = vmatpush.msra.mxu3 %v17799_v45  ;;  %5337 = vrot.lane.b32.xlu1 %v5326_v9, %s8498_s26  ;;  %v17065_v7 = vpop.f32.mrf.mxu1  ;;  %v8424_v9 = vld [vmem:[%s17499_s5 + $0xac8] sm:$0xff]  ;;  %v8430_v45 = vld [vmem:[%s17499_s5 + $0xa98] sm:$0xff] }
 0x72e   : > { %5781 = vmatpush.msra.mxu0 %v8399_v61  ;;  %5800 = vmatpush.msrb.mxu1 %v8400_v33  ;;  %v8431_v33 = vld [vmem:[%s17499_s5 + $0x988] sm:$0xff] }
 0x72f   : > { %5782 = vmatmul.f32.vlgmr.msra.gmra.mxu0 %v5726_v63  ;;  %5867 = vmatpush.msra.mxu3 %v17800_v29  ;;  %v17078_v44 = vpop.f32.mrf.mxu3  ;;  %v8432_v29 = vld [vmem:[%s17499_s5 + $0xa88] sm:$0xff] }
 0x730   : > { %5881 = vmatpush.msrb.mxu0 %v8401_v17  ;;  %5801 = vmatpush.msrb.mxu1 %v8402_v55 }
 0x731   : > { %5854 = vmatmul.f32.gmra.mxu2 %v16910_v62  ;;  %5868 = vmatpush.msra.mxu3 %v17801_v24  ;;  %v17804_v62 = vld [vmem:[#allocation13_spill] sm:$0xff] }
 0x732   : > { %5882 = vmatpush.msrb.mxu0 %v8403_v41  ;;  %5802 = vmatpush.msrb.mxu1 %v8404_v28 }
 0x733   : > { %5869 = vmatpush.msra.mxu3 %v17804_v62 }
 0x734   : > { %5883 = vmatpush.msrb.mxu0 %v8405_v54  ;;  %5803 = vmatpush.msrb.mxu1 %v8406_v38 }
 0x735   : > { %5870 = vmatpush.msra.mxu3 %v17805_v16 }
 0x736   : > { %5884 = vmatpush.msrb.mxu0 %v8407_v52  ;;  %5804 = vmatpush.msrb.mxu1 %v8408_v46  ;;  %v17107_v8 = vpop.f32.mrf.mxu1 }
 0x737   : > { %5785 = vmatmul.f32.gmra.mxu0 %v16993_v11  ;;  %5805 = vmatmul.f32.vlgmr.msrb.gmra.mxu1 %v17061_v25 }
 0x738   : > { %5871 = vmatpush.msra.mxu3 %v17806_v51  ;;  %5885 = vmatpush.msrb.mxu0 %v8409_v12  ;;  %v5387_v51 = vadd.f32 %v17051_v14, %v17027_v58 }
 0x739   : > { %5908 = vmatpush.msra.mxu1 %v8410_v22  ;;  %v5478_v43 = vpop.f32.mrf.mxu3 }
 0x73a   : > { %5872 = vmatpush.msra.mxu3 %v17807_v15  ;;  %5886 = vmatpush.msrb.mxu0 %v8411_v59  ;;  %v5479_v23 = vadd.f32 %v5478_v43, %v5455_v3 }
 0x73b   : > { %5909 = vmatpush.msra.mxu1 %v8412_v21  ;;  %v5390_v21 = vadd.f32 %v17098_v48, %v17078_v44 }
 0x73c   : > { %5873 = vmatpush.msra.mxu3 %v17808_v26  ;;  %5887 = vmatpush.msrb.mxu0 %v8413_v50 }
 0x73d   : > { %5910 = vmatpush.msra.mxu1 %v8414_v2  ;;  %5874 = vmatmul.f32.vlgmr.msra.gmra.mxu3 %v5726_v63  ;;  %v5458_v63 = vpop.f32.mrf.mxu2  ;;  %v5413_v2 = vadd.f32 %v17107_v8, %v5390_v21 }
 0x73e   : > { %5888 = vmatpush.msrb.mxu0 %v8415_v0 }
 0x73f   : > { %5911 = vmatpush.msra.mxu1 %v8416_v36  ;;  %v5436_v58 = vadd.f32 %v17087_v42, %v5413_v2 }
 0x740   : > { %5808 = vmatmul.f32.gmra.mxu1 %v17032_v6  ;;  %5889 = vmatpush.msrb.mxu0 %v8417_v34 }
 0x741   : > { %5912 = vmatpush.msra.mxu1 %v8418_v10 }
 0x742   : > { %5890 = vmatpush.msrb.mxu0 %v8419_v53  ;;  %v5481_v61 = vpop.f32.mrf.mxu3 }
 0x743   : > { %5913 = vmatpush.msra.mxu1 %v8420_v35  ;;  %v5482_v17 = vadd.f32 %v5481_v61, %v5458_v63 }
 0x744   : > { %5891 = vmatpush.msrb.mxu0 %v8421_v1 }
 0x745   : > { %5914 = vmatpush.msra.mxu1 %v8422_v18  ;;  %5877 = vmatmul.f32.gmra.mxu3 %v16993_v11  ;;  %v8426_v11 = vld [vmem:[%s17499_s5 + $0xab8] sm:$0xff] }
 0x746   : > { %5892 = vmatpush.msrb.mxu0 %v8423_v31 }
 0x747   : > { %5915 = vmatpush.msra.mxu1 %v8424_v9  ;;  %v5501_v40 = vpop.f32.mrf.mxu0  ;;  %v5570_v62 = vpop.f32.mrf.mxu2 }
 0x748   : > { %5893 = vmatpush.msrb.mxu0 %v8425_v30  ;;  %v5502_v56 = vadd.f32 %v5501_v40, %v5479_v23  ;;  %v5524_v49 = vpop.f32.mrf.mxu1 }
 0x749   : > { %5916 = vmatpush.msra.mxu1 %v8426_v11 }
 0x74a   : > { %5894 = vmatpush.msrb.mxu0 %v8427_v13  ;;  %v17137_v60 = vadd.f32 %v5524_v49, %v5502_v56 }
 0x74b   : > { %5917 = vmatpush.msra.mxu1 %v8428_v39 }
 0x74c   : > { %5895 = vmatpush.msrb.mxu0 %v8429_v20 }
 0x74d   : > { %5918 = vmatpush.msra.mxu1 %v8430_v45 }
 0x74e   : > { %5896 = vmatpush.msrb.mxu0 %v8431_v33 }
 0x74f   : > { %5919 = vmatpush.msra.mxu1 %v8432_v29  ;;  %5897 = vmatmul.f32.vlgmr.msrb.gmra.mxu0 %v17061_v25 }
 0x750   : > { %7232 = vmatmul.msk.f32.vlgmr.msra.gmra.mxu1 %vm509_vm0, %v16802_v37 }
 0x751   : > { %v5504_v55 = vpop.f32.mrf.mxu0  ;;  %v5527_v32 = vpop.f32.mrf.mxu1 }
 0x752   : > { %v5505_v24 = vadd.f32 %v5504_v55, %v5482_v17  ;;  %v5573_v52 = vpop.f32.mrf.mxu2 }
 0x754   : > { %v5528_v41 = vadd.f32 %v5527_v32, %v5505_v24 }
 0x757   : > { %5900 = vmatmul.f32.gmra.mxu0 %v17032_v6  ;;  %v5410_v6 = vadd.f32 %v17065_v7, %v5387_v51 }
 0x758   : > { %7233 = vmatmul.msk.f32.gmra.mxu1 %vm509_vm0, %v16770_v4 }
 0x759   : > { %v5433_v4 = vadd.f32 %v17041_v27, %v5410_v6 }
 0x75e   : > { %v5593_v5 = vpop.f32.mrf.mxu3 }
 0x763   : > { %v5616_v28 = vpop.f32.mrf.mxu0 }
 0x766   : > { %v5596_v38 = vpop.f32.mrf.mxu3 }
 0x76c   : > { %v5547_v19 = vpop.f32.mrf.mxu1  ;;  %v5619_v54 = vpop.f32.mrf.mxu0 }
 0x76d   : > { %v5685_v12 = vpop.f32.mrf.mxu2  ;;  %v5548_v59 = vadd.f32 %v5547_v19, %v5433_v4 }
 0x76f   : > { %v5571_v0 = vadd.f32 %v5570_v62, %v5548_v59 }
 0x771   : > { %v5594_v14 = vadd.f32 %v5593_v5, %v5571_v0  ;;  %v7252_v0 = vld [vmem:[%s17502_s8 + $0xe8] sm:$0xff] }
 0x772   : > { %6042 = vmatpush.msrb.mxu2 %v7252_v0 }
 0x773   : > { %v5617_v1 = vadd.f32 %v5616_v28, %v5594_v14  ;;  %v17204_v14 = vld [vmem:[%s17502_s8 + $0xd8] sm:$0xff] }
 0x776   : > { %v5550_v16 = vpop.f32.mrf.mxu1  ;;  %v5688_v50 = vpop.f32.mrf.mxu2 }
 0x777   : > { %v5551_v7 = vadd.f32 %v5550_v16, %v5436_v58 }
 0x779   : > { %v5708_v37 = vpop.f32.mrf.mxu3  ;;  %v5574_v3 = vadd.f32 %v5573_v52, %v5551_v7  ;;  %v17215_v7 = vld [vmem:[%s17502_s8 + $0xd0] sm:$0xff] }
 0x77b   : > { %v5597_v8 = vadd.f32 %v5596_v38, %v5574_v3 }
 0x77d   : > { %v5620_v30 = vadd.f32 %v5619_v54, %v5597_v8  ;;  %v17245_v8 = vld [vmem:[%s17502_s8 + $0x48] sm:$0xff] }
 0x782   : > { %v5711_v15 = vpop.f32.mrf.mxu3  ;;  %v5336_v51 = vpop.permute.xlu0 %5335 }
 0x787   : > { %v5829_v35 = vpop.f32.mrf.mxu2 }
 0x788   : > { %v5639_v46 = vpop.f32.mrf.mxu0 }
 0x789   : > { %v5640_v11 = vadd.f32 %v5639_v46, %v17137_v60 }
 0x791   : > { %v5642_v22 = vpop.f32.mrf.mxu0  ;;  %v5832_v9 = vpop.f32.mrf.mxu2 }
 0x792   : > { %v5662_v25 = vpop.f32.mrf.mxu1  ;;  %v5643_v33 = vadd.f32 %v5642_v22, %v5528_v41  ;;  %v5332_v41 = vpop.permute.xlu2 %5331  ;;  %v7331_v22 = vld [vmem:[%s17500_s6] ss:$0 sm:$0xff] }
 0x793   : > { %v5663_v13 = vadd.f32 %v5662_v25, %v5640_v11 }
 0x795   : > { %v5686_v20 = vadd.f32 %v5685_v12, %v5663_v13  ;;  %v17285_v13 = vld [vmem:[%s17502_s8 + $0x38] sm:$0xff] }
 0x797   : > { %v5709_v55 = vadd.f32 %v5708_v37, %v5686_v20  ;;  %v17294_v20 = vld [vmem:[%s17502_s8 + $0x30] sm:$0xff] }
 0x79b   : > { %v5665_v26 = vpop.f32.mrf.mxu1 }
 0x79c   : > { %v5666_v17 = vadd.f32 %v5665_v26, %v5643_v33  ;;  %v6006_v33 = vld [vmem:[%s17502_s8 + $0x28] sm:$0xff] }
 0x79d   : > { %v5334_v2 = vpop.permute.xlu0 %5333 }
 0x79e   : > { %v5760_v34 = vpop.f32.mrf.mxu3  ;;  %v5689_v19 = vadd.f32 %v5688_v50, %v5666_v17  ;;  %v5340_v58 = vsel %vm5339_vm4, %v5332_v41, %v5334_v2  ;;  %v6005_v17 = vld [vmem:[%s17502_s8 + $0x20] sm:$0xff] }
 0x79f   : > { %v5338_v25 = vpop.permute.xlu1 %5337  ;;  %v7261_v41 = vld [vmem:[%s17502_s8 + $0x120] sm:$0xff] }
 0x7a0   : > { %v5712_v16 = vadd.f32 %v5711_v15, %v5689_v19  ;;  %v5341_v37 = vsel %vm5339_vm4, %v5336_v51, %v5338_v25  ;;  %v7239_v19 = vld [vmem:[%s17502_s8 + $0x80] sm:$0xff]  ;;  %v7260_v25 = vld [vmem:[%s17502_s8 + $0x118] sm:$0xff]  ;;  %v7259_v51 = vld [vmem:[%s17502_s8 + $0x110] sm:$0xff] }
 0x7a1   : > { %v5345_v12 = vmax.f32 %v16854_v47, %v5341_v37  ;;  %v7251_v47 = vld [vmem:[%s17502_s8 + $0xe0] sm:$0xff]  ;;  %v7258_v37 = vld [vmem:[%s17502_s8 + $0x108] sm:$0xff] }
 0x7a2   : > { %6043 = vmatpush.msrb.mxu2 %v7251_v47 }
 0x7a4   : > { %6044 = vmatpush.msrb.mxu2 %v17204_v14 }
 0x7a6   : > { %6045 = vmatpush.msrb.mxu2 %v17215_v7 }
 0x7a7   : > { %v5763_v48 = vpop.f32.mrf.mxu3 }
 0x7ac   : > { %v5783_v36 = vpop.f32.mrf.mxu0  ;;  %v5852_v39 = vpop.f32.mrf.mxu2 }
 0x7ad   : > { %v5784_v10 = vadd.f32 %v5783_v36, %v5760_v34  ;;  %v17192_v36 = vld [vmem:[%s17502_s8 + $0x70] sm:$0xff]  ;;  %v17198_v34 = vld [vmem:[%s17502_s8 + $0x68] sm:$0xff] }
 0x7ae   : > { %6064 = vmatpush.msrb.mxu3 %v17192_v36 }
 0x7b0   : > { %6065 = vmatpush.msrb.mxu3 %v17198_v34 }
 0x7b4   : > { %v5806_v53 = vpop.f32.mrf.mxu1  ;;  %v5786_v18 = vpop.f32.mrf.mxu0 }
 0x7b5   : > { %v5807_v27 = vadd.f32 %v5806_v53, %v5784_v10  ;;  %v5787_v31 = vadd.f32 %v5786_v18, %v5763_v48  ;;  %v5855_v5 = vpop.f32.mrf.mxu2  ;;  %v17209_v10 = vld [vmem:[%s17502_s8 + $0x60] sm:$0xff]  ;;  %v17220_v53 = vld [vmem:[%s17502_s8 + $0x58] sm:$0xff] }
 0x7b6   : > { %6066 = vmatpush.msrb.mxu3 %v17209_v10  ;;  %v7247_v48 = vld [vmem:[%s17502_s8 + $0xc0] sm:$0xff] }
 0x7b7   : > { %v5830_v43 = vadd.f32 %v5829_v35, %v5807_v27  ;;  %v5344_v35 = vmax.f32 %v16798_v57, %v5340_v58  ;;  %v17228_v27 = vld [vmem:[%s17502_s8 + $0xc8] sm:$0xff] }
 0x7b8   : > { %6067 = vmatpush.msrb.mxu3 %v17220_v53  ;;  %6046 = vmatpush.msrb.mxu2 %v17228_v27 }
 0x7b9   : > { %v17168_v44 = vadd.f32 %v5830_v43, %v5617_v1  ;;  %v17233_v43 = vld [vmem:[%s17502_s8 + $0x50] sm:$0xff] }
 0x7ba   : > { %6068 = vmatpush.msrb.mxu3 %v17233_v43  ;;  %6047 = vmatpush.msrb.mxu2 %v7247_v48 }
 0x7bb   : > { %5937 = vrot.lane.b32.xlu0 %v17168_v44, %s8498_s26  ;;  %v5931_v18 = vmax.f32 %v5344_v35, %v17168_v44  ;;  %v17252_v44 = vld [vmem:[%s17502_s8 + $0x160] sm:$0xff] }
 0x7bc   : > { %6106 = vmatpush.msra.mxu0 %v17252_v44  ;;  %6069 = vmatpush.msrb.mxu3 %v17245_v8 }
 0x7bd   : > { %v5809_v23 = vpop.f32.mrf.mxu1 }
 0x7be   : > { %v5810_v42 = vadd.f32 %v5809_v23, %v5787_v31  ;;  %v7246_v23 = vld [vmem:[%s17502_s8 + $0xb8] sm:$0xff] }
 0x7bf   : > { %6048 = vmatpush.msrb.mxu2 %v7246_v23 }
 0x7c0   : > { %v5833_v40 = vadd.f32 %v5832_v9, %v5810_v42  ;;  %v5875_v49 = vpop.f32.mrf.mxu3  ;;  %v17260_v42 = vld [vmem:[%s17502_s8 + $0x40] sm:$0xff]  ;;  %v17266_v9 = vld [vmem:[%s17502_s8 + $0x158] sm:$0xff] }
 0x7c1   : > { %v5876_v45 = vadd.f32 %v5875_v49, %v5852_v39  ;;  %6107 = vmatpush.msra.mxu0 %v17266_v9  ;;  %v5959_v49 = vld [vmem:[%s17501_s7] sm:$0xff]  ;;  %6070 = vmatpush.msrb.mxu3 %v17260_v42  ;;  %v7244_v39 = vld [vmem:[%s17502_s8 + $0xa8] sm:$0xff] }
 0x7c2   : > { %v5929_v56 = vadd.f32 %v5833_v40, %v5620_v30  ;;  %v17272_v30 = vld [vmem:[%s17502_s8 + $0x150] sm:$0xff] }
 0x7c3   : > { %6108 = vmatpush.msra.mxu0 %v17272_v30  ;;  %6071 = vmatpush.msrb.mxu3 %v17285_v13 }
 0x7c4   : > { %5941 = vrot.lane.b32.xlu1 %v5929_v56, %s8498_s26  ;;  %v5932_v59 = vmax.f32 %v5345_v12, %v5929_v56  ;;  %v7245_v56 = vld [vmem:[%s17502_s8 + $0xb0] sm:$0xff]  ;;  %v7257_v12 = vld [vmem:[%s17502_s8 + $0x100] sm:$0xff] }
 0x7c5   : > { %6049 = vmatpush.msrb.mxu2 %v7245_v56  ;;  %6072 = vmatpush.msrb.mxu3 %v17294_v20 }
 0x7c7   : > { %6050 = vmatpush.msrb.mxu2 %v7244_v39  ;;  %6073 = vmatpush.msrb.mxu3 %v6006_v33 }
 0x7c8   : > { %v5878_v32 = vpop.f32.mrf.mxu3 }
 0x7c9   : > { %v5879_v62 = vadd.f32 %v5878_v32, %v5855_v5  ;;  %v6004_v32 = vld [vmem:[%s17502_s8 + $0x18] sm:$0xff]  ;;  %6074 = vmatpush.msrb.mxu3 %v6005_v17  ;;  %v6003_v5 = vld [vmem:[%s17502_s8 + $0x10] sm:$0xff] }
 0x7cb   : > { %6075 = vmatpush.msrb.mxu3 %v6004_v32 }
 0x7cc   : > { %v5898_v61 = vpop.f32.mrf.mxu0 }
 0x7cd   : > { %v5899_v63 = vadd.f32 %v5898_v61, %v5876_v45  ;;  %v5921_v29 = vpop.f32.mrf.mxu1  ;;  %v7266_v45 = vld [vmem:[%s17502_s8 + $0x148] sm:$0xff]  ;;  %v7243_v61 = vld [vmem:[%s17502_s8 + $0xa0] sm:$0xff]  ;;  %6076 = vmatpush.msrb.mxu3 %v6003_v5 }
 0x7ce   : > { %6109 = vmatpush.msra.mxu0 %v7266_v45  ;;  %6051 = vmatpush.msrb.mxu2 %v7243_v61 }
 0x7cf   : > { %v5922_v24 = vadd.f32 %v5921_v29, %v5899_v63  ;;  %v7265_v63 = vld [vmem:[%s17502_s8 + $0x140] sm:$0xff]  ;;  %v7242_v29 = vld [vmem:[%s17502_s8 + $0x98] sm:$0xff] }
 0x7d0   : > { %6110 = vmatpush.msra.mxu0 %v7265_v63  ;;  %6052 = vmatpush.msrb.mxu2 %v7242_v29 }
 0x7d1   : > { %v5928_v28 = vadd.f32 %v5922_v24, %v5709_v55  ;;  %v7241_v55 = vld [vmem:[%s17502_s8 + $0x90] sm:$0xff]  ;;  %v5960_v24 = vld [vmem:[%s17501_s7 + $0x8] sm:$0xff] }
 0x7d2   : > { %6053 = vmatpush.msrb.mxu2 %v7241_v55 }
 0x7d3   : > { %5939 = vrot.lane.b32.xlu1 %v5928_v28, %s8498_s26  ;;  %v7240_v28 = vld [vmem:[%s17502_s8 + $0x88] sm:$0xff] }
 0x7d4   : > { %v5901_v60 = vpop.f32.mrf.mxu0  ;;  %6054 = vmatpush.msrb.mxu2 %v7240_v28 }
 0x7d5   : > { %v5902_v54 = vadd.f32 %v5901_v60, %v5879_v62  ;;  %v5924_v38 = vpop.f32.mrf.mxu1  ;;  %v6002_v62 = vld [vmem:[%s17502_s8 + $0x8] sm:$0xff]  ;;  %v7238_v60 = vld [vmem:[%s17502_s8 + $0x78] sm:$0xff] }
 0x7d6   : > { %6055 = vmatpush.msrb.mxu2 %v7239_v19  ;;  %6077 = vmatpush.msrb.mxu3 %v6002_v62 }
 0x7d7   : > { %v5925_v52 = vadd.f32 %v5924_v38, %v5902_v54  ;;  %v6001_v54 = vld [vmem:[%s17502_s8] sm:$0xff]  ;;  %v5961_v38 = vld [vmem:[%s17501_s7 + $0x10] sm:$0xff] }
 0x7d8   : > { %6056 = vmatpush.msrb.mxu2 %v7238_v60  ;;  %6078 = vmatpush.msrb.mxu3 %v6001_v54 }
 0x7d9   : > { %v5930_v46 = vadd.f32 %v5925_v52, %v5712_v16  ;;  %v7264_v16 = vld [vmem:[%s17502_s8 + $0x138] sm:$0xff]  ;;  %v7263_v52 = vld [vmem:[%s17502_s8 + $0x130] sm:$0xff] }
 0x7da   : > { %6152 = vmatpush.msra.mxu2 %v17192_v36  ;;  %6175 = vmatpush.msra.mxu3 %v17252_v44 }
 0x7db   : > { %5943 = vrot.lane.b32.xlu2 %v5930_v46, %s8498_s26  ;;  %6111 = vmatpush.msra.mxu0 %v7264_v16  ;;  %v7262_v46 = vld [vmem:[%s17502_s8 + $0x128] sm:$0xff]  ;;  %s8500_s26 = smov 60  }
 0x7dc   : > { %6153 = vmatpush.msra.mxu2 %v17198_v34  ;;  %6176 = vmatpush.msra.mxu3 %v17266_v9 }
 0x7dd   : > { %6112 = vmatpush.msra.mxu0 %v7263_v52 }
 0x7de   : > { %6154 = vmatpush.msra.mxu2 %v17209_v10  ;;  %6177 = vmatpush.msra.mxu3 %v17272_v30 }
 0x7df   : > { %6113 = vmatpush.msra.mxu0 %v7262_v46 }
 0x7e0   : > { %6155 = vmatpush.msra.mxu2 %v17220_v53  ;;  %6178 = vmatpush.msra.mxu3 %v7266_v45  ;;  %v6247_v45 = vld [vmem:[%s17504_s10 + $0x48] sm:$0xff] }
 0x7e1   : > { %6114 = vmatpush.msra.mxu0 %v7261_v41 }
 0x7e2   : > { %6156 = vmatpush.msra.mxu2 %v17233_v43  ;;  %6179 = vmatpush.msra.mxu3 %v7265_v63  ;;  %v6244_v63 = vld [vmem:[%s17504_s10 + $0x30] sm:$0xff] }
 0x7e3   : > { %6115 = vmatpush.msra.mxu0 %v7260_v25 }
 0x7e4   : > { %6157 = vmatpush.msra.mxu2 %v17245_v8  ;;  %6180 = vmatpush.msra.mxu3 %v7264_v16 }
 0x7e5   : > { %6116 = vmatpush.msra.mxu0 %v7259_v51 }
 0x7e6   : > { %6158 = vmatpush.msra.mxu2 %v17260_v42  ;;  %6181 = vmatpush.msra.mxu3 %v7263_v52 }
 0x7e7   : > { %6117 = vmatpush.msra.mxu0 %v7258_v37 }
 0x7e8   : > { %6159 = vmatpush.msra.mxu2 %v17285_v13  ;;  %6182 = vmatpush.msra.mxu3 %v7262_v46  ;;  %v6250_v13 = vld [vmem:[%s17504_s10 + $0x60] sm:$0xff] }
 0x7e9   : > { %6118 = vmatpush.msra.mxu0 %v7257_v12 }
 0x7ea   : > { %6160 = vmatpush.msra.mxu2 %v17294_v20  ;;  %6183 = vmatpush.msra.mxu3 %v7261_v41  ;;  %v6248_v20 = vld [vmem:[%s17504_s10 + $0x50] sm:$0xff] }
 0x7ec   : > { %6161 = vmatpush.msra.mxu2 %v6006_v33  ;;  %6184 = vmatpush.msra.mxu3 %v7260_v25  ;;  %v6245_v33 = vld [vmem:[%s17504_s10 + $0x38] sm:$0xff]  ;;  %v6279_v25 = vld [vmem:[%s17506_s12 + $0x8] sm:$0x7f] }
 0x7ee   : > { %6162 = vmatpush.msra.mxu2 %v6005_v17  ;;  %6185 = vmatpush.msra.mxu3 %v7259_v51  ;;  %v6242_v17 = vld [vmem:[%s17504_s10 + $0x20] sm:$0xff] }
 0x7ef   : > { %v6278_v51 = vld [vmem:[%s17506_s12] sm:$0xff] }
 0x7f0   : > { %6163 = vmatpush.msra.mxu2 %v6004_v32  ;;  %6186 = vmatpush.msra.mxu3 %v7258_v37  ;;  %v6239_v32 = vld [vmem:[%s17504_s10 + $0x8] sm:$0xff]  ;;  %v6253_v37 = vld [vmem:[%s17505_s11] sm:$0x1] }
 0x7f2   : > { %6164 = vmatpush.msra.mxu2 %v6003_v5  ;;  %6187 = vmatpush.msra.mxu3 %v7257_v12 }
 0x7f4   : > { %6165 = vmatpush.msra.mxu2 %v6002_v62 }
 0x7f6   : > { %6166 = vmatpush.msra.mxu2 %v6001_v54 }
 0x82d   : > { %v5938_v1 = vpop.permute.xlu0 %5937 }
 0x835   : > { %v5944_v6 = vpop.permute.xlu2 %5943 }
 0x836   : > { %v5942_v4 = vpop.permute.xlu1 %5941 }
 0x837   : > { %v5946_v15 = vsel %vm5339_vm4, %v5942_v4, %v5944_v6  ;;  %v7256_v6 = vld [vmem:[%s17502_s8 + $0xf8] sm:$0xff] }
 0x838   : > { %v5950_v21 = vmax.f32 %v5932_v59, %v5946_v15  ;;  %6119 = vmatpush.msra.mxu0 %v7256_v6  ;;  %6188 = vmatpush.msra.mxu3 %v7256_v6 }
 0x83a   : > { %v5956_v26 = vadd.f32 %v7331_v22, %v5950_v21 }
 0x83c   : > { %v5958_v50 = vmax.f32 %v5956_v26, 0.0 }
 0x83e   : > { %7234 = vmatpush.msk.msrb.mxu1 %vm4616_vm3, %v5958_v50 }
 0x845   : > { %v5940_v3 = vpop.permute.xlu1 %5939 }
 0x846   : > { %v5945_v57 = vsel %vm5339_vm4, %v5938_v1, %v5940_v3 }
 0x847   : > { %v5949_v31 = vmax.f32 %v5931_v18, %v5945_v57  ;;  %v7332_v57 = vld [vmem:[%s17503_s9] ss:$0 sm:$0xff] }
 0x849   : > { %v5955_v40 = vadd.f32 %v7331_v22, %v5949_v31  ;;  %v7255_v22 = vld [vmem:[%s17502_s8 + $0xf0] sm:$0xff] }
 0x84a   : > { %6120 = vmatpush.msra.mxu0 %v7255_v22  ;;  %6189 = vmatpush.msra.mxu3 %v7255_v22 }
 0x84b   : > { %v5957_v11 = vmax.f32 %v5955_v40, 0.0 }
 0x84d   : > { %5990 = vmatpush.msrb.mxu1 %v5957_v11  ;;  %v6252_v11 = vld [vmem:[%s17504_s10 + $0x70] sm:$0xff] }
 0x84e   : > { %7235 = vmatmul.msk.f32.vlgmr.msrb.gmra.mxu1 %vm5962_vm5, %v5959_v49  ;;  %v6251_v49 = vld [vmem:[%s17504_s10 + $0x68] sm:$0xff]  ;;  %6258 = vmatpush.msrb.mxu0 %v6252_v11 }
 0x84f   : > { %6132 = vmatpush.msra.mxu1 %v7252_v0 }
 0x850   : > { %6259 = vmatpush.msrb.mxu0 %v6251_v49 }
 0x851   : > { %6133 = vmatpush.msra.mxu1 %v7251_v47 }
 0x852   : > { %6260 = vmatpush.msrb.mxu0 %v6250_v13 }
 0x853   : > { %6134 = vmatpush.msra.mxu1 %v17204_v14 }
 0x855   : > { %6135 = vmatpush.msra.mxu1 %v17215_v7 }
 0x856   : > { %7236 = vmatmul.msk.f32.gmra.mxu1 %vm5962_vm5, %v5960_v24  ;;  %v6240_v24 = vld [vmem:[%s17504_s10 + $0x10] sm:$0xff] }
 0x857   : > { %6136 = vmatpush.msra.mxu1 %v17228_v27 }
 0x859   : > { %6137 = vmatpush.msra.mxu1 %v7247_v48 }
 0x85b   : > { %6138 = vmatpush.msra.mxu1 %v7246_v23 }
 0x85d   : > { %6139 = vmatpush.msra.mxu1 %v7245_v56 }
 0x85e   : > { %7237 = vmatmul.msk.f32.gmra.mxu1 %vm5962_vm5, %v5961_v38 }
 0x85f   : > { %6140 = vmatpush.msra.mxu1 %v7244_v39  ;;  %v6249_v39 = vld [vmem:[%s17504_s10 + $0x58] sm:$0xff] }
 0x860   : > { %6261 = vmatpush.msrb.mxu0 %v6249_v39 }
 0x861   : > { %6141 = vmatpush.msra.mxu1 %v7243_v61  ;;  %v6246_v61 = vld [vmem:[%s17504_s10 + $0x40] sm:$0xff] }
 0x862   : > { %6262 = vmatpush.msrb.mxu0 %v6248_v20 }
 0x863   : > { %6142 = vmatpush.msra.mxu1 %v7242_v29  ;;  %v6243_v29 = vld [vmem:[%s17504_s10 + $0x28] sm:$0xff] }
 0x864   : > { %6263 = vmatpush.msrb.mxu0 %v6247_v45 }
 0x865   : > { %6143 = vmatpush.msra.mxu1 %v7241_v55  ;;  %v6241_v55 = vld [vmem:[%s17504_s10 + $0x18] sm:$0xff] }
 0x866   : > { %6264 = vmatpush.msrb.mxu0 %v6246_v61 }
 0x867   : > { %6144 = vmatpush.msra.mxu1 %v7240_v28  ;;  %v6238_v28 = vld [vmem:[%s17504_s10] sm:$0xff] }
 0x868   : > { %6265 = vmatpush.msrb.mxu0 %v6245_v33 }
 0x869   : > { %6145 = vmatpush.msra.mxu1 %v7239_v19 }
 0x86a   : > { %6266 = vmatpush.msrb.mxu0 %v6244_v63 }
 0x86b   : > { %6146 = vmatpush.msra.mxu1 %v7238_v60 }
 0x86c   : > { %6267 = vmatpush.msrb.mxu0 %v6243_v29 }
 0x86d   : > { %7275 = vmatpush.msk.msrb.mxu1 %vm6285_vm13, %v6279_v25 }
 0x86e   : > { %6268 = vmatpush.msrb.mxu0 %v6242_v17 }
 0x86f   : > { %6304 = vmatpush.msrb.mxu1 %v6278_v51 }
 0x870   : > { %6269 = vmatpush.msrb.mxu0 %v6241_v55 }
 0x872   : > { %6270 = vmatpush.msrb.mxu0 %v6240_v24 }
 0x874   : > { %6271 = vmatpush.msrb.mxu0 %v6239_v32 }
 0x876   : > { %6272 = vmatpush.msrb.mxu0 %v6238_v28 }
 0x8cb   : > { %v5992_v4 = vpop.f32.mrf.mxu1 }
 0x8cc   : > { %7254 = vmatmul.msk.f32.vlgmr.msrb.gmra.mxu3 %vm6038_vm6, %v5992_v4  ;;  %v6035_v15 = vrot.slane %v5992_v4, 6  ;;  %v6280_v4 = vld [vmem:[%s17507_s13] sm:$0x1] }
 0x8d3   : > { %v5995_v59 = vpop.f32.mrf.mxu1 }
 0x8d4   : > { %v6036_v21 = vrot.slane %v5995_v59, 6  ;;  %v6100_v2 = vrot.slane %v5995_v59, 4 }
 0x8d6   : > { %v6037_v26 = vsel %vm6034_vm7, %v6035_v15, %v6036_v21 }
 0x8d7   : > { %7253 = vmatmul.msk.f32.vlgmr.msrb.gmra.mxu2 %vm6038_vm6, %v6037_v26 }
 0x8db   : > { %v5998_v50 = vpop.f32.mrf.mxu1 }
 0x8dc   : > { %v6101_v0 = vrot.slane %v5998_v50, 4  ;;  %v6171_v47 = vrot.slane %v5998_v50, 2 }
 0x8de   : > { %v6102_v36 = vsel %vm4616_vm3, %v6100_v2, %v6101_v0  ;;  %7273 = vmatmul.msk.f32.vlgmr.msra.gmra.mxu3 %vm6038_vm6, %v6171_v47 }
 0x8df   : > { %7270 = vmatmul.msk.f32.vlgmr.msra.gmra.mxu0 %vm6038_vm6, %v6102_v36  ;;  %7271 = vmatmul.msk.f32.vlgmr.msra.gmra.mxu1 %vm6038_vm6, %v6102_v36 }
 0x8e0   : > { %7272 = vmatmul.msk.f32.vlgmr.msra.gmra.mxu2 %vm6038_vm6, %v6037_v26 }
 0x94f   : > { %v6080_v34 = vpop.f32.mrf.mxu3 }
 0x95a   : > { %v6058_v58 = vpop.f32.mrf.mxu2 }
 0x95b   : > { %v6081_v14 = vadd.f32 %v6080_v34, %v6058_v58 }
 0x95c   : > { %v6122_v10 = vpop.f32.mrf.mxu0  ;;  %v6148_v53 = vpop.f32.mrf.mxu1 }
 0x95d   : > { %v6125_v7 = vadd.f32 %v6122_v10, %v6081_v14 }
 0x95f   : > { %6127 = vrot.lane.b32.xlu2 %v6125_v7, %s8499_s0 }
 0x961   : > { %v6191_v27 = vpop.f32.mrf.mxu3 }
 0x963   : > { %v6168_v35 = vpop.f32.mrf.mxu2 }
 0x964   : > { %v6169_v43 = vadd.f32 %v6168_v35, %v6148_v53 }
 0x966   : > { %v6194_v1 = vadd.f32 %v6191_v27, %v6169_v43 }
 0x968   : > { %6197 = vrot.lane.b32.xlu0 %v6194_v1, %s8499_s0 }
 0x9b9   : > { %v6128_v3 = vpop.permute.xlu2 %6127 }
 0x9ba   : > { %v6130_v18 = vmax.f32 %v6125_v7, %v6128_v3 }
 0x9bc   : > { %v6195_v48 = vmax.f32 %v6130_v18, %v6194_v1 }
 0x9da   : > { %v6198_v8 = vpop.permute.xlu0 %6197 }
 0x9db   : > { %v6200_v31 = vmax.f32 %v6195_v48, %v6198_v8 }
 0x9dd   : > { %v6205_v44 = vadd.f32 %v7332_v57, %v6200_v31 }
 0x9df   : > { %v6206_v23 = vmax.f32 %v6205_v44, 0.0 }
 0x9e1   : > { %v6216_v42 = vrot.slane %v6206_v23, 3  ;;  %v6212_v9 = vrot.slane %v6206_v23, 2  ;;  %v6208_v40 = vrot.slane %v6206_v23, 1  ;;  %v6224_v30 = vrot.slane %v6206_v23, 5 }
 0x9e2   : > { %v6220_v56 = vrot.slane %v6206_v23, 4 }
 0x9e3   : > { %6217 = vrot.lane.b32.xlu0 %v6216_v42, %s8500_s26  ;;  %6213 = vrot.lane.b32.xlu2 %v6212_v9, %s8501_s18  ;;  %s8453_s26 = scalar_lea.hbm %s17508_s14, 2 }
 0x9e4   : > { %6209 = vrot.lane.b32.xlu1 %v6208_v40, %s8502_s21  ;;  %s6339_s21 = scalar_lea.hbm %s17508_s14, %s8601_s17  ;;  %s6331_s17 = scalar_lea.sflag [#allocation3], %s461_s22 }
 0x9e5   : > { %s6343_s27 = sshll.u32 %s6339_s21, 4  ;;  %s6344_s27 = int_to_ptr.hbm [resolvable:$true] %s6343_s27 }
 0x9e6   : > { %s8447_s28 = sshra.s32 %s6344_s27, 4  ;;  %s8448_s28 = int_to_ptr.hbm [resolvable:$true] %s8447_s28 }
 0x9e7   : > { %s8449_s20 = scalar_lea.hbm %s8448_s28, 1  ;;  %p8454_p0 = scmp.lt.s32.totalorder %s8448_s28, %s17508_s14 }
 0x9e8   : > { %p8450_p11 = scmp.ne.s32.totalorder %s8448_s28, %s8449_s20  ;;  %p8455_p1 = scmp.lt.s32.totalorder %s8453_s26, %s8449_s20 }
 0x9ea   : > { %p8451_p12 = pnand %p8450_p11, %p8618_p5  ;;  %p8456_p2 = por %p8455_p1, %p8454_p0 }
 0x9eb   : > { %6225 = vrot.lane.b32.xlu2 %v6224_v30, %s8503_s25  ;;  %s462_s25 = scalar_lea.vmem [#allocation2], %s461_s22 }
 0x9ec   : > { %6221 = vrot.lane.b32.xlu1 %v6220_v56, %s8504_s1  ;;  %s6341_s1 = sshll.u32 %s462_s25, 4  ;;  %p8452_p13 = pneg %p8451_p12  ;;  %s6342_s1 = int_to_ptr.vmem [resolvable:$true] %s6341_s1 }
 0x9ee   : > { %p8457_p3 = pnand %p8456_p2, %p8452_p13 }
 0xa3d   : > { %v6214_v5 = vpop.permute.xlu2 %6213 }
 0xa45   : > { %v6226_v52 = vpop.permute.xlu2 %6225 }
 0xa55   : > { %v6218_v54 = vpop.permute.xlu0 %6217 }
 0xa56   : > { %v6210_v19 = vpop.permute.xlu1 %6209 }
 0xa57   : > { %v6229_v62 = vsel %vm6228_vm8, %v6206_v23, %v6210_v19 }
 0xa58   : > { %v6231_v60 = vsel %vm6230_vm9, %v6229_v62, %v6214_v5 }
 0xa59   : > { %v6233_v38 = vsel %vm6232_vm10, %v6231_v60, %v6218_v54 }
 0xa5e   : > { %v6222_v16 = vpop.permute.xlu1 %6221 }
 0xa5f   : > { %v6235_v46 = vsel %vm6234_vm11, %v6233_v38, %v6222_v16 }
 0xa60   : > { %v6237_v41 = vsel %vm6236_vm12, %v6235_v46, %v6226_v52 }
 0xa61   : > { %7274 = vmatmul.msk.f32.vlgmr.msrb.gmra.mxu0 %vm6038_vm6, %v6237_v41 }
 0xade   : > { %v6274_v12 = vpop.f32.mrf.mxu0 }
 0xadf   : > { %v6275_v6 = vadd.f32 %v6274_v12, %v6253_v37 }
 0xae1   : > { %v6277_v22 = vmax.f32 %v6275_v6, 0.0 }
 0xae3   : > { %7276 = vmatmul.msk.f32.vlgmr.msrb.gmra.mxu1 %vm6281_vm14, %v6277_v22 }
 0xb60   : > { %v6306_v59 = vpop.f32.mrf.mxu1 }
 0xb61   : > { %v6307_v15 = vadd.f32 %v6306_v59, %v6280_v4 }
 0xb63   : > { %v7277_v21 = vmul.f32 -1.442695, %v6307_v15 }
 0xb65   : > { %7333 = vpow2.f32 %v7277_v21 }
 0xb6b   : > { %v7334_v26 = vpop.eup %7333 }
 0xb6c   : > { %v6312_v50 = vadd.f32 1.0, %v7334_v26 }
 0xb6e   : > { %7335 = vrcp.f32 %v6312_v50  ;;  %v6324_v36 = vand.u32 2147483648, %v6312_v50  ;;  %v6322_v58 = vand.u32 2147483647, %v6312_v50  ;;  %vm6318_vm0 = vweird.f32 %v6312_v50 }
 0xb70   : > { %v6325_v10 = vor.u32 1.1754944e-38, %v6324_v36  ;;  %vm6323_vm3 = vcmp.eq.f32.partialorder %v6322_v58, 8.507059e+37 }
 0xb74   : > { %v7336_v2 = vpop.eup %7335 }
 0xb75   : > { %v6314_v0 = vmul.f32 %v7336_v2, %v6312_v50  ;;  %vm6319_vm15 = vweird.f32 %v7336_v2 }
 0xb76   : > { %vm6320_vm1 = vmor %vm6318_vm0, %vm6319_vm15 }
 0xb77   : > { %v6315_v47 = vsub.f32 1.0, %v6314_v0 }
 0xb79   : > { %v6316_v34 = vmul.f32 %v7336_v2, %v6315_v47 }
 0xb7b   : > { %v6317_v14 = vadd.f32 %v7336_v2, %v6316_v34 }
 0xb7d   : > { %v6321_v7 = vsel %vm6320_vm1, %v7336_v2, %v6317_v14 }
 0xb7e   : > { %v6326_v53 = vsel %vm6323_vm3, %v6325_v10, %v6321_v7 }
 0xb7f   : > { %6329 = vst.msk [vmem:[%s462_s25] sm:$0x1] %vm6328_vm2, %v6326_v53 }
 0xb80   : > { %8460 = shalt.err (!%p8457_p3)
}
 0xb81   : > { %7284 = dma.vmem_to_hbm [thread:$0]  (%p8618_p5), %s6342_s1, 16, %s6344_s27, %s6331_s17  }
 0xb82 PF: > { %p7290_p4 = scmp.ge.s32.totalorder %s8495_s16, 2  ;;  %s6355_s22 = sand.u32 1, %s8483_s29  }
 0xb83   : > { %s6356_s25 = scalar_lea.sflag [#allocation3], %s6355_s22 }
 0xb84   : > { %p7287_p7 = pnand %p7290_p4, %p8622_p6 }
 0xb86   : > { %p7288_p8 = pneg %p7287_p7 }
 0xb88   : > { %8478 = dma.done.wait (%p7288_p8), %s6356_s25, 16  }
 0xb89   : > { %8480 = vsyncadd (%p7288_p8), %s6356_s25, 4294967280  ;;  %s17809_s28 = sld [smem:[#allocation5_spill]]  ;;  %p24_p9 = scmp.ge.s32.totalorder %s8605_s19, 4  }
 0xb8a   : > { %s17810_s15 = sld [smem:[#allocation6_spill]]  ;;  %s17811_s29 = smov %s8487_s30 }
 0xb8b   : > { %s17813_s16 = smov %s8605_s19  ;;  %26 = sbr.rel (!%p24_p9) target bundleno = 6 (0x6), region = 117 }
 0xb8f   : > { %s17812_s30 = smov %s17809_s28 }
 0xb90   :  { %6361 = vsyncpa [#allocation3], 1 }
 0xb91   :  { %6363 = vsyncpa [#allocation3 + $0x1], 1 }

</bundles_post_ra>
